<compile_context>
chip_gen: v6e
topology: v6e:2x2x1
jax: 0.10.0
libtpu: 0.0.40
codegen_flags: <defaults>
</compile_context>

<pallas_src>
import functools

import numpy as np

import jax
import jax.numpy as jnp
from jax.experimental import pallas as pl
from jax.experimental.pallas import tpu as pltpu


def _silu(x):
    return x * jax.nn.sigmoid(x)


def _round_up(v, m):
    return (v + m - 1) // m * m


def _c1_kernel(xp_ref, mask_ref, w1_ref, b1_ref, w3_ref, b3_ref,
               o_ref, zbuf_ref, *, H, W, c2, n, base, total_rows):
    """One batch element per grid step; flat padded-pixel-row x channel layout.

    xp_ref  : (1, M, c1)          width-padded input pixels (M = H*(W+2)), NHWC
    mask_ref: (M, 1)              1.0 on real pixels, 0.0 on left/right pad cols
    w1_ref  : (c1, c2)            1x1 conv weight with BN scale folded in
    b1_ref  : (1, c2)             folded-BN bias of cv1
    w3_ref  : (n, 3, 3*c2, c2)    3x3 weights (BN scale folded), kx taps on K
    b3_ref  : (n, 1, c2)          folded-BN bias per 3x3 layer
    o_ref   : (1, M, c2)          output (width-padded; wrapper drops pad cols)
    zbuf_ref: (total_rows, 3*c2)  shift-replicated activation buffer:
                                  zbuf[r, b*c2:(b+1)*c2] == act at padded pixel
                                  row (r + b - 1 - out0)
    """
    Wp = W + 2
    M = H * Wp
    out0 = base + Wp                       # zbuf row of padded pixel (1, 0)
    C3 = 3 * c2

    # Zero ONLY the border strips (top pad rows / bottom pad rows + guards).
    # The interior rows of all three column blocks are fully overwritten below.
    head = out0 + 1
    zbuf_ref[pl.ds(0, head), :] = jnp.zeros((head, C3), jnp.float32)
    tail0 = out0 + M - 1
    tail = total_rows - tail0
    zbuf_ref[pl.ds(tail0, tail), :] = jnp.zeros((tail, C3), jnp.float32)

    valid = mask_ref[...] > 0.5            # (M, 1): real pixel vs. pad column

    def store_replicas(z):
        # Three shifted copies -> every 3x3 LHS is later a plain 2-D slice.
        zbuf_ref[pl.ds(out0 + 1, M), pl.ds(0, c2)] = z          # shift -1
        zbuf_ref[pl.ds(out0,     M), pl.ds(c2, c2)] = z         # shift  0 (aligned)
        zbuf_ref[pl.ds(out0 - 1, M), pl.ds(2 * c2, c2)] = z     # shift +1

    # ---- cv1: 1x1 conv == channel matmul (BN scale pre-folded), bias, SiLU ---
    xp = xp_ref[0].astype(jnp.float32)                              # (M, c1)
    y = jnp.dot(xp, w1_ref[...], preferred_element_type=jnp.float32)
    y = _silu(y + b1_ref[...])                                      # (M, c2)
    y = jnp.where(valid, y, 0.0)                                    # pad cols = 0
    store_replicas(y)

    # ---- self.m: n x (3x3 conv + folded BN + SiLU) ---------------------------
    z = y
    for layer in range(n):                                          # n static -> unrolled
        b3l = b3_ref[layer]                                         # (1, c2)
        acc = None
        for ky in range(3):                                         # 3 matmuls, K = 3*c2
            row0 = out0 + (ky - 1) * Wp
            lhs = zbuf_ref[pl.ds(row0, M), :]                       # (M, 3*c2) pure slice
            part = jnp.dot(lhs, w3_ref[layer, ky],
                           preferred_element_type=jnp.float32)
            acc = part if acc is None else acc + part               # init from 1st matmul
        z = _silu(acc + b3l)
        if layer + 1 < n:                                           # feed next 3x3 layer
            z = jnp.where(valid, z, 0.0)
            store_replicas(z)

    o_ref[0] = (z + y).astype(o_ref.dtype)                          # residual


def c1_forward_nhwc(x_nhwc, params):
    """C1 forward, channels-last. x: (N, H, W, c1) -> (N, H, W, c2)."""
    w1, s1, b1, w3, s3, b3 = params
    N, H, W, c1 = x_nhwc.shape
    c2 = w1.shape[1]
    n = w3.shape[0]
    Wp = W + 2
    M = H * Wp

    # base chosen so the interior offset (base + Wp) is sublane (8) aligned.
    base = (-Wp) % 8
    total_rows = _round_up(base + (H + 2) * Wp, 8)

    # Width-pad once (zero pad columns) and flatten pixels -> (N, M, c1).
    xp = jnp.pad(x_nhwc.astype(jnp.float32),
                 ((0, 0), (0, 0), (1, 1), (0, 0))).reshape(N, M, c1)

    # Valid-column mask (constant, computed host-side; avoids in-kernel mod/iota).
    col = np.arange(M) % Wp
    mask = jnp.asarray(((col >= 1) & (col <= W)).astype(np.float32)[:, None])

    # Fold BN scales into the conv weights host-side; only biases go in-kernel.
    w1f = (w1 * s1[None, :]).astype(jnp.float32)                     # (c1, c2)
    b1r = b1.reshape(1, c2).astype(jnp.float32)
    # 3x3 weights: (n, 9, c2, c2) tap-major -> (n, 3, 3*c2, c2): kx taps on K.
    w3f = (w3 * s3[:, None, None, :]).reshape(n, 3, 3 * c2, c2).astype(jnp.float32)
    b3r = b3.reshape(n, 1, c2).astype(jnp.float32)

    kernel = functools.partial(_c1_kernel, H=H, W=W, c2=c2, n=n,
                               base=base, total_rows=total_rows)
    bc2 = lambda b: (0, 0)
    out = pl.pallas_call(
        kernel,
        out_shape=jax.ShapeDtypeStruct((N, M, c2), x_nhwc.dtype),
        grid_spec=pltpu.PrefetchScalarGridSpec(
            num_scalar_prefetch=0,
            grid=(N,),
            in_specs=[
                pl.BlockSpec((1, M, c1), lambda b: (b, 0, 0)),
                pl.BlockSpec((M, 1), bc2),
                pl.BlockSpec((c1, c2), bc2),
                pl.BlockSpec((1, c2), bc2),
                pl.BlockSpec((n, 3, 3 * c2, c2), lambda b: (0, 0, 0, 0)),
                pl.BlockSpec((n, 1, c2), lambda b: (0, 0, 0)),
            ],
            out_specs=pl.BlockSpec((1, M, c2), lambda b: (b, 0, 0)),
            scratch_shapes=[pltpu.VMEM((total_rows, 3 * c2), jnp.float32)],
        ),
        compiler_params=pltpu.CompilerParams(
            dimension_semantics=("parallel",),        # batch shards across TCs (v7x)
            vmem_limit_bytes=64 * 1024 * 1024,
        ),
    )(xp, mask, w1f, b1r, w3f, b3r)

    # Drop the pad columns (kept in-kernel so every slice/store stays contiguous).
    return out.reshape(N, H, Wp, c2)[:, :, 1:W + 1, :]


def c1_forward(x_nchw, params):
    """PyTorch-layout wrapper: (N, c1, H, W) -> (N, c2, H, W)."""
    x = jnp.transpose(x_nchw, (0, 2, 3, 1))          # NCHW -> NHWC
    out = c1_forward_nhwc(x, params)
    return jnp.transpose(out, (0, 3, 1, 2))          # NHWC -> NCHW


def init_params(key, c1, c2, n, eps=1e-3):
    """Deterministic synthetic params; BN(eval) folded into scale/bias."""
    def bn_fold(k, c):
        kg, kb, km, kv = jax.random.split(k, 4)
        gamma = 1.0 + 0.1 * jax.random.normal(kg, (c,), jnp.float32)
        beta = 0.1 * jax.random.normal(kb, (c,), jnp.float32)
        mean = 0.05 * jax.random.normal(km, (c,), jnp.float32)
        var = 1.0 + 0.1 * jnp.abs(jax.random.normal(kv, (c,), jnp.float32))
        scale = gamma / jnp.sqrt(var + eps)
        bias = beta - mean * scale
        return scale, bias

    ks = jax.random.split(key, 1 + n)
    kw1, kbn1 = jax.random.split(ks[0])
    w1 = jax.random.normal(kw1, (c1, c2), jnp.float32) / np.sqrt(c1)
    s1, b1 = bn_fold(kbn1, c2)

    w3s, s3s, b3s = [], [], []
    for i in range(n):
        kw, kbn = jax.random.split(ks[1 + i])
        w3s.append(jax.random.normal(kw, (9, c2, c2), jnp.float32) / np.sqrt(9 * c2))
        s, b = bn_fold(kbn, c2)
        s3s.append(s)
        b3s.append(b)

    return (w1, s1, b1, jnp.stack(w3s), jnp.stack(s3s), jnp.stack(b3s))


def reference_forward(x_nchw, params):
    """Plain-JAX reference with identical math (for verification)."""
    w1, s1, b1, w3, s3, b3 = params
    N, c1, H, W = x_nchw.shape
    c2 = w1.shape[1]
    n = w3.shape[0]
    x = jnp.transpose(x_nchw, (0, 2, 3, 1)).astype(jnp.float32)
    y = jnp.einsum('nhwc,cd->nhwd', x, w1, precision='highest') * s1 + b1
    y = _silu(y)
    z = y
    for layer in range(n):
        zp = jnp.pad(z, ((0, 0), (1, 1), (1, 1), (0, 0)))
        acc = jnp.zeros((N, H, W, c2), jnp.float32)
        for ky in range(3):
            for kx in range(3):
                acc = acc + jnp.einsum('nhwc,cd->nhwd',
                                       zp[:, ky:ky + H, kx:kx + W, :],
                                       w3[layer, ky * 3 + kx],
                                       precision='highest')
        z = _silu(acc * s3[layer] + b3[layer])
    return jnp.transpose(z + y, (0, 3, 1, 2))


if __name__ == "__main__":
    key = jax.random.PRNGKey(0)
    kx_, kp = jax.random.split(key)

    # Small shapes, but c2 chosen as a multiple of 128 so the channel (lane)
    # dimension is dense and matmuls/stores use full vregs.
    N, c1, c2, n, H, W = 2, 32, 128, 2, 16, 16
    x = jax.random.normal(kx_, (N, c1, H, W), jnp.float32)
    params = init_params(kp, c1, c2, n)

    out = jax.block_until_ready(c1_forward(x, params))

    ref = reference_forward(x, params)
    err = float(jnp.max(jnp.abs(out - ref)))
    scale = max(float(jnp.max(jnp.abs(ref))), 1.0)
    assert out.shape == (N, c2, H, W), out.shape
    assert err < 1e-2 * scale, f"max abs error too large: {err} (scale {scale})"
    print("KERNEL_OK")
</pallas_src>

<mosaic_0001>
module attributes {stable_mosaic.version = 11 : i64} {
  func.func @_c1_kernel(%arg0: i32, %arg1: memref<1x288x32xf32, #tpu.memory_space<vmem>>, %arg2: memref<288x1xf32, #tpu.memory_space<vmem>>, %arg3: memref<32x128xf32, #tpu.memory_space<vmem>>, %arg4: memref<1x128xf32, #tpu.memory_space<vmem>>, %arg5: memref<2x3x384x128xf32, #tpu.memory_space<vmem>>, %arg6: memref<2x1x128xf32, #tpu.memory_space<vmem>>, %arg7: memref<1x288x128xf32, #tpu.memory_space<vmem>>, %arg8: memref<336x384xf32, #tpu.memory_space<vmem>>) attributes {dimension_semantics = [#tpu.dimension_semantics<parallel>], iteration_bounds = array<i64: 2>, scalar_prefetch = 0 : i64, scratch_operands = 1 : i64, tpu.core_type = #tpu.core_type<tc>, window_params = [{transform_indices = @transform_0, window_bounds = array<i64: 1, 288, 32>}, {pipeline_mode = #tpu.pipeline_mode<synchronous>, transform_indices = @transform_1, window_bounds = array<i64: 288, 1>}, {pipeline_mode = #tpu.pipeline_mode<synchronous>, transform_indices = @transform_2, window_bounds = array<i64: 32, 128>}, {pipeline_mode = #tpu.pipeline_mode<synchronous>, transform_indices = @transform_3, window_bounds = array<i64: 1, 128>}, {pipeline_mode = #tpu.pipeline_mode<synchronous>, transform_indices = @transform_4, window_bounds = array<i64: 2, 3, 384, 128>}, {pipeline_mode = #tpu.pipeline_mode<synchronous>, transform_indices = @transform_5, window_bounds = array<i64: 2, 1, 128>}, {transform_indices = @transform_6, window_bounds = array<i64: 1, 288, 128>}]} {
    %cst = arith.constant 0.000000e+00 : f32
    %0 = vector.broadcast %cst : f32 to vector<25x384xf32>
    %c0 = arith.constant 0 : index
    %c0_0 = arith.constant 0 : index
    %1 = vector.load %arg8[%c0, %c0_0] : memref<336x384xf32, #tpu.memory_space<vmem>>, vector<25x384xf32>
    tpu.vector_store %arg8[%c0, %c0_0], %0 {strides = array<i32>} : memref<336x384xf32, #tpu.memory_space<vmem>>, vector<25x384xf32>,
    %cst_1 = arith.constant 0.000000e+00 : f32
    %2 = vector.broadcast %cst_1 : f32 to vector<25x384xf32>
    %c311 = arith.constant 311 : index
    %c0_2 = arith.constant 0 : index
    %3 = vector.load %arg8[%c311, %c0_2] : memref<336x384xf32, #tpu.memory_space<vmem>>, vector<25x384xf32>
    tpu.vector_store %arg8[%c311, %c0_2], %2 {strides = array<i32>} : memref<336x384xf32, #tpu.memory_space<vmem>>, vector<25x384xf32>,
    %c0_3 = arith.constant 0 : index
    %c0_4 = arith.constant 0 : index
    %4 = vector.load %arg2[%c0_3, %c0_4] : memref<288x1xf32, #tpu.memory_space<vmem>>, vector<288x1xf32>
    %cst_5 = arith.constant 5.000000e-01 : f32
    %5 = vector.broadcast %cst_5 : f32 to vector<288x1xf32>
    %6 = arith.cmpf ogt, %4, %5 : vector<288x1xf32>
    %c0_6 = arith.constant 0 : index
    %c0_7 = arith.constant 0 : index
    %c0_8 = arith.constant 0 : index
    %7 = vector.load %arg1[%c0_6, %c0_7, %c0_8] : memref<1x288x32xf32, #tpu.memory_space<vmem>>, vector<1x288x32xf32>
    %8 = vector.shape_cast %7 : vector<1x288x32xf32> to vector<288x32xf32>
    %c0_9 = arith.constant 0 : index
    %c0_10 = arith.constant 0 : index
    %9 = vector.load %arg3[%c0_9, %c0_10] : memref<32x128xf32, #tpu.memory_space<vmem>>, vector<32x128xf32>
    %cst_11 = arith.constant dense<0.000000e+00> : vector<288x128xf32>
    %10 = tpu.matmul %8, %9, %cst_11 {dimension_numbers = #tpu.dot_dimension_numbers<[1], [0], [0], [1], [0, 0, 1, 1], [], []>} : vector<288x32xf32>, vector<32x128xf32>, vector<288x128xf32> -> vector<288x128xf32>
    %c0_12 = arith.constant 0 : index
    %c0_13 = arith.constant 0 : index
    %11 = vector.load %arg4[%c0_12, %c0_13] : memref<1x128xf32, #tpu.memory_space<vmem>>, vector<1x128xf32>
    %12 = vector.broadcast %11 : vector<1x128xf32> to vector<288x128xf32>
    %13 = arith.addf %10, %12 : vector<288x128xf32>
    %14 = arith.negf %13 : vector<288x128xf32>
    %15 = math.exp %14 : vector<288x128xf32>
    %cst_14 = arith.constant 1.000000e+00 : f32
    %16 = vector.broadcast %cst_14 : f32 to vector<288x128xf32>
    %17 = arith.addf %16, %15 : vector<288x128xf32>
    %18 = arith.divf %16, %17 : vector<288x128xf32>
    %19 = arith.mulf %13, %18 : vector<288x128xf32>
    %cst_15 = arith.constant 0.000000e+00 : f32
    %20 = vector.shape_cast %6 : vector<288x1xi1> to vector<288x1xi1>
    %21 = vector.broadcast %20 : vector<288x1xi1> to vector<288x128xi1>
    %22 = vector.broadcast %cst_15 : f32 to vector<288x128xf32>
    %23 = arith.select %21, %19, %22 : vector<288x128xi1>, vector<288x128xf32>
    %c25 = arith.constant 25 : index
    %c0_16 = arith.constant 0 : index
    %24 = vector.load %arg8[%c25, %c0_16] : memref<336x384xf32, #tpu.memory_space<vmem>>, vector<288x128xf32>
    tpu.vector_store %arg8[%c25, %c0_16], %23 {strides = array<i32>} : memref<336x384xf32, #tpu.memory_space<vmem>>, vector<288x128xf32>,
    %c24 = arith.constant 24 : index
    %c128 = arith.constant 128 : index
    %25 = vector.load %arg8[%c24, %c128] : memref<336x384xf32, #tpu.memory_space<vmem>>, vector<288x128xf32>
    tpu.vector_store %arg8[%c24, %c128], %23 {strides = array<i32>} : memref<336x384xf32, #tpu.memory_space<vmem>>, vector<288x128xf32>,
    %c23 = arith.constant 23 : index
    %c256 = arith.constant 256 : index
    %26 = vector.load %arg8[%c23, %c256] : memref<336x384xf32, #tpu.memory_space<vmem>>, vector<288x128xf32>
    tpu.vector_store %arg8[%c23, %c256], %23 {strides = array<i32>} : memref<336x384xf32, #tpu.memory_space<vmem>>, vector<288x128xf32>,
    %c0_17 = arith.constant 0 : index
    %c0_18 = arith.constant 0 : index
    %c0_19 = arith.constant 0 : index
    %27 = vector.load %arg6[%c0_17, %c0_18, %c0_19] : memref<2x1x128xf32, #tpu.memory_space<vmem>>, vector<1x1x128xf32>
    %28 = vector.shape_cast %27 : vector<1x1x128xf32> to vector<1x128xf32>
    %c6 = arith.constant 6 : index
    %c0_20 = arith.constant 0 : index
    %29 = vector.load %arg8[%c6, %c0_20] : memref<336x384xf32, #tpu.memory_space<vmem>>, vector<288x384xf32>
    %c0_21 = arith.constant 0 : index
    %c0_22 = arith.constant 0 : index
    %c0_23 = arith.constant 0 : index
    %c0_24 = arith.constant 0 : index
    %30 = vector.load %arg5[%c0_21, %c0_22, %c0_23, %c0_24] : memref<2x3x384x128xf32, #tpu.memory_space<vmem>>, vector<1x1x384x128xf32>
    %31 = vector.shape_cast %30 : vector<1x1x384x128xf32> to vector<384x128xf32>
    %cst_25 = arith.constant dense<0.000000e+00> : vector<288x128xf32>
    %32 = tpu.matmul %29, %31, %cst_25 {dimension_numbers = #tpu.dot_dimension_numbers<[1], [0], [0], [1], [0, 0, 1, 1], [], []>} : vector<288x384xf32>, vector<384x128xf32>, vector<288x128xf32> -> vector<288x128xf32>
    %c24_26 = arith.constant 24 : index
    %c0_27 = arith.constant 0 : index
    %33 = vector.load %arg8[%c24_26, %c0_27] : memref<336x384xf32, #tpu.memory_space<vmem>>, vector<288x384xf32>
    %c0_28 = arith.constant 0 : index
    %c1 = arith.constant 1 : index
    %c0_29 = arith.constant 0 : index
    %c0_30 = arith.constant 0 : index
    %34 = vector.load %arg5[%c0_28, %c1, %c0_29, %c0_30] : memref<2x3x384x128xf32, #tpu.memory_space<vmem>>, vector<1x1x384x128xf32>
    %35 = vector.shape_cast %34 : vector<1x1x384x128xf32> to vector<384x128xf32>
    %cst_31 = arith.constant dense<0.000000e+00> : vector<288x128xf32>
    %36 = tpu.matmul %33, %35, %cst_31 {dimension_numbers = #tpu.dot_dimension_numbers<[1], [0], [0], [1], [0, 0, 1, 1], [], []>} : vector<288x384xf32>, vector<384x128xf32>, vector<288x128xf32> -> vector<288x128xf32>
    %37 = arith.addf %32, %36 : vector<288x128xf32>
    %c42 = arith.constant 42 : index
    %c0_32 = arith.constant 0 : index
    %38 = vector.load %arg8[%c42, %c0_32] : memref<336x384xf32, #tpu.memory_space<vmem>>, vector<288x384xf32>
    %c0_33 = arith.constant 0 : index
    %c2 = arith.constant 2 : index
    %c0_34 = arith.constant 0 : index
    %c0_35 = arith.constant 0 : index
    %39 = vector.load %arg5[%c0_33, %c2, %c0_34, %c0_35] : memref<2x3x384x128xf32, #tpu.memory_space<vmem>>, vector<1x1x384x128xf32>
    %40 = vector.shape_cast %39 : vector<1x1x384x128xf32> to vector<384x128xf32>
    %cst_36 = arith.constant dense<0.000000e+00> : vector<288x128xf32>
    %41 = tpu.matmul %38, %40, %cst_36 {dimension_numbers = #tpu.dot_dimension_numbers<[1], [0], [0], [1], [0, 0, 1, 1], [], []>} : vector<288x384xf32>, vector<384x128xf32>, vector<288x128xf32> -> vector<288x128xf32>
    %42 = arith.addf %37, %41 : vector<288x128xf32>
    %43 = vector.broadcast %28 : vector<1x128xf32> to vector<288x128xf32>
    %44 = arith.addf %42, %43 : vector<288x128xf32>
    %45 = arith.negf %44 : vector<288x128xf32>
    %46 = math.exp %45 : vector<288x128xf32>
    %cst_37 = arith.constant 1.000000e+00 : f32
    %47 = vector.broadcast %cst_37 : f32 to vector<288x128xf32>
    %48 = arith.addf %47, %46 : vector<288x128xf32>
    %49 = arith.divf %47, %48 : vector<288x128xf32>
    %50 = arith.mulf %44, %49 : vector<288x128xf32>
    %cst_38 = arith.constant 0.000000e+00 : f32
    %51 = vector.shape_cast %6 : vector<288x1xi1> to vector<288x1xi1>
    %52 = vector.broadcast %51 : vector<288x1xi1> to vector<288x128xi1>
    %53 = vector.broadcast %cst_38 : f32 to vector<288x128xf32>
    %54 = arith.select %52, %50, %53 : vector<288x128xi1>, vector<288x128xf32>
    %c25_39 = arith.constant 25 : index
    %c0_40 = arith.constant 0 : index
    %55 = vector.load %arg8[%c25_39, %c0_40] : memref<336x384xf32, #tpu.memory_space<vmem>>, vector<288x128xf32>
    tpu.vector_store %arg8[%c25_39, %c0_40], %54 {strides = array<i32>} : memref<336x384xf32, #tpu.memory_space<vmem>>, vector<288x128xf32>,
    %c24_41 = arith.constant 24 : index
    %c128_42 = arith.constant 128 : index
    %56 = vector.load %arg8[%c24_41, %c128_42] : memref<336x384xf32, #tpu.memory_space<vmem>>, vector<288x128xf32>
    tpu.vector_store %arg8[%c24_41, %c128_42], %54 {strides = array<i32>} : memref<336x384xf32, #tpu.memory_space<vmem>>, vector<288x128xf32>,
    %c23_43 = arith.constant 23 : index
    %c256_44 = arith.constant 256 : index
    %57 = vector.load %arg8[%c23_43, %c256_44] : memref<336x384xf32, #tpu.memory_space<vmem>>, vector<288x128xf32>
    tpu.vector_store %arg8[%c23_43, %c256_44], %54 {strides = array<i32>} : memref<336x384xf32, #tpu.memory_space<vmem>>, vector<288x128xf32>,
    %c1_45 = arith.constant 1 : index
    %c0_46 = arith.constant 0 : index
    %c0_47 = arith.constant 0 : index
    %58 = vector.load %arg6[%c1_45, %c0_46, %c0_47] : memref<2x1x128xf32, #tpu.memory_space<vmem>>, vector<1x1x128xf32>
    %59 = vector.shape_cast %58 : vector<1x1x128xf32> to vector<1x128xf32>
    %c6_48 = arith.constant 6 : index
    %c0_49 = arith.constant 0 : index
    %60 = vector.load %arg8[%c6_48, %c0_49] : memref<336x384xf32, #tpu.memory_space<vmem>>, vector<288x384xf32>
    %c1_50 = arith.constant 1 : index
    %c0_51 = arith.constant 0 : index
    %c0_52 = arith.constant 0 : index
    %c0_53 = arith.constant 0 : index
    %61 = vector.load %arg5[%c1_50, %c0_51, %c0_52, %c0_53] : memref<2x3x384x128xf32, #tpu.memory_space<vmem>>, vector<1x1x384x128xf32>
    %62 = vector.shape_cast %61 : vector<1x1x384x128xf32> to vector<384x128xf32>
    %cst_54 = arith.constant dense<0.000000e+00> : vector<288x128xf32>
    %63 = tpu.matmul %60, %62, %cst_54 {dimension_numbers = #tpu.dot_dimension_numbers<[1], [0], [0], [1], [0, 0, 1, 1], [], []>} : vector<288x384xf32>, vector<384x128xf32>, vector<288x128xf32> -> vector<288x128xf32>
    %c24_55 = arith.constant 24 : index
    %c0_56 = arith.constant 0 : index
    %64 = vector.load %arg8[%c24_55, %c0_56] : memref<336x384xf32, #tpu.memory_space<vmem>>, vector<288x384xf32>
    %c1_57 = arith.constant 1 : index
    %c1_58 = arith.constant 1 : index
    %c0_59 = arith.constant 0 : index
    %c0_60 = arith.constant 0 : index
    %65 = vector.load %arg5[%c1_57, %c1_58, %c0_59, %c0_60] : memref<2x3x384x128xf32, #tpu.memory_space<vmem>>, vector<1x1x384x128xf32>
    %66 = vector.shape_cast %65 : vector<1x1x384x128xf32> to vector<384x128xf32>
    %cst_61 = arith.constant dense<0.000000e+00> : vector<288x128xf32>
    %67 = tpu.matmul %64, %66, %cst_61 {dimension_numbers = #tpu.dot_dimension_numbers<[1], [0], [0], [1], [0, 0, 1, 1], [], []>} : vector<288x384xf32>, vector<384x128xf32>, vector<288x128xf32> -> vector<288x128xf32>
    %68 = arith.addf %63, %67 : vector<288x128xf32>
    %c42_62 = arith.constant 42 : index
    %c0_63 = arith.constant 0 : index
    %69 = vector.load %arg8[%c42_62, %c0_63] : memref<336x384xf32, #tpu.memory_space<vmem>>, vector<288x384xf32>
    %c1_64 = arith.constant 1 : index
    %c2_65 = arith.constant 2 : index
    %c0_66 = arith.constant 0 : index
    %c0_67 = arith.constant 0 : index
    %70 = vector.load %arg5[%c1_64, %c2_65, %c0_66, %c0_67] : memref<2x3x384x128xf32, #tpu.memory_space<vmem>>, vector<1x1x384x128xf32>
    %71 = vector.shape_cast %70 : vector<1x1x384x128xf32> to vector<384x128xf32>
    %cst_68 = arith.constant dense<0.000000e+00> : vector<288x128xf32>
    %72 = tpu.matmul %69, %71, %cst_68 {dimension_numbers = #tpu.dot_dimension_numbers<[1], [0], [0], [1], [0, 0, 1, 1], [], []>} : vector<288x384xf32>, vector<384x128xf32>, vector<288x128xf32> -> vector<288x128xf32>
    %73 = arith.addf %68, %72 : vector<288x128xf32>
    %74 = vector.broadcast %59 : vector<1x128xf32> to vector<288x128xf32>
    %75 = arith.addf %73, %74 : vector<288x128xf32>
    %76 = arith.negf %75 : vector<288x128xf32>
    %77 = math.exp %76 : vector<288x128xf32>
    %cst_69 = arith.constant 1.000000e+00 : f32
    %78 = vector.broadcast %cst_69 : f32 to vector<288x128xf32>
    %79 = arith.addf %78, %77 : vector<288x128xf32>
    %80 = arith.divf %78, %79 : vector<288x128xf32>
    %81 = arith.mulf %75, %80 : vector<288x128xf32>
    %82 = arith.addf %81, %23 : vector<288x128xf32>
    %c0_70 = arith.constant 0 : index
    %c0_71 = arith.constant 0 : index
    %c0_72 = arith.constant 0 : index
    %83 = vector.load %arg7[%c0_70, %c0_71, %c0_72] : memref<1x288x128xf32, #tpu.memory_space<vmem>>, vector<1x288x128xf32>
    %84 = vector.shape_cast %83 : vector<1x288x128xf32> to vector<288x128xf32>
    %85 = vector.shape_cast %82 : vector<288x128xf32> to vector<1x288x128xf32>
    tpu.vector_store %arg7[%c0_70, %c0_71, %c0_72], %85 {strides = array<i32>} : memref<1x288x128xf32, #tpu.memory_space<vmem>>, vector<1x288x128xf32>,
    return
  }
  func.func @transform_0(%arg0: i32) -> (i32, i32, i32) {
    %c0_i32 = arith.constant 0 : i32
    %c0_i32_0 = arith.constant 0 : i32
    %c0_i32_1 = arith.constant 0 : i32
    return %arg0, %c0_i32, %c0_i32_0 : i32, i32, i32
  }
  func.func @transform_1(%arg0: i32) -> (i32, i32) {
    %c0_i32 = arith.constant 0 : i32
    %c0_i32_0 = arith.constant 0 : i32
    %c0_i32_1 = arith.constant 0 : i32
    return %c0_i32, %c0_i32_0 : i32, i32
  }
  func.func @transform_2(%arg0: i32) -> (i32, i32) {
    %c0_i32 = arith.constant 0 : i32
    %c0_i32_0 = arith.constant 0 : i32
    %c0_i32_1 = arith.constant 0 : i32
    return %c0_i32, %c0_i32_0 : i32, i32
  }
  func.func @transform_3(%arg0: i32) -> (i32, i32) {
    %c0_i32 = arith.constant 0 : i32
    %c0_i32_0 = arith.constant 0 : i32
    %c0_i32_1 = arith.constant 0 : i32
    return %c0_i32, %c0_i32_0 : i32, i32
  }
  func.func @transform_4(%arg0: i32) -> (i32, i32, i32, i32) {
    %c0_i32 = arith.constant 0 : i32
    %c0_i32_0 = arith.constant 0 : i32
    %c0_i32_1 = arith.constant 0 : i32
    %c0_i32_2 = arith.constant 0 : i32
    %c0_i32_3 = arith.constant 0 : i32
    return %c0_i32, %c0_i32_0, %c0_i32_1, %c0_i32_2 : i32, i32, i32, i32
  }
  func.func @transform_5(%arg0: i32) -> (i32, i32, i32) {
    %c0_i32 = arith.constant 0 : i32
    %c0_i32_0 = arith.constant 0 : i32
    %c0_i32_1 = arith.constant 0 : i32
    %c0_i32_2 = arith.constant 0 : i32
    return %c0_i32, %c0_i32_0, %c0_i32_1 : i32, i32, i32
  }
  func.func @transform_6(%arg0: i32) -> (i32, i32, i32) {
    %c0_i32 = arith.constant 0 : i32
    %c0_i32_0 = arith.constant 0 : i32
    %c0_i32_1 = arith.constant 0 : i32
    return %arg0, %c0_i32, %c0_i32_0 : i32, i32, i32
  }
}

</mosaic_0001>

<bundles_post_ra>
// kernel: tpu_custom_call.1
= control target key start
LH: loop header
LB: loop body
LE: loop exit
PB: predicated region body
PF: predicated region fallthrough
CT: control target
= control target key end

     0   :  { %11 = vsyncpa [#allocation4], 0  ;;  %s15415_s0 = inlined_call_operand.vmem [shape: f32[2,288,32], index: 0, kind: input, shape index: {}]   ;;  %s15416_s1 = inlined_call_operand.vmem [shape: f32[288,1], index: 1, kind: input, shape index: {}]   ;;  %s15417_s2 = inlined_call_operand.hbm [shape: f32[32,128], index: 2, kind: input, shape index: {}]   ;;  %s15418_s3 = inlined_call_operand.hbm [shape: f32[1,128], index: 3, kind: input, shape index: {}]   ;;  %s15419_s4 = inlined_call_operand.hbm [shape: f32[2,3,384,128], index: 4, kind: input, shape index: {}]   ;;  %s15420_s5 = inlined_call_operand.hbm [shape: f32[2,1,128], index: 5, kind: input, shape index: {}]   ;;  %s15421_s6 = inlined_call_operand.hbm [shape: f32[2,288,128], index: 6, kind: output, shape index: {}]  }
   0x1   :  { %12 = vsyncpa [#allocation7], 0 }
   0x2   :  { %13 = vsyncpa [#allocation10], 0 }
   0x3   :  { %14 = vsyncpa [#allocation5], 0 }
   0x4   :  { %16 = vsyncpa [#allocation5 + $0x1], 0  ;;  %s10324_s21 = smov 0   ;;  %s10326_s22 = smov 0  }
   0x5   :  { %s10328_s23 = smov 0   ;;  %s10330_s24 = smov 0  }
   0x6 LB: > { %s10345_s25 = sadd.s32 4294967295, %s10274_s24   ;;  %s8335_s26 = sadd.s32 4294967294, %s10274_s24   ;;  %s10274_s24 = sphi %s10330_s24, %s16580_s24   ;;  %s10270_s23 = sphi %s10328_s23, %s16579_s23   ;;  %s10266_s22 = sphi %s10326_s22, %s16578_s22   ;;  %s10262_s21 = sphi %s10324_s21, %s16577_s21  }
   0x7   : > { %s10349_s27 = sadd.s32 1, %s10274_s24   ;;  %s160_s28 = sadd.s32 1, %s10270_s23 }
   0x8   : > { %s157_s29 = ssub.s32 %s10274_s24, %s10349_s27  ;;  %p170_p0 = scmp.ne.s32.totalorder %s10270_s23, %s10266_s22 }
   0x9   : > { %p158_p1 = scmp.eq.s32.totalorder %s157_s29, 0  ;;  %p171_p2 = scmp.eq.s32.totalorder %s10345_s25, 1 }
   0xa   : > { %p176_p3 = scmp.ne.s32.totalorder %s10266_s22, %s10262_s21  ;;  %p177_p4 = scmp.eq.s32.totalorder %s8335_s26, 1 }
   0xb   : > { %s10360_s30 = scalar_select %p158_p1, %s10270_s23, %s160_s28  }
   0xc   : > { %p10362_p5 = por %p171_p2, %p170_p0  ;;  %p10366_p6 = por %p177_p4, %p176_p3 }
   0xd   : > { %p8336_p7 = scmp.ge.s32.totalorder %s10274_s24, 1  ;;  %p184_p8 = scmp.lt.s32.totalorder %s10274_s24, 3 }
   0xe   : > { %p15422_p9 = scmp.eq.s32.totalorder %s10345_s25, 0  ;;  %s10276_s10 = smov [#allocation6]  }
   0xf   : > { %p10373_p10 = pnand %p8336_p7, %p184_p8  ;;  %s213_s11 = sshll.u32 %s10276_s10, 4  ;;  %s214_s11 = int_to_ptr.vmem [resolvable:$true] %s213_s11 }
  0x10   : > { %s10277_s12 = smov [#allocation3]   ;;  %s10278_s15 = smov [#allocation8]  }
  0x11   : > { %p9489_p11 = pneg %p10373_p10  ;;  %s199_s13 = sshll.u32 %s10277_s12, 4  ;;  %s10385_s13 = int_to_ptr.vmem [resolvable:$true] %s199_s13 }
  0x12   : > { %s223_s16 = sshll.u32 %s10278_s15, 4  ;;  %s10109_s17 = scalar_lea.vmem %s214_s11, 16  ;;  %s224_s16 = int_to_ptr.vmem [resolvable:$true] %s223_s16 }
  0x13   : > { %p10381_p12 = pnand %p15422_p9, %p9489_p11  ;;  %p10110_p0 = scmp.ne.s32.totalorder %s214_s11, %s10109_s17 }
  0x14   : > { %s10116_s18 = scalar_lea.vmem %s214_s11, 32  ;;  %p10117_p3 = scmp.lt.s32.totalorder %s214_s11, %s214_s11 }
  0x15   : > { %p10100_p13 = pneg %p10381_p12  ;;  %p10118_p4 = scmp.lt.s32.totalorder %s10116_s18, %s10109_s17 }
  0x17   : > { %p10112_p1 = pnand %p10110_p0, %p10100_p13  ;;  %p10119_p7 = por %p10118_p4, %p10117_p3 }
  0x19   : > { %p10113_p2 = pneg %p10112_p1 }
  0x1b   : > { %p10120_p8 = pnand %p10119_p7, %p10113_p2 }
  0x1d   : > { %10123 = shalt.err (!%p10120_p8)
}
  0x1e   : > { %9495 = dma.hbm_to_vmem [thread:$0]  (!%p10381_p12), %s15418_s3, 16, %s214_s11, [#allocation7]  }
  0x1f   : > { %s10135_s26 = scalar_lea.vmem %s10385_s13, 512  ;;  %p10143_p3 = scmp.lt.s32.totalorder %s10385_s13, %s10385_s13 }
  0x20   : > { %p10136_p11 = scmp.ne.s32.totalorder %s10385_s13, %s10135_s26  ;;  %p10144_p2 = scmp.lt.s32.totalorder %s10135_s26, %s10135_s26 }
  0x22   : > { %p10138_p0 = pnand %p10136_p11, %p10100_p13  ;;  %p10145_p4 = por %p10144_p2, %p10143_p3 }
  0x24   : > { %p10139_p1 = pneg %p10138_p0 }
  0x26   : > { %p10146_p7 = pnand %p10145_p4, %p10139_p1 }
  0x28   : > { %10149 = shalt.err (!%p10146_p7)
}
  0x29   : > { %s10279_s28 = smov 128   ;;  %s10280_s29 = smov 8  }
  0x2a   : > { %9492 = dma.hbm_to_vmem [thread:$0]  (!%p10381_p12), %s15417_s2, 512, %s10385_s13, [#allocation4], %s10279_s28, %s10279_s28, %s10280_s29  }
  0x2b   : > { %s10161_s12 = scalar_lea.vmem %s224_s16, 36864  ;;  %p10169_p3 = scmp.lt.s32.totalorder %s224_s16, %s224_s16 }
  0x2c   : > { %p10162_p8 = scmp.ne.s32.totalorder %s224_s16, %s10161_s12  ;;  %p10170_p1 = scmp.lt.s32.totalorder %s10161_s12, %s10161_s12 }
  0x2e   : > { %p10164_p11 = pnand %p10162_p8, %p10100_p13  ;;  %p10171_p2 = por %p10170_p1, %p10169_p3 }
  0x30   : > { %p10165_p0 = pneg %p10164_p11 }
  0x32   : > { %p10172_p4 = pnand %p10171_p2, %p10165_p0 }
  0x34   : > { %10175 = shalt.err (!%p10172_p4)
}
  0x35   : > { %9498 = dma.hbm_to_vmem [thread:$0]  (!%p10381_p12), %s15419_s4, 36864, %s224_s16, [#allocation7], %s10279_s28, %s10279_s28, %s10280_s29  }
  0x36   : > { %s10281_s13 = smov [#allocation9]  }
  0x37   : > { %s236_s18 = sshll.u32 %s10281_s13, 4  ;;  %s237_s18 = int_to_ptr.vmem [resolvable:$true] %s236_s18 }
  0x38   : > { %s10187_s19 = scalar_lea.vmem %s237_s18, 32  ;;  %p10195_p9 = scmp.lt.s32.totalorder %s237_s18, %s237_s18 }
  0x39   : > { %p10188_p7 = scmp.ne.s32.totalorder %s237_s18, %s10187_s19  ;;  %p10196_p3 = scmp.lt.s32.totalorder %s10187_s19, %s10187_s19 }
  0x3b   : > { %p10190_p8 = pnand %p10188_p7, %p10100_p13  ;;  %p10197_p0 = por %p10196_p3, %p10195_p9 }
  0x3d   : > { %p10191_p11 = pneg %p10190_p8 }
  0x3f   : > { %p10198_p1 = pnand %p10197_p0, %p10191_p11 }
  0x41   : > { %10201 = shalt.err (!%p10198_p1)
}
  0x42   : > { %s10282_s20 = smov 16   ;;  %s10283_s26 = smov 1  }
  0x43   : > { %9501 = dma.hbm_to_vmem [thread:$0]  (!%p10381_p12), %s15420_s5, 32, %s237_s18, [#allocation10], %s10282_s20, %s10282_s20, %s10283_s26  }
  0x44   : > { %260 = sbr.rel (%p10373_p10) target bundleno = 1520 (0x5f0), region = 44 }
  0x49   : > { %p15703_p2 = scmp.eq.s32.totalorder %s10345_s25, 0 }
  0x4b   : > { %10245 = dma.done.wait (%p15703_p2), [#allocation4], 512   ;;  %p15704_p13 = pmov %p15703_p2 }
  0x4c   : > { %p15705_p9 = pmov %p15703_p2 }
  0x4d   : > { %10247 = vsyncadd (%p15704_p13), [#allocation4], 4294966784 }
  0x4e   : > { %10249 = dma.done.wait (%p15705_p9), [#allocation7], 36880   ;;  %p15706_p4 = pmov %p15703_p2 }
  0x4f   : > { %p15707_p7 = pmov %p15703_p2 }
  0x50   : > { %10251 = vsyncadd (%p15706_p4), [#allocation7], 4294930416 }
  0x51   : > { %10253 = dma.done.wait (%p15707_p7), [#allocation10], 32   ;;  %p15708_p12 = pmov %p15703_p2 }
  0x52   : > { %p302_p10 = scmp.lt.s32.totalorder %s10345_s25, 1  ;;  %v10284_v0 = vmov 0   ;;  %v442_v1 = vld [vmem:[#allocation3 + $0x18] sm:$0xff]  ;;  %v441_v2 = vld [vmem:[#allocation3 + $0x10] sm:$0xff]  ;;  %v440_v3 = vld [vmem:[#allocation3 + $0x8] sm:$0xff]  ;;  %vm450_vm0 = vcmask 261120  }
  0x53   : > { %10255 = vsyncadd (%p15708_p12), [#allocation10], 4294967264  ;;  %9559 = vset.pattern.permute.xlu0 %v10284_v0  ;;  %9560 = vset.pattern.permute.xlu1 %v10284_v0  ;;  %v439_v4 = vld [vmem:[#allocation3] sm:$0xff]  ;;  %v331_v16 = vld [vmem:[%s15416_s1] sm:$0xff]  ;;  %v10285_v61 = vmov 0.0   ;;  %s299_s29 = sand.u32 1, %s10266_s22  }
  0x54   : > { %s303_s9 = scalar_select %p302_p10, %s10345_s25, 1  ;;  %8850 = vmatprep.subr.mxu0 %v442_v1  ;;  %9428 = vmatprep.subr.mxu1 %v442_v1  ;;  %v333_v17 = vld [vmem:[%s15416_s1 + $0x10] sm:$0xff]  ;;  %vm367_vm1 = vcmp.gt.f32.partialorder %v331_v16, 0.5  ;;  %v332_v19 = vld [vmem:[%s15416_s1 + $0x8] sm:$0xff]  ;;  %v334_v20 = vld [vmem:[%s15416_s1 + $0x18] sm:$0xff]  ;;  %307 = vst [vmem:[#allocation2 + $0x308] sm:$0xff] %v10285_v61 }
  0x55   : > { %8851 = vmatpush3.msra.mxu0 %v442_v1  ;;  %9432 = vmatpush3.msra.mxu1 %v442_v1  ;;  %vm369_vm2 = vcmp.gt.f32.partialorder %v333_v17, 0.5  ;;  %v1056_v21 = vsel %vm367_vm1, 1, %v10284_v0  ;;  %vm368_vm3 = vcmp.gt.f32.partialorder %v332_v19, 0.5  ;;  %vm370_vm4 = vcmp.gt.f32.partialorder %v334_v20, 0.5  ;;  %v335_v23 = vld [vmem:[%s15416_s1 + $0x20] sm:$0xff]  ;;  %v336_v24 = vld [vmem:[%s15416_s1 + $0x28] sm:$0xff] }
  0x56   : > { %s9469_s14 = smul.u32 288, %s303_s9  ;;  %8852 = vmatprep.subr.mxu0 %v441_v2  ;;  %9429 = vmatprep.subr.mxu1 %v441_v2  ;;  %v1058_v22 = vsel %vm369_vm2, 1, %v10284_v0  ;;  %v1057_v27 = vsel %vm368_vm3, 1, %v10284_v0  ;;  %v1059_v28 = vsel %vm370_vm4, 1, %v10284_v0  ;;  %vm371_vm5 = vcmp.gt.f32.partialorder %v335_v23, 0.5  ;;  %v337_v31 = vld [vmem:[%s15416_s1 + $0x30] sm:$0xff] }
  0x57   : > { %8853 = vmatpush3.msra.mxu0 %v441_v2  ;;  %9433 = vmatpush3.msra.mxu1 %v441_v2  ;;  %vm372_vm6 = vcmp.gt.f32.partialorder %v336_v24, 0.5  ;;  %v338_v32 = vld [vmem:[%s15416_s1 + $0x38] sm:$0xff]  ;;  %v1060_v35 = vsel %vm371_vm5, 1, %v10284_v0  ;;  %vm373_vm7 = vcmp.gt.f32.partialorder %v337_v31, 0.5  ;;  %v339_v39 = vld [vmem:[%s15416_s1 + $0x40] sm:$0xff]  ;;  %v340_v40 = vld [vmem:[%s15416_s1 + $0x48] sm:$0xff] }
  0x58   : > { %s10447_s11 = scalar_lea.vmem %s15415_s0, %s9469_s14  ;;  %8854 = vmatprep.subr.mxu0 %v440_v3  ;;  %9430 = vmatprep.subr.mxu1 %v440_v3  ;;  %v1061_v36 = vsel %vm372_vm6, 1, %v10284_v0  ;;  %vm374_vm8 = vcmp.gt.f32.partialorder %v338_v32, 0.5  ;;  %v1062_v43 = vsel %vm373_vm7, 1, %v10284_v0  ;;  %vm375_vm9 = vcmp.gt.f32.partialorder %v339_v39, 0.5  ;;  %v341_v47 = vld [vmem:[%s15416_s1 + $0x50] sm:$0xff]  ;;  %v342_v48 = vld [vmem:[%s15416_s1 + $0x58] sm:$0xff] }
  0x59   : > { %8855 = vmatpush3.msra.mxu0 %v440_v3  ;;  %9434 = vmatpush3.msra.mxu1 %v440_v3  ;;  %v403_v5 = vld [vmem:[%s10447_s11] sm:$0xff]  ;;  %v404_v7 = vld [vmem:[%s10447_s11 + $0x8] sm:$0xff]  ;;  %v405_v9 = vld [vmem:[%s10447_s11 + $0x10] sm:$0xff]  ;;  %v1063_v44 = vsel %vm374_vm8, 1, %v10284_v0  ;;  %vm376_vm10 = vcmp.gt.f32.partialorder %v340_v40, 0.5  ;;  %v1064_v51 = vsel %vm375_vm9, 1, %v10284_v0 }
  0x5a   : > { %v419_v6 = vld [vmem:[%s10447_s11 + $0x80] sm:$0xff]  ;;  %8856 = vmatprep.subr.mxu0 %v439_v4  ;;  %9431 = vmatprep.subr.mxu1 %v439_v4  ;;  %v420_v8 = vld [vmem:[%s10447_s11 + $0x88] sm:$0xff]  ;;  %v421_v10 = vld [vmem:[%s10447_s11 + $0x90] sm:$0xff]  ;;  %v1065_v52 = vsel %vm376_vm10, 1, %v10284_v0  ;;  %vm377_vm11 = vcmp.gt.f32.partialorder %v341_v47, 0.5  ;;  %vm378_vm12 = vcmp.gt.f32.partialorder %v342_v48, 0.5 }
  0x5b   : > { %8857 = vmatpush3.msra.mxu0 %v439_v4  ;;  %9435 = vmatpush3.msra.mxu1 %v439_v4  ;;  %v406_v11 = vld [vmem:[%s10447_s11 + $0x18] sm:$0xff]  ;;  %v407_v13 = vld [vmem:[%s10447_s11 + $0x20] sm:$0xff]  ;;  %v408_v15 = vld [vmem:[%s10447_s11 + $0x28] sm:$0xff]  ;;  %v1066_v59 = vsel %vm377_vm11, 1, %v10284_v0  ;;  %v1067_v60 = vsel %vm378_vm12, 1, %v10284_v0  ;;  %308 = vst [vmem:[#allocation2 + $0x2e0] sm:$0xff] %v10285_v61 }
  0x5c   : > { %8858 = vmatprep.mubr.msk.f32.mxu0 %vm450_vm0, %v403_v5  ;;  %8882 = vmatprep.mubr.msk.f32.mxu1 %vm450_vm0, %v419_v6  ;;  %v422_v12 = vld [vmem:[%s10447_s11 + $0x98] sm:$0xff]  ;;  %v423_v14 = vld [vmem:[%s10447_s11 + $0xa0] sm:$0xff]  ;;  %v424_v18 = vld [vmem:[%s10447_s11 + $0xa8] sm:$0xff]  ;;  %309 = vst [vmem:[#allocation2 + $0xa8] sm:$0xff] %v10285_v61  ;;  %s15141_s12 = smul.u32 288, %s299_s29  ;;  %s10286_s10 = smov [#allocation11]  }
  0x5d   : > { %8859 = vmatmul.mubr.msk.f32.vlgmr.msra.gmra.mxu0 %vm450_vm0, %v404_v7  ;;  %8883 = vmatmul.mubr.msk.f32.vlgmr.msra.gmra.mxu1 %vm450_vm0, %v420_v8  ;;  %v409_v25 = vld [vmem:[%s10447_s11 + $0x30] sm:$0xff]  ;;  %v410_v29 = vld [vmem:[%s10447_s11 + $0x38] sm:$0xff]  ;;  %v411_v33 = vld [vmem:[%s10447_s11 + $0x40] sm:$0xff]  ;;  %315 = vst [vmem:[#allocation2 + $0x250] sm:$0xff] %v10285_v61  ;;  %s9470_s17 = smul.u32 4608, %s10345_s25  ;;  %s15375_s25 = scalar_lea.sflag [#allocation5], %s299_s29 }
  0x5e   : > { %8861 = vmatprep.mubr.msk.f32.mxu0 %vm450_vm0, %v405_v9  ;;  %8885 = vmatprep.mubr.msk.f32.mxu1 %vm450_vm0, %v421_v10  ;;  %v425_v26 = vld [vmem:[%s10447_s11 + $0xb0] sm:$0xff]  ;;  %v426_v30 = vld [vmem:[%s10447_s11 + $0xb8] sm:$0xff]  ;;  %v427_v34 = vld [vmem:[%s10447_s11 + $0xc0] sm:$0xff]  ;;  %316 = vst [vmem:[#allocation2 + $0x150] sm:$0x1] %v10285_v61  ;;  %s15155_s15 = scalar_lea.vmem [#allocation11], %s15141_s12 }
  0x5f   : > { %1093 = vperm.xlu0 %9559, %v1056_v21   ;;  %1099 = vperm.xlu1 %9560, %v1058_v22   ;;  %v412_v37 = vld [vmem:[%s10447_s11 + $0x48] sm:$0xff]  ;;  %v413_v41 = vld [vmem:[%s10447_s11 + $0x50] sm:$0xff]  ;;  %v414_v45 = vld [vmem:[%s10447_s11 + $0x58] sm:$0xff]  ;;  %317 = vst [vmem:[#allocation2 + $0x168] sm:$0x1] %v10285_v61  ;;  %s8232_s13 = sshll.u32 %s15155_s15, 4  ;;  %s15366_s20 = scalar_lea.hbm %s15421_s6, %s9470_s17  ;;  %s15370_s13 = int_to_ptr.vmem [resolvable:$true] %s8232_s13 }
  0x60   : > { %v428_v38 = vld [vmem:[%s10447_s11 + $0xc8] sm:$0xff]  ;;  %v429_v42 = vld [vmem:[%s10447_s11 + $0xd0] sm:$0xff]  ;;  %v430_v46 = vld [vmem:[%s10447_s11 + $0xd8] sm:$0xff]  ;;  %1854 = vmatprep.subr.mxu1 %v10285_v61  ;;  %318 = vst [vmem:[#allocation2 + $0x3c8] sm:$0x1] %v10285_v61  ;;  %s10202_s26 = scalar_lea.vmem %s15370_s13, 4608 }
  0x61   : > { %8862 = vmatmul.mubr.msk.f32.gmra.mxu0 %vm450_vm0, %v406_v11  ;;  %8886 = vmatmul.mubr.msk.f32.gmra.mxu1 %vm450_vm0, %v422_v12  ;;  %v415_v49 = vld [vmem:[%s10447_s11 + $0x60] sm:$0xff]  ;;  %v416_v53 = vld [vmem:[%s10447_s11 + $0x68] sm:$0xff]  ;;  %v417_v57 = vld [vmem:[%s10447_s11 + $0x70] sm:$0xff]  ;;  %319 = vst [vmem:[#allocation2 + $0x130] sm:$0x80] %v10285_v61  ;;  %p10203_p8 = scmp.ne.s32.totalorder %s15370_s13, %s10202_s26  ;;  %s10206_s16 = sshll.u32 %s10286_s10, 4  ;;  %s10207_s16 = int_to_ptr.vmem [resolvable:$false] %s10206_s16 }
  0x62   : > { %8864 = vmatprep.mubr.msk.f32.mxu0 %vm450_vm0, %v407_v13  ;;  %8888 = vmatprep.mubr.msk.f32.mxu1 %vm450_vm0, %v423_v14  ;;  %v431_v50 = vld [vmem:[%s10447_s11 + $0xe0] sm:$0xff]  ;;  %v432_v54 = vld [vmem:[%s10447_s11 + $0xe8] sm:$0xff]  ;;  %v433_v58 = vld [vmem:[%s10447_s11 + $0xf0] sm:$0xff]  ;;  %320 = vst [vmem:[#allocation2 + $0x210] sm:$0x80] %v10285_v61  ;;  %s10208_s9 = scalar_lea.vmem %s10207_s16, 9216  ;;  %p10209_p0 = scmp.lt.s32.totalorder %s15370_s13, %s10207_s16 }
  0x63   : > { %1096 = vperm.xlu0 %9559, %v1057_v27   ;;  %1102 = vperm.xlu1 %9560, %v1059_v28   ;;  %v343_v55 = vld [vmem:[%s15416_s1 + $0x60] sm:$0xff]  ;;  %v344_v56 = vld [vmem:[%s15416_s1 + $0x68] sm:$0xff]  ;;  %321 = vst [vmem:[#allocation2 + $0x138] sm:$0x80] %v10285_v61  ;;  %322 = vst [vmem:[#allocation2 + $0x390] sm:$0xff] %v10285_v61  ;;  %p10204_p11 = pnand %p10203_p8, %p10362_p5  ;;  %p10210_p1 = scmp.lt.s32.totalorder %s10208_s9, %s10202_s26 }
  0x64   : > { %328 = vst [vmem:[#allocation2 + $0x318] sm:$0xff] %v10285_v61  ;;  %329 = vst [vmem:[#allocation2 + $0x348] sm:$0xff] %v10285_v61  ;;  %v418_v62 = vld [vmem:[%s10447_s11 + $0x78] sm:$0xff]  ;;  %vm379_vm13 = vcmp.gt.f32.partialorder %v343_v55, 0.5  ;;  %vm380_vm14 = vcmp.gt.f32.partialorder %v344_v56, 0.5  ;;  %v1821_v63 = vld [vmem:[#allocation8 + $0x1f8] sm:$0xff] }
  0x65   : > { %8865 = vmatmul.mubr.msk.f32.gmra.mxu0 %vm450_vm0, %v408_v15  ;;  %8889 = vmatmul.mubr.msk.f32.gmra.mxu1 %vm450_vm0, %v424_v18  ;;  %330 = vst [vmem:[#allocation2 + $0x258] sm:$0xff] %v10285_v61  ;;  %v434_v1 = vld [vmem:[%s10447_s11 + $0xf8] sm:$0xff]  ;;  %v345_v2 = vld [vmem:[%s15416_s1 + $0x70] sm:$0xff]  ;;  %v435_v4 = vld [vmem:[%s10447_s11 + $0x100] sm:$0xff]  ;;  %v1068_v5 = vsel %vm379_vm13, 1, %v10284_v0  ;;  %v1069_v6 = vsel %vm380_vm14, 1, %v10284_v0  ;;  %p10205_p3 = pneg %p10204_p11  ;;  %p10211_p2 = por %p10210_p1, %p10209_p0 }
  0x66   : > { %8867 = vmatprep.mubr.msk.f32.mxu0 %vm450_vm0, %v409_v25  ;;  %8891 = vmatprep.mubr.msk.f32.mxu1 %vm450_vm0, %v425_v26  ;;  %v346_v3 = vld [vmem:[%s15416_s1 + $0x78] sm:$0xff]  ;;  %vm381_vm15 = vcmp.gt.f32.partialorder %v345_v2, 0.5  ;;  %v1820_v7 = vld [vmem:[#allocation8 + $0x1f0] sm:$0xff]  ;;  %v437_v11 = vld [vmem:[%s10447_s11 + $0x110] sm:$0xff] }
  0x67   : > { %1105 = vperm.xlu0 %9559, %v1060_v35   ;;  %1108 = vperm.xlu1 %9560, %v1061_v36   ;;  %vm382_vm1 = vcmp.gt.f32.partialorder %v346_v3, 0.5  ;;  %v436_v8 = vld [vmem:[%s10447_s11 + $0x108] sm:$0xff]  ;;  %v347_v9 = vld [vmem:[%s15416_s1 + $0x80] sm:$0xff]  ;;  %v1070_v13 = vsel %vm381_vm15, 1, %v10284_v0  ;;  %v438_v15 = vld [vmem:[%s10447_s11 + $0x118] sm:$0xff]  ;;  %p10212_p13 = pnand %p10211_p2, %p10205_p3 }
  0x68   : > { %1855 = vmatpush1.msra.mxu1 %v1821_v63  ;;  %v348_v10 = vld [vmem:[%s15416_s1 + $0x88] sm:$0xff]  ;;  %v1819_v12 = vld [vmem:[#allocation8 + $0x1e8] sm:$0xff]  ;;  %v1071_v14 = vsel %vm382_vm1, 1, %v10284_v0  ;;  %vm383_vm2 = vcmp.gt.f32.partialorder %v347_v9, 0.5  ;;  %v349_v16 = vld [vmem:[%s15416_s1 + $0x90] sm:$0xff] }
  0x69   : > { %8868 = vmatmul.mubr.msk.f32.gmra.mxu0 %vm450_vm0, %v410_v29  ;;  %8892 = vmatmul.mubr.msk.f32.gmra.mxu1 %vm450_vm0, %v426_v30  ;;  %vm384_vm3 = vcmp.gt.f32.partialorder %v348_v10, 0.5  ;;  %v350_v17 = vld [vmem:[%s15416_s1 + $0x98] sm:$0xff]  ;;  %v1072_v19 = vsel %vm383_vm2, 1, %v10284_v0  ;;  %vm385_vm4 = vcmp.gt.f32.partialorder %v349_v16, 0.5  ;;  %v351_v21 = vld [vmem:[%s15416_s1 + $0xa0] sm:$0xff]  ;;  %v352_v22 = vld [vmem:[%s15416_s1 + $0xa8] sm:$0xff] }
  0x6a   : > { %8870 = vmatprep.mubr.msk.f32.mxu0 %vm450_vm0, %v411_v33  ;;  %8894 = vmatprep.mubr.msk.f32.mxu1 %vm450_vm0, %v427_v34  ;;  %v1818_v18 = vld [vmem:[#allocation8 + $0x1e0] sm:$0xff]  ;;  %v1073_v20 = vsel %vm384_vm3, 1, %v10284_v0  ;;  %vm386_vm5 = vcmp.gt.f32.partialorder %v350_v17, 0.5  ;;  %v1817_v23 = vld [vmem:[#allocation8 + $0x1d8] sm:$0xff]  ;;  %v1074_v24 = vsel %vm385_vm4, 1, %v10284_v0  ;;  %vm388_vm6 = vcmp.gt.f32.partialorder %v352_v22, 0.5 }
  0x6b   : > { %1111 = vperm.xlu0 %9559, %v1062_v43   ;;  %1114 = vperm.xlu1 %9560, %v1063_v44   ;;  %v1075_v25 = vsel %vm386_vm5, 1, %v10284_v0  ;;  %v1816_v26 = vld [vmem:[#allocation8 + $0x1d0] sm:$0xff]  ;;  %v353_v27 = vld [vmem:[%s15416_s1 + $0xb0] sm:$0xff]  ;;  %v354_v28 = vld [vmem:[%s15416_s1 + $0xb8] sm:$0xff]  ;;  %v1077_v31 = vsel %vm388_vm6, 1, %v10284_v0 }
  0x6c   : > { %1856 = vmatprep.subr.mxu1 %v10285_v61  ;;  %v1815_v29 = vld [vmem:[#allocation8 + $0x1c8] sm:$0xff]  ;;  %vm389_vm7 = vcmp.gt.f32.partialorder %v353_v27, 0.5  ;;  %vm390_vm8 = vcmp.gt.f32.partialorder %v354_v28, 0.5  ;;  %v356_v33 = vld [vmem:[%s15416_s1 + $0xc8] sm:$0xff]  ;;  %v357_v36 = vld [vmem:[%s15416_s1 + $0xd0] sm:$0xff] }
  0x6d   : > { %8871 = vmatmul.mubr.msk.f32.gmra.mxu0 %vm450_vm0, %v412_v37  ;;  %8895 = vmatmul.mubr.msk.f32.gmra.mxu1 %vm450_vm0, %v428_v38  ;;  %v355_v32 = vld [vmem:[%s15416_s1 + $0xc0] sm:$0xff]  ;;  %v1078_v34 = vsel %vm389_vm7, 1, %v10284_v0  ;;  %v1079_v35 = vsel %vm390_vm8, 1, %v10284_v0  ;;  %vm392_vm10 = vcmp.gt.f32.partialorder %v356_v33, 0.5  ;;  %v358_v37 = vld [vmem:[%s15416_s1 + $0xd8] sm:$0xff]  ;;  %vm393_vm11 = vcmp.gt.f32.partialorder %v357_v36, 0.5 }
  0x6e   : > { %8873 = vmatprep.mubr.msk.f32.mxu0 %vm450_vm0, %v413_v41  ;;  %8897 = vmatprep.mubr.msk.f32.mxu1 %vm450_vm0, %v429_v42  ;;  %vm391_vm9 = vcmp.gt.f32.partialorder %v355_v32, 0.5  ;;  %v1081_v39 = vsel %vm392_vm10, 1, %v10284_v0  ;;  %vm394_vm12 = vcmp.gt.f32.partialorder %v358_v37, 0.5  ;;  %v359_v40 = vld [vmem:[%s15416_s1 + $0xe0] sm:$0xff]  ;;  %v360_v41 = vld [vmem:[%s15416_s1 + $0xe8] sm:$0xff]  ;;  %v1082_v42 = vsel %vm393_vm11, 1, %v10284_v0 }
  0x6f   : > { %1117 = vperm.xlu0 %9559, %v1064_v51   ;;  %1120 = vperm.xlu1 %9560, %v1065_v52   ;;  %v1080_v38 = vsel %vm391_vm9, 1, %v10284_v0  ;;  %v1083_v43 = vsel %vm394_vm12, 1, %v10284_v0  ;;  %vm395_vm13 = vcmp.gt.f32.partialorder %v359_v40, 0.5  ;;  %vm396_vm14 = vcmp.gt.f32.partialorder %v360_v41, 0.5  ;;  %v361_v44 = vld [vmem:[%s15416_s1 + $0xf0] sm:$0xff]  ;;  %v363_v48 = vld [vmem:[%s15416_s1 + $0x100] sm:$0xff] }
  0x70   : > { %1857 = vmatpush1.msra.mxu1 %v1820_v7  ;;  %v1085_v47 = vsel %vm396_vm14, 1, %v10284_v0  ;;  %vm397_vm15 = vcmp.gt.f32.partialorder %v361_v44, 0.5  ;;  %vm399_vm2 = vcmp.gt.f32.partialorder %v363_v48, 0.5  ;;  %v365_v52 = vld [vmem:[%s15416_s1 + $0x110] sm:$0xff]  ;;  %v1807_v2 = vld [vmem:[#allocation8 + $0x188] sm:$0xff]  ;;  %v1848_v16 = vld [vmem:[#allocation8 + $0x2d0] sm:$0xff] }
  0x71   : > { %8874 = vmatmul.mubr.msk.f32.gmra.mxu0 %vm450_vm0, %v414_v45  ;;  %8898 = vmatmul.mubr.msk.f32.gmra.mxu1 %vm450_vm0, %v430_v46  ;;  %v362_v45 = vld [vmem:[%s15416_s1 + $0xf8] sm:$0xff]  ;;  %v1084_v46 = vsel %vm395_vm13, 1, %v10284_v0  ;;  %v1088_v55 = vsel %vm399_vm2, 1, %v10284_v0  ;;  %vm401_vm4 = vcmp.gt.f32.partialorder %v365_v52, 0.5  ;;  %v1845_v22 = vld [vmem:[#allocation8 + $0x2b8] sm:$0xff]  ;;  %vm1308_vm8 = vcmask 1040384  }
  0x72   : > { %8876 = vmatprep.mubr.msk.f32.mxu0 %vm450_vm0, %v415_v49  ;;  %8900 = vmatprep.mubr.msk.f32.mxu1 %vm450_vm0, %v431_v50  ;;  %vm398_vm1 = vcmp.gt.f32.partialorder %v362_v45, 0.5  ;;  %v364_v49 = vld [vmem:[%s15416_s1 + $0x108] sm:$0xff]  ;;  %v1086_v50 = vsel %vm397_vm15, 1, %v10284_v0  ;;  %v1810_v63 = vld [vmem:[#allocation8 + $0x1a0] sm:$0xff]  ;;  %v1835_v7 = vld [vmem:[#allocation8 + $0x268] sm:$0xff]  ;;  %vm1490_vm9 = vcmask 1046528  }
  0x73   : > { %1123 = vperm.xlu0 %9559, %v1066_v59   ;;  %1126 = vperm.xlu1 %9560, %v1067_v60   ;;  %v1087_v51 = vsel %vm398_vm1, 1, %v10284_v0  ;;  %vm400_vm3 = vcmp.gt.f32.partialorder %v364_v49, 0.5  ;;  %v1090_v59 = vsel %vm401_vm4, 1, %v10284_v0  ;;  %v1806_v3 = vld [vmem:[#allocation8 + $0x180] sm:$0xff]  ;;  %v1851_v10 = vld [vmem:[#allocation8 + $0x2e8] sm:$0xff]  ;;  %v1825_v27 = vld [vmem:[#allocation8 + $0x218] sm:$0xff] }
  0x74   : > { %1858 = vmatprep.subr.mxu1 %v10285_v61  ;;  %v1089_v56 = vsel %vm400_vm3, 1, %v10284_v0  ;;  %v1834_v9 = vld [vmem:[#allocation8 + $0x260] sm:$0xff]  ;;  %v1841_v32 = vld [vmem:[#allocation8 + $0x298] sm:$0xff]  ;;  %v1823_v33 = vld [vmem:[#allocation8 + $0x208] sm:$0xff] }
  0x75   : > { %8877 = vmatmul.mubr.msk.f32.gmra.mxu0 %vm450_vm0, %v416_v53  ;;  %8901 = vmatmul.mubr.msk.f32.gmra.mxu1 %vm450_vm0, %v432_v54  ;;  %v366_v53 = vld [vmem:[%s15416_s1 + $0x118] sm:$0xff]  ;;  %v10728_v44 = vld [vmem:[#allocation6] ss:$0 sm:$0xff] }
  0x76   : > { %8879 = vmatprep.mubr.msk.f32.mxu0 %vm450_vm0, %v417_v57  ;;  %8903 = vmatprep.mubr.msk.f32.mxu1 %vm450_vm0, %v433_v58  ;;  %v1814_v54 = vld [vmem:[#allocation8 + $0x1c0] sm:$0xff]  ;;  %v1813_v57 = vld [vmem:[#allocation8 + $0x1b8] sm:$0xff]  ;;  %vm402_vm5 = vcmp.gt.f32.partialorder %v366_v53, 0.5  ;;  %v1812_v58 = vld [vmem:[#allocation8 + $0x1b0] sm:$0xff] }
  0x77   : > { %1129 = vperm.xlu0 %9559, %v1068_v5   ;;  %1132 = vperm.xlu1 %9560, %v1069_v6   ;;  %v1091_v60 = vsel %vm402_vm5, 1, %v10284_v0  ;;  %v1836_v5 = vld [vmem:[#allocation8 + $0x270] sm:$0xff]  ;;  %v1853_v6 = vld [vmem:[#allocation8 + $0x2f8] sm:$0xff]  ;;  %v1830_v17 = vld [vmem:[#allocation8 + $0x240] sm:$0xff] }
  0x78   : > { %1859 = vmatpush1.msra.mxu1 %v1819_v12  ;;  %8912 = vmatprep.subr.mxu0 %v1853_v6  ;;  %v1850_v12 = vld [vmem:[#allocation8 + $0x2e0] sm:$0xff]  ;;  %v1839_v36 = vld [vmem:[#allocation8 + $0x288] sm:$0xff] }
  0x79   : > { %8880 = vmatmul.mubr.msk.f32.gmra.mxu0 %vm450_vm0, %v418_v62  ;;  %8904 = vmatmul.mubr.msk.f32.gmra.mxu1 %vm450_vm0, %v434_v1  ;;  %v1811_v62 = vld [vmem:[#allocation8 + $0x1a8] sm:$0xff]  ;;  %v1809_v1 = vld [vmem:[#allocation8 + $0x198] sm:$0xff]  ;;  %v1842_v28 = vld [vmem:[#allocation8 + $0x2a0] sm:$0xff] }
  0x7a   : > { %8906 = vmatprep.mubr.msk.f32.mxu1 %vm450_vm0, %v435_v4  ;;  %1860 = vmatprep.subr.mxu1 %v10285_v61  ;;  %v1837_v4 = vld [vmem:[#allocation8 + $0x278] sm:$0xff] }
  0x7b   : > { %1135 = vperm.xlu0 %9559, %v1070_v13   ;;  %1138 = vperm.xlu1 %9560, %v1071_v14   ;;  %v1832_v13 = vld [vmem:[#allocation8 + $0x250] sm:$0xff]  ;;  %v1849_v14 = vld [vmem:[#allocation8 + $0x2d8] sm:$0xff] }
  0x7c   : > { %1861 = vmatpush1.msra.mxu1 %v1818_v18  ;;  %8913 = vmatpush3.msra.mxu0 %v1853_v6  ;;  %v1847_v18 = vld [vmem:[#allocation8 + $0x2c8] sm:$0xff] }
  0x7d   : > { %8907 = vmatmul.mubr.msk.f32.gmra.mxu1 %vm450_vm0, %v436_v8  ;;  %1862 = vmatprep.subr.mxu1 %v10285_v61  ;;  %v1852_v8 = vld [vmem:[#allocation8 + $0x2f0] sm:$0xff] }
  0x7e   : > { %8909 = vmatprep.mubr.msk.f32.mxu1 %vm450_vm0, %v437_v11  ;;  %1863 = vmatpush1.msra.mxu1 %v1817_v23  ;;  %v1833_v11 = vld [vmem:[#allocation8 + $0x258] sm:$0xff]  ;;  %v1827_v23 = vld [vmem:[#allocation8 + $0x228] sm:$0xff] }
  0x7f   : > { %1141 = vperm.xlu0 %9559, %v1072_v19   ;;  %1144 = vperm.xlu1 %9560, %v1073_v20   ;;  %v1829_v19 = vld [vmem:[#allocation8 + $0x238] sm:$0xff]  ;;  %v1846_v20 = vld [vmem:[#allocation8 + $0x2c0] sm:$0xff] }
  0x80   : > { %1864 = vmatprep.subr.mxu1 %v10285_v61  ;;  %8914 = vmatprep.subr.mxu0 %v1852_v8 }
  0x81   : > { %8910 = vmatmul.mubr.msk.f32.gmra.mxu1 %vm450_vm0, %v438_v15  ;;  %vm387_vm0 = vcmp.gt.f32.partialorder %v351_v21, 0.5  ;;  %8915 = vmatpush3.msra.mxu0 %v1852_v8  ;;  %v1831_v15 = vld [vmem:[#allocation8 + $0x248] sm:$0xff]  ;;  %v1828_v21 = vld [vmem:[#allocation8 + $0x230] sm:$0xff] }
  0x82   : > { %v1076_v30 = vsel %vm387_vm0, 1, %v10284_v0  ;;  %1865 = vmatpush1.msra.mxu1 %v1816_v26  ;;  %v1808_v0 = vld [vmem:[#allocation8 + $0x190] sm:$0xff]  ;;  %8916 = vmatprep.subr.mxu0 %v1851_v10  ;;  %v1843_v26 = vld [vmem:[#allocation8 + $0x2a8] sm:$0xff] }
  0x83   : > { %1147 = vperm.xlu0 %9559, %v1074_v24   ;;  %1150 = vperm.xlu1 %9560, %v1075_v25   ;;  %v1844_v24 = vld [vmem:[#allocation8 + $0x2b0] sm:$0xff]  ;;  %v1826_v25 = vld [vmem:[#allocation8 + $0x220] sm:$0xff] }
  0x84   : > { %1866 = vmatprep.subr.mxu1 %v10285_v61  ;;  %8917 = vmatpush3.msra.mxu0 %v1851_v10 }
  0x85   : > { %1867 = vmatpush1.msra.mxu1 %v1815_v29  ;;  %8918 = vmatprep.subr.mxu0 %v1850_v12  ;;  %v1824_v29 = vld [vmem:[#allocation8 + $0x210] sm:$0xff] }
  0x86   : > { %1868 = vmatprep.subr.mxu1 %v10285_v61  ;;  %8919 = vmatpush3.msra.mxu0 %v1850_v12 }
  0x87   : > { %1153 = vperm.xlu0 %9559, %v1076_v30   ;;  %1156 = vperm.xlu1 %9560, %v1077_v31  }
  0x88   : > { %1869 = vmatpush1.msra.mxu1 %v1814_v54  ;;  %8920 = vmatprep.subr.mxu0 %v1849_v14 }
  0x89   : > { %1870 = vmatprep.subr.mxu1 %v10285_v61  ;;  %8921 = vmatpush3.msra.mxu0 %v1849_v14 }
  0x8a   : > { %1871 = vmatpush1.msra.mxu1 %v1813_v57  ;;  %8922 = vmatprep.subr.mxu0 %v1848_v16 }
  0x8b   : > { %1159 = vperm.xlu0 %9559, %v1078_v34   ;;  %1162 = vperm.xlu1 %9560, %v1079_v35   ;;  %v1840_v34 = vld [vmem:[#allocation8 + $0x290] sm:$0xff]  ;;  %v1822_v35 = vld [vmem:[#allocation8 + $0x200] sm:$0xff] }
  0x8c   : > { %1872 = vmatprep.subr.mxu1 %v10285_v61  ;;  %8923 = vmatpush3.msra.mxu0 %v1848_v16 }
  0x8d   : > { %1873 = vmatpush1.msra.mxu1 %v1812_v58  ;;  %8924 = vmatprep.subr.mxu0 %v1847_v18 }
  0x8e   : > { %1874 = vmatprep.subr.mxu1 %v10285_v61  ;;  %8925 = vmatpush3.msra.mxu0 %v1847_v18  ;;  %v10783_v18 = vld [vmem:[#allocation8 + $0x178] sm:$0xff] }
  0x8f   : > { %1165 = vperm.xlu0 %9559, %v1080_v38   ;;  %1168 = vperm.xlu1 %9560, %v1081_v39   ;;  %v1838_v39 = vld [vmem:[#allocation8 + $0x280] sm:$0xff] }
  0x90   : > { %1875 = vmatpush1.msra.mxu1 %v1811_v62  ;;  %8926 = vmatprep.subr.mxu0 %v1846_v20 }
  0x91   : > { %1876 = vmatprep.subr.mxu1 %v10285_v61  ;;  %8927 = vmatpush3.msra.mxu0 %v1846_v20 }
  0x92   : > { %1877 = vmatpush1.msra.mxu1 %v1810_v63  ;;  %8928 = vmatprep.subr.mxu0 %v1845_v22 }
  0x93   : > { %1171 = vperm.xlu0 %9559, %v1082_v42   ;;  %1174 = vperm.xlu1 %9560, %v1083_v43  }
  0x94   : > { %1878 = vmatprep.subr.mxu1 %v10285_v61  ;;  %8929 = vmatpush3.msra.mxu0 %v1845_v22 }
  0x95   : > { %1879 = vmatpush1.msra.mxu1 %v1809_v1  ;;  %8930 = vmatprep.subr.mxu0 %v1844_v24 }
  0x96   : > { %1880 = vmatprep.subr.mxu1 %v10285_v61  ;;  %8931 = vmatpush3.msra.mxu0 %v1844_v24 }
  0x97   : > { %1177 = vperm.xlu0 %9559, %v1084_v46   ;;  %1180 = vperm.xlu1 %9560, %v1085_v47  }
  0x98   : > { %1881 = vmatpush1.msra.mxu1 %v1808_v0  ;;  %8932 = vmatprep.subr.mxu0 %v1843_v26 }
  0x99   : > { %1882 = vmatprep.subr.mxu1 %v10285_v61  ;;  %8933 = vmatpush3.msra.mxu0 %v1843_v26 }
  0x9a   : > { %1883 = vmatpush1.msra.mxu1 %v1807_v2  ;;  %8934 = vmatprep.subr.mxu0 %v1842_v28 }
  0x9b   : > { %1183 = vperm.xlu0 %9559, %v1086_v50   ;;  %1186 = vperm.xlu1 %9560, %v1087_v51  }
  0x9c   : > { %1884 = vmatprep.subr.mxu1 %v10285_v61  ;;  %8935 = vmatpush3.msra.mxu0 %v1842_v28 }
  0x9d   : > { %1885 = vmatpush1.msra.mxu1 %v1806_v3  ;;  %8936 = vmatprep.subr.mxu0 %v1841_v32 }
  0x9e   : > { %1886 = vmatprep.subr.mxu1 %v10285_v61  ;;  %8937 = vmatpush3.msra.mxu0 %v1841_v32 }
  0x9f   : > { %1189 = vperm.xlu0 %9559, %v1088_v55   ;;  %1192 = vperm.xlu1 %9560, %v1089_v56  }
  0xa0   : > { %1887 = vmatpush2.msra.mxu1 %v1837_v4  ;;  %8938 = vmatprep.subr.mxu0 %v1840_v34 }
  0xa1   : > { %1888 = vmatprep.subr.mxu1 %v10285_v61  ;;  %8939 = vmatpush3.msra.mxu0 %v1840_v34 }
  0xa2   : > { %1889 = vmatpush2.msra.mxu1 %v1836_v5  ;;  %8940 = vmatprep.subr.mxu0 %v1839_v36 }
  0xa3   : > { %1195 = vperm.xlu0 %9559, %v1090_v59   ;;  %1198 = vperm.xlu1 %9560, %v1091_v60  }
  0xa4   : > { %1890 = vmatprep.subr.mxu1 %v10285_v61  ;;  %8941 = vmatpush3.msra.mxu0 %v1839_v36 }
  0xa5   : > { %1891 = vmatpush2.msra.mxu1 %v1835_v7  ;;  %8942 = vmatprep.subr.mxu0 %v1838_v39 }
  0xa6   : > { %1892 = vmatprep.subr.mxu1 %v10285_v61  ;;  %8943 = vmatpush3.msra.mxu0 %v1838_v39 }
  0xa7   : > { %1893 = vmatpush2.msra.mxu1 %v1834_v9  ;;  %2783 = vmatprep.subr.mxu0 %v10285_v61 }
  0xa8   : > { %1894 = vmatprep.subr.mxu1 %v10285_v61 }
  0xa9   : > { %1895 = vmatpush2.msra.mxu1 %v1833_v11 }
  0xaa   : > { %1896 = vmatprep.subr.mxu1 %v10285_v61 }
  0xab   : > { %1897 = vmatpush2.msra.mxu1 %v1832_v13 }
  0xac   : > { %1898 = vmatprep.subr.mxu1 %v10285_v61 }
  0xad   : > { %1899 = vmatpush2.msra.mxu1 %v1831_v15 }
  0xae   : > { %1900 = vmatprep.subr.mxu1 %v10285_v61 }
  0xaf   : > { %1901 = vmatpush2.msra.mxu1 %v1830_v17 }
  0xb0   : > { %1902 = vmatprep.subr.mxu1 %v10285_v61 }
  0xb1   : > { %1903 = vmatpush2.msra.mxu1 %v1829_v19 }
  0xb2   : > { %1904 = vmatprep.subr.mxu1 %v10285_v61 }
  0xb3   : > { %1905 = vmatpush2.msra.mxu1 %v1828_v21 }
  0xb4   : > { %1906 = vmatprep.subr.mxu1 %v10285_v61 }
  0xb5   : > { %1907 = vmatpush2.msra.mxu1 %v1827_v23 }
  0xb6   : > { %1908 = vmatprep.subr.mxu1 %v10285_v61 }
  0xb7   : > { %1909 = vmatpush2.msra.mxu1 %v1826_v25 }
  0xb8   : > { %1910 = vmatprep.subr.mxu1 %v10285_v61 }
  0xb9   : > { %1911 = vmatpush2.msra.mxu1 %v1825_v27 }
  0xba   : > { %1912 = vmatprep.subr.mxu1 %v10285_v61 }
  0xbb   : > { %1913 = vmatpush2.msra.mxu1 %v1824_v29 }
  0xbc   : > { %1914 = vmatprep.subr.mxu1 %v10285_v61 }
  0xbd   : > { %1915 = vmatpush2.msra.mxu1 %v1823_v33 }
  0xbe   : > { %1916 = vmatprep.subr.mxu1 %v10285_v61 }
  0xbf   : > { %1917 = vmatpush2.msra.mxu1 %v1822_v35 }
  0xc0   : > { %8998 = vmatprep.subr.mxu1 %v10783_v18 }
  0xda   : > { %v10709_v30 = vpop.permute.xlu0 %1093  ;;  %v10711_v31 = vpop.permute.xlu1 %1099 }
  0xdb   : > { %15709 = vst [vmem:[#allocation16_spill] sm:$0xff] %v10709_v30  ;;  %15710 = vst [vmem:[#allocation17_spill] sm:$0xff] %v10711_v31  ;;  %vm1200_vm0 = vcmp.eq.s32.totalorder %v10709_v30, 1  ;;  %vm15488_vm10 = vcmp.eq.s32.totalorder %v10711_v31, 1 }
  0xde   : > { %v10715_v37 = vpop.permute.xlu0 %1096  ;;  %v10717_v38 = vpop.permute.xlu1 %1102 }
  0xdf   : > { %15711 = vst [vmem:[#allocation18_spill] sm:$0xff] %v10715_v37  ;;  %15712 = vst [vmem:[#allocation19_spill] sm:$0xff] %v10717_v38  ;;  %vm1201_vm6 = vcmp.eq.s32.totalorder %v10715_v37, 1  ;;  %vm1203_vm7 = vcmp.eq.s32.totalorder %v10717_v38, 1  ;;  %v1638_v38 = vld [vmem:[#allocation2 + $0x2e0] sm:$0xc0] }
  0xe0   : > { %v2459_v31 = vrot.slane %v1638_v38, 6 }
  0xe2   : > { %v10720_v40 = vpop.permute.xlu0 %1105  ;;  %v10722_v41 = vpop.permute.xlu1 %1108 }
  0xe3   : > { %15713 = vst [vmem:[#allocation20_spill] sm:$0xff] %v10720_v40  ;;  %15714 = vst [vmem:[#allocation21_spill] sm:$0xff] %v10722_v41  ;;  %vm15465_vm15 = vcmp.eq.s32.totalorder %v10722_v41, 1  ;;  %vm15487_vm1 = vcmp.eq.s32.totalorder %v10720_v40, 1 }
  0xe6   : > { %v10724_v42 = vpop.permute.xlu0 %1111  ;;  %v10726_v43 = vpop.permute.xlu1 %1114 }
  0xe7   : > { %15715 = vst [vmem:[#allocation22_spill] sm:$0xff] %v10724_v42  ;;  %15716 = vst [vmem:[#allocation23_spill] sm:$0xff] %v10726_v43  ;;  %vm15463_vm3 = vcmp.eq.s32.totalorder %v10726_v43, 1 }
  0xea   : > { %v10736_v50 = vpop.permute.xlu0 %1117  ;;  %v10738_v51 = vpop.permute.xlu1 %1120 }
  0xeb   : > { %15717 = vst [vmem:[#allocation24_spill] sm:$0xff] %v10736_v50  ;;  %15718 = vst [vmem:[#allocation25_spill] sm:$0xff] %v10738_v51 }
  0xee   : > { %v10764_v7 = vpop.permute.xlu0 %1123  ;;  %v10766_v8 = vpop.permute.xlu1 %1126 }
  0xef   : > { %15719 = vst [vmem:[#allocation26_spill] sm:$0xff] %v10764_v7  ;;  %15720 = vst [vmem:[#allocation27_spill] sm:$0xff] %v10766_v8 }
  0xf2   : > { %v10795_v28 = vpop.permute.xlu1 %1132  ;;  %v10804_v34 = vpop.permute.xlu0 %1129 }
  0xf3   : > { %15721 = vst [vmem:[#allocation28_spill] sm:$0xff] %v10795_v28  ;;  %15722 = vst [vmem:[#allocation29_spill] sm:$0xff] %v10804_v34 }
 0x11d   : > { %v8860_v45 = vpop.f32.mrf.mxu0  ;;  %v8884_v46 = vpop.f32.mrf.mxu1 }
 0x11e   : > { %v10731_v47 = vadd.f32 %v8860_v45, %v10728_v44  ;;  %v10734_v48 = vadd.f32 %v8884_v46, %v10728_v44 }
 0x11f   : > { %v625_v49 = vpop.f32.mrf.mxu0  ;;  %v705_v61 = vpop.f32.mrf.mxu1 }
 0x120   : > { %v8386_v52 = vmul.f32 -1.442695, %v10731_v47  ;;  %v8402_v53 = vmul.f32 -1.442695, %v10734_v48  ;;  %v10743_v54 = vadd.f32 %v10728_v44, %v625_v49  ;;  %v10746_v55 = vadd.f32 %v10728_v44, %v705_v61 }
 0x121   : > { %v8863_v56 = vpop.f32.mrf.mxu0  ;;  %v8887_v57 = vpop.f32.mrf.mxu1 }
 0x122   : > { %9561 = vpow2.f32 %v8386_v52  ;;  %v8385_v58 = vmul.f32 -1.442695, %v10743_v54  ;;  %v8401_v59 = vmul.f32 -1.442695, %v10746_v55  ;;  %v10751_v60 = vadd.f32 %v8863_v56, %v10728_v44  ;;  %v10809_v56 = vpop.permute.xlu1 %1138 }
 0x123   : > { %9563 = vpow2.f32 %v8402_v53  ;;  %v10754_v62 = vadd.f32 %v8887_v57, %v10728_v44  ;;  %v635_v63 = vpop.f32.mrf.mxu0  ;;  %v715_v1 = vpop.f32.mrf.mxu1  ;;  %15723 = vst [vmem:[#allocation30_spill] sm:$0xff] %v10809_v56 }
 0x124   : > { %9565 = vpow2.f32 %v8385_v58  ;;  %v8388_v0 = vmul.f32 -1.442695, %v10751_v60  ;;  %v10758_v2 = vadd.f32 %v10728_v44, %v635_v63  ;;  %v10761_v3 = vadd.f32 %v10728_v44, %v715_v1  ;;  %v10811_v63 = vpop.permute.xlu0 %1135 }
 0x125   : > { %9567 = vpow2.f32 %v8401_v59  ;;  %v8404_v4 = vmul.f32 -1.442695, %v10754_v62  ;;  %v8866_v5 = vpop.f32.mrf.mxu0  ;;  %v8890_v6 = vpop.f32.mrf.mxu1  ;;  %15724 = vst [vmem:[#allocation31_spill] sm:$0xff] %v10811_v63 }
 0x126   : > { %9569 = vpow2.f32 %v8388_v0  ;;  %v8387_v9 = vmul.f32 -1.442695, %v10758_v2  ;;  %v8403_v10 = vmul.f32 -1.442695, %v10761_v3  ;;  %v10771_v11 = vadd.f32 %v8866_v5, %v10728_v44 }
 0x127   : > { %9571 = vpow2.f32 %v8404_v4  ;;  %v10774_v12 = vadd.f32 %v8890_v6, %v10728_v44  ;;  %v645_v13 = vpop.f32.mrf.mxu0  ;;  %v725_v14 = vpop.f32.mrf.mxu1 }
 0x128   : > { %9573 = vpow2.f32 %v8387_v9  ;;  %v8390_v15 = vmul.f32 -1.442695, %v10771_v11  ;;  %v10778_v16 = vadd.f32 %v10728_v44, %v645_v13  ;;  %v10781_v17 = vadd.f32 %v10728_v44, %v725_v14 }
 0x129   : > { %9575 = vpow2.f32 %v8403_v10  ;;  %v8406_v19 = vmul.f32 -1.442695, %v10774_v12  ;;  %v8869_v20 = vpop.f32.mrf.mxu0  ;;  %v8893_v21 = vpop.f32.mrf.mxu1 }
 0x12a   : > { %9577 = vpow2.f32 %v8390_v15  ;;  %v8389_v22 = vmul.f32 -1.442695, %v10778_v16  ;;  %v8405_v23 = vmul.f32 -1.442695, %v10781_v17  ;;  %v10790_v24 = vadd.f32 %v8869_v20, %v10728_v44 }
 0x12b   : > { %9579 = vpow2.f32 %v8406_v19  ;;  %v10793_v25 = vadd.f32 %v8893_v21, %v10728_v44  ;;  %v655_v26 = vpop.f32.mrf.mxu0  ;;  %v735_v27 = vpop.f32.mrf.mxu1 }
 0x12c   : > { %9581 = vpow2.f32 %v8389_v22  ;;  %v8392_v29 = vmul.f32 -1.442695, %v10790_v24  ;;  %v10799_v32 = vadd.f32 %v10728_v44, %v655_v26  ;;  %v10802_v33 = vadd.f32 %v10728_v44, %v735_v27  ;;  %v10813_v22 = vpop.permute.xlu1 %1144  ;;  %v10816_v27 = vpop.permute.xlu0 %1141 }
 0x12d   : > { %9583 = vpow2.f32 %v8405_v23  ;;  %v8408_v35 = vmul.f32 -1.442695, %v10793_v25  ;;  %v8872_v58 = vpop.f32.mrf.mxu0  ;;  %v8896_v0 = vpop.f32.mrf.mxu1  ;;  %15725 = vst [vmem:[#allocation32_spill] sm:$0xff] %v10813_v22  ;;  %15726 = vst [vmem:[#allocation33_spill] sm:$0xff] %v10816_v27  ;;  %vm15454_vm11 = vcmp.eq.s32.totalorder %v10816_v27, 1  ;;  %vm15453_vm12 = vcmp.eq.s32.totalorder %v10813_v22, 1 }
 0x12e   : > { %9585 = vpow2.f32 %v8392_v29  ;;  %v8391_v36 = vmul.f32 -1.442695, %v10799_v32  ;;  %v8407_v39 = vmul.f32 -1.442695, %v10802_v33 }
 0x12f   : > { %v9562_v45 = vpop.eup %9561  ;;  %9587 = vpow2.f32 %v8408_v35  ;;  %v665_v14 = vpop.f32.mrf.mxu0 }
 0x130   : > { %v9564_v46 = vpop.eup %9563  ;;  %v913_v49 = vadd.f32 1.0, %v9562_v45  ;;  %9589 = vpow2.f32 %v8391_v36  ;;  %v745_v20 = vpop.f32.mrf.mxu1 }
 0x131   : > { %v9566_v61 = vpop.eup %9565  ;;  %v929_v52 = vadd.f32 1.0, %v9564_v46  ;;  %9591 = vpow2.f32 %v8407_v39  ;;  %v10820_v39 = vadd.f32 %v8872_v58, %v10728_v44  ;;  %v8875_v45 = vpop.f32.mrf.mxu0  ;;  %v10830_v58 = vadd.f32 %v10728_v44, %v745_v20 }
 0x132   : > { %v9568_v53 = vpop.eup %9567  ;;  %9593 = vrcp.f32 %v913_v49  ;;  %v912_v57 = vadd.f32 1.0, %v9566_v61  ;;  %v10823_v61 = vadd.f32 %v8896_v0, %v10728_v44 }
 0x133   : > { %v9570_v59 = vpop.eup %9569  ;;  %9595 = vrcp.f32 %v929_v52  ;;  %v928_v1 = vadd.f32 1.0, %v9568_v53  ;;  %v10826_v52 = vadd.f32 %v10728_v44, %v665_v14  ;;  %v8899_v53 = vpop.f32.mrf.mxu1 }
 0x134   : > { %v9572_v4 = vpop.eup %9571  ;;  %9597 = vrcp.f32 %v912_v57  ;;  %v915_v5 = vadd.f32 1.0, %v9570_v59  ;;  %v10845_v20 = vmul.f32 -1.442695, %v10823_v61 }
 0x135   : > { %v9574_v6 = vpop.eup %9573  ;;  %9599 = vrcp.f32 %v928_v1  ;;  %v931_v9 = vadd.f32 1.0, %v9572_v4  ;;  %v10835_v4 = vadd.f32 %v8875_v45, %v10728_v44 }
 0x136   : > { %v9576_v10 = vpop.eup %9575  ;;  %9601 = vrcp.f32 %v915_v5  ;;  %v914_v13 = vadd.f32 1.0, %v9574_v6  ;;  %v10838_v6 = vpop.permute.xlu1 %1150 }
 0x137   : > { %v9578_v15 = vpop.eup %9577  ;;  %9603 = vrcp.f32 %v931_v9  ;;  %v930_v19 = vadd.f32 1.0, %v9576_v10  ;;  %15727 = vst [vmem:[#allocation34_spill] sm:$0xff] %v10838_v6  ;;  %v8394_v10 = vmul.f32 -1.442695, %v10820_v39  ;;  %vm15427_vm13 = vcmp.eq.s32.totalorder %v10838_v6, 1 }
 0x138   : > { %v9580_v21 = vpop.eup %9579  ;;  %9605 = vrcp.f32 %v914_v13  ;;  %v917_v23 = vadd.f32 1.0, %v9578_v15  ;;  %v675_v13 = vpop.f32.mrf.mxu0 }
 0x139   : > { %v9582_v26 = vpop.eup %9581  ;;  %9607 = vrcp.f32 %v930_v19  ;;  %v933_v29 = vadd.f32 1.0, %v9580_v21  ;;  %v10841_v15 = vpop.permute.xlu0 %1147  ;;  %v10848_v21 = vmul.f32 -1.442695, %v10826_v52 }
 0x13a   : > { %v9584_v35 = vpop.eup %9583  ;;  %9609 = vrcp.f32 %v917_v23  ;;  %v916_v36 = vadd.f32 1.0, %v9582_v26  ;;  %15728 = vst [vmem:[#allocation35_spill] sm:$0xff] %v10841_v15  ;;  %v755_v23 = vpop.f32.mrf.mxu1  ;;  %vm15428_vm14 = vcmp.eq.s32.totalorder %v10841_v15, 1 }
 0x13b   : > { %v9586_v46 = vpop.eup %9585  ;;  %9611 = vrcp.f32 %v933_v29  ;;  %v932_v49 = vadd.f32 1.0, %v9584_v35  ;;  %v10852_v35 = vmul.f32 -1.442695, %v10830_v58 }
 0x13c   : > { %v9588_v57 = vpop.eup %9587  ;;  %9613 = vrcp.f32 %v916_v36  ;;  %v919_v59 = vadd.f32 1.0, %v9586_v46  ;;  %v10855_v36 = vadd.f32 %v8899_v53, %v10728_v44 }
 0x13d   : > { %v9590_v1 = vpop.eup %9589  ;;  %9615 = vrcp.f32 %v932_v49  ;;  %v935_v0 = vadd.f32 1.0, %v9588_v57  ;;  %v10860_v49 = vmul.f32 -1.442695, %v10835_v4  ;;  %v10863_v57 = vadd.f32 %v10728_v44, %v675_v13 }
 0x13e   : > { %v9592_v5 = vpop.eup %9591  ;;  %9617 = vrcp.f32 %v919_v59  ;;  %v918_v9 = vadd.f32 1.0, %v9590_v1  ;;  %v10871_v1 = vadd.f32 %v10728_v44, %v755_v23 }
 0x13f   : > { %v9594_v14 = vpop.eup %9593  ;;  %9619 = vrcp.f32 %v935_v0  ;;  %v934_v19 = vadd.f32 1.0, %v9592_v5 }
 0x140   : > { %v9596_v26 = vpop.eup %9595  ;;  %v1021_v29 = vmul.f32 %v9594_v14, %v10731_v47  ;;  %9621 = vrcp.f32 %v918_v9 }
 0x141   : > { %v9598_v45 = vpop.eup %9597  ;;  %v1037_v46 = vmul.f32 %v9596_v26, %v10734_v48  ;;  %9623 = vrcp.f32 %v934_v19 }
 0x142   : > { %v9600_v47 = vpop.eup %9599  ;;  %v10867_v59 = vsel %vm1201_vm6, %v1021_v29, 0.0  ;;  %v1020_v53 = vmul.f32 %v9598_v45, %v10743_v54  ;;  %9625 = vpow2.f32 %v8394_v10 }
 0x143   : > { %15729 = vst [vmem:[#allocation36_spill] sm:$0xff] %v10867_v59  ;;  %v9602_v48 = vpop.eup %9601  ;;  %v1310_v0 = vrot.slane %v10867_v59, 7  ;;  %1455 = vst [vmem:[#allocation2 + $0x378] sm:$0xff] %v10867_v59  ;;  %v1492_v5 = vrot.slane %v10867_v59, 1  ;;  %v1036_v9 = vmul.f32 %v9600_v47, %v10746_v55  ;;  %v10880_v13 = vsel %vm15453_vm12, %v1037_v46, 0.0  ;;  %v10891_v55 = vpop.permute.xlu1 %1156 }
 0x144   : > { %15730 = vst [vmem:[#allocation37_spill] sm:$0xff] %v10880_v13  ;;  %v9604_v54 = vpop.eup %9603  ;;  %v10885_v10 = vsel %vm1200_vm0, %v1020_v53, 0.0  ;;  %v1023_v14 = vmul.f32 %v9602_v48, %v10751_v60  ;;  %1471 = vst [vmem:[#allocation2 + $0x1a0] sm:$0xff] %v10880_v13  ;;  %v10901_v47 = vpop.permute.xlu0 %1153  ;;  %vm15451_vm2 = vcmp.eq.s32.totalorder %v10891_v55, 1  ;;  %9627 = vpow2.f32 %v10845_v20 }
 0x145   : > { %15731 = vst [vmem:[#allocation38_spill] sm:$0xff] %v10885_v10  ;;  %15732 = vst [vmem:[#allocation39_spill] sm:$0xff] %v10891_v55  ;;  %v9606_v26 = vpop.eup %9605  ;;  %v1309_v29 = vrot.slane %v10885_v10, 7  ;;  %v1491_v45 = vrot.slane %v10885_v10, 1  ;;  %v10898_v46 = vsel %vm15454_vm11, %v1036_v9, 0.0  ;;  %v1039_v60 = vmul.f32 %v9604_v54, %v10754_v62 }
 0x146   : > { %1454 = vst [vmem:[#allocation2 + $0x168] sm:$0xff] %v10885_v10  ;;  %15733 = vst [vmem:[#allocation40_spill] sm:$0xff] %v10898_v46  ;;  %v9608_v53 = vpop.eup %9607  ;;  %v10908_v19 = vsel %vm1203_vm7, %v1023_v14, 0.0  ;;  %v1022_v10 = vmul.f32 %v9606_v26, %v10758_v2  ;;  %v15736_v2 = vrot.slane %v10880_v13, 7  ;;  %v15737_v14 = vrot.slane %v10898_v46, 7 }
 0x147   : > { %15734 = vst [vmem:[#allocation41_spill] sm:$0xff] %v10901_v47  ;;  %1470 = vst [vmem:[#allocation2 + $0x2f0] sm:$0xff] %v10898_v46  ;;  %v9610_v59 = vpop.eup %9609  ;;  %v1311_v9 = vsel %vm1308_vm8, %v1309_v29, %v1310_v0  ;;  %v1493_v62 = vsel %vm1490_vm9, %v1491_v45, %v1492_v5  ;;  %v1038_v22 = vmul.f32 %v9608_v53, %v10761_v3  ;;  %vm15452_vm4 = vcmp.eq.s32.totalorder %v10901_v47, 1 }
 0x148   : > { %15735 = vst [vmem:[#allocation42_spill] sm:$0xff] %v10908_v19  ;;  %1417 = vst [vmem:[#allocation2 + $0x150] sm:$0xfe] %v1309_v29  ;;  %v9612_v23 = vpop.eup %9611  ;;  %v1343_v26 = vsel %vm1308_vm8, %v15737_v14, %v15736_v2  ;;  %v15738_v29 = vrot.slane %v10880_v13, 1  ;;  %v10930_v48 = vsel %vm15488_vm10, %v1022_v10, 0.0  ;;  %v1025_v14 = vmul.f32 %v9610_v59, %v10771_v11 }
 0x149   : > { %1599 = vst [vmem:[#allocation2 + $0x250] sm:$0x80] %v1491_v45  ;;  %1457 = vst [vmem:[#allocation2 + $0x1b0] sm:$0xff] %v10908_v19  ;;  %v15739_v45 = vrot.slane %v10898_v46, 1  ;;  %v1494_v2 = vrot.slane %v10930_v48, 1  ;;  %v10941_v10 = vsel %vm15428_vm14, %v1038_v22, 0.0 }
 0x14a   : > { %1418 = vst [vmem:[#allocation2 + $0x388] sm:$0xff] %v1311_v9  ;;  %1600 = vst [vmem:[#allocation2 + $0x3c8] sm:$0xff] %v1493_v62  ;;  %v9614_v9 = vpop.eup %9613  ;;  %v1312_v62 = vrot.slane %v10930_v48, 7  ;;  %v10945_v3 = vsel %vm15427_vm13, %v1039_v60, 0.0  ;;  %vm15457_vm13 = vcmp.eq.s32.totalorder %v10724_v42, 1  ;;  %v1650_v41 = vld [vmem:[#allocation2 + $0x378] sm:$0xff] }
 0x14b   : > { %v1525_v54 = vsel %vm1490_vm9, %v15739_v45, %v15738_v29  ;;  %15740 = vst [vmem:[#allocation43_spill] sm:$0xff] %v10930_v48  ;;  %1434 = vst [vmem:[#allocation2 + $0x368] sm:$0xff] %v1343_v26  ;;  %v1041_v29 = vmul.f32 %v9612_v23, %v10774_v12  ;;  %v9616_v45 = vpop.eup %9615  ;;  %v1024_v53 = vmul.f32 %v9614_v9, %v10778_v16  ;;  %v15744_v12 = vrot.slane %v10908_v19, 7  ;;  %v10961_v16 = vpop.permute.xlu0 %1159 }
 0x14c   : > { %1616 = vst [vmem:[#allocation2 + $0x10] sm:$0xff] %v1525_v54  ;;  %1456 = vst [vmem:[#allocation2 + $0x3a8] sm:$0xff] %v10930_v48  ;;  %v10949_v54 = vpop.permute.xlu1 %1162  ;;  %v9618_v26 = vpop.eup %9617  ;;  %v1313_v11 = vsel %vm1308_vm8, %v1310_v0, %v1312_v62  ;;  %v1495_v22 = vsel %vm1490_vm9, %v1492_v5, %v1494_v2  ;;  %v15745_v23 = vrot.slane %v10908_v19, 1  ;;  %v1344_v0 = vrot.slane %v10941_v10, 7 }
 0x14d   : > { %15741 = vst [vmem:[#allocation44_spill] sm:$0xff] %v10941_v10  ;;  %15742 = vst [vmem:[#allocation45_spill] sm:$0xff] %v10945_v3  ;;  %v1315_v59 = vsel %vm1308_vm8, %v1312_v62, %v15744_v12  ;;  %vm15447_vm5 = vcmp.eq.s32.totalorder %v10949_v54, 1  ;;  %v9620_v20 = vpop.eup %9619  ;;  %v1526_v5 = vrot.slane %v10941_v10, 1  ;;  %v10969_v9 = vsel %vm15465_vm15, %v1025_v14, 0.0  ;;  %v1647_v12 = vld [vmem:[#allocation2 + $0x168] sm:$0xff] }
 0x14e   : > { %15743 = vst [vmem:[#allocation46_spill] sm:$0xff] %v10949_v54  ;;  %v1497_v60 = vsel %vm1490_vm9, %v1494_v2, %v15745_v23  ;;  %1472 = vst [vmem:[#allocation2 + $0x220] sm:$0xff] %v10941_v10  ;;  %vm15448_vm14 = vcmp.eq.s32.totalorder %v10961_v16, 1  ;;  %v10973_v2 = vpop.f32.mrf.mxu1  ;;  %v9622_v23 = vpop.eup %9621  ;;  %v10981_v14 = vsel %vm15487_vm1, %v1024_v53, 0.0  ;;  %1918 = vmatprep.mubr.f32.mxu1 %v1647_v12  ;;  %v15749_v62 = vrot.slane %v10880_v13, 7 }
 0x14f   : > { %1473 = vst [vmem:[#allocation2 + $0x340] sm:$0xff] %v10945_v3  ;;  %15746 = vst [vmem:[#allocation47_spill] sm:$0xff] %v10961_v16  ;;  %v15750_v10 = vrot.slane %v10880_v13, 1  ;;  %v15751_v6 = vrot.slane %v10945_v3, 7  ;;  %v1316_v15 = vrot.slane %v10981_v14, 7  ;;  %v1646_v53 = vld [vmem:[#allocation2 + $0x150] sm:$0xff]  ;;  %v1040_v13 = vmul.f32 %v9616_v45, %v10781_v17 }
 0x150   : > { %1419 = vst [vmem:[#allocation2 + $0xb8] sm:$0xff] %v1313_v11  ;;  %1420 = vst [vmem:[#allocation2 + $0x2a8] sm:$0xff] %v1315_v59  ;;  %v1345_v48 = vsel %vm1308_vm8, %v15749_v62, %v1344_v0  ;;  %v1498_v62 = vrot.slane %v10981_v14, 1  ;;  %1919 = vmatmul.mubr.f32.vlgmr.msra.gmra.mxu1 %v1646_v53  ;;  %v15752_v40 = vrot.slane %v10908_v19, 7  ;;  %v11009_v17 = vsel %vm15451_vm2, %v1041_v29, 0.0  ;;  %v11013_v45 = vpop.f32.mrf.mxu1 }
 0x151   : > { %1601 = vst [vmem:[#allocation2 + $0x2b8] sm:$0xff] %v1495_v22  ;;  %1602 = vst [vmem:[#allocation2 + $0x380] sm:$0xff] %v1497_v60  ;;  %v1528_v22 = vrot.slane %v10945_v3, 1  ;;  %v9624_v60 = vpop.eup %9623  ;;  %v1527_v11 = vsel %vm1490_vm9, %v15750_v10, %v1526_v5  ;;  %v1347_v59 = vsel %vm1308_vm8, %v1344_v0, %v15751_v6  ;;  %v1027_v10 = vmul.f32 %v9618_v26, %v10790_v24  ;;  %v1648_v6 = vld [vmem:[#allocation2 + $0x3c8] sm:$0xff]  ;;  %v11011_v24 = vpop.f32.mrf.mxu0 }
 0x152   : > { %15747 = vst [vmem:[#allocation48_spill] sm:$0xff] %v10969_v9  ;;  %1459 = vst [vmem:[#allocation2 + $0x2b0] sm:$0xff] %v10969_v9  ;;  %v9626_v27 = vpop.eup %9625  ;;  %v10998_v0 = vld [vmem:[#allocation8 + $0x170] sm:$0xff]  ;;  %1923 = vmatprep.mubr.f32.mxu1 %v1650_v41  ;;  %8944 = vmatprep.mubr.f32.mxu0 %v1648_v6  ;;  %v11023_v29 = vsel %vm15452_vm4, %v1040_v13, 0.0  ;;  %v1532_v6 = vrot.slane %v11009_v17, 1  ;;  %vm15462_vm2 = vcmp.eq.s32.totalorder %v10766_v8, 1 }
 0x153   : > { %15748 = vst [vmem:[#allocation49_spill] sm:$0xff] %v10981_v14  ;;  %1458 = vst [vmem:[#allocation2 + $0x2c0] sm:$0xff] %v10981_v14  ;;  %v1529_v12 = vsel %vm1490_vm9, %v1526_v5, %v1528_v22  ;;  %8999 = vmatpush3.msra.mxu1 %v10783_v18  ;;  %v1348_v41 = vrot.slane %v11023_v29, 7  ;;  %v1530_v53 = vrot.slane %v11023_v29, 1  ;;  %v1350_v18 = vrot.slane %v11009_v17, 7 }
 0x154   : > { %1435 = vst [vmem:[#allocation2] sm:$0xff] %v1345_v48  ;;  %1617 = vst [vmem:[#allocation2 + $0x38] sm:$0xff] %v1527_v11  ;;  %v1317_v48 = vsel %vm1308_vm8, %v15752_v40, %v1316_v15  ;;  %v15753_v11 = vrot.slane %v10969_v9, 7  ;;  %v15755_v40 = vrot.slane %v10908_v19, 1  ;;  %9000 = vmatprep.subr.mxu1 %v10998_v0  ;;  %v11050_v19 = vpop.f32.mrf.mxu0  ;;  %vm1210_vm12 = vcmp.eq.s32.totalorder %v10764_v7, 1 }
 0x155   : > { %1436 = vst [vmem:[#allocation2 + $0x3d8] sm:$0xff] %v1347_v59  ;;  %1618 = vst [vmem:[#allocation2 + $0x1f8] sm:$0xff] %v1529_v12  ;;  %v1043_v59 = vmul.f32 %v9620_v20, %v10793_v25  ;;  %v11027_v20 = vsel %vm15463_vm3, %v1027_v10, 0.0  ;;  %v1763_v10 = vld [vmem:[#allocation8 + $0x78] sm:$0xff]  ;;  %v1531_v13 = vsel %vm1490_vm9, %v1528_v22, %v1530_v53  ;;  %v921_v12 = vadd.f32 1.0, %v9626_v27  ;;  %9001 = vmatpush3.msra.mxu1 %v10998_v0 }
 0x156   : > { %v1319_v5 = vsel %vm1308_vm8, %v1316_v15, %v15753_v11  ;;  %15754 = vst [vmem:[#allocation50_spill] sm:$0xff] %v11009_v17  ;;  %1421 = vst [vmem:[#allocation2 + $0x28] sm:$0xff] %v1317_v48  ;;  %v1499_v26 = vsel %vm1490_vm9, %v15755_v40, %v1498_v62  ;;  %v15756_v15 = vrot.slane %v10969_v9, 1  ;;  %v1026_v48 = vmul.f32 %v9622_v23, %v10799_v32  ;;  %v11052_v32 = vpop.f32.mrf.mxu1 }
 0x157   : > { %1422 = vst [vmem:[#allocation2 + $0x1c8] sm:$0xff] %v1319_v5  ;;  %15757 = vst [vmem:[#allocation51_spill] sm:$0xff] %v11023_v29  ;;  %v1042_v11 = vmul.f32 %v9624_v60, %v10802_v33  ;;  %v1653_v5 = vld [vmem:[#allocation2 + $0x3a8] sm:$0xff]  ;;  %v11048_v14 = vsel %vm15447_vm5, %v1043_v59, 0.0  ;;  %v1351_v23 = vsel %vm1308_vm8, %v1348_v41, %v1350_v18  ;;  %v1533_v60 = vsel %vm1490_vm9, %v1530_v53, %v1532_v6 }
 0x158   : > { %v1501_v25 = vsel %vm1490_vm9, %v1498_v62, %v15756_v15  ;;  %15758 = vst [vmem:[#allocation52_spill] sm:$0xff] %v11027_v20  ;;  %1475 = vst [vmem:[#allocation2 + $0x260] sm:$0xff] %v11009_v17  ;;  %v1649_v62 = vld [vmem:[#allocation2 + $0x388] sm:$0xff]  ;;  %v1651_v40 = vld [vmem:[#allocation2 + $0x2b8] sm:$0xff]  ;;  %v15759_v15 = vrot.slane %v10945_v3, 7  ;;  %v11058_v27 = vsel %vm15457_vm13, %v1026_v48, 0.0  ;;  %9629 = vrcp.f32 %v921_v12 }
 0x159   : > { %1603 = vst [vmem:[#allocation2 + $0xb0] sm:$0xff] %v1499_v26  ;;  %1604 = vst [vmem:[#allocation2 + $0x170] sm:$0xff] %v1501_v25  ;;  %1924 = vmatmul.mubr.f32.gmra.mxu1 %v1649_v62  ;;  %v1654_v26 = vld [vmem:[#allocation2 + $0x380] sm:$0xff]  ;;  %8945 = vmatmul.mubr.f32.vlgmr.msra.gmra.mxu0 %v1651_v40  ;;  %v11062_v22 = vsel %vm15448_vm14, %v1042_v11, 0.0  ;;  %v1320_v59 = vrot.slane %v11058_v27, 7  ;;  %v11071_v62 = vld [vmem:[#allocation2 + $0x308] sm:$0xff]  ;;  %v9628_v11 = vpop.eup %9627  ;;  %9631 = vpow2.f32 %v10848_v21 }
 0x15a   : > { %1474 = vst [vmem:[#allocation2 + $0x358] sm:$0xff] %v11023_v29  ;;  %1461 = vst [vmem:[#allocation2 + $0xe8] sm:$0xff] %v11027_v20  ;;  %v1349_v25 = vsel %vm1308_vm8, %v15759_v15, %v1348_v41  ;;  %1928 = vmatprep.mubr.f32.mxu1 %v1653_v5  ;;  %v1762_v33 = vld [vmem:[#allocation8 + $0x70] sm:$0xff]  ;;  %2784 = vmatpush1.msra.mxu0 %v1763_v10  ;;  %v1502_v41 = vrot.slane %v11058_v27, 1  ;;  %v1352_v53 = vrot.slane %v11062_v22, 7  ;;  %v1652_v10 = vld [vmem:[#allocation2 + $0xb8] sm:$0xff] }
 0x15b   : > { %15760 = vst [vmem:[#allocation53_spill] sm:$0xff] %v11048_v14  ;;  %1437 = vst [vmem:[#allocation2 + $0x68] sm:$0xff] %v1349_v25  ;;  %8947 = vmatprep.mubr.f32.mxu0 %v1654_v26  ;;  %2785 = vmatprep.subr.mxu0 %v11071_v62  ;;  %v1793_v48 = vld [vmem:[#allocation8 + $0x168] sm:$0xff]  ;;  %v11079_v26 = vadd.f32 %v11011_v24, %v10728_v44  ;;  %v1656_v15 = vld [vmem:[#allocation2 + $0x1b0] sm:$0xff]  ;;  %v15763_v25 = vrot.slane %v10969_v9, 7  ;;  %v15764_v0 = vrot.slane %v11027_v20, 7 }
 0x15c   : > { %1619 = vst [vmem:[#allocation2 + $0x100] sm:$0xff] %v1531_v13  ;;  %15761 = vst [vmem:[#allocation54_spill] sm:$0xff] %v11058_v27  ;;  %v1534_v13 = vrot.slane %v11062_v22, 1  ;;  %2786 = vmatpush1.msra.mxu0 %v1762_v33  ;;  %v15765_v12 = vrot.slane %v10969_v9, 1  ;;  %v15766_v40 = vrot.slane %v11027_v20, 1  ;;  %v1761_v33 = vld [vmem:[#allocation8 + $0x68] sm:$0xff]  ;;  %9002 = vmatprep.subr.mxu1 %v1793_v48 }
 0x15d   : > { %15762 = vst [vmem:[#allocation55_spill] sm:$0xff] %v11062_v22  ;;  %1477 = vst [vmem:[#allocation2 + $0x2f8] sm:$0xff] %v11048_v14  ;;  %1929 = vmatmul.mubr.f32.gmra.mxu1 %v1652_v10  ;;  %v775_v10 = vpop.f32.mrf.mxu1  ;;  %v15767_v9 = vrot.slane %v11048_v14, 7  ;;  %2787 = vmatprep.subr.mxu0 %v11071_v62  ;;  %v1655_v21 = vld [vmem:[#allocation2 + $0x2a8] sm:$0xff]  ;;  %vm15455_vm5 = vcmp.eq.s32.totalorder %v10738_v51, 1  ;;  %vm1213_vm11 = vcmp.eq.s32.totalorder %v10795_v28, 1 }
 0x15e   : > { %1438 = vst [vmem:[#allocation2 + $0x98] sm:$0xff] %v1351_v23  ;;  %1620 = vst [vmem:[#allocation2 + $0x78] sm:$0xff] %v1533_v60  ;;  %v1321_v23 = vsel %vm1308_vm8, %v15763_v25, %v1320_v59  ;;  %v1323_v60 = vsel %vm1308_vm8, %v1320_v59, %v15764_v0  ;;  %v1503_v5 = vsel %vm1490_vm9, %v15765_v12, %v1502_v41  ;;  %1933 = vmatprep.mubr.f32.mxu1 %v1656_v15  ;;  %v1781_v17 = vld [vmem:[#allocation8 + $0x108] sm:$0xff] }
 0x15f   : > { %1460 = vst [vmem:[#allocation2 + $0xc8] sm:$0xff] %v11058_v27  ;;  %1476 = vst [vmem:[#allocation2 + $0x298] sm:$0xff] %v11062_v22  ;;  %v1505_v24 = vsel %vm1490_vm9, %v1502_v41, %v15766_v40  ;;  %v8881_v27 = vpop.f32.mrf.mxu0  ;;  %v1353_v25 = vsel %vm1308_vm8, %v1350_v18, %v1352_v53  ;;  %v1535_v59 = vsel %vm1490_vm9, %v1532_v6, %v1534_v13  ;;  %v937_v0 = vadd.f32 1.0, %v9628_v11  ;;  %v8908_v15 = vpop.f32.mrf.mxu1 }
 0x160   : > { %1423 = vst [vmem:[#allocation2 + $0x60] sm:$0xff] %v1321_v23  ;;  %1424 = vst [vmem:[#allocation2 + $0x360] sm:$0xff] %v1323_v60  ;;  %v1355_v12 = vsel %vm1308_vm8, %v1352_v53, %v15767_v9  ;;  %v1657_v22 = vld [vmem:[#allocation2 + $0xb0] sm:$0xff]  ;;  %v8412_v18 = vmul.f32 -1.442695, %v10855_v36  ;;  %v11106_v6 = vadd.f32 %v10973_v2, %v10728_v44  ;;  %9003 = vmatpush3.msra.mxu1 %v1793_v48  ;;  %2788 = vmatpush1.msra.mxu0 %v1761_v33  ;;  %v1659_v23 = vld [vmem:[#allocation2 + $0x2c0] sm:$0xff] }
 0x161   : > { %1605 = vst [vmem:[#allocation2 + $0x3b8] sm:$0xff] %v1503_v5  ;;  %1606 = vst [vmem:[#allocation2 + $0x40] sm:$0xff] %v1505_v24  ;;  %v1660_v41 = vld [vmem:[#allocation2 + $0x170] sm:$0xff]  ;;  %v15768_v5 = vrot.slane %v11048_v14, 1  ;;  %8948 = vmatmul.mubr.f32.gmra.mxu0 %v1657_v22  ;;  %9633 = vrcp.f32 %v937_v0  ;;  %v8395_v53 = vmul.f32 -1.442695, %v10863_v57  ;;  %v11111_v11 = vadd.f32 %v10728_v44, %v11050_v19  ;;  %v695_v48 = vpop.f32.mrf.mxu0  ;;  %2789 = vmatprep.subr.mxu0 %v11071_v62 }
 0x162   : > { %1439 = vst [vmem:[#allocation2 + $0x1d8] sm:$0xff] %v1353_v25  ;;  %1621 = vst [vmem:[#allocation2 + $0x1f0] sm:$0xff] %v1535_v59  ;;  %v1760_v9 = vld [vmem:[#allocation8 + $0x60] sm:$0xff]  ;;  %8950 = vmatprep.mubr.f32.mxu0 %v1660_v41  ;;  %9635 = vpow2.f32 %v10852_v35  ;;  %v8411_v2 = vmul.f32 -1.442695, %v10871_v1  ;;  %v11117_v22 = vadd.f32 %v10728_v44, %v11013_v45  ;;  %1934 = vmatmul.mubr.f32.gmra.mxu1 %v1655_v21  ;;  %v1759_v19 = vld [vmem:[#allocation8 + $0x58] sm:$0xff] }
 0x163   : > { %1440 = vst [vmem:[#allocation2 + $0x158] sm:$0xff] %v1355_v12  ;;  %v1537_v40 = vsel %vm1490_vm9, %v1534_v13, %v15768_v5  ;;  %v1792_v13 = vld [vmem:[#allocation8 + $0x160] sm:$0xff]  ;;  %9637 = vpow2.f32 %v10860_v49  ;;  %v8398_v60 = vmul.f32 -1.442695, %v11079_v26  ;;  %v11123_v24 = vadd.f32 %v8881_v27, %v10728_v44  ;;  %2790 = vmatpush1.msra.mxu0 %v1760_v9  ;;  %1938 = vmatprep.mubr.f32.mxu1 %v1659_v23  ;;  %v1658_v27 = vld [vmem:[#allocation2 + $0x28] sm:$0xff]  ;;  %v785_v12 = vpop.f32.mrf.mxu1 }
 0x164   : > { %1622 = vst [vmem:[#allocation2 + $0x88] sm:$0xff] %v1537_v40  ;;  %9639 = vpow2.f32 %v8412_v18  ;;  %v8414_v35 = vmul.f32 -1.442695, %v11106_v6  ;;  %v11128_v45 = vadd.f32 %v11052_v32, %v10728_v44  ;;  %2791 = vmatprep.subr.mxu0 %v11071_v62  ;;  %9004 = vmatprep.subr.mxu1 %v1792_v13  ;;  %v8397_v49 = vmul.f32 -1.442695, %v11111_v11  ;;  %v1758_v25 = vld [vmem:[#allocation8 + $0x50] sm:$0xff] }
 0x165   : > { %9641 = vpow2.f32 %v8395_v53  ;;  %v11133_v33 = vadd.f32 %v10728_v44, %v695_v48  ;;  %2792 = vmatpush1.msra.mxu0 %v1759_v19  ;;  %9005 = vmatpush3.msra.mxu1 %v1792_v13  ;;  %v1791_v59 = vld [vmem:[#allocation8 + $0x158] sm:$0xff]  ;;  %v8413_v0 = vmul.f32 -1.442695, %v11117_v22  ;;  %v11137_v32 = vadd.f32 %v10728_v44, %v775_v10  ;;  %v1757_v53 = vld [vmem:[#allocation8 + $0x48] sm:$0xff]  ;;  %v1756_v48 = vld [vmem:[#allocation8 + $0x40] sm:$0xff] }
 0x166   : > { %9643 = vpow2.f32 %v8411_v2  ;;  %1939 = vmatmul.mubr.f32.gmra.mxu1 %v1658_v27  ;;  %2793 = vmatprep.subr.mxu0 %v11071_v62  ;;  %v1662_v40 = vld [vmem:[#allocation2 + $0x2b0] sm:$0xff]  ;;  %v8400_v18 = vmul.f32 -1.442695, %v11123_v24  ;;  %v11142_v9 = vadd.f32 %v8908_v15, %v10728_v44  ;;  %v8416_v10 = vmul.f32 -1.442695, %v11128_v45  ;;  %v1661_v2 = vld [vmem:[#allocation2 + $0x1c8] sm:$0xff]  ;;  %v9630_v15 = vpop.eup %9629 }
 0x167   : > { %9645 = vpow2.f32 %v8398_v60  ;;  %1943 = vmatprep.mubr.f32.mxu1 %v1662_v40  ;;  %2794 = vmatpush1.msra.mxu0 %v1758_v25  ;;  %v8399_v21 = vmul.f32 -1.442695, %v11133_v33  ;;  %v11147_v13 = vadd.f32 %v10728_v44, %v785_v12  ;;  %v8415_v23 = vmul.f32 -1.442695, %v11137_v32  ;;  %v1665_v19 = vld [vmem:[#allocation2 + $0xc8] sm:$0xff]  ;;  %v9632_v27 = vpop.eup %9631  ;;  %v1789_v40 = vld [vmem:[#allocation8 + $0x148] sm:$0xff] }
 0x168   : > { %v1663_v41 = vld [vmem:[#allocation2 + $0x3b8] sm:$0xff]  ;;  %v1666_v5 = vld [vmem:[#allocation2 + $0x40] sm:$0xff]  ;;  %9647 = vpow2.f32 %v8414_v35  ;;  %2795 = vmatprep.subr.mxu0 %v11071_v62  ;;  %9006 = vmatprep.subr.mxu1 %v1791_v59  ;;  %v1029_v35 = vmul.f32 %v9630_v15, %v10820_v39  ;;  %v1755_v44 = vld [vmem:[#allocation8 + $0x38] sm:$0xff]  ;;  %vm1214_vm15 = vcmp.eq.s32.totalorder %v10811_v63, 1  ;;  %v15815_v42 = vrot.slane %v10898_v46, 7 }
 0x169   : > { %8951 = vmatmul.mubr.f32.gmra.mxu0 %v1663_v41  ;;  %9649 = vpow2.f32 %v8397_v49  ;;  %v1790_v60 = vld [vmem:[#allocation8 + $0x150] sm:$0xff]  ;;  %v8418_v49 = vmul.f32 -1.442695, %v11142_v9  ;;  %9007 = vmatpush3.msra.mxu1 %v1791_v59  ;;  %v8417_v39 = vmul.f32 -1.442695, %v11147_v13 }
 0x16a   : > { %8953 = vmatprep.mubr.f32.mxu0 %v1666_v5  ;;  %9651 = vpow2.f32 %v8413_v0  ;;  %2796 = vmatpush1.msra.mxu0 %v1757_v53  ;;  %v11157_v25 = vsel %vm15455_vm5, %v1029_v35, 0.0  ;;  %v1664_v0 = vld [vmem:[#allocation2 + $0x60] sm:$0xff]  ;;  %v920_v5 = vadd.f32 1.0, %v9632_v27  ;;  %v1668_v59 = vld [vmem:[#allocation2 + $0xe8] sm:$0xff]  ;;  %v1752_v35 = vld [vmem:[#allocation8 + $0x20] sm:$0xff] }
 0x16b   : > { %1944 = vmatmul.mubr.f32.gmra.mxu1 %v1661_v2  ;;  %9653 = vpow2.f32 %v8400_v18  ;;  %2797 = vmatprep.subr.mxu0 %v11071_v62  ;;  %15769 = vst [vmem:[#allocation56_spill] sm:$0xff] %v11157_v25  ;;  %v1754_v12 = vld [vmem:[#allocation8 + $0x30] sm:$0xff]  ;;  %1463 = vst [vmem:[#allocation2 + $0x8] sm:$0xff] %v11157_v25 }
 0x16c   : > { %1948 = vmatprep.mubr.f32.mxu1 %v1665_v19  ;;  %9655 = vpow2.f32 %v8416_v10  ;;  %2798 = vmatpush1.msra.mxu0 %v1756_v48  ;;  %v11163_v10 = vpop.permute.xlu1 %1168  ;;  %v11776_v37 = vld [vmem:[#allocation2 + $0x68] sm:$0xff] }
 0x16d   : > { %9657 = vpow2.f32 %v8399_v21  ;;  %2799 = vmatprep.subr.mxu0 %v11071_v62  ;;  %9008 = vmatprep.subr.mxu1 %v1790_v60  ;;  %15770 = vst [vmem:[#allocation57_spill] sm:$0xff] %v11163_v10  ;;  %v1753_v21 = vld [vmem:[#allocation8 + $0x28] sm:$0xff]  ;;  %vm15450_vm14 = vcmp.eq.s32.totalorder %v11163_v10, 1  ;;  %v15793_v10 = vrot.slane %v11157_v25, 7 }
 0x16e   : > { %v9634_v41 = vpop.eup %9633  ;;  %9659 = vpow2.f32 %v8415_v23  ;;  %2800 = vmatpush1.msra.mxu0 %v1755_v44  ;;  %9009 = vmatpush3.msra.mxu1 %v1790_v60 }
 0x16f   : > { %1949 = vmatmul.mubr.f32.gmra.mxu1 %v1664_v0  ;;  %v9636_v18 = vpop.eup %9635  ;;  %v1045_v53 = vmul.f32 %v9634_v41, %v10823_v61  ;;  %9661 = vpow2.f32 %v8418_v49  ;;  %2801 = vmatprep.subr.mxu0 %v11071_v62  ;;  %v1667_v61 = vld [vmem:[#allocation2 + $0x360] sm:$0xff]  ;;  %v1788_v49 = vld [vmem:[#allocation8 + $0x140] sm:$0xff]  ;;  %v1787_v41 = vld [vmem:[#allocation8 + $0x138] sm:$0xff] }
 0x170   : > { %1953 = vmatprep.mubr.f32.mxu1 %v1668_v59  ;;  %v9638_v2 = vpop.eup %9637  ;;  %9663 = vrcp.f32 %v920_v5  ;;  %v936_v48 = vadd.f32 1.0, %v9636_v18  ;;  %2802 = vmatpush1.msra.mxu0 %v1754_v12  ;;  %v8911_v12 = vpop.f32.mrf.mxu1 }
 0x171   : > { %v9640_v15 = vpop.eup %9639  ;;  %v923_v23 = vadd.f32 1.0, %v9638_v2  ;;  %v11169_v19 = vsel %vm15450_vm14, %v1045_v53, 0.0  ;;  %9665 = vpow2.f32 %v8417_v39  ;;  %2803 = vmatprep.subr.mxu0 %v11071_v62  ;;  %9010 = vmatprep.subr.mxu1 %v1789_v40  ;;  %v1751_v39 = vld [vmem:[#allocation8 + $0x18] sm:$0xff]  ;;  %v11174_v53 = vpop.permute.xlu0 %1165  ;;  %vm15458_vm14 = vcmp.eq.s32.totalorder %v10736_v50, 1 }
 0x172   : > { %15771 = vst [vmem:[#allocation58_spill] sm:$0xff] %v11169_v19  ;;  %v9642_v44 = vpop.eup %9641  ;;  %9667 = vrcp.f32 %v936_v48  ;;  %v939_v27 = vadd.f32 1.0, %v9640_v15  ;;  %1479 = vst [vmem:[#allocation2 + $0x320] sm:$0xff] %v11169_v19  ;;  %2804 = vmatpush1.msra.mxu0 %v1753_v21  ;;  %9011 = vmatpush3.msra.mxu1 %v1789_v40  ;;  %v1750_v21 = vld [vmem:[#allocation8 + $0x10] sm:$0xff]  ;;  %vm15459_vm4 = vcmp.eq.s32.totalorder %v11174_v53, 1 }
 0x173   : > { %1954 = vmatmul.mubr.f32.gmra.mxu1 %v1667_v61  ;;  %v9644_v60 = vpop.eup %9643  ;;  %9669 = vrcp.f32 %v923_v23  ;;  %v922_v0 = vadd.f32 1.0, %v9642_v44  ;;  %2805 = vmatprep.subr.mxu0 %v11071_v62  ;;  %15772 = vst [vmem:[#allocation59_spill] sm:$0xff] %v11174_v53  ;;  %v1786_v48 = vld [vmem:[#allocation8 + $0x130] sm:$0xff]  ;;  %v1749_v44 = vld [vmem:[#allocation8 + $0x8] sm:$0xff] }
 0x174   : > { %v9646_v5 = vpop.eup %9645  ;;  %9671 = vrcp.f32 %v939_v27  ;;  %v938_v59 = vadd.f32 1.0, %v9644_v60  ;;  %2806 = vmatpush1.msra.mxu0 %v1752_v35  ;;  %9012 = vmatprep.subr.mxu1 %v1788_v49  ;;  %v795_v35 = vpop.f32.mrf.mxu1  ;;  %v1785_v27 = vld [vmem:[#allocation8 + $0x128] sm:$0xff] }
 0x175   : > { %v9648_v18 = vpop.eup %9647  ;;  %9673 = vrcp.f32 %v922_v0  ;;  %v925_v2 = vadd.f32 1.0, %v9646_v5  ;;  %2807 = vmatprep.subr.mxu0 %v11071_v62  ;;  %9013 = vmatpush3.msra.mxu1 %v1788_v49  ;;  %v9994_v5 = vld [vmem:[#allocation6] ss:$0 sm:$0xff] }
 0x176   : > { %v9650_v15 = vpop.eup %9649  ;;  %9675 = vrcp.f32 %v938_v59  ;;  %v941_v23 = vadd.f32 1.0, %v9648_v18  ;;  %2808 = vmatpush1.msra.mxu0 %v1751_v39  ;;  %9014 = vmatprep.subr.mxu1 %v1787_v41  ;;  %v11178_v49 = vadd.f32 %v9994_v5, %v8911_v12  ;;  %v1748_v18 = vld [vmem:[#allocation8] sm:$0xff]  ;;  %v11181_v29 = vadd.f32 %v9994_v5, %v795_v35  ;;  %v11183_v12 = vpop.permute.xlu0 %1171 }
 0x177   : > { %v9652_v40 = vpop.eup %9651  ;;  %9677 = vrcp.f32 %v925_v2  ;;  %v924_v61 = vadd.f32 1.0, %v9650_v15  ;;  %2809 = vmatprep.subr.mxu0 %v11071_v62  ;;  %9015 = vmatpush3.msra.mxu1 %v1787_v41  ;;  %v1784_v2 = vld [vmem:[#allocation8 + $0x120] sm:$0xff]  ;;  %15773 = vst [vmem:[#allocation60_spill] sm:$0xff] %v11183_v12  ;;  %vm15477_vm5 = vcmp.eq.s32.totalorder %v11183_v12, 1 }
 0x178   : > { %v9654_v60 = vpop.eup %9653  ;;  %9679 = vrcp.f32 %v941_v23  ;;  %v940_v0 = vadd.f32 1.0, %v9652_v40  ;;  %2810 = vmatpush1.msra.mxu0 %v1750_v21  ;;  %9016 = vmatprep.subr.mxu1 %v1786_v48  ;;  %v11185_v21 = vpop.permute.xlu1 %1174 }
 0x179   : > { %v9656_v59 = vpop.eup %9655  ;;  %9681 = vrcp.f32 %v924_v61  ;;  %v927_v39 = vadd.f32 1.0, %v9654_v60  ;;  %2811 = vmatprep.subr.mxu0 %v11071_v62  ;;  %9017 = vmatpush3.msra.mxu1 %v1786_v48  ;;  %15774 = vst [vmem:[#allocation61_spill] sm:$0xff] %v11185_v21  ;;  %v1779_v61 = vld [vmem:[#allocation8 + $0xf8] sm:$0xff]  ;;  %vm15476_vm13 = vcmp.eq.s32.totalorder %v11185_v21, 1  ;;  %v15795_v21 = vrot.slane %v11157_v25, 1 }
 0x17a   : > { %v9658_v15 = vpop.eup %9657  ;;  %9683 = vrcp.f32 %v940_v0  ;;  %v943_v41 = vadd.f32 1.0, %v9656_v59  ;;  %2812 = vmatpush1.msra.mxu0 %v1749_v44  ;;  %9018 = vmatprep.subr.mxu1 %v1785_v27  ;;  %v1783_v48 = vld [vmem:[#allocation8 + $0x118] sm:$0xff]  ;;  %v8420_v44 = vmul.f32 -1.442695, %v11178_v49  ;;  %v1782_v59 = vld [vmem:[#allocation8 + $0x110] sm:$0xff] }
 0x17b   : > { %v9660_v23 = vpop.eup %9659  ;;  %9685 = vrcp.f32 %v927_v39  ;;  %v926_v40 = vadd.f32 1.0, %v9658_v15  ;;  %2813 = vmatprep.subr.mxu0 %v11071_v62  ;;  %9019 = vmatpush3.msra.mxu1 %v1785_v27  ;;  %v1778_v27 = vld [vmem:[#allocation8 + $0xf0] sm:$0xff]  ;;  %v8419_v15 = vmul.f32 -1.442695, %v11181_v29 }
 0x17c   : > { %v9662_v60 = vpop.eup %9661  ;;  %9687 = vrcp.f32 %v943_v41  ;;  %v942_v35 = vadd.f32 1.0, %v9660_v23  ;;  %2814 = vmatpush1.msra.mxu0 %v1748_v18  ;;  %9020 = vmatprep.subr.mxu1 %v1784_v2  ;;  %v11214_v23 = vpop.permute.xlu1 %1180 }
 0x17d   : > { %v9664_v0 = vpop.eup %9663  ;;  %9689 = vrcp.f32 %v926_v40  ;;  %v945_v5 = vadd.f32 1.0, %v9662_v60  ;;  %2815 = vmatprep.subr.mxu0 %v11071_v62  ;;  %9021 = vmatpush3.msra.mxu1 %v1784_v2  ;;  %v1777_v60 = vld [vmem:[#allocation8 + $0xe8] sm:$0xff]  ;;  %15777 = vst [vmem:[#allocation64_spill] sm:$0xff] %v11214_v23  ;;  %vm1229_vm3 = vcmp.eq.s32.totalorder %v11214_v23, 1 }
 0x17e   : > { %v9666_v39 = vpop.eup %9665  ;;  %v1028_v18 = vmul.f32 %v9664_v0, %v10826_v52  ;;  %9691 = vrcp.f32 %v942_v35  ;;  %2816 = vmatpush2.msra.mxu0 %v1779_v61  ;;  %9022 = vmatprep.subr.mxu1 %v1783_v48  ;;  %v15780_v0 = vrot.slane %v11157_v25, 7 }
 0x17f   : > { %v9668_v41 = vpop.eup %9667  ;;  %9693 = vrcp.f32 %v945_v5  ;;  %v944_v40 = vadd.f32 1.0, %v9666_v39  ;;  %2817 = vmatprep.subr.mxu0 %v11071_v62  ;;  %9023 = vmatpush3.msra.mxu1 %v1783_v48 }
 0x180   : > { %v9670_v52 = vpop.eup %9669  ;;  %v11203_v35 = vsel %vm15458_vm14, %v1028_v18, 0.0  ;;  %v1044_v61 = vmul.f32 %v9668_v41, %v10830_v58  ;;  %9695 = vpow2.f32 %v8420_v44  ;;  %2818 = vmatpush2.msra.mxu0 %v1778_v27  ;;  %9024 = vmatprep.subr.mxu1 %v1782_v59  ;;  %v11212_v18 = vpop.permute.xlu0 %1177  ;;  %vm1212_vm14 = vcmp.eq.s32.totalorder %v10804_v34, 1 }
 0x181   : > { %15775 = vst [vmem:[#allocation62_spill] sm:$0xff] %v11203_v35  ;;  %v9672_v5 = vpop.eup %9671  ;;  %v1324_v39 = vrot.slane %v11203_v35, 7  ;;  %1462 = vst [vmem:[#allocation2 + $0x128] sm:$0xff] %v11203_v35  ;;  %v1506_v48 = vrot.slane %v11203_v35, 1  ;;  %v1031_v2 = vmul.f32 %v9670_v52, %v10835_v4  ;;  %9697 = vrcp.f32 %v944_v40  ;;  %2819 = vmatprep.subr.mxu0 %v11071_v62  ;;  %9025 = vmatpush3.msra.mxu1 %v1782_v59  ;;  %v1776_v4 = vld [vmem:[#allocation8 + $0xe0] sm:$0xff] }
 0x182   : > { %15776 = vst [vmem:[#allocation63_spill] sm:$0xff] %v11212_v18  ;;  %v9674_v58 = vpop.eup %9673  ;;  %v11219_v44 = vsel %vm15459_vm4, %v1044_v61, 0.0  ;;  %v11222_v27 = vmul.f32 %v9672_v5, %v10855_v36  ;;  %9699 = vpow2.f32 %v8419_v15  ;;  %2820 = vmatpush2.msra.mxu0 %v1777_v60  ;;  %9026 = vmatprep.subr.mxu1 %v1781_v17  ;;  %v15779_v40 = vrot.slane %v11027_v20, 7 }
 0x183   : > { %15778 = vst [vmem:[#allocation65_spill] sm:$0xff] %v11219_v44  ;;  %v9676_v52 = vpop.eup %9675  ;;  %v1327_v61 = vsel %vm1308_vm8, %v1324_v39, %v15780_v0  ;;  %v15781_v36 = vrot.slane %v11027_v20, 1  ;;  %v15782_v15 = vrot.slane %v11157_v25, 1  ;;  %1478 = vst [vmem:[#allocation2 + $0x398] sm:$0xff] %v11219_v44  ;;  %2821 = vmatprep.subr.mxu0 %v11071_v62  ;;  %v1356_v0 = vrot.slane %v11219_v44, 7  ;;  %9027 = vmatpush3.msra.mxu1 %v1781_v17 }
 0x184   : > { %v1325_v59 = vsel %vm1308_vm8, %v15779_v40, %v1324_v39  ;;  %v9678_v41 = vpop.eup %9677  ;;  %1426 = vst [vmem:[#allocation2 + $0x120] sm:$0xff] %v1327_v61  ;;  %v1538_v39 = vrot.slane %v11219_v44, 1  ;;  %v11250_v40 = vsel %vm15462_vm2, %v1031_v2, 0.0  ;;  %vm1215_vm4 = vcmp.eq.s32.totalorder %v10809_v56, 1  ;;  %2822 = vmatpush2.msra.mxu0 %v1776_v4  ;;  %v1774_v4 = vld [vmem:[#allocation8 + $0xd0] sm:$0xff] }
 0x185   : > { %v11235_v5 = vsel %vm1490_vm9, %v15781_v36, %v1506_v48  ;;  %v11240_v60 = vsel %vm1490_vm9, %v1506_v48, %v15782_v15  ;;  %1425 = vst [vmem:[#allocation2 + $0x278] sm:$0xff] %v1325_v59  ;;  %15783 = vst [vmem:[#allocation66_spill] sm:$0xff] %v11250_v40  ;;  %v11253_v48 = vmul.f32 %v9674_v58, %v10863_v57  ;;  %v1775_v36 = vld [vmem:[#allocation8 + $0xd8] sm:$0xff]  ;;  %v1780_v59 = vld [vmem:[#allocation8 + $0x100] sm:$0xff]  ;;  %v9680_v61 = vpop.eup %9679  ;;  %vm1228_vm2 = vcmp.eq.s32.totalorder %v11212_v18, 1 }
 0x186   : > { %1607 = vst [vmem:[#allocation2 + $0x2d0] sm:$0xff] %v11235_v5  ;;  %1608 = vst [vmem:[#allocation2 + $0x2e8] sm:$0xff] %v11240_v60  ;;  %8954 = vmatmul.mubr.f32.gmra.mxu0 %v11235_v5  ;;  %v1046_v2 = vmul.f32 %v9676_v52, %v10871_v1  ;;  %v11262_v44 = vmul.f32 %v9678_v41, %v11079_v26  ;;  %v9682_v57 = vpop.eup %9681  ;;  %v15784_v17 = vrot.slane %v11048_v14, 7  ;;  %v15785_v15 = vrot.slane %v11048_v14, 1 }
 0x187   : > { %1465 = vst [vmem:[#allocation2 + $0xd8] sm:$0xff] %v11250_v40  ;;  %8956 = vmatprep.mubr.f32.mxu0 %v11240_v60  ;;  %v15786_v1 = vrot.slane %v11169_v19, 7  ;;  %v15787_v41 = vrot.slane %v11169_v19, 1  ;;  %2823 = vmatprep.subr.mxu0 %v11071_v62  ;;  %v9684_v3 = vpop.eup %9683  ;;  %v11317_v35 = vsel %vm15476_vm13, %v11222_v27, 0.0  ;;  %v11320_v12 = vmul.f32 %v9682_v57, %v11111_v11 }
 0x188   : > { %v1357_v58 = vsel %vm1308_vm8, %v15784_v17, %v1356_v0  ;;  %v1539_v20 = vsel %vm1490_vm9, %v15785_v15, %v1538_v39  ;;  %v11283_v15 = vsel %vm1210_vm12, %v11253_v48, 0.0  ;;  %v11295_v17 = vmul.f32 %v9680_v61, %v11106_v6  ;;  %2824 = vmatpush2.msra.mxu0 %v1775_v36  ;;  %9028 = vmatprep.subr.mxu1 %v1780_v59  ;;  %v11309_v61 = vld [vmem:[#allocation2 + $0x128] sm:$0xff] }
 0x189   : > { %v1359_v26 = vsel %vm1308_vm8, %v1356_v0, %v15786_v1  ;;  %v1541_v52 = vsel %vm1490_vm9, %v1538_v39, %v15787_v41  ;;  %1441 = vst [vmem:[#allocation2 + $0x188] sm:$0xff] %v1357_v58  ;;  %1623 = vst [vmem:[#allocation2 + $0x230] sm:$0xff] %v1539_v20  ;;  %v11287_v0 = vsel %vm15477_vm5, %v1046_v2, 0.0  ;;  %v11292_v39 = vsel %vm1213_vm11, %v11262_v44, 0.0  ;;  %v11297_v20 = vpop.permute.xlu0 %1183  ;;  %v11299_v58 = vpop.permute.xlu1 %1186  ;;  %2825 = vmatprep.subr.mxu0 %v11071_v62 }
 0x18a   : > { %1442 = vst [vmem:[#allocation2 + $0x148] sm:$0xff] %v1359_v26  ;;  %1624 = vst [vmem:[#allocation2 + $0x1c0] sm:$0xff] %v1541_v52  ;;  %v9686_v1 = vpop.eup %9685  ;;  %v1328_v2 = vrot.slane %v11283_v15, 7  ;;  %v1510_v26 = vrot.slane %v11283_v15, 1  ;;  %v1360_v41 = vrot.slane %v11287_v0, 7  ;;  %v1542_v6 = vrot.slane %v11287_v0, 1  ;;  %9029 = vmatpush3.msra.mxu1 %v1780_v59  ;;  %1958 = vmatprep.mubr.f32.mxu1 %v11309_v61 }
 0x18b   : > { %15788 = vst [vmem:[#allocation67_spill] sm:$0xff] %v11283_v15  ;;  %15789 = vst [vmem:[#allocation68_spill] sm:$0xff] %v11287_v0  ;;  %v9688_v36 = vpop.eup %9687  ;;  %2826 = vmatpush2.msra.mxu0 %v1774_v4  ;;  %v15794_v52 = vrot.slane %v11250_v40, 7  ;;  %v15796_v11 = vrot.slane %v11250_v40, 1  ;;  %vm1230_vm13 = vcmp.eq.s32.totalorder %v11297_v20, 1  ;;  %vm1231_vm5 = vcmp.eq.s32.totalorder %v11299_v58, 1  ;;  %3872 = vmatprep.subr.mxu1 %v11071_v62 }
 0x18c   : > { %15790 = vst [vmem:[#allocation69_spill] sm:$0xff] %v11297_v20  ;;  %15791 = vst [vmem:[#allocation70_spill] sm:$0xff] %v11299_v58  ;;  %v11326_v59 = vsel %vm1308_vm8, %v15793_v10, %v1328_v2  ;;  %v11334_v27 = vsel %vm1490_vm9, %v15795_v21, %v1510_v26  ;;  %2827 = vmatprep.subr.mxu0 %v11071_v62  ;;  %v1773_v10 = vld [vmem:[#allocation8 + $0xc8] sm:$0xff]  ;;  %v15797_v21 = vrot.slane %v11169_v19, 7  ;;  %v15800_v54 = vrot.slane %v11317_v35, 7 }
 0x18d   : > { %1464 = vst [vmem:[#allocation2 + $0xa0] sm:$0xff] %v11283_v15  ;;  %1480 = vst [vmem:[#allocation2 + $0xf8] sm:$0xff] %v11287_v0  ;;  %v9690_v0 = vpop.eup %9689  ;;  %v1331_v14 = vsel %vm1308_vm8, %v1328_v2, %v15794_v52  ;;  %v11339_v57 = vsel %vm1490_vm9, %v1510_v26, %v15796_v11  ;;  %v15798_v26 = vrot.slane %v11169_v19, 1  ;;  %8957 = vmatmul.mubr.f32.gmra.mxu0 %v11334_v27  ;;  %v11378_v19 = vld [vmem:[#allocation2 + $0x8] sm:$0xff]  ;;  %v15810_v23 = vrot.slane %v11292_v39, 1 }
 0x18e   : > { %1467 = vst [vmem:[#allocation2 + $0x118] sm:$0xff] %v11292_v39  ;;  %15792 = vst [vmem:[#allocation71_spill] sm:$0xff] %v11317_v35  ;;  %v11343_v4 = vpop.eup %9691  ;;  %v1361_v2 = vsel %vm1308_vm8, %v15797_v21, %v1360_v41  ;;  %v11367_v21 = vsel %vm1212_vm14, %v11320_v12, 0.0  ;;  %v11371_v25 = vmul.f32 %v9686_v1, %v11123_v24  ;;  %v11374_v11 = vmul.f32 %v9688_v36, %v11128_v45  ;;  %v11391_v1 = vpop.permute.xlu0 %1189 }
 0x18f   : > { %1481 = vst [vmem:[#allocation2 + $0x328] sm:$0xff] %v11317_v35  ;;  %1427 = vst [vmem:[#allocation2 + $0x310] sm:$0xff] %v11326_v59  ;;  %v1543_v52 = vsel %vm1490_vm9, %v15798_v26, %v1542_v6  ;;  %v11362_v53 = vpop.eup %9693  ;;  %v1048_v26 = vmul.f32 %v9684_v3, %v11117_v22  ;;  %8959 = vmatprep.mubr.f32.mxu0 %v11339_v57  ;;  %v1363_v16 = vsel %vm1308_vm8, %v1360_v41, %v15800_v54  ;;  %v11393_v36 = vpop.permute.xlu1 %1192 }
 0x190   : > { %1428 = vst [vmem:[#allocation2 + $0x228] sm:$0xff] %v1331_v14  ;;  %1609 = vst [vmem:[#allocation2 + $0x1d0] sm:$0xff] %v11334_v27  ;;  %v11359_v14 = vld [vmem:[#allocation2 + $0x278] sm:$0xff]  ;;  %v15801_v3 = vrot.slane %v11317_v35, 1  ;;  %v1332_v24 = vrot.slane %v11367_v21, 7  ;;  %v1514_v45 = vrot.slane %v11367_v21, 1  ;;  %2828 = vmatpush2.msra.mxu0 %v1773_v10 }
 0x191   : > { %1610 = vst [vmem:[#allocation2 + $0x350] sm:$0xff] %v11339_v57  ;;  %1443 = vst [vmem:[#allocation2 + $0x280] sm:$0xff] %v1361_v2  ;;  %1959 = vmatmul.mubr.f32.gmra.mxu1 %v11359_v14  ;;  %v1772_v2 = vld [vmem:[#allocation8 + $0xc0] sm:$0xff]  ;;  %v11398_v54 = vsel %vm1228_vm2, %v1048_v26, 0.0  ;;  %v11403_v41 = vsel %vm1215_vm4, %v11371_v25, 0.0  ;;  %vm15516_vm1 = vcmp.eq.s32.totalorder %v11391_v1, 1  ;;  %2829 = vmatprep.subr.mxu0 %v11071_v62 }
 0x192   : > { %1625 = vst [vmem:[#allocation2 + $0x180] sm:$0xff] %v1543_v52  ;;  %15799 = vst [vmem:[#allocation72_spill] sm:$0xff] %v11367_v21  ;;  %v11380_v52 = vpop.eup %9695  ;;  %v1545_v22 = vsel %vm1490_vm9, %v1542_v6, %v15801_v3  ;;  %1963 = vmatprep.mubr.f32.mxu1 %v11378_v19  ;;  %v11408_v6 = vsel %vm1229_vm3, %v11295_v17, 0.0  ;;  %v11411_v3 = vmul.f32 %v9690_v0, %v11133_v33  ;;  %vm15515_vm10 = vcmp.eq.s32.totalorder %v11393_v36, 1 }
 0x193   : > { %1466 = vst [vmem:[#allocation2 + $0x3e8] sm:$0xff] %v11367_v21  ;;  %15802 = vst [vmem:[#allocation73_spill] sm:$0xff] %v11391_v1  ;;  %v9698_v55 = vpop.eup %9697  ;;  %v15807_v10 = vrot.slane %v11250_v40, 7  ;;  %v15809_v33 = vrot.slane %v11250_v40, 1  ;;  %v11436_v18 = vsel %vm1490_vm9, %v1514_v45, %v15810_v23  ;;  %2830 = vmatpush2.msra.mxu0 %v1772_v2  ;;  %v1364_v23 = vrot.slane %v11398_v54, 7  ;;  %v1771_v2 = vld [vmem:[#allocation8 + $0xb8] sm:$0xff] }
 0x194   : > { %15803 = vst [vmem:[#allocation74_spill] sm:$0xff] %v11393_v36  ;;  %1444 = vst [vmem:[#allocation2 + $0xe0] sm:$0xff] %v1363_v16  ;;  %v11416_v16 = vpop.eup %9699  ;;  %v1548_v40 = vrot.slane %v11408_v6, 1  ;;  %v11458_v47 = vsel %vm1214_vm15, %v11411_v3, 0.0  ;;  %v15812_v8 = vrot.slane %v11317_v35, 7  ;;  %2831 = vmatprep.subr.mxu0 %v11071_v62  ;;  %v11648_v1 = vld [vmem:[#allocation2 + $0x230] sm:$0xff] }
 0x195   : > { %1626 = vst [vmem:[#allocation2 + $0x3c0] sm:$0xff] %v1545_v22  ;;  %15804 = vst [vmem:[#allocation75_spill] sm:$0xff] %v11398_v54  ;;  %v11421_v26 = vsel %vm1308_vm8, %v15807_v10, %v1332_v24  ;;  %v15808_v22 = vrot.slane %v11292_v39, 7  ;;  %v11431_v0 = vsel %vm1490_vm9, %v15809_v33, %v1514_v45  ;;  %v11441_v10 = vld [vmem:[#allocation2 + $0x120] sm:$0xff]  ;;  %v1338_v45 = vrot.slane %v11403_v41, 7  ;;  %2832 = vmatpush2.msra.mxu0 %v1771_v2  ;;  %v11509_v2 = vld [vmem:[#allocation2 + $0xd8] sm:$0xff] }
 0x196   : > { %15805 = vst [vmem:[#allocation76_spill] sm:$0xff] %v11403_v41  ;;  %15806 = vst [vmem:[#allocation77_spill] sm:$0xff] %v11408_v6  ;;  %8960 = vmatmul.mubr.f32.gmra.mxu0 %v11431_v0  ;;  %1964 = vmatmul.mubr.f32.gmra.mxu1 %v11441_v10  ;;  %v1366_v33 = vrot.slane %v11408_v6, 7  ;;  %v1365_v51 = vsel %vm1308_vm8, %v15812_v8, %v1364_v23  ;;  %v2535_v63 = vrot.slane %v11339_v57, 6  ;;  %v2547_v28 = vrot.slane %v11436_v18, 6  ;;  %v11725_v57 = vld [vmem:[#allocation2] sm:$0xff] }
 0x197   : > { %v11426_v17 = vsel %vm1308_vm8, %v1332_v24, %v15808_v22  ;;  %1482 = vst [vmem:[#allocation2 + $0x80] sm:$0xff] %v11398_v54  ;;  %1469 = vst [vmem:[#allocation2 + $0x198] sm:$0xff] %v11403_v41  ;;  %v1546_v24 = vrot.slane %v11398_v54, 1  ;;  %v1520_v22 = vrot.slane %v11403_v41, 1  ;;  %v1050_v54 = vmul.f32 %v11343_v4, %v11137_v32  ;;  %8962 = vmatprep.mubr.f32.mxu0 %v11436_v18 }
 0x198   : > { %1483 = vst [vmem:[#allocation2 + $0x300] sm:$0xff] %v11408_v6  ;;  %1429 = vst [vmem:[#allocation2 + $0x370] sm:$0xff] %v11421_v26  ;;  %10057 = vmatprep.mubr.msk.f32.mxu1 %vm1210_vm12, %v11253_v48  ;;  %v15813_v6 = vrot.slane %v11317_v35, 1  ;;  %v11477_v43 = vsel %vm1308_vm8, %v1338_v45, %v15815_v42  ;;  %v15816_v32 = vrot.slane %v10898_v46, 1  ;;  %v1367_v8 = vsel %vm1308_vm8, %v1364_v23, %v1366_v33 }
 0x199   : > { %1430 = vst [vmem:[#allocation2 + $0x140] sm:$0xff] %v11426_v17  ;;  %1611 = vst [vmem:[#allocation2 + $0x330] sm:$0xff] %v11431_v0  ;;  %v11491_v42 = vsel %vm1490_vm9, %v1546_v24, %v1548_v40  ;;  %v1336_v48 = vrot.slane %v11458_v47, 7  ;;  %v11505_v23 = vsel %vm1231_vm5, %v11374_v11, 0.0  ;;  %2833 = vmatprep.subr.mxu0 %v11071_v62  ;;  %v11683_v56 = vld [vmem:[#allocation2 + $0x180] sm:$0xff]  ;;  %v15837_v34 = vrot.slane %v11235_v5, 6 }
 0x19a   : > { %1612 = vst [vmem:[#allocation2 + $0x270] sm:$0xff] %v11436_v18  ;;  %15811 = vst [vmem:[#allocation78_spill] sm:$0xff] %v11458_v47  ;;  %v11472_v50 = vsel %vm1490_vm9, %v15813_v6, %v1546_v24  ;;  %v11482_v4 = vsel %vm1490_vm9, %v1520_v22, %v15816_v32  ;;  %v1518_v6 = vrot.slane %v11458_v47, 1  ;;  %v1053_v32 = vmul.f32 %v11362_v53, %v11142_v9  ;;  %v11733_v18 = vld [vmem:[#allocation2 + $0x340] sm:$0xff] }
 0x19b   : > { %15814 = vst [vmem:[#allocation79_spill] sm:$0xff] %v11472_v50  ;;  %1468 = vst [vmem:[#allocation2 + $0x1e8] sm:$0xff] %v11458_v47  ;;  %v1052_v24 = vmul.f32 %v9698_v55, %v11147_v13  ;;  %1969 = vmatmul.mubr.f32.gmra.mxu1 %v11326_v59  ;;  %v11518_v9 = vsel %vm1308_vm8, %v1336_v48, %v1338_v45  ;;  %v15820_v53 = vrot.slane %v11292_v39, 1  ;;  %v1370_v45 = vrot.slane %v11505_v23, 7 }
 0x19c   : > { %1445 = vst [vmem:[#allocation2 + $0x108] sm:$0xff] %v1365_v51  ;;  %1627 = vst [vmem:[#allocation2 + $0xc0] sm:$0xff] %v11472_v50  ;;  %v11498_v51 = vsel %vm1230_vm13, %v1050_v54, 0.0  ;;  %v15819_v54 = vrot.slane %v11292_v39, 7  ;;  %v11526_v55 = vsel %vm1490_vm9, %v1518_v6, %v1520_v22  ;;  %1973 = vmatprep.mubr.f32.mxu1 %v11509_v2  ;;  %v1552_v22 = vrot.slane %v11505_v23, 1 }
 0x19d   : > { %1433 = vst [vmem:[#allocation2 + $0x20] sm:$0xff] %v11477_v43  ;;  %1615 = vst [vmem:[#allocation2 + $0x1b8] sm:$0xff] %v11482_v4  ;;  %v11523_v11 = vsel %vm1490_vm9, %v15820_v53, %v1518_v6  ;;  %v1368_v13 = vrot.slane %v11498_v51, 7  ;;  %v1550_v39 = vrot.slane %v11498_v51, 1  ;;  %v947_v6 = vadd.f32 1.0, %v11380_v52 }
 0x19e   : > { %1446 = vst [vmem:[#allocation2 + $0x238] sm:$0xff] %v1367_v8  ;;  %1628 = vst [vmem:[#allocation2 + $0x248] sm:$0xff] %v11491_v42  ;;  %v1770_v8 = vld [vmem:[#allocation8 + $0xb0] sm:$0xff]  ;;  %v11515_v35 = vsel %vm1308_vm8, %v15819_v54, %v1336_v48  ;;  %8963 = vmatmul.mubr.f32.gmra.mxu0 %v11523_v11  ;;  %v11542_v48 = vsel %vm15516_vm1, %v1052_v24, 0.0  ;;  %v11547_v54 = vsel %vm15515_vm10, %v1053_v32, 0.0  ;;  %v946_v53 = vadd.f32 1.0, %v11416_v16 }
 0x19f   : > { %15817 = vst [vmem:[#allocation80_spill] sm:$0xff] %v11498_v51  ;;  %15818 = vst [vmem:[#allocation81_spill] sm:$0xff] %v11505_v23  ;;  %8965 = vmatprep.mubr.f32.mxu0 %v11526_v55  ;;  %2834 = vmatpush2.msra.mxu0 %v1770_v8  ;;  %v11555_v46 = vsel %vm1490_vm9, %v1548_v40, %v1550_v39  ;;  %v1371_v24 = vsel %vm1308_vm8, %v1368_v13, %v1370_v45  ;;  %v1769_v16 = vld [vmem:[#allocation8 + $0xa8] sm:$0xff]  ;;  %v1372_v40 = vrot.slane %v11542_v48, 7  ;;  %v11575_v8 = vld [vmem:[#allocation2 + $0x10] sm:$0xff] }
 0x1a0   : > { %1484 = vst [vmem:[#allocation2 + $0x3e0] sm:$0xff] %v11498_v51  ;;  %1485 = vst [vmem:[#allocation2 + $0x338] sm:$0xff] %v11505_v23  ;;  %v11551_v51 = vld [vmem:[#allocation2 + $0x228] sm:$0xff]  ;;  %v1369_v23 = vsel %vm1308_vm8, %v1366_v33, %v1368_v13  ;;  %v11559_v52 = vsel %vm1490_vm9, %v1550_v39, %v1552_v22  ;;  %v1554_v33 = vrot.slane %v11542_v48, 1  ;;  %9701 = vrcp.f32 %v947_v6  ;;  %2835 = vmatprep.subr.mxu0 %v11071_v62  ;;  %v1768_v13 = vld [vmem:[#allocation8 + $0xa0] sm:$0xff] }
 0x1a1   : > { %1431 = vst [vmem:[#allocation2 + $0x2c8] sm:$0xff] %v11515_v35  ;;  %1432 = vst [vmem:[#allocation2 + $0x90] sm:$0xff] %v11518_v9  ;;  %1974 = vmatmul.mubr.f32.gmra.mxu1 %v11551_v51  ;;  %v15513_v32 = vrot.slane %v11547_v54, 7  ;;  %9703 = vrcp.f32 %v946_v53  ;;  %v1373_v39 = vsel %vm1308_vm8, %v1370_v45, %v1372_v40  ;;  %2836 = vmatpush2.msra.mxu0 %v1769_v16  ;;  %v1767_v45 = vld [vmem:[#allocation8 + $0x98] sm:$0xff]  ;;  %v11602_v53 = vld [vmem:[#allocation2 + $0x1f8] sm:$0xff]  ;;  %v2555_v36 = vrot.slane %v11515_v35, 6 }
 0x1a2   : > { %1613 = vst [vmem:[#allocation2 + $0x240] sm:$0xff] %v11523_v11  ;;  %1614 = vst [vmem:[#allocation2 + $0x3a0] sm:$0xff] %v11526_v55  ;;  %10058 = vmatprep.mubr.msk.f32.mxu1 %vm1212_vm14, %v11320_v12  ;;  %8966 = vmatmul.mubr.f32.gmra.mxu0 %v11482_v4  ;;  %v11579_v6 = vsel %vm1490_vm9, %v1552_v22, %v1554_v33  ;;  %v11592_v12 = vld [vmem:[#allocation2 + $0x308] sm:$0xff]  ;;  %v11596_v22 = vld [vmem:[#allocation2 + $0x38] sm:$0xff]  ;;  %v15832_v58 = vrot.slane %v11547_v54, 1  ;;  %v2655_v30 = vrot.slane %v11559_v52, 6 }
 0x1a3   : > { %15821 = vst [vmem:[#allocation82_spill] sm:$0xff] %v11542_v48  ;;  %15822 = vst [vmem:[#allocation83_spill] sm:$0xff] %v11547_v54  ;;  %8968 = vmatprep.mubr.f32.mxu0 %v11575_v8  ;;  %2837 = vmatprep.subr.mxu0 %v11592_v12  ;;  %v1766_v16 = vld [vmem:[#allocation8 + $0x90] sm:$0xff] }
 0x1a4   : > { %1486 = vst [vmem:[#allocation2 + $0xf0] sm:$0xff] %v11542_v48  ;;  %1487 = vst [vmem:[#allocation2 + $0x30] sm:$0xff] %v11547_v54  ;;  %2838 = vmatpush2.msra.mxu0 %v1768_v13  ;;  %v1764_v13 = vld [vmem:[#allocation8 + $0x80] sm:$0xff] }
 0x1a5   : > { %1447 = vst [vmem:[#allocation2 + $0x3d0] sm:$0xff] %v1369_v23  ;;  %1629 = vst [vmem:[#allocation2 + $0x1e0] sm:$0xff] %v11555_v46  ;;  %v15512_v23 = vrot.slane %v11547_v54, 1  ;;  %1979 = vmatmul.mubr.f32.gmra.mxu1 %v11421_v26  ;;  %2839 = vmatprep.subr.mxu0 %v11592_v12 }
 0x1a6   : > { %1448 = vst [vmem:[#allocation2 + $0x1a8] sm:$0xff] %v1371_v24  ;;  %1630 = vst [vmem:[#allocation2 + $0x2d8] sm:$0xff] %v11559_v52  ;;  %v1375_v24 = vsel %vm1308_vm8, %v1372_v40, %v15513_v32  ;;  %10059 = vmatprep.mubr.msk.f32.mxu1 %vm1213_vm11, %v11262_v44  ;;  %8969 = vmatmul.mubr.f32.gmra.mxu0 %v11596_v22  ;;  %v1765_v40 = vld [vmem:[#allocation8 + $0x88] sm:$0xff] }
 0x1a7   : > { %1449 = vst [vmem:[#allocation2 + $0x200] sm:$0xff] %v1373_v39  ;;  %1631 = vst [vmem:[#allocation2 + $0x290] sm:$0xff] %v11579_v6  ;;  %v11589_v62 = vsel %vm1490_vm9, %v1554_v33, %v15512_v23  ;;  %8971 = vmatprep.mubr.f32.mxu0 %v11602_v53  ;;  %2840 = vmatpush2.msra.mxu0 %v1767_v45  ;;  %v11608_v33 = vld [vmem:[#allocation2 + $0x100] sm:$0xff]  ;;  %v11614_v44 = vld [vmem:[#allocation2 + $0x78] sm:$0xff] }
 0x1a8   : > { %1450 = vst [vmem:[#allocation2 + $0x58] sm:$0xff] %v1375_v24  ;;  %15823 = vst [vmem:[#allocation84_spill] sm:$0xff] %v11589_v62  ;;  %2841 = vmatprep.subr.mxu0 %v11592_v12  ;;  %v11618_v39 = vld [vmem:[#allocation8 + $0x478] sm:$0xff]  ;;  %v11622_v24 = vpop.permute.xlu1 %1198 }
 0x1a9   : > { %1632 = vst [vmem:[#allocation2 + $0x218] sm:$0xff] %v11589_v62  ;;  %1984 = vmatmul.mubr.f32.gmra.mxu1 %v11426_v17  ;;  %2842 = vmatpush2.msra.mxu0 %v1766_v16  ;;  %15824 = vst [vmem:[#allocation85_spill] sm:$0xff] %v11622_v24  ;;  %v11629_v16 = vpop.permute.xlu0 %1195  ;;  %vm15524_vm10 = vcmp.eq.s32.totalorder %v11622_v24, 1 }
 0x1aa   : > { %10060 = vmatprep.mubr.msk.f32.mxu1 %vm1214_vm15, %v11411_v3  ;;  %8972 = vmatmul.mubr.f32.gmra.mxu0 %v11608_v33  ;;  %v11624_v3 = vld [vmem:[#allocation2 + $0x1f0] sm:$0xff]  ;;  %15825 = vst [vmem:[#allocation86_spill] sm:$0xff] %v11629_v16  ;;  %vm15575_vm1 = vcmp.eq.s32.totalorder %v11629_v16, 1  ;;  %15828 = vst [vmem:[#allocation89_spill] sm:$0xff] %v11648_v1  ;;  %v15831_v16 = vrot.slane %v11547_v54, 7 }
 0x1ab   : > { %2843 = vmatprep.subr.mxu0 %v11592_v12  ;;  %8974 = vmatprep.mubr.f32.mxu0 %v11614_v44  ;;  %15833 = vst [vmem:[#allocation92_spill] sm:$0xff] %v11683_v56 }
 0x1ac   : > { %2844 = vmatpush2.msra.mxu0 %v1765_v40  ;;  %v11632_v40 = vld [vmem:[#allocation2 + $0x88] sm:$0xff] }
 0x1ad   : > { %1989 = vmatmul.mubr.f32.gmra.mxu1 %v11515_v35  ;;  %2845 = vmatprep.subr.mxu0 %v11592_v12  ;;  %v9702_v45 = vpop.eup %9701  ;;  %15826 = vst [vmem:[#allocation87_spill] sm:$0xff] %v11632_v40 }
 0x1ae   : > { %10061 = vmatprep.mubr.msk.f32.mxu1 %vm1215_vm4, %v11371_v25  ;;  %2846 = vmatpush2.msra.mxu0 %v1764_v13  ;;  %v9704_v23 = vpop.eup %9703  ;;  %v1055_v32 = vmul.f32 %v9702_v45, %v11178_v49  ;;  %v11640_v25 = vld [vmem:[#allocation2 + $0x2f0] sm:$0xff]  ;;  %v2549_v49 = vrot.slane %v11426_v17, 6 }
 0x1af   : > { %8975 = vmatmul.mubr.f32.gmra.mxu0 %v11624_v3  ;;  %9084 = vmatprep.subr.mxu0 %v11618_v39  ;;  %v1054_v48 = vmul.f32 %v9704_v23, %v11181_v29 }
 0x1b0   : > { %8977 = vmatprep.mubr.f32.mxu0 %v11632_v40  ;;  %v11645_v13 = vsel %vm15524_vm10, %v1055_v32, 0.0  ;;  %v11660_v32 = vld [vmem:[#allocation2 + $0x1c0] sm:$0xff]  ;;  %vm2455_vm10 = vcmask 1041408   ;;  %v10001_v40 = vld [vmem:[#allocation2 + $0xb8] sm:$0xff] }
 0x1b1   : > { %1994 = vmatmul.mubr.f32.gmra.mxu1 %v11518_v9  ;;  %15827 = vst [vmem:[#allocation88_spill] sm:$0xff] %v11645_v13  ;;  %v11654_v29 = vsel %vm15575_vm1, %v1054_v48, 0.0  ;;  %v1378_v23 = vrot.slane %v11645_v13, 7  ;;  %1489 = vst [vmem:[#allocation2 + $0x210] sm:$0xff] %v11645_v13  ;;  %v1560_v45 = vrot.slane %v11645_v13, 1  ;;  %v2561_v48 = vrot.slane %v11518_v9, 6 }
 0x1b2   : > { %1998 = vmatprep.mubr.f32.mxu1 %v11640_v25  ;;  %15829 = vst [vmem:[#allocation90_spill] sm:$0xff] %v11654_v29  ;;  %15830 = vst [vmem:[#allocation91_spill] sm:$0xff] %v11660_v32  ;;  %v1376_v17 = vrot.slane %v11654_v29, 7  ;;  %v1558_v24 = vrot.slane %v11654_v29, 1  ;;  %v11669_v13 = vld [vmem:[#allocation2 + $0x1a0] sm:$0xff]  ;;  %vm15580_vm1 = vcmask 1045504  }
 0x1b3   : > { %8978 = vmatmul.mubr.f32.gmra.mxu0 %v11648_v1  ;;  %1488 = vst [vmem:[#allocation2 + $0x110] sm:$0xff] %v11654_v29  ;;  %1453 = vst [vmem:[#allocation2 + $0x390] sm:$0x1] %v1378_v23  ;;  %v11706_v54 = vsel %vm2455_vm10, %v2555_v36, %v2561_v48 }
 0x1b4   : > { %8980 = vmatprep.mubr.f32.mxu0 %v11660_v32  ;;  %1635 = vst [vmem:[#allocation2 + $0x138] sm:$0x7f] %v1560_v45  ;;  %v1377_v35 = vsel %vm1308_vm8, %v15831_v16, %v1376_v17  ;;  %v11677_v20 = vsel %vm1490_vm9, %v15832_v58, %v1558_v24  ;;  %v1379_v29 = vsel %vm1308_vm8, %v1376_v17, %v1378_v23  ;;  %v11689_v16 = vld [vmem:[#allocation2 + $0x3c0] sm:$0xff]  ;;  %v15835_v23 = vrot.slane %v11421_v26, 6  ;;  %v11798_v32 = vld [vmem:[#allocation2 + $0x98] sm:$0xff] }
 0x1b5   : > { %1999 = vmatmul.mubr.f32.gmra.mxu1 %v11477_v43  ;;  %v11681_v9 = vsel %vm1490_vm9, %v1558_v24, %v1560_v45  ;;  %1451 = vst [vmem:[#allocation2 + $0x288] sm:$0xff] %v1377_v35  ;;  %1633 = vst [vmem:[#allocation2 + $0xd0] sm:$0xff] %v11677_v20  ;;  %v11698_v45 = vsel %vm2455_vm10, %v2549_v49, %v2555_v36  ;;  %v11703_v35 = vld [vmem:[#allocation2 + $0x368] sm:$0xff]  ;;  %v2529_v58 = vrot.slane %v11334_v27, 6  ;;  %v2553_v36 = vrot.slane %v11523_v11, 6 }
 0x1b6   : > { %2003 = vmatprep.mubr.f32.mxu1 %v11669_v13  ;;  %1452 = vst [vmem:[#allocation2 + $0x130] sm:$0xff] %v1379_v29  ;;  %1634 = vst [vmem:[#allocation2 + $0x2a0] sm:$0xff] %v11681_v9  ;;  %v11695_v24 = vsel %vm2455_vm10, %v15835_v23, %v2549_v49  ;;  %v2523_v29 = vrot.slane %v11240_v60, 6  ;;  %v11711_v23 = vld [vmem:[#allocation2 + $0x220] sm:$0xff]  ;;  %v15836_v49 = vrot.slane %v11477_v43, 6  ;;  %v2541_v60 = vrot.slane %v11431_v0, 6 }
 0x1b7   : > { %8981 = vmatmul.mubr.f32.gmra.mxu0 %v11683_v56  ;;  %15834 = vst [vmem:[#allocation93_spill] sm:$0xff] %v11689_v16  ;;  %v2559_v27 = vrot.slane %v11526_v55, 6  ;;  %v11739_v11 = vsel %vm2455_vm10, %v2529_v58, %v2535_v63  ;;  %v15549_v55 = vrot.slane %v11482_v4, 6  ;;  %v11751_v7 = vsel %vm2455_vm10, %v2547_v28, %v2553_v36 }
 0x1b8   : > { %8983 = vmatprep.mubr.f32.mxu0 %v11689_v16  ;;  %v11716_v17 = vsel %vm2455_vm10, %v2561_v48, %v15836_v49  ;;  %v11730_v48 = vsel %vm2455_vm10, %v15837_v34, %v2523_v29  ;;  %v11736_v0 = vsel %vm2455_vm10, %v2523_v29, %v2529_v58  ;;  %v11744_v49 = vsel %vm2455_vm10, %v2535_v63, %v2541_v60  ;;  %v11757_v58 = vld [vmem:[#allocation2 + $0x3d8] sm:$0xff]  ;;  %v1637_v16 = vld [vmem:[#allocation2 + $0x308] sm:$0xc0] }
 0x1b9   : > { %2004 = vmatmul.mubr.f32.gmra.mxu1 %v11703_v35  ;;  %v11747_v34 = vsel %vm2455_vm10, %v2541_v60, %v2547_v28  ;;  %v11754_v29 = vsel %vm2455_vm10, %v2553_v36, %v2559_v27  ;;  %v11762_v63 = vsel %vm2455_vm10, %v2559_v27, %v15549_v55  ;;  %v11765_v60 = vld [vmem:[#allocation2 + $0x358] sm:$0xff]  ;;  %v2643_v28 = vrot.slane %v11491_v42, 6 }
 0x1ba   : > { %2008 = vmatprep.mubr.f32.mxu1 %v11711_v23  ;;  %v2649_v36 = vrot.slane %v11555_v46, 6  ;;  %v2661_v27 = vrot.slane %v11579_v6, 6  ;;  %v2456_v56 = vrot.slane %v1637_v16, 6  ;;  %v11819_v16 = vld [vmem:[#allocation2 + $0x2f8] sm:$0xff] }
 0x1bb   : > { %8984 = vmatmul.mubr.f32.gmra.mxu0 %v11472_v50  ;;  %15845 = vst [vmem:[#allocation99_spill] sm:$0xff] %v11819_v16 }
 0x1bc   : > { %8986 = vmatprep.mubr.f32.mxu0 %v11491_v42  ;;  %v11779_v42 = vld [vmem:[#allocation2 + $0x260] sm:$0xff]  ;;  %v11792_v55 = vsel %vm2455_vm10, %v2643_v28, %v2649_v36  ;;  %v11795_v38 = vsel %vm2455_vm10, %v2649_v36, %v2655_v30  ;;  %v11811_v36 = vld [vmem:[#allocation2 + $0x298] sm:$0xff] }
 0x1bd   : > { %2009 = vmatmul.mubr.f32.gmra.mxu1 %v11725_v57  ;;  %15840 = vst [vmem:[#allocation95_spill] sm:$0xff] %v11792_v55  ;;  %15841 = vst [vmem:[#allocation96_spill] sm:$0xff] %v11795_v38  ;;  %v1804_v38 = vld [vmem:[#allocation2 + $0x138] sm:$0xff] }
 0x1be   : > { %2013 = vmatprep.mubr.f32.mxu1 %v11733_v18  ;;  %v9998_v55 = vld [vmem:[#allocation2 + $0x378] sm:$0xff] }
 0x1bf   : > { %8987 = vmatmul.mubr.f32.gmra.mxu0 %v11555_v46  ;;  %v15838_v46 = vrot.slane %v11472_v50, 6  ;;  %v11801_v50 = vsel %vm2455_vm10, %v2655_v30, %v2661_v27 }
 0x1c0   : > { %8989 = vmatprep.mubr.f32.mxu0 %v11559_v52  ;;  %15842 = vst [vmem:[#allocation97_spill] sm:$0xff] %v11801_v50  ;;  %v3429_v50 = vld [vmem:[#allocation8 + $0x460] sm:$0xff] }
 0x1c1   : > { %2014 = vmatmul.mubr.f32.gmra.mxu1 %v11757_v58  ;;  %v11785_v52 = vsel %vm2455_vm10, %v15838_v46, %v2643_v28  ;;  %v15843_v46 = vrot.slane %v11589_v62, 6 }
 0x1c2   : > { %2018 = vmatprep.mubr.f32.mxu1 %v11765_v60  ;;  %15839 = vst [vmem:[#allocation94_spill] sm:$0xff] %v11785_v52  ;;  %v2479_v52 = vrot.slane %v9998_v55, 6  ;;  %v11842_v55 = vld [vmem:[#allocation2 + $0x148] sm:$0xff] }
 0x1c3   : > { %8990 = vmatmul.mubr.f32.gmra.mxu0 %v11579_v6  ;;  %v11789_v6 = vrot.slane %v11592_v12, 6  ;;  %15850 = vst [vmem:[#allocation104_spill] sm:$0xff] %v11842_v55 }
 0x1c4   : > { %8992 = vmatprep.mubr.f32.mxu0 %v11589_v62  ;;  %v9997_v62 = vld [vmem:[#allocation2 + $0x150] sm:$0xff] }
 0x1c5   : > { %2019 = vmatmul.mubr.f32.gmra.mxu1 %v11776_v37  ;;  %v2461_v28 = vsel %vm2455_vm10, %v2459_v31, %v11789_v6  ;;  %v2458_v30 = vsel %vm2455_vm10, %v2456_v56, %v11789_v6  ;;  %v9996_v31 = vld [vmem:[#allocation2 + $0x168] sm:$0xff]  ;;  %v11827_v56 = vld [vmem:[#allocation2 + $0x398] sm:$0xff] }
 0x1c6   : > { %2023 = vmatprep.mubr.f32.mxu1 %v11779_v42  ;;  %15847 = vst [vmem:[#allocation101_spill] sm:$0xff] %v11827_v56 }
 0x1c7   : > { %8993 = vmatmul.mubr.f32.gmra.mxu0 %v11677_v20  ;;  %v11806_v20 = vsel %vm2455_vm10, %v2661_v27, %v15843_v46  ;;  %v3431_v27 = vld [vmem:[#allocation8 + $0x470] sm:$0xff]  ;;  %v2473_v46 = vrot.slane %v9996_v31, 6  ;;  %v3428_v31 = vld [vmem:[#allocation8 + $0x458] sm:$0xff] }
 0x1c8   : > { %8995 = vmatprep.mubr.f32.mxu0 %v11681_v9  ;;  %15844 = vst [vmem:[#allocation98_spill] sm:$0xff] %v11806_v20  ;;  %v11816_v9 = vld [vmem:[#allocation2 + $0x1d8] sm:$0xff]  ;;  %v2471_v20 = vrot.slane %v9997_v62, 6  ;;  %v11836_v62 = vld [vmem:[#allocation2 + $0x320] sm:$0xff] }
 0x1c9   : > { %2024 = vmatmul.mubr.f32.gmra.mxu1 %v11798_v32  ;;  %15849 = vst [vmem:[#allocation103_spill] sm:$0xff] %v11836_v62 }
 0x1ca   : > { %2028 = vmatprep.mubr.f32.mxu1 %v11811_v36 }
 0x1cb   : > { %8996 = vmatmul.mubr.f32.gmra.mxu0 %v1804_v38  ;;  %v11824_v38 = vld [vmem:[#allocation2 + $0x158] sm:$0xff] }
 0x1cc   : > { %2847 = vmatprep.mubr.f32.mxu0 %v2461_v28  ;;  %15846 = vst [vmem:[#allocation100_spill] sm:$0xff] %v11824_v38  ;;  %v3430_v28 = vld [vmem:[#allocation8 + $0x468] sm:$0xff] }
 0x1cd   : > { %2029 = vmatmul.mubr.f32.gmra.mxu1 %v11816_v9 }
 0x1ce   : > { %2033 = vmatprep.mubr.f32.mxu1 %v11819_v16  ;;  %v2480_v16 = vsel %vm2455_vm10, %v2473_v46, %v2479_v52 }
 0x1cf   : > { %2848 = vmatmul.mubr.f32.vlgmr.msra.gmra.mxu0 %v2458_v30  ;;  %v11833_v30 = vld [vmem:[#allocation2 + $0x188] sm:$0xff] }
 0x1d0   : > { %9085 = vmatpush3.msra.mxu0 %v11618_v39  ;;  %2852 = vmatprep.mubr.f32.mxu0 %v11789_v6  ;;  %v2474_v39 = vsel %vm2455_vm10, %v11789_v6, %v2473_v46  ;;  %15848 = vst [vmem:[#allocation102_spill] sm:$0xff] %v11833_v30  ;;  %v11850_v46 = vld [vmem:[#allocation2 + $0x280] sm:$0xff] }
 0x1d1   : > { %9086 = vmatprep.subr.mxu0 %v3431_v27  ;;  %2034 = vmatmul.mubr.f32.gmra.mxu1 %v11824_v38  ;;  %15852 = vst [vmem:[#allocation106_spill] sm:$0xff] %v11850_v46 }
 0x1d2   : > { %9087 = vmatpush3.msra.mxu0 %v3431_v27  ;;  %2038 = vmatprep.mubr.f32.mxu1 %v11827_v56  ;;  %v9999_v27 = vld [vmem:[#allocation2 + $0x388] sm:$0xff]  ;;  %v2472_v56 = vsel %vm2455_vm10, %v11789_v6, %v2471_v20 }
 0x1d3   : > { %2853 = vmatmul.mubr.f32.gmra.mxu0 %v11789_v6  ;;  %9088 = vmatprep.subr.mxu0 %v3430_v28  ;;  %v2477_v1 = vrot.slane %v9999_v27, 6  ;;  %v11845_v27 = vld [vmem:[#allocation2 + $0xf8] sm:$0xff] }
 0x1d4   : > { %2857 = vmatprep.mubr.f32.mxu0 %v2474_v39  ;;  %9089 = vmatpush3.msra.mxu0 %v3430_v28  ;;  %v3427_v39 = vld [vmem:[#allocation8 + $0x450] sm:$0xff]  ;;  %15851 = vst [vmem:[#allocation105_spill] sm:$0xff] %v11845_v27 }
 0x1d5   : > { %2039 = vmatmul.mubr.f32.gmra.mxu1 %v11833_v30  ;;  %9090 = vmatprep.subr.mxu0 %v3429_v50  ;;  %v10000_v28 = vld [vmem:[#allocation2 + $0x3a8] sm:$0xff]  ;;  %v3426_v30 = vld [vmem:[#allocation8 + $0x448] sm:$0xff] }
 0x1d6   : > { %2043 = vmatprep.mubr.f32.mxu1 %v11836_v62  ;;  %9091 = vmatpush3.msra.mxu0 %v3429_v50  ;;  %v2485_v38 = vrot.slane %v10000_v28, 6  ;;  %v2483_v62 = vrot.slane %v10001_v40, 6  ;;  %v2478_v50 = vsel %vm2455_vm10, %v2471_v20, %v2477_v1  ;;  %v10002_v28 = vld [vmem:[#allocation2 + $0x1b0] sm:$0xff]  ;;  %v11853_v40 = vld [vmem:[#allocation2 + $0x328] sm:$0xff] }
 0x1d7   : > { %2858 = vmatmul.mubr.f32.gmra.mxu0 %v2472_v56  ;;  %9092 = vmatprep.subr.mxu0 %v3428_v31  ;;  %v3425_v56 = vld [vmem:[#allocation8 + $0x440] sm:$0xff]  ;;  %15853 = vst [vmem:[#allocation107_spill] sm:$0xff] %v11853_v40  ;;  %v10003_v20 = vld [vmem:[#allocation2 + $0x2a8] sm:$0xff] }
 0x1d8   : > { %2862 = vmatprep.mubr.f32.mxu0 %v2480_v16  ;;  %9093 = vmatpush3.msra.mxu0 %v3428_v31  ;;  %v2486_v16 = vsel %vm2455_vm10, %v2479_v52, %v2485_v38  ;;  %v3424_v31 = vld [vmem:[#allocation8 + $0x438] sm:$0xff]  ;;  %v3423_v52 = vld [vmem:[#allocation8 + $0x430] sm:$0xff] }
 0x1d9   : > { %2044 = vmatmul.mubr.f32.gmra.mxu1 %v11842_v55  ;;  %9094 = vmatprep.subr.mxu0 %v3427_v39  ;;  %v2491_v55 = vrot.slane %v10002_v28, 6  ;;  %v11858_v28 = vld [vmem:[#allocation2 + $0xe0] sm:$0xff] }
 0x1da   : > { %2048 = vmatprep.mubr.f32.mxu1 %v11845_v27  ;;  %9095 = vmatpush3.msra.mxu0 %v3427_v39  ;;  %v2489_v27 = vrot.slane %v10003_v20, 6  ;;  %v2484_v39 = vsel %vm2455_vm10, %v2477_v1, %v2483_v62  ;;  %15854 = vst [vmem:[#allocation108_spill] sm:$0xff] %v11858_v28  ;;  %v11861_v20 = vld [vmem:[#allocation2 + $0x80] sm:$0xff]  ;;  %v10005_v1 = vld [vmem:[#allocation2 + $0x28] sm:$0xff] }
 0x1db   : > { %2863 = vmatmul.mubr.f32.gmra.mxu0 %v2478_v50  ;;  %9096 = vmatprep.subr.mxu0 %v3426_v30  ;;  %v10004_v50 = vld [vmem:[#allocation2 + $0x2c0] sm:$0xff]  ;;  %15855 = vst [vmem:[#allocation109_spill] sm:$0xff] %v11861_v20 }
 0x1dc   : > { %2867 = vmatprep.mubr.f32.mxu0 %v2486_v16  ;;  %9097 = vmatpush3.msra.mxu0 %v3426_v30  ;;  %v2497_v16 = vrot.slane %v10004_v50, 6  ;;  %v2492_v30 = vsel %vm2455_vm10, %v2485_v38, %v2491_v55  ;;  %v3420_v50 = vld [vmem:[#allocation8 + $0x418] sm:$0xff] }
 0x1dd   : > { %2049 = vmatmul.mubr.f32.gmra.mxu1 %v11850_v46  ;;  %9098 = vmatprep.subr.mxu0 %v3425_v56  ;;  %v3422_v46 = vld [vmem:[#allocation8 + $0x428] sm:$0xff] }
 0x1de   : > { %2053 = vmatprep.mubr.f32.mxu1 %v11853_v40  ;;  %9099 = vmatpush3.msra.mxu0 %v3425_v56  ;;  %v2495_v40 = vrot.slane %v10005_v1, 6  ;;  %v2490_v56 = vsel %vm2455_vm10, %v2483_v62, %v2489_v27  ;;  %v2498_v38 = vsel %vm2455_vm10, %v2491_v55, %v2497_v16  ;;  %v11869_v1 = vld [vmem:[#allocation2 + $0x300] sm:$0xff]  ;;  %v10007_v62 = vld [vmem:[#allocation2 + $0x1c8] sm:$0xff] }
 0x1df   : > { %2868 = vmatmul.mubr.f32.gmra.mxu0 %v2484_v39  ;;  %9100 = vmatprep.subr.mxu0 %v3424_v31  ;;  %v3421_v39 = vld [vmem:[#allocation8 + $0x420] sm:$0xff]  ;;  %15857 = vst [vmem:[#allocation111_spill] sm:$0xff] %v11869_v1  ;;  %v3419_v55 = vld [vmem:[#allocation8 + $0x410] sm:$0xff] }
 0x1e0   : > { %2872 = vmatprep.mubr.f32.mxu0 %v2492_v30  ;;  %9101 = vmatpush3.msra.mxu0 %v3424_v31  ;;  %v11866_v31 = vld [vmem:[#allocation2 + $0x108] sm:$0xff]  ;;  %v10006_v30 = vld [vmem:[#allocation2 + $0x2b0] sm:$0xff] }
 0x1e1   : > { %2054 = vmatmul.mubr.f32.gmra.mxu1 %v11858_v28  ;;  %9102 = vmatprep.subr.mxu0 %v3423_v52  ;;  %15856 = vst [vmem:[#allocation110_spill] sm:$0xff] %v11866_v31  ;;  %v2503_v28 = vrot.slane %v10006_v30, 6  ;;  %v11874_v30 = vld [vmem:[#allocation2 + $0x238] sm:$0xff] }
 0x1e2   : > { %2058 = vmatprep.mubr.f32.mxu1 %v11861_v20  ;;  %9103 = vmatpush3.msra.mxu0 %v3423_v52  ;;  %v2501_v20 = vrot.slane %v10007_v62, 6  ;;  %v2496_v52 = vsel %vm2455_vm10, %v2489_v27, %v2495_v40  ;;  %15858 = vst [vmem:[#allocation112_spill] sm:$0xff] %v11874_v30  ;;  %v11877_v62 = vld [vmem:[#allocation2 + $0x3e0] sm:$0xff] }
 0x1e3   : > { %2873 = vmatmul.mubr.f32.gmra.mxu0 %v2490_v56  ;;  %9104 = vmatprep.subr.mxu0 %v3422_v46  ;;  %v10008_v56 = vld [vmem:[#allocation2 + $0xc8] sm:$0xff]  ;;  %v10009_v27 = vld [vmem:[#allocation2 + $0x60] sm:$0xff] }
 0x1e4   : > { %2877 = vmatprep.mubr.f32.mxu0 %v2498_v38  ;;  %9105 = vmatpush3.msra.mxu0 %v3422_v46  ;;  %v2509_v38 = vrot.slane %v10008_v56, 6  ;;  %v2504_v46 = vsel %vm2455_vm10, %v2497_v16, %v2503_v28  ;;  %v10010_v56 = vld [vmem:[#allocation2 + $0xe8] sm:$0xff] }
 0x1e5   : > { %2059 = vmatmul.mubr.f32.gmra.mxu1 %v11866_v31  ;;  %9106 = vmatprep.subr.mxu0 %v3421_v39  ;;  %v3418_v31 = vld [vmem:[#allocation8 + $0x408] sm:$0xff] }
 0x1e6   : > { %2063 = vmatprep.mubr.f32.mxu1 %v11869_v1  ;;  %9107 = vmatpush3.msra.mxu0 %v3421_v39  ;;  %v2507_v1 = vrot.slane %v10009_v27, 6  ;;  %v2502_v39 = vsel %vm2455_vm10, %v2495_v40, %v2501_v20  ;;  %v2510_v16 = vsel %vm2455_vm10, %v2503_v28, %v2509_v38  ;;  %v10011_v40 = vld [vmem:[#allocation2 + $0x360] sm:$0xff]  ;;  %v2521_v28 = vrot.slane %v11309_v61, 6 }
 0x1e7   : > { %2878 = vmatmul.mubr.f32.gmra.mxu0 %v2496_v52  ;;  %9108 = vmatprep.subr.mxu0 %v3420_v50  ;;  %v3417_v52 = vld [vmem:[#allocation8 + $0x400] sm:$0xff]  ;;  %v2513_v27 = vrot.slane %v10011_v40, 6 }
 0x1e8   : > { %2882 = vmatprep.mubr.f32.mxu0 %v2504_v46  ;;  %9109 = vmatpush3.msra.mxu0 %v3420_v50  ;;  %v11882_v50 = vld [vmem:[#allocation2 + $0x3d0] sm:$0xff]  ;;  %v2515_v46 = vrot.slane %v10010_v56, 6  ;;  %v2519_v56 = vrot.slane %v11359_v14, 6 }
 0x1e9   : > { %2064 = vmatmul.mubr.f32.gmra.mxu1 %v11874_v30  ;;  %9110 = vmatprep.subr.mxu0 %v3419_v55  ;;  %v11885_v30 = vld [vmem:[#allocation2 + $0x338] sm:$0xff]  ;;  %v1797_v40 = vld [vmem:[#allocation2 + $0x30] sm:$0xff] }
 0x1ea   : > { %2068 = vmatprep.mubr.f32.mxu1 %v11877_v62  ;;  %9111 = vmatpush3.msra.mxu0 %v3419_v55  ;;  %v2508_v55 = vsel %vm2455_vm10, %v2501_v20, %v2507_v1  ;;  %v2514_v20 = vsel %vm2455_vm10, %v2507_v1, %v2513_v27  ;;  %v2522_v61 = vsel %vm2455_vm10, %v2515_v46, %v2521_v28  ;;  %v1796_v1 = vld [vmem:[#allocation2 + $0x58] sm:$0xff] }
 0x1eb   : > { %2883 = vmatmul.mubr.f32.gmra.mxu0 %v2502_v39  ;;  %9112 = vmatprep.subr.mxu0 %v3418_v31  ;;  %v2516_v39 = vsel %vm2455_vm10, %v2509_v38, %v2515_v46  ;;  %v11901_v38 = vld [vmem:[#allocation2 + $0x200] sm:$0xff]  ;;  %v2533_v46 = vrot.slane %v11283_v15, 6  ;;  %v2537_v15 = vrot.slane %v11551_v51, 6 }
 0x1ec   : > { %2887 = vmatprep.mubr.f32.mxu0 %v2510_v16  ;;  %9113 = vmatpush3.msra.mxu0 %v3418_v31  ;;  %v11892_v31 = vld [vmem:[#allocation2 + $0x1a8] sm:$0xff]  ;;  %v11895_v16 = vld [vmem:[#allocation2 + $0xf0] sm:$0xff]  ;;  %15859 = vst [vmem:[#allocation113_spill] sm:$0xff] %v11901_v38 }
 0x1ed   : > { %2069 = vmatmul.mubr.f32.gmra.mxu1 %v11882_v50  ;;  %9114 = vmatprep.subr.mxu0 %v3417_v52 }
 0x1ee   : > { %2073 = vmatprep.mubr.f32.mxu1 %v11885_v30  ;;  %9115 = vmatpush3.msra.mxu0 %v3417_v52  ;;  %v2527_v52 = vrot.slane %v11378_v19, 6 }
 0x1ef   : > { %2888 = vmatmul.mubr.f32.gmra.mxu0 %v2508_v55  ;;  %5310 = vmatprep.subr.mxu0 %v11592_v12  ;;  %v2525_v55 = vrot.slane %v11441_v10, 6 }
 0x1f0   : > { %2892 = vmatprep.mubr.f32.mxu0 %v2516_v39  ;;  %v2520_v39 = vsel %vm2455_vm10, %v2513_v27, %v2519_v56  ;;  %v2528_v14 = vsel %vm2455_vm10, %v2521_v28, %v2527_v52  ;;  %v2534_v10 = vsel %vm2455_vm10, %v2527_v52, %v2533_v46  ;;  %v1799_v28 = vld [vmem:[#allocation2 + $0x288] sm:$0xff]  ;;  %v1802_v52 = vld [vmem:[#allocation2 + $0x130] sm:$0xff] }
 0x1f1   : > { %2074 = vmatmul.mubr.f32.gmra.mxu1 %v11892_v31  ;;  %v2526_v19 = vsel %vm2455_vm10, %v2519_v56, %v2525_v55 }
 0x1f2   : > { %2078 = vmatprep.mubr.f32.mxu1 %v11895_v16 }
 0x1f3   : > { %2893 = vmatmul.mubr.f32.gmra.mxu0 %v2514_v20  ;;  %v1639_v20 = vld [vmem:[#allocation2 + $0xa8] sm:$0xc0] }
 0x1f4   : > { %2897 = vmatprep.mubr.f32.mxu0 %v2522_v61  ;;  %v1800_v61 = vld [vmem:[#allocation2 + $0x110] sm:$0xff]  ;;  %v2462_v27 = vrot.slane %v1639_v20, 6 }
 0x1f5   : > { %2079 = vmatmul.mubr.f32.gmra.mxu1 %v11901_v38  ;;  %v2539_v38 = vrot.slane %v11509_v2, 6 }
 0x1f6   : > { %2083 = vmatprep.mubr.f32.mxu1 %v1797_v40  ;;  %v2531_v40 = vrot.slane %v11326_v59, 6  ;;  %v2464_v2 = vsel %vm2455_vm10, %v2462_v27, %v11789_v6  ;;  %v10012_v59 = vld [vmem:[#allocation2 + $0x3c8] sm:$0xff]  ;;  %v10013_v27 = vld [vmem:[#allocation2 + $0x2b8] sm:$0xff] }
 0x1f7   : > { %2898 = vmatmul.mubr.f32.gmra.mxu0 %v2520_v39  ;;  %v1803_v39 = vld [vmem:[#allocation2 + $0x210] sm:$0xff]  ;;  %v2540_v56 = vsel %vm2455_vm10, %v2533_v46, %v2539_v38 }
 0x1f8   : > { %2902 = vmatprep.mubr.f32.mxu0 %v2528_v14  ;;  %v1645_v14 = vld [vmem:[#allocation2 + $0x250] sm:$0xff] }
 0x1f9   : > { %2084 = vmatmul.mubr.f32.gmra.mxu1 %v1796_v1  ;;  %v2532_v1 = vsel %vm2455_vm10, %v2525_v55, %v2531_v40  ;;  %v2469_v20 = vrot.slane %v1645_v14, 6  ;;  %v3400_v55 = vld [vmem:[#allocation8 + $0x378] sm:$0xff] }
 0x1fa   : > { %2088 = vmatprep.mubr.f32.mxu1 %v1800_v61  ;;  %v2475_v61 = vrot.slane %v10012_v59, 6 }
 0x1fb   : > { %2903 = vmatmul.mubr.f32.gmra.mxu0 %v2526_v19  ;;  %v2545_v19 = vrot.slane %v11367_v21, 6  ;;  %v2470_v46 = vsel %vm2455_vm10, %v11789_v6, %v2469_v20  ;;  %v2557_v6 = vrot.slane %v11458_v47, 6 }
 0x1fc   : > { %2907 = vmatprep.mubr.f32.mxu0 %v2534_v10  ;;  %v2538_v10 = vsel %vm2455_vm10, %v2531_v40, %v2537_v15  ;;  %v2476_v40 = vsel %vm2455_vm10, %v2469_v20, %v2475_v61 }
 0x1fd   : > { %2089 = vmatmul.mubr.f32.gmra.mxu1 %v1799_v28  ;;  %v2546_v51 = vsel %vm2455_vm10, %v2539_v38, %v2545_v19  ;;  %v2481_v28 = vrot.slane %v10013_v27, 6 }
 0x1fe   : > { %2093 = vmatprep.mubr.f32.mxu1 %v1803_v39  ;;  %v10014_v39 = vld [vmem:[#allocation2 + $0x380] sm:$0xff] }
 0x1ff   : > { %2908 = vmatmul.mubr.f32.gmra.mxu0 %v2532_v1  ;;  %v2487_v14 = vrot.slane %v10014_v39, 6  ;;  %v11923_v1 = vld [vmem:[#allocation2 + $0x118] sm:$0xff]  ;;  %v2482_v20 = vsel %vm2455_vm10, %v2475_v61, %v2481_v28  ;;  %v3396_v39 = vld [vmem:[#allocation8 + $0x358] sm:$0xff] }
 0x200   : > { %2912 = vmatprep.mubr.f32.mxu0 %v2540_v56  ;;  %15860 = vst [vmem:[#allocation114_spill] sm:$0xff] %v11923_v1  ;;  %v2551_v56 = vrot.slane %v11923_v1, 6 }
 0x201   : > { %2094 = vmatmul.mubr.f32.gmra.mxu1 %v1802_v52  ;;  %v15861_v52 = vrot.slane %v11421_v26, 6 }
 0x202   : > { %9030 = vmatprep.mubr.f32.mxu1 %v2464_v2  ;;  %v3399_v2 = vld [vmem:[#allocation8 + $0x370] sm:$0xff]  ;;  %v2552_v59 = vsel %vm2455_vm10, %v2545_v19, %v2551_v56  ;;  %v2558_v19 = vsel %vm2455_vm10, %v2551_v56, %v2557_v6 }
 0x203   : > { %2913 = vmatmul.mubr.f32.gmra.mxu0 %v2538_v10  ;;  %v2544_v38 = vsel %vm2455_vm10, %v2537_v15, %v15861_v52  ;;  %v3398_v10 = vld [vmem:[#allocation8 + $0x368] sm:$0xff]  ;;  %v2488_v15 = vsel %vm2455_vm10, %v2481_v28, %v2487_v14 }
 0x204   : > { %2917 = vmatprep.mubr.f32.mxu0 %v2546_v51  ;;  %v10016_v51 = vld [vmem:[#allocation2 + $0xb0] sm:$0xff]  ;;  %v10019_v52 = vld [vmem:[#allocation2 + $0x40] sm:$0xff] }
 0x205   : > { %9031 = vmatmul.mubr.f32.vlgmr.msra.gmra.mxu1 %v2470_v46  ;;  %v2493_v27 = vrot.slane %v10016_v51, 6  ;;  %v10017_v46 = vld [vmem:[#allocation2 + $0x170] sm:$0xff]  ;;  %v2511_v28 = vrot.slane %v10019_v52, 6  ;;  %v2569_v51 = vrot.slane %v11640_v25, 6 }
 0x206   : > { %9033 = vmatprep.mubr.f32.mxu1 %v2476_v40  ;;  %3873 = vmatpush1.msra.mxu1 %v3400_v55  ;;  %v2499_v26 = vrot.slane %v10017_v46, 6  ;;  %v3397_v55 = vld [vmem:[#allocation8 + $0x360] sm:$0xff]  ;;  %v15862_v46 = vrot.slane %v11235_v5, 6  ;;  %v3390_v5 = vld [vmem:[#allocation8 + $0x328] sm:$0xff] }
 0x207   : > { %2918 = vmatmul.mubr.f32.gmra.mxu0 %v2544_v38  ;;  %3874 = vmatprep.subr.mxu1 %v11592_v12  ;;  %v10018_v40 = vld [vmem:[#allocation2 + $0x3b8] sm:$0xff]  ;;  %v2563_v38 = vrot.slane %v11403_v41, 6 }
 0x208   : > { %2922 = vmatprep.mubr.f32.mxu0 %v2552_v59  ;;  %3875 = vmatpush1.msra.mxu1 %v3399_v2  ;;  %v2505_v61 = vrot.slane %v10018_v40, 6  ;;  %v2494_v2 = vsel %vm2455_vm10, %v2487_v14, %v2493_v27  ;;  %v2500_v59 = vsel %vm2455_vm10, %v2493_v27, %v2499_v26  ;;  %v3394_v14 = vld [vmem:[#allocation8 + $0x348] sm:$0xff]  ;;  %v2518_v25 = vsel %vm2455_vm10, %v2511_v28, %v15862_v46 }
 0x209   : > { %9034 = vmatmul.mubr.f32.gmra.mxu1 %v2482_v20  ;;  %3876 = vmatprep.subr.mxu1 %v11592_v12  ;;  %v2564_v56 = vsel %vm2455_vm10, %v2557_v6, %v2563_v38  ;;  %v3393_v20 = vld [vmem:[#allocation8 + $0x340] sm:$0xff]  ;;  %v3392_v6 = vld [vmem:[#allocation8 + $0x338] sm:$0xff]  ;;  %v2595_v46 = vrot.slane %v11614_v44, 6 }
 0x20a   : > { %9036 = vmatprep.mubr.f32.mxu1 %v2488_v15  ;;  %3877 = vmatpush1.msra.mxu1 %v3398_v10  ;;  %v2506_v10 = vsel %vm2455_vm10, %v2499_v26, %v2505_v61  ;;  %v2512_v27 = vsel %vm2455_vm10, %v2505_v61, %v2511_v28  ;;  %v2575_v26 = vrot.slane %v11669_v13, 6  ;;  %v3391_v15 = vld [vmem:[#allocation8 + $0x330] sm:$0xff]  ;;  %v3389_v13 = vld [vmem:[#allocation8 + $0x320] sm:$0xff]  ;;  %v2593_v61 = vrot.slane %v11765_v60, 6 }
 0x20b   : > { %2923 = vmatmul.mubr.f32.gmra.mxu0 %v11695_v24  ;;  %3878 = vmatprep.subr.mxu1 %v11592_v12  ;;  %v3395_v24 = vld [vmem:[#allocation8 + $0x350] sm:$0xff]  ;;  %v2571_v28 = vrot.slane %v11575_v8, 6  ;;  %v15864_v8 = vrot.slane %v11482_v4, 6  ;;  %v3414_v4 = vld [vmem:[#allocation8 + $0x3e8] sm:$0xff] }
 0x20c   : > { %2927 = vmatprep.mubr.f32.mxu0 %v2558_v19  ;;  %3879 = vmatpush1.msra.mxu1 %v3397_v55  ;;  %v2576_v55 = vsel %vm2455_vm10, %v2569_v51, %v2575_v26  ;;  %v2573_v19 = vrot.slane %v11703_v35, 6  ;;  %v3388_v35 = vld [vmem:[#allocation8 + $0x318] sm:$0xff] }
 0x20d   : > { %9037 = vmatmul.mubr.f32.gmra.mxu1 %v2494_v2  ;;  %3880 = vmatprep.subr.mxu1 %v11592_v12 }
 0x20e   : > { %9039 = vmatprep.mubr.f32.mxu1 %v2500_v59  ;;  %3881 = vmatpush1.msra.mxu1 %v3396_v39  ;;  %v3416_v59 = vld [vmem:[#allocation8 + $0x3f8] sm:$0xff] }
 0x20f   : > { %2928 = vmatmul.mubr.f32.gmra.mxu0 %v11698_v45  ;;  %3882 = vmatprep.subr.mxu1 %v11592_v12  ;;  %v2570_v45 = vsel %vm2455_vm10, %v2563_v38, %v2569_v51  ;;  %v3415_v51 = vld [vmem:[#allocation8 + $0x3f0] sm:$0xff] }
 0x210   : > { %2932 = vmatprep.mubr.f32.mxu0 %v2564_v56  ;;  %3883 = vmatpush1.msra.mxu1 %v3395_v24  ;;  %v11979_v40 = vpop.f32.mrf.mxu1  ;;  %v2577_v24 = vrot.slane %v11596_v22, 6  ;;  %v2597_v22 = vrot.slane %v11798_v32, 6 }
 0x211   : > { %9040 = vmatmul.mubr.f32.gmra.mxu1 %v2506_v10  ;;  %3884 = vmatprep.subr.mxu1 %v11592_v12  ;;  %v2572_v10 = vsel %vm2455_vm10, %v15864_v8, %v2571_v28 }
 0x212   : > { %9042 = vmatprep.mubr.f32.mxu1 %v2512_v27  ;;  %3885 = vmatpush1.msra.mxu1 %v3394_v14  ;;  %v2599_v14 = vrot.slane %v11779_v42, 6  ;;  %v2605_v42 = vrot.slane %v11811_v36, 6  ;;  %v3413_v36 = vld [vmem:[#allocation8 + $0x3e0] sm:$0xff] }
 0x213   : > { %2933 = vmatmul.mubr.f32.gmra.mxu0 %v11706_v54  ;;  %3886 = vmatprep.subr.mxu1 %v11592_v12  ;;  %v2581_v54 = vrot.slane %v11711_v23, 6  ;;  %v15863_v23 = vrot.slane %v11477_v43, 6  ;;  %v3387_v43 = vld [vmem:[#allocation8 + $0x310] sm:$0xff] }
 0x214   : > { %2937 = vmatprep.mubr.f32.mxu0 %v2570_v45  ;;  %3887 = vmatpush1.msra.mxu1 %v3393_v20  ;;  %v2589_v45 = vrot.slane %v11608_v33, 6  ;;  %v2606_v33 = vsel %vm2455_vm10, %v2599_v14, %v2605_v42 }
 0x215   : > { %9043 = vmatmul.mubr.f32.gmra.mxu1 %v2518_v25  ;;  %3888 = vmatprep.subr.mxu1 %v11592_v12  ;;  %v2582_v39 = vsel %vm2455_vm10, %v2575_v26, %v2581_v54 }
 0x216   : > { %9045 = vmatprep.mubr.f32.mxu1 %v11730_v48  ;;  %3889 = vmatpush1.msra.mxu1 %v3392_v6  ;;  %v2579_v48 = vrot.slane %v11725_v57, 6  ;;  %v2585_v57 = vrot.slane %v11757_v58, 6  ;;  %v3385_v58 = vld [vmem:[#allocation8 + $0x300] sm:$0xff]  ;;  %v2578_v6 = vsel %vm2455_vm10, %v2571_v28, %v2577_v24 }
 0x217   : > { %2938 = vmatmul.mubr.f32.gmra.mxu0 %v11716_v17  ;;  %3890 = vmatprep.subr.mxu1 %v11592_v12  ;;  %v2574_v17 = vsel %vm2455_vm10, %v15863_v23, %v2573_v19  ;;  %v15865_v23 = vld [vmem:[#allocation87_spill] sm:$0xff] }
 0x218   : > { %2942 = vmatprep.mubr.f32.mxu0 %v2576_v55  ;;  %3891 = vmatpush1.msra.mxu1 %v3391_v15  ;;  %v2586_v52 = vsel %vm2455_vm10, %v2579_v48, %v2585_v57  ;;  %v2603_v15 = vrot.slane %v11816_v9, 6  ;;  %v3412_v55 = vld [vmem:[#allocation8 + $0x3d8] sm:$0xff] }
 0x219   : > { %9046 = vmatmul.mubr.f32.gmra.mxu1 %v11736_v0  ;;  %3892 = vmatprep.subr.mxu1 %v11592_v12  ;;  %v2587_v0 = vrot.slane %v11733_v18, 6  ;;  %v3386_v18 = vld [vmem:[#allocation8 + $0x308] sm:$0xff] }
 0x21a   : > { %9048 = vmatprep.mubr.f32.mxu1 %v11739_v11  ;;  %3893 = vmatpush1.msra.mxu1 %v3390_v5  ;;  %v2580_v11 = vsel %vm2455_vm10, %v2573_v19, %v2579_v48  ;;  %v2601_v19 = vrot.slane %v11624_v3, 6  ;;  %v3411_v3 = vld [vmem:[#allocation8 + $0x3d0] sm:$0xff] }
 0x21b   : > { %2943 = vmatmul.mubr.f32.gmra.mxu0 %v2574_v17  ;;  %3894 = vmatprep.subr.mxu1 %v11592_v12  ;;  %v2588_v2 = vsel %vm2455_vm10, %v2581_v54, %v2587_v0  ;;  %v2594_v38 = vsel %vm2455_vm10, %v2587_v0, %v2593_v61  ;;  %v2607_v17 = vrot.slane %v15865_v23, 6  ;;  %v12027_v0 = vld [vmem:[#allocation2 + $0x308] sm:$0xff]  ;;  %v3406_v23 = vld [vmem:[#allocation8 + $0x3a8] sm:$0xff] }
 0x21c   : > { %2947 = vmatprep.mubr.f32.mxu0 %v2582_v39  ;;  %3895 = vmatpush1.msra.mxu1 %v3389_v13  ;;  %v15866_v39 = vld [vmem:[#allocation99_spill] sm:$0xff]  ;;  %v2602_v28 = vsel %vm2455_vm10, %v2595_v46, %v2601_v19 }
 0x21d   : > { %9049 = vmatmul.mubr.f32.gmra.mxu1 %v11744_v49  ;;  %3896 = vmatprep.subr.mxu1 %v11592_v12  ;;  %v1922_v49 = vpop.f32.mrf.mxu1 }
 0x21e   : > { %9051 = vmatprep.mubr.f32.mxu1 %v11747_v34  ;;  %3897 = vmatpush1.msra.mxu1 %v3388_v35  ;;  %v2591_v34 = vrot.slane %v11776_v37, 6  ;;  %v2611_v35 = vrot.slane %v15866_v39, 6 }
 0x21f   : > { %2948 = vmatmul.mubr.f32.gmra.mxu0 %v2580_v11  ;;  %3898 = vmatprep.subr.mxu1 %v11592_v12  ;;  %v1925_v60 = vpop.f32.mrf.mxu1 }
 0x220   : > { %2952 = vmatprep.mubr.f32.mxu0 %v2588_v2  ;;  %3899 = vmatpush1.msra.mxu1 %v3387_v43  ;;  %v2592_v20 = vsel %vm2455_vm10, %v2585_v57, %v2591_v34  ;;  %v2598_v54 = vsel %vm2455_vm10, %v2591_v34, %v2597_v22  ;;  %v15867_v57 = vld [vmem:[#allocation100_spill] sm:$0xff]  ;;  %v15868_v2 = vld [vmem:[#allocation101_spill] sm:$0xff]  ;;  %v2612_v49 = vsel %vm2455_vm10, %v2605_v42, %v2611_v35 }
 0x221   : > { %9052 = vmatmul.mubr.f32.gmra.mxu1 %v11751_v7  ;;  %3900 = vmatprep.subr.mxu1 %v11592_v12  ;;  %v8946_v7 = vpop.f32.mrf.mxu0  ;;  %v1927_v56 = vpop.f32.mrf.mxu1  ;;  %v2609_v11 = vrot.slane %v15867_v57, 6 }
 0x222   : > { %9054 = vmatprep.mubr.f32.mxu1 %v11754_v29  ;;  %3901 = vmatpush1.msra.mxu1 %v3386_v18  ;;  %v11993_v37 = vadd.f32 %v8946_v7, %v1925_v60  ;;  %v2583_v29 = vrot.slane %v11602_v53, 6  ;;  %v2617_v18 = vrot.slane %v15868_v2, 6  ;;  %v3409_v56 = vld [vmem:[#allocation8 + $0x3c0] sm:$0xff]  ;;  %v3404_v2 = vld [vmem:[#allocation8 + $0x398] sm:$0xff] }
 0x223   : > { %2953 = vmatmul.mubr.f32.gmra.mxu0 %v2586_v52  ;;  %3902 = vmatprep.subr.mxu1 %v11592_v12  ;;  %v12002_v27 = vpop.f32.mrf.mxu0  ;;  %v1930_v53 = vpop.f32.mrf.mxu1  ;;  %v15869_v52 = vld [vmem:[#allocation89_spill] sm:$0xff] }
 0x224   : > { %2957 = vmatprep.mubr.f32.mxu0 %v2594_v38  ;;  %3903 = vmatpush1.msra.mxu1 %v3385_v58  ;;  %v2584_v25 = vsel %vm2455_vm10, %v2577_v24, %v2583_v29  ;;  %v2590_v13 = vsel %vm2455_vm10, %v2583_v29, %v2589_v45  ;;  %v3410_v58 = vld [vmem:[#allocation8 + $0x3c8] sm:$0xff]  ;;  %v2613_v60 = vrot.slane %v15869_v52, 6  ;;  %v2608_v24 = vsel %vm2455_vm10, %v2601_v19, %v2607_v17  ;;  %v15880_v52 = vld [vmem:[#allocation107_spill] sm:$0xff] }
 0x225   : > { %9055 = vmatmul.mubr.f32.gmra.mxu1 %v11762_v63  ;;  %3904 = vmatprep.subr.mxu1 %v11592_v12  ;;  %v2600_v63 = vsel %vm2455_vm10, %v2593_v61, %v2599_v14  ;;  %v1932_v32 = vpop.f32.mrf.mxu1  ;;  %v8949_v26 = vpop.f32.mrf.mxu0  ;;  %v2604_v61 = vsel %vm2455_vm10, %v2597_v22, %v2603_v15  ;;  %v15871_v14 = vld [vmem:[#allocation102_spill] sm:$0xff]  ;;  %v2618_v22 = vsel %vm2455_vm10, %v2611_v35, %v2617_v18 }
 0x226   : > { %9057 = vmatprep.mubr.f32.mxu1 %v2572_v10  ;;  %3905 = vmatpush2.msra.mxu1 %v3416_v59  ;;  %v15870_v59 = vld [vmem:[#allocation91_spill] sm:$0xff]  ;;  %v2615_v8 = vrot.slane %v15871_v14, 6  ;;  %v2610_v10 = vsel %vm2455_vm10, %v2603_v15, %v2609_v11  ;;  %v15873_v32 = vld [vmem:[#allocation93_spill] sm:$0xff] }
 0x227   : > { %2958 = vmatmul.mubr.f32.gmra.mxu0 %v2592_v20  ;;  %3906 = vmatprep.subr.mxu1 %v11592_v12  ;;  %v2175_v44 = vpop.f32.mrf.mxu0  ;;  %v1935_v5 = vpop.f32.mrf.mxu1  ;;  %v2619_v7 = vrot.slane %v15870_v59, 6  ;;  %v3408_v20 = vld [vmem:[#allocation8 + $0x3b8] sm:$0xff]  ;;  %v3407_v15 = vld [vmem:[#allocation8 + $0x3b0] sm:$0xff]  ;;  %v15881_v59 = vld [vmem:[#allocation108_spill] sm:$0xff] }
 0x228   : > { %2962 = vmatprep.mubr.f32.mxu0 %v2600_v63  ;;  %3907 = vmatpush2.msra.mxu1 %v3415_v51  ;;  %v12020_v48 = vadd.f32 %v2175_v44, %v1930_v53  ;;  %v12022_v9 = vadd.f32 %v8949_v26, %v1935_v5  ;;  %v15872_v63 = vld [vmem:[#allocation92_spill] sm:$0xff]  ;;  %v2616_v44 = vsel %vm2455_vm10, %v2609_v11, %v2615_v8  ;;  %v15876_v5 = vld [vmem:[#allocation105_spill] sm:$0xff] }
 0x229   : > { %9058 = vmatmul.mubr.f32.gmra.mxu1 %v2578_v6  ;;  %3908 = vmatprep.subr.mxu1 %v11592_v12  ;;  %v1937_v43 = vpop.f32.mrf.mxu1  ;;  %v8952_v38 = vpop.f32.mrf.mxu0  ;;  %v2620_v26 = vsel %vm2455_vm10, %v2613_v60, %v2619_v7  ;;  %v2629_v19 = vrot.slane %v15876_v5, 6  ;;  %v15889_v5 = vld [vmem:[#allocation112_spill] sm:$0xff] }
 0x22a   : > { %9060 = vmatprep.mubr.f32.mxu1 %v2584_v25  ;;  %3909 = vmatpush2.msra.mxu1 %v3414_v4  ;;  %v2625_v4 = vrot.slane %v15872_v63, 6  ;;  %v15874_v25 = vld [vmem:[#allocation103_spill] sm:$0xff]  ;;  %v15877_v43 = vld [vmem:[#allocation106_spill] sm:$0xff] }
 0x22b   : > { %2963 = vmatmul.mubr.f32.gmra.mxu0 %v2598_v54  ;;  %3910 = vmatprep.subr.mxu1 %v11592_v12  ;;  %v2596_v12 = vsel %vm2455_vm10, %v2589_v45, %v2595_v46  ;;  %v1940_v34 = vpop.f32.mrf.mxu1  ;;  %v2185_v51 = vpop.f32.mrf.mxu0  ;;  %v2614_v45 = vsel %vm2455_vm10, %v2607_v17, %v2613_v60  ;;  %v2631_v46 = vrot.slane %v15873_v32, 6  ;;  %v2627_v57 = vrot.slane %v15877_v43, 6  ;;  %v3274_v32 = vld [vmem:[#allocation2 + $0x3a8] sm:$0xfc]  ;;  %v15891_v43 = vld [vmem:[#allocation84_spill] sm:$0xff] }
 0x22c   : > { %2967 = vmatprep.mubr.f32.mxu0 %v2606_v33  ;;  %3911 = vmatpush2.msra.mxu1 %v3413_v36  ;;  %v12044_v53 = vadd.f32 %v2185_v51, %v1940_v34  ;;  %v2623_v36 = vrot.slane %v15874_v25, 6  ;;  %v15875_v33 = vld [vmem:[#allocation104_spill] sm:$0xff]  ;;  %v2626_v39 = vsel %vm2455_vm10, %v2619_v7, %v2625_v4  ;;  %v2635_v60 = vrot.slane %v15880_v52, 6  ;;  %v15884_v51 = vld [vmem:[#allocation95_spill] sm:$0xff] }
 0x22d   : > { %9061 = vmatmul.mubr.f32.gmra.mxu1 %v2590_v13  ;;  %3912 = vmatprep.subr.mxu1 %v12027_v0  ;;  %v1942_v29 = vpop.f32.mrf.mxu1  ;;  %v2632_v35 = vsel %vm2455_vm10, %v2625_v4, %v2631_v46  ;;  %v2633_v7 = vrot.slane %v15881_v59, 6  ;;  %v2651_v52 = vrot.slane %v11882_v50, 6  ;;  %v3283_v59 = vld [vmem:[#allocation2 + $0x2b0] sm:$0xff]  ;;  %v2657_v50 = vrot.slane %v11892_v31, 6 }
 0x22e   : > { %9063 = vmatprep.mubr.f32.mxu1 %v2596_v12  ;;  %3913 = vmatpush2.msra.mxu1 %v3412_v55  ;;  %v2621_v55 = vrot.slane %v15875_v33, 6  ;;  %v2624_v13 = vsel %vm2455_vm10, %v2617_v18, %v2623_v36  ;;  %v3405_v12 = vld [vmem:[#allocation8 + $0x3a0] sm:$0xff]  ;;  %v15883_v29 = vld [vmem:[#allocation109_spill] sm:$0xff]  ;;  %v3548_v33 = vrot.slane %v3274_v32, 2 }
 0x22f   : > { %2968 = vmatmul.mubr.f32.gmra.mxu0 %v2604_v61  ;;  %3914 = vmatprep.subr.mxu1 %v12027_v0  ;;  %v1945_v42 = vpop.f32.mrf.mxu1  ;;  %v2630_v61 = vsel %vm2455_vm10, %v2623_v36, %v2629_v19  ;;  %v2641_v14 = vrot.slane %v15883_v29, 6  ;;  %v2634_v4 = vsel %vm2455_vm10, %v2627_v57, %v2633_v7  ;;  %v3277_v36 = vld [vmem:[#allocation2 + $0x1b0] sm:$0xff]  ;;  %v3282_v29 = vld [vmem:[#allocation2 + $0x1c8] sm:$0xff]  ;;  %v15893_v32 = vld [vmem:[#allocation113_spill] sm:$0xff] }
 0x230   : > { %2972 = vmatprep.mubr.f32.mxu0 %v2612_v49  ;;  %3915 = vmatpush2.msra.mxu1 %v3411_v3  ;;  %v12048_v6 = vadd.f32 %v8952_v38, %v1945_v42  ;;  %v2622_v11 = vsel %vm2455_vm10, %v2615_v8, %v2621_v55  ;;  %v15878_v49 = vld [vmem:[#allocation79_spill] sm:$0xff]  ;;  %v2636_v8 = vsel %vm2455_vm10, %v2629_v19, %v2635_v60  ;;  %v15885_v42 = vld [vmem:[#allocation110_spill] sm:$0xff]  ;;  %v2645_v19 = vrot.slane %v15889_v5, 6 }
 0x231   : > { %9064 = vmatmul.mubr.f32.gmra.mxu1 %v2602_v28  ;;  %3916 = vmatprep.subr.mxu1 %v12027_v0  ;;  %v1947_v54 = vpop.f32.mrf.mxu1  ;;  %v3403_v28 = vld [vmem:[#allocation8 + $0x390] sm:$0xff]  ;;  %v2639_v63 = vrot.slane %v15885_v42, 6 }
 0x232   : > { %9066 = vmatprep.mubr.f32.mxu1 %v2608_v24  ;;  %3917 = vmatpush2.msra.mxu1 %v3410_v58  ;;  %v15879_v58 = vrot.slane %v15878_v49, 6  ;;  %v2628_v24 = vsel %vm2455_vm10, %v2621_v55, %v2627_v57  ;;  %v15888_v54 = vld [vmem:[#allocation97_spill] sm:$0xff]  ;;  %v15892_v57 = vrot.slane %v15891_v43, 6 }
 0x233   : > { %2973 = vmatmul.mubr.f32.gmra.mxu0 %v2610_v10  ;;  %3918 = vmatprep.subr.mxu1 %v12027_v0  ;;  %v12059_v17 = vpop.f32.mrf.mxu1  ;;  %v3402_v10 = vld [vmem:[#allocation8 + $0x388] sm:$0xff] }
 0x234   : > { %2977 = vmatprep.mubr.f32.mxu0 %v2618_v22  ;;  %3919 = vmatpush2.msra.mxu1 %v3409_v56  ;;  %v2638_v34 = vsel %vm2455_vm10, %v2631_v46, %v15879_v58  ;;  %v15882_v56 = vld [vmem:[#allocation94_spill] sm:$0xff]  ;;  %v1747_v22 = vld [vmem:[#allocation2 + $0xd0] sm:$0x3f]  ;;  %v2642_v46 = vsel %vm2455_vm10, %v2635_v60, %v2641_v14  ;;  %v3273_v55 = vld [vmem:[#allocation2 + $0xb8] sm:$0xfc] }
 0x235   : > { %9067 = vmatmul.mubr.f32.gmra.mxu1 %v2614_v45  ;;  %3920 = vmatprep.subr.mxu1 %v12027_v0  ;;  %v1952_v3 = vpop.f32.mrf.mxu1  ;;  %v15886_v45 = vld [vmem:[#allocation96_spill] sm:$0xff]  ;;  %v2673_v25 = vrot.slane %v1747_v22, 6 }
 0x236   : > { %9069 = vmatprep.mubr.f32.mxu1 %v2620_v26  ;;  %3921 = vmatpush2.msra.mxu1 %v3408_v20  ;;  %v3401_v20 = vld [vmem:[#allocation8 + $0x380] sm:$0xff]  ;;  %v3549_v3 = vrot.slane %v3277_v36, 2 }
 0x237   : > { %2978 = vmatmul.mubr.f32.gmra.mxu0 %v2616_v44  ;;  %3922 = vmatprep.subr.mxu1 %v12027_v0  ;;  %v12068_v18 = vpop.f32.mrf.mxu1  ;;  %v15887_v26 = vld [vmem:[#allocation111_spill] sm:$0xff] }
 0x238   : > { %2982 = vmatprep.mubr.f32.mxu0 %v2624_v13  ;;  %3923 = vmatpush2.msra.mxu1 %v3407_v15  ;;  %v2647_v15 = vrot.slane %v15887_v26, 6  ;;  %v3276_v44 = vld [vmem:[#allocation2 + $0x2a8] sm:$0xff]  ;;  %v2640_v13 = vsel %vm2455_vm10, %v2633_v7, %v2639_v63  ;;  %v3550_v49 = vsel %vm15580_vm1, %v3548_v33, %v3549_v3  ;;  %v2659_v7 = vrot.slane %v11885_v30, 6  ;;  %v1745_v26 = vld [vmem:[#allocation2 + $0x58] sm:$0x3f] }
 0x239   : > { %9070 = vmatmul.mubr.f32.gmra.mxu1 %v2626_v39  ;;  %3924 = vmatprep.subr.mxu1 %v12027_v0  ;;  %v1957_v38 = vpop.f32.mrf.mxu1  ;;  %v3280_v39 = vld [vmem:[#allocation2 + $0x2c0] sm:$0xff] }
 0x23a   : > { %9072 = vmatprep.mubr.f32.mxu1 %v2632_v35  ;;  %3925 = vmatpush2.msra.mxu1 %v3406_v23  ;;  %v15890_v23 = vld [vmem:[#allocation98_spill] sm:$0xff]  ;;  %v2653_v35 = vrot.slane %v11877_v62, 6  ;;  %v3556_v58 = vrot.slane %v3280_v39, 2  ;;  %v2646_v62 = vsel %vm2455_vm10, %v2639_v63, %v2645_v19  ;;  %v3560_v63 = vrot.slane %v3282_v29, 2 }
 0x23b   : > { %2983 = vmatmul.mubr.f32.gmra.mxu0 %v2622_v11  ;;  %3926 = vmatprep.subr.mxu1 %v12027_v0  ;;  %v2674_v11 = vsel %vm2455_vm10, %v15892_v57, %v2673_v25  ;;  %v1746_v25 = vld [vmem:[#allocation2 + $0x30] sm:$0x3f] }
 0x23c   : > { %2987 = vmatprep.mubr.f32.mxu0 %v2630_v61  ;;  %3927 = vmatpush2.msra.mxu1 %v3405_v12  ;;  %v2648_v12 = vsel %vm2455_vm10, %v2641_v14, %v2647_v15  ;;  %v3545_v61 = vrot.slane %v3273_v55, 2  ;;  %v2654_v60 = vsel %vm2455_vm10, %v2647_v15, %v2653_v35  ;;  %v2652_v14 = vsel %vm2455_vm10, %v2645_v19, %v2651_v52  ;;  %v3278_v15 = vld [vmem:[#allocation2 + $0xb0] sm:$0xff]  ;;  %v3289_v55 = vld [vmem:[#allocation2 + $0xe8] sm:$0xff] }
 0x23d   : > { %9073 = vmatmul.mubr.f32.gmra.mxu1 %v2638_v34  ;;  %3928 = vmatprep.subr.mxu1 %v12027_v0  ;;  %v3279_v34 = vld [vmem:[#allocation2 + $0x28] sm:$0xff]  ;;  %v2660_v22 = vsel %vm2455_vm10, %v2653_v35, %v2659_v7  ;;  %v2669_v35 = vrot.slane %v1745_v26, 6  ;;  %v3552_v57 = vrot.slane %v3278_v15, 2 }
 0x23e   : > { %9075 = vmatprep.mubr.f32.mxu1 %v15882_v56  ;;  %3929 = vmatpush2.msra.mxu1 %v3404_v2  ;;  %v3546_v2 = vrot.slane %v3276_v44, 2  ;;  %v3554_v38 = vrot.slane %v3279_v34, 2  ;;  %v3557_v56 = vsel %vm15580_vm1, %v3549_v3, %v3556_v58  ;;  %v2671_v44 = vrot.slane %v1746_v25, 6  ;;  %v3292_v3 = vld [vmem:[#allocation2 + $0x128] sm:$0xff]  ;;  %v3298_v25 = vld [vmem:[#allocation2 + $0xa0] sm:$0xff] }
 0x23f   : > { %2988 = vmatmul.mubr.f32.gmra.mxu0 %v2628_v24  ;;  %3930 = vmatprep.subr.mxu1 %v12027_v0  ;;  %v3293_v15 = vld [vmem:[#allocation2 + $0x2e8] sm:$0xff] }
 0x240   : > { %2992 = vmatprep.mubr.f32.mxu0 %v2636_v8  ;;  %3931 = vmatpush2.msra.mxu1 %v3403_v28  ;;  %v3547_v28 = vsel %vm15580_vm1, %v3545_v61, %v3546_v2  ;;  %v3555_v31 = vsel %vm15580_vm1, %v3546_v2, %v3554_v38 }
 0x241   : > { %9076 = vmatmul.mubr.f32.gmra.mxu1 %v15884_v51  ;;  %3932 = vmatprep.subr.mxu1 %v12027_v0  ;;  %v2665_v51 = vrot.slane %v11895_v16, 6  ;;  %v2658_v16 = vsel %vm2455_vm10, %v2651_v52, %v2657_v50 }
 0x242   : > { %9078 = vmatprep.mubr.f32.mxu1 %v15886_v45  ;;  %3933 = vmatpush2.msra.mxu1 %v3402_v10  ;;  %v3286_v10 = vld [vmem:[#allocation2 + $0xc8] sm:$0xff]  ;;  %v3285_v45 = vld [vmem:[#allocation2 + $0x60] sm:$0xff] }
 0x243   : > { %2993 = vmatmul.mubr.f32.gmra.mxu0 %v2634_v4  ;;  %3934 = vmatprep.subr.mxu1 %v12027_v0  ;;  %v2666_v36 = vsel %vm2455_vm10, %v2659_v7, %v2665_v51  ;;  %v3566_v33 = vrot.slane %v3285_v45, 2  ;;  %v2672_v43 = vsel %vm2455_vm10, %v2665_v51, %v2671_v44  ;;  %v3291_v7 = vld [vmem:[#allocation2 + $0x278] sm:$0xff]  ;;  %v3287_v51 = vld [vmem:[#allocation2 + $0x40] sm:$0xff] }
 0x244   : > { %2997 = vmatprep.mubr.f32.mxu0 %v2642_v46  ;;  %3935 = vmatpush2.msra.mxu1 %v3401_v20  ;;  %v3562_v20 = vrot.slane %v3283_v59, 2  ;;  %v2663_v46 = vrot.slane %v15893_v32, 6  ;;  %v3580_v59 = vrot.slane %v3292_v3, 2  ;;  %v3294_v45 = vld [vmem:[#allocation2 + $0x120] sm:$0xff]  ;;  %v3582_v3 = vrot.slane %v3293_v15, 2 }
 0x245   : > { %9079 = vmatmul.mubr.f32.gmra.mxu1 %v15888_v54  ;;  %v3561_v54 = vsel %vm15580_vm1, %v3554_v38, %v3560_v63  ;;  %v3567_v34 = vsel %vm15580_vm1, %v3560_v63, %v3566_v33  ;;  %v3295_v63 = vld [vmem:[#allocation2 + $0x8] sm:$0xff] }
 0x246   : > { %9081 = vmatprep.mubr.f32.mxu1 %v15890_v23  ;;  %v8955_v24 = vpop.f32.mrf.mxu0  ;;  %v3563_v4 = vsel %vm15580_vm1, %v3556_v58, %v3562_v20  ;;  %v2664_v23 = vsel %vm2455_vm10, %v2657_v50, %v2663_v46  ;;  %v3284_v58 = vld [vmem:[#allocation2 + $0x3b8] sm:$0xff] }
 0x247   : > { %2998 = vmatmul.mubr.f32.gmra.mxu0 %v2640_v13  ;;  %v12108_v8 = vadd.f32 %v8955_v24, %v12068_v18  ;;  %v3568_v18 = vrot.slane %v3286_v10, 2  ;;  %v3288_v13 = vld [vmem:[#allocation2 + $0x360] sm:$0xff]  ;;  %v2670_v24 = vsel %vm2455_vm10, %v2663_v46, %v2669_v35  ;;  %v3564_v10 = vrot.slane %v3284_v58, 2  ;;  %v3297_v35 = vld [vmem:[#allocation2 + $0x310] sm:$0xff] }
 0x248   : > { %3002 = vmatprep.mubr.f32.mxu0 %v2648_v12  ;;  %v2195_v30 = vpop.f32.mrf.mxu0  ;;  %v3275_v12 = vld [vmem:[#allocation2 + $0x380] sm:$0xfc]  ;;  %v3572_v52 = vrot.slane %v3288_v13, 2  ;;  %v3570_v46 = vrot.slane %v3287_v51, 2 }
 0x249   : > { %9082 = vmatmul.mubr.f32.gmra.mxu1 %v2674_v11  ;;  %v12113_v42 = vadd.f32 %v2195_v30, %v12059_v17  ;;  %v3569_v19 = vsel %vm15580_vm1, %v3562_v20, %v3568_v18  ;;  %v3281_v11 = vld [vmem:[#allocation2 + $0x170] sm:$0xff] }
 0x24a   : > { %3936 = vmatprep.mubr.f32.mxu1 %v3550_v49  ;;  %v3574_v49 = vrot.slane %v3289_v55, 2  ;;  %v3290_v30 = vld [vmem:[#allocation2 + $0x2d0] sm:$0xff]  ;;  %v3573_v20 = vsel %vm15580_vm1, %v3566_v33, %v3572_v52  ;;  %v3586_v33 = vrot.slane %v3295_v63, 2  ;;  %v3308_v63 = vld [vmem:[#allocation2 + $0x240] sm:$0xff] }
 0x24b   : > { %3003 = vmatmul.mubr.f32.gmra.mxu0 %v2646_v62  ;;  %v3296_v55 = vld [vmem:[#allocation2 + $0x1d0] sm:$0xff] }
 0x24c   : > { %3007 = vmatprep.mubr.f32.mxu0 %v2654_v60  ;;  %v3551_v60 = vrot.slane %v3275_v12, 2  ;;  %v3575_v38 = vsel %vm15580_vm1, %v3568_v18, %v3574_v49  ;;  %v3581_v18 = vsel %vm15580_vm1, %v3574_v49, %v3580_v59  ;;  %v3571_v12 = vsel %vm15580_vm1, %v3564_v10, %v3570_v46  ;;  %v3299_v49 = vld [vmem:[#allocation2 + $0x350] sm:$0xff] }
 0x24d   : > { %3937 = vmatmul.mubr.f32.vlgmr.msra.gmra.mxu1 %v3547_v28  ;;  %v8958_v17 = vpop.f32.mrf.mxu0 }
 0x24e   : > { %3941 = vmatprep.mubr.f32.mxu1 %v3557_v56  ;;  %v3558_v56 = vrot.slane %v3281_v11, 2  ;;  %v3553_v50 = vsel %vm15580_vm1, %v3551_v60, %v3552_v57  ;;  %v3590_v60 = vrot.slane %v3297_v35, 2 }
 0x24f   : > { %3008 = vmatmul.mubr.f32.gmra.mxu0 %v2652_v14  ;;  %v2205_v39 = vpop.f32.mrf.mxu0 }
 0x250   : > { %3012 = vmatprep.mubr.f32.mxu0 %v2660_v22  ;;  %v3559_v32 = vsel %vm15580_vm1, %v3552_v57, %v3558_v56  ;;  %v3565_v26 = vsel %vm15580_vm1, %v3558_v56, %v3564_v10  ;;  %v3594_v56 = vrot.slane %v3299_v49, 2  ;;  %v3314_v49 = vld [vmem:[#allocation2 + $0x1b8] sm:$0xff] }
 0x251   : > { %3942 = vmatmul.mubr.f32.gmra.mxu1 %v3555_v31  ;;  %v1960_v5 = vpop.f32.mrf.mxu1  ;;  %v3578_v31 = vrot.slane %v3291_v7, 2  ;;  %v3300_v7 = vld [vmem:[#allocation2 + $0x228] sm:$0xff] }
 0x252   : > { %3946 = vmatprep.mubr.f32.mxu1 %v3563_v4  ;;  %v12124_v61 = vadd.f32 %v2205_v39, %v1960_v5  ;;  %v3584_v5 = vrot.slane %v3294_v45, 2  ;;  %v3592_v39 = vrot.slane %v3298_v25, 2 }
 0x253   : > { %3013 = vmatmul.mubr.f32.gmra.mxu0 %v2658_v16  ;;  %v1962_v2 = vpop.f32.mrf.mxu1  ;;  %v3579_v44 = vsel %vm15580_vm1, %v3572_v52, %v3578_v31 }
 0x254   : > { %3017 = vmatprep.mubr.f32.mxu0 %v2666_v36  ;;  %v3588_v2 = vrot.slane %v3296_v55, 2  ;;  %v3585_v52 = vsel %vm15580_vm1, %v3578_v31, %v3584_v5 }
 0x255   : > { %3947 = vmatmul.mubr.f32.gmra.mxu1 %v3561_v54 }
 0x256   : > { %3951 = vmatprep.mubr.f32.mxu1 %v3569_v19  ;;  %v8961_v62 = vpop.f32.mrf.mxu0  ;;  %v1965_v28 = vpop.f32.mrf.mxu1  ;;  %v3589_v51 = vsel %vm15580_vm1, %v3582_v3, %v3588_v2 }
 0x257   : > { %3018 = vmatmul.mubr.f32.gmra.mxu0 %v2664_v23  ;;  %v12129_v29 = vadd.f32 %v8958_v17, %v1965_v28  ;;  %v3576_v17 = vrot.slane %v3290_v30, 2  ;;  %v3587_v23 = vsel %vm15580_vm1, %v3580_v59, %v3586_v33  ;;  %v3301_v28 = vld [vmem:[#allocation2 + $0xd8] sm:$0xff]  ;;  %v3305_v30 = vld [vmem:[#allocation2 + $0x270] sm:$0xff] }
 0x258   : > { %3022 = vmatprep.mubr.f32.mxu0 %v2672_v43  ;;  %v2215_v14 = vpop.f32.mrf.mxu0  ;;  %v1967_v22 = vpop.f32.mrf.mxu1  ;;  %v3598_v31 = vrot.slane %v3301_v28, 2  ;;  %v3606_v15 = vrot.slane %v3305_v30, 2 }
 0x259   : > { %3952 = vmatmul.mubr.f32.gmra.mxu1 %v3567_v34  ;;  %v3577_v11 = vsel %vm15580_vm1, %v3570_v46, %v3576_v17  ;;  %v3302_v34 = vld [vmem:[#allocation2 + $0x330] sm:$0xff] }
 0x25a   : > { %3956 = vmatprep.mubr.f32.mxu1 %v3575_v38  ;;  %v3600_v22 = vrot.slane %v3302_v34, 2  ;;  %v3599_v46 = vsel %vm15580_vm1, %v3592_v39, %v3598_v31  ;;  %v3310_v34 = vld [vmem:[#allocation2 + $0x1e8] sm:$0xff] }
 0x25b   : > { %3023 = vmatmul.mubr.f32.gmra.mxu0 %v2670_v24  ;;  %v1970_v4 = vpop.f32.mrf.mxu1  ;;  %v3583_v24 = vsel %vm15580_vm1, %v3576_v17, %v3582_v3  ;;  %v3595_v17 = vsel %vm15580_vm1, %v3588_v2, %v3594_v56  ;;  %v3306_v3 = vld [vmem:[#allocation2 + $0x140] sm:$0xff]  ;;  %v3616_v30 = vrot.slane %v3310_v34, 2 }
 0x25c   : > { %9116 = vmatprep.mubr.f32.mxu0 %v3553_v50  ;;  %v12135_v16 = vadd.f32 %v2215_v14, %v1970_v4  ;;  %v3304_v14 = vld [vmem:[#allocation2 + $0x3e8] sm:$0xff]  ;;  %v3591_v4 = vsel %vm15580_vm1, %v3584_v5, %v3590_v60  ;;  %v3601_v55 = vsel %vm15580_vm1, %v3594_v56, %v3600_v22  ;;  %v3311_v5 = vld [vmem:[#allocation2 + $0x3a0] sm:$0xff] }
 0x25d   : > { %3957 = vmatmul.mubr.f32.gmra.mxu1 %v3573_v20  ;;  %v1972_v54 = vpop.f32.mrf.mxu1  ;;  %v3604_v25 = vrot.slane %v3304_v14, 2  ;;  %v3618_v2 = vrot.slane %v3311_v5, 2  ;;  %v3624_v14 = vrot.slane %v3314_v49, 2  ;;  %v3313_v5 = vld [vmem:[#allocation2 + $0x198] sm:$0xff] }
 0x25e   : > { %3961 = vmatprep.mubr.f32.mxu1 %v3581_v18  ;;  %v8964_v36 = vpop.f32.mrf.mxu0  ;;  %v3596_v18 = vrot.slane %v3300_v7, 2  ;;  %v3622_v34 = vrot.slane %v3313_v5, 2 }
 0x25f   : > { %9117 = vmatmul.mubr.f32.vlgmr.msra.gmra.mxu0 %v3559_v32 }
 0x260   : > { %9119 = vmatprep.mubr.f32.mxu0 %v3565_v26  ;;  %v2225_v19 = vpop.f32.mrf.mxu0  ;;  %v3303_v26 = vld [vmem:[#allocation2 + $0x370] sm:$0xff] }
 0x261   : > { %v1975_v13 = vpop.f32.mrf.mxu1  ;;  %3962 = vmatmul.mubr.f32.gmra.mxu1 %v3579_v44  ;;  %v3612_v44 = vrot.slane %v3308_v63, 2 }
 0x262   : > { %v12141_v43 = vadd.f32 %v8961_v62, %v1975_v13  ;;  %3966 = vmatprep.mubr.f32.mxu1 %v3587_v23  ;;  %v12143_v57 = vpop.f32.mrf.mxu0  ;;  %v3593_v62 = vsel %vm15580_vm1, %v3586_v33, %v3592_v39  ;;  %v3597_v13 = vsel %vm15580_vm1, %v3590_v60, %v3596_v18  ;;  %v3602_v23 = vrot.slane %v3303_v26, 2  ;;  %v3307_v39 = vld [vmem:[#allocation2 + $0x118] sm:$0xff] }
 0x263   : > { %9120 = vmatmul.mubr.f32.gmra.mxu0 %v3571_v12  ;;  %v1977_v58 = vpop.f32.mrf.mxu1  ;;  %v3613_v60 = vsel %vm15580_vm1, %v3606_v15, %v3612_v44 }
 0x264   : > { %9122 = vmatprep.mubr.f32.mxu0 %v3577_v11  ;;  %v2235_v38 = vpop.f32.mrf.mxu0  ;;  %v3607_v11 = vsel %vm15580_vm1, %v3600_v22, %v3606_v15  ;;  %v3603_v7 = vsel %vm15580_vm1, %v3596_v18, %v3602_v23  ;;  %v3625_v18 = vsel %vm15580_vm1, %v3618_v2, %v3624_v14  ;;  %v3326_v15 = vld [vmem:[#allocation2 + $0x100] sm:$0xff] }
 0x265   : > { %v1980_v59 = vpop.f32.mrf.mxu1  ;;  %3967 = vmatmul.mubr.f32.gmra.mxu1 %v3585_v52 }
 0x266   : > { %v12149_v50 = vadd.f32 %v2225_v19, %v1980_v59  ;;  %3971 = vmatprep.mubr.f32.mxu1 %v3593_v62  ;;  %v12151_v10 = vpop.f32.mrf.mxu0  ;;  %v3610_v59 = vrot.slane %v3307_v39, 2  ;;  %v3320_v62 = vld [vmem:[#allocation2 + $0x38] sm:$0xff] }
 0x267   : > { %9123 = vmatmul.mubr.f32.gmra.mxu0 %v3583_v24  ;;  %v1982_v20 = vpop.f32.mrf.mxu1  ;;  %v3608_v24 = vrot.slane %v3306_v3, 2 }
 0x268   : > { %9125 = vmatprep.mubr.f32.mxu0 %v3589_v51  ;;  %v12155_v45 = vpop.f32.mrf.mxu0  ;;  %v3317_v51 = vld [vmem:[#allocation2 + $0x10] sm:$0xff]  ;;  %v3611_v22 = vsel %vm15580_vm1, %v3604_v25, %v3610_v59  ;;  %v3309_v20 = vld [vmem:[#allocation2 + $0x2c8] sm:$0xff] }
 0x269   : > { %v1985_v32 = vpop.f32.mrf.mxu1  ;;  %3972 = vmatmul.mubr.f32.gmra.mxu1 %v3591_v4 }
 0x26a   : > { %v12159_v54 = vadd.f32 %v8964_v36, %v1985_v32  ;;  %3976 = vmatprep.mubr.f32.mxu1 %v3599_v46  ;;  %v12161_v33 = vpop.f32.mrf.mxu0  ;;  %v3605_v36 = vsel %vm15580_vm1, %v3598_v31, %v3604_v25  ;;  %v3619_v31 = vsel %vm15580_vm1, %v3612_v44, %v3618_v2  ;;  %v3636_v32 = vrot.slane %v3320_v62, 2  ;;  %v3323_v46 = vld [vmem:[#allocation2 + $0x1f8] sm:$0xff]  ;;  %v3316_v62 = vld [vmem:[#allocation2 + $0x2f0] sm:$0xff] }
 0x26b   : > { %9126 = vmatmul.mubr.f32.gmra.mxu0 %v3595_v17  ;;  %v1987_v19 = vpop.f32.mrf.mxu1  ;;  %v3630_v17 = vrot.slane %v3317_v51, 2  ;;  %v3609_v25 = vsel %vm15580_vm1, %v3602_v23, %v3608_v24  ;;  %v3329_v2 = vld [vmem:[#allocation2 + $0x78] sm:$0xff] }
 0x26c   : > { %9128 = vmatprep.mubr.f32.mxu0 %v3601_v55  ;;  %v12165_v35 = vpop.f32.mrf.mxu0  ;;  %v3614_v55 = vrot.slane %v3309_v20, 2  ;;  %v3617_v19 = vsel %vm15580_vm1, %v3610_v59, %v3616_v30 }
 0x26d   : > { %v1990_v12 = vpop.f32.mrf.mxu1  ;;  %3977 = vmatmul.mubr.f32.gmra.mxu1 %v3597_v13  ;;  %v3312_v13 = vld [vmem:[#allocation2 + $0x90] sm:$0xff]  ;;  %v3631_v39 = vsel %vm15580_vm1, %v3624_v14, %v3630_v17  ;;  %v3637_v23 = vsel %vm15580_vm1, %v3630_v17, %v3636_v32  ;;  %v3623_v14 = vsel %vm15580_vm1, %v3616_v30, %v3622_v34  ;;  %v3315_v17 = vld [vmem:[#allocation2 + $0x20] sm:$0xff] }
 0x26e   : > { %v12169_v58 = vadd.f32 %v2235_v38, %v1990_v12  ;;  %3981 = vmatprep.mubr.f32.mxu1 %v3605_v36  ;;  %v3642_v12 = vrot.slane %v3323_v46, 2  ;;  %v3620_v59 = vrot.slane %v3312_v13, 2 }
 0x26f   : > { %v12171_v52 = vpop.f32.mrf.mxu0  ;;  %9129 = vmatmul.mubr.f32.gmra.mxu0 %v3607_v11  ;;  %v1992_v28 = vpop.f32.mrf.mxu1  ;;  %v3648_v11 = vrot.slane %v3326_v15, 2  ;;  %v3338_v15 = vld [vmem:[#allocation2 + $0x230] sm:$0xff] }
 0x270   : > { %9131 = vmatprep.mubr.f32.mxu0 %v3613_v60  ;;  %v3332_v60 = vld [vmem:[#allocation2 + $0x1f0] sm:$0xff]  ;;  %v3615_v28 = vsel %vm15580_vm1, %v3608_v24, %v3614_v55  ;;  %v3643_v51 = vsel %vm15580_vm1, %v3636_v32, %v3642_v12  ;;  %v3621_v30 = vsel %vm15580_vm1, %v3614_v55, %v3620_v59  ;;  %v3319_v32 = vld [vmem:[#allocation2 + $0x1a0] sm:$0xff] }
 0x271   : > { %v12175_v56 = vpop.f32.mrf.mxu0  ;;  %v1995_v38 = vpop.f32.mrf.mxu1  ;;  %3982 = vmatmul.mubr.f32.gmra.mxu1 %v3603_v7  ;;  %v3649_v24 = vsel %vm15580_vm1, %v3642_v12, %v3648_v11  ;;  %v3322_v12 = vld [vmem:[#allocation2 + $0x220] sm:$0xff] }
 0x272   : > { %v12180_v63 = vadd.f32 %v12143_v57, %v1995_v38  ;;  %3986 = vmatprep.mubr.f32.mxu1 %v3611_v22  ;;  %v3654_v38 = vrot.slane %v3329_v2, 2  ;;  %v3672_v2 = vrot.slane %v3338_v15, 2 }
 0x273   : > { %v12182_v4 = vpop.f32.mrf.mxu0  ;;  %9132 = vmatmul.mubr.f32.gmra.mxu0 %v3619_v31  ;;  %v1997_v26 = vpop.f32.mrf.mxu1  ;;  %v3660_v31 = vrot.slane %v3332_v60, 2 }
 0x274   : > { %9134 = vmatprep.mubr.f32.mxu0 %v3625_v18  ;;  %v3335_v18 = vld [vmem:[#allocation2 + $0x88] sm:$0xff]  ;;  %v3628_v26 = vrot.slane %v3316_v62, 2 }
 0x275   : > { %v12186_v44 = vpop.f32.mrf.mxu0  ;;  %v2000_v57 = vpop.f32.mrf.mxu1  ;;  %3987 = vmatmul.mubr.f32.gmra.mxu1 %v3609_v25  ;;  %v3661_v55 = vsel %vm15580_vm1, %v3654_v38, %v3660_v31  ;;  %v3318_v62 = vld [vmem:[#allocation2 + $0x368] sm:$0xff] }
 0x276   : > { %v12191_v36 = vadd.f32 %v12155_v45, %v2000_v57  ;;  %3991 = vmatprep.mubr.f32.mxu1 %v3617_v19  ;;  %v3629_v5 = vsel %vm15580_vm1, %v3622_v34, %v3628_v26  ;;  %v3655_v57 = vsel %vm15580_vm1, %v3648_v11, %v3654_v38  ;;  %v3666_v19 = vrot.slane %v3335_v18, 2  ;;  %v3344_v34 = vld [vmem:[#allocation2 + $0x180] sm:$0xff] }
 0x277   : > { %v12193_v3 = vpop.f32.mrf.mxu0  ;;  %9135 = vmatmul.mubr.f32.gmra.mxu0 %v3631_v39  ;;  %v2002_v49 = vpop.f32.mrf.mxu1  ;;  %v3626_v39 = vrot.slane %v3315_v17, 2  ;;  %v3632_v17 = vrot.slane %v3318_v62, 2 }
 0x278   : > { %9137 = vmatprep.mubr.f32.mxu0 %v3637_v23  ;;  %v3341_v49 = vld [vmem:[#allocation2 + $0x1c0] sm:$0xff]  ;;  %v3667_v18 = vsel %vm15580_vm1, %v3660_v31, %v3666_v19 }
 0x279   : > { %v12197_v7 = vpop.f32.mrf.mxu0  ;;  %v2005_v45 = vpop.f32.mrf.mxu1  ;;  %3992 = vmatmul.mubr.f32.gmra.mxu1 %v3615_v28  ;;  %v3634_v28 = vrot.slane %v3319_v32, 2  ;;  %v3627_v11 = vsel %vm15580_vm1, %v3620_v59, %v3626_v39  ;;  %v3678_v38 = vrot.slane %v3341_v49, 2  ;;  %v3673_v59 = vsel %vm15580_vm1, %v3666_v19, %v3672_v2  ;;  %v3347_v32 = vld [vmem:[#allocation2 + $0x3c0] sm:$0xff]  ;;  %v12233_v49 = vld [vmem:[#allocation2 + $0x3d8] sm:$0xff] }
 0x27a   : > { %v12202_v22 = vadd.f32 %v12151_v10, %v2005_v45  ;;  %3996 = vmatprep.mubr.f32.mxu1 %v3623_v14  ;;  %v3325_v31 = vld [vmem:[#allocation2 + $0x340] sm:$0xff]  ;;  %v3690_v19 = vrot.slane %v3347_v32, 2 }
 0x27b   : > { %v12204_v20 = vpop.f32.mrf.mxu0  ;;  %9138 = vmatmul.mubr.f32.gmra.mxu0 %v3643_v51  ;;  %v2007_v46 = vpop.f32.mrf.mxu1  ;;  %v3635_v14 = vsel %vm15580_vm1, %v3628_v26, %v3634_v28  ;;  %v3640_v51 = vrot.slane %v3322_v12, 2  ;;  %v3350_v26 = vld [vmem:[#allocation2 + $0xc0] sm:$0xff] }
 0x27c   : > { %9140 = vmatprep.mubr.f32.mxu0 %v3649_v24  ;;  %v3321_v24 = vld [vmem:[#allocation2] sm:$0xff] }
 0x27d   : > { %v12208_v25 = vpop.f32.mrf.mxu0  ;;  %v2010_v10 = vpop.f32.mrf.mxu1  ;;  %3997 = vmatmul.mubr.f32.gmra.mxu1 %v3621_v30  ;;  %v3684_v30 = vrot.slane %v3344_v34, 2  ;;  %v12239_v34 = vld [vmem:[#allocation2 + $0x358] sm:$0xff] }
 0x27e   : > { %v12213_v13 = vadd.f32 %v12165_v35, %v2010_v10  ;;  %4001 = vmatprep.mubr.f32.mxu1 %v3629_v5  ;;  %v3633_v5 = vsel %vm15580_vm1, %v3626_v39, %v3632_v17 }
 0x27f   : > { %v12215_v23 = vpop.f32.mrf.mxu0  ;;  %9141 = vmatmul.mubr.f32.gmra.mxu0 %v3655_v57  ;;  %v2012_v60 = vpop.f32.mrf.mxu1  ;;  %v3638_v57 = vrot.slane %v3321_v24, 2 }
 0x280   : > { %9143 = vmatprep.mubr.f32.mxu0 %v3661_v55  ;;  %v3641_v55 = vsel %vm15580_vm1, %v3634_v28, %v3640_v51  ;;  %v3679_v60 = vsel %vm15580_vm1, %v3672_v2, %v3678_v38  ;;  %v3646_v28 = vrot.slane %v3325_v31, 2 }
 0x281   : > { %v12219_v45 = vpop.f32.mrf.mxu0  ;;  %v2015_v35 = vpop.f32.mrf.mxu1  ;;  %4002 = vmatmul.mubr.f32.gmra.mxu1 %v3627_v11  ;;  %v3685_v11 = vsel %vm15580_vm1, %v3678_v38, %v3684_v30  ;;  %v3639_v2 = vsel %vm15580_vm1, %v3632_v17, %v3638_v57  ;;  %v3691_v38 = vsel %vm15580_vm1, %v3684_v30, %v3690_v19 }
 0x282   : > { %v12224_v46 = vadd.f32 %v12161_v33, %v2015_v35  ;;  %4006 = vmatprep.mubr.f32.mxu1 %v3635_v14  ;;  %v3696_v35 = vrot.slane %v3350_v26, 2  ;;  %v3353_v14 = vld [vmem:[#allocation2 + $0x248] sm:$0xff] }
 0x283   : > { %v12226_v15 = vpop.f32.mrf.mxu0  ;;  %9144 = vmatmul.mubr.f32.gmra.mxu0 %v3667_v18  ;;  %v2017_v10 = vpop.f32.mrf.mxu1  ;;  %v3356_v18 = vld [vmem:[#allocation2 + $0x1e0] sm:$0xff]  ;;  %v3702_v26 = vrot.slane %v3353_v14, 2 }
 0x284   : > { %9146 = vmatprep.mubr.f32.mxu0 %v3673_v59  ;;  %v3644_v59 = vrot.slane %v12233_v49, 2  ;;  %v3647_v10 = vsel %vm15580_vm1, %v3640_v51, %v3646_v28  ;;  %v3708_v49 = vrot.slane %v3356_v18, 2  ;;  %v12259_v51 = vld [vmem:[#allocation2 + $0x290] sm:$0xff]  ;;  %v3331_v14 = vld [vmem:[#allocation2 + $0x260] sm:$0xff]  ;;  %v2166_v18 = vadd.f32 %v12002_v27, %v11979_v40 }
 0x285   : > { %v12230_v12 = vpop.f32.mrf.mxu0  ;;  %v2020_v33 = vpop.f32.mrf.mxu1  ;;  %4007 = vmatmul.mubr.f32.gmra.mxu1 %v3633_v5  ;;  %v3652_v5 = vrot.slane %v12239_v34, 2  ;;  %v3658_v41 = vrot.slane %v3331_v14, 2  ;;  %v12281_v27 = vld [vmem:[#allocation2 + $0xd0] sm:$0xff]  ;;  %v5275_v14 = vld [vmem:[#allocation8 + $0x668] sm:$0xff] }
 0x286   : > { %v12237_v62 = vadd.f32 %v12175_v56, %v2020_v33  ;;  %4011 = vmatprep.mubr.f32.mxu1 %v3641_v55  ;;  %v12250_v33 = vld [vmem:[#allocation2 + $0x68] sm:$0xff]  ;;  %v3697_v55 = vsel %vm15580_vm1, %v3690_v19, %v3696_v35  ;;  %v3645_v34 = vsel %vm15580_vm1, %v3638_v57, %v3644_v59 }
 0x287   : > { %v12241_v39 = vpop.f32.mrf.mxu0  ;;  %9147 = vmatmul.mubr.f32.gmra.mxu0 %v3679_v60  ;;  %v2022_v24 = vpop.f32.mrf.mxu1  ;;  %v3359_v60 = vld [vmem:[#allocation2 + $0x2d8] sm:$0xff]  ;;  %v3650_v30 = vrot.slane %v12250_v33, 2  ;;  %v5277_v19 = vld [vmem:[#allocation8 + $0x678] sm:$0xff] }
 0x288   : > { %9149 = vmatprep.mubr.f32.mxu0 %v3685_v11  ;;  %v12274_v33 = vld [vmem:[#allocation2 + $0x298] sm:$0xff]  ;;  %5311 = vmatpush1.msra.mxu0 %v5277_v19 }
 0x289   : > { %v12246_v56 = vpop.f32.mrf.mxu0  ;;  %v2025_v32 = vpop.f32.mrf.mxu1  ;;  %4012 = vmatmul.mubr.f32.gmra.mxu1 %v3639_v2  ;;  %v3653_v2 = vsel %vm15580_vm1, %v3646_v28, %v3652_v5  ;;  %v3709_v28 = vsel %vm15580_vm1, %v3702_v26, %v3708_v49  ;;  %5312 = vmatprep.subr.mxu0 %v12027_v0 }
 0x28a   : > { %v12254_v31 = vadd.f32 %v12171_v52, %v2025_v32  ;;  %4016 = vmatprep.mubr.f32.mxu1 %v3647_v10  ;;  %v12266_v32 = vld [vmem:[#allocation2 + $0x98] sm:$0xff]  ;;  %v3703_v10 = vsel %vm15580_vm1, %v3696_v35, %v3702_v26  ;;  %v3659_v26 = vsel %vm15580_vm1, %v3652_v5, %v3658_v41  ;;  %v3732_v5 = vrot.slane %v12281_v27, 2  ;;  %v12304_v27 = vld [vmem:[#allocation2 + $0x308] sm:$0xff] }
 0x28b   : > { %v12256_v17 = vpop.f32.mrf.mxu0  ;;  %9150 = vmatmul.mubr.f32.gmra.mxu0 %v3691_v38  ;;  %v2027_v11 = vpop.f32.mrf.mxu1  ;;  %v3714_v38 = vrot.slane %v3359_v60, 2  ;;  %v3656_v35 = vrot.slane %v12266_v32, 2  ;;  %v5276_v60 = vld [vmem:[#allocation8 + $0x670] sm:$0xff] }
 0x28c   : > { %9152 = vmatprep.mubr.f32.mxu0 %v3697_v55  ;;  %v3720_v11 = vrot.slane %v12259_v51, 2  ;;  %v12287_v51 = vld [vmem:[#allocation2 + $0x1d8] sm:$0xff]  ;;  %5313 = vmatpush1.msra.mxu0 %v5276_v60 }
 0x28d   : > { %v12263_v24 = vpop.f32.mrf.mxu0  ;;  %v2030_v52 = vpop.f32.mrf.mxu1  ;;  %4017 = vmatmul.mubr.f32.gmra.mxu1 %v3645_v34  ;;  %v3365_v34 = vld [vmem:[#allocation2 + $0x218] sm:$0xff]  ;;  %v3715_v19 = vsel %vm15580_vm1, %v3708_v49, %v3714_v38  ;;  %5314 = vmatprep.subr.mxu0 %v12027_v0  ;;  %v3657_v49 = vsel %vm15580_vm1, %v3650_v30, %v3656_v35 }
 0x28e   : > { %v12272_v57 = vadd.f32 %v12186_v44, %v2030_v52  ;;  %4021 = vmatprep.mubr.f32.mxu1 %v3653_v2  ;;  %v3651_v44 = vsel %vm15580_vm1, %v3644_v59, %v3650_v30  ;;  %v3721_v32 = vsel %vm15580_vm1, %v3714_v38, %v3720_v11  ;;  %5315 = vmatpush1.msra.mxu0 %v5275_v14  ;;  %v12302_v38 = vld [vmem:[#allocation2 + $0x158] sm:$0xff] }
 0x28f   : > { %v2849_v55 = vpop.f32.mrf.mxu0  ;;  %9153 = vmatmul.mubr.f32.gmra.mxu0 %v3703_v10  ;;  %v2032_v47 = vpop.f32.mrf.mxu1  ;;  %5316 = vmatprep.subr.mxu0 %v12304_v27 }
 0x290   : > { %v12279_v40 = vadd.f32 %v2849_v55, %v2166_v18  ;;  %9155 = vmatprep.mubr.f32.mxu0 %v3709_v28  ;;  %v3664_v47 = vrot.slane %v12274_v33, 2  ;;  %v3726_v18 = vrot.slane %v3365_v34, 2  ;;  %v3371_v33 = vld [vmem:[#allocation2 + $0x2a0] sm:$0xff]  ;;  %v3337_v34 = vld [vmem:[#allocation2 + $0x2f8] sm:$0xff] }
 0x291   : > { %v2851_v52 = vpop.f32.mrf.mxu0  ;;  %v2035_v2 = vpop.f32.mrf.mxu1  ;;  %4022 = vmatmul.mubr.f32.gmra.mxu1 %v3651_v44 }
 0x292   : > { %v12291_v10 = vadd.f32 %v12182_v4, %v2035_v2  ;;  %4026 = vmatprep.mubr.f32.mxu1 %v3659_v26  ;;  %v3662_v4 = vrot.slane %v12287_v51, 2  ;;  %v3665_v60 = vsel %vm15580_vm1, %v3658_v41, %v3664_v47  ;;  %v3738_v52 = vrot.slane %v3371_v33, 2  ;;  %v3374_v2 = vld [vmem:[#allocation2 + $0x138] sm:$0xff] }
 0x293   : > { %v2854_v59 = vpop.f32.mrf.mxu0  ;;  %9156 = vmatmul.mubr.f32.gmra.mxu0 %v3715_v19  ;;  %v2037_v55 = vpop.f32.mrf.mxu1  ;;  %v12311_v26 = vld [vmem:[#allocation2 + $0x398] sm:$0xff]  ;;  %v3733_v41 = vsel %vm15580_vm1, %v3726_v18, %v3732_v5 }
 0x294   : > { %v12297_v28 = vadd.f32 %v2854_v59, %v11993_v37  ;;  %9158 = vmatprep.mubr.f32.mxu0 %v3721_v32  ;;  %v3727_v37 = vsel %vm15580_vm1, %v3720_v11, %v3726_v18  ;;  %v5274_v51 = vld [vmem:[#allocation8 + $0x660] sm:$0xff]  ;;  %v3670_v59 = vrot.slane %v3337_v34, 2  ;;  %v5273_v32 = vld [vmem:[#allocation8 + $0x658] sm:$0xff]  ;;  %v3663_v11 = vsel %vm15580_vm1, %v3656_v35, %v3662_v4  ;;  %v5272_v35 = vld [vmem:[#allocation8 + $0x650] sm:$0xff] }
 0x295   : > { %v2856_v44 = vpop.f32.mrf.mxu0  ;;  %v2040_v0 = vpop.f32.mrf.mxu1  ;;  %4027 = vmatmul.mubr.f32.gmra.mxu1 %v3657_v49  ;;  %5317 = vmatpush1.msra.mxu0 %v5274_v51  ;;  %v3744_v49 = vrot.slane %v3374_v2, 2  ;;  %v3676_v18 = vrot.slane %v12311_v26, 2  ;;  %v3383_v34 = vld [vmem:[#allocation2 + $0x258] sm:$0x3] }
 0x296   : > { %v12309_v30 = vadd.f32 %v12197_v7, %v2040_v0  ;;  %4031 = vmatprep.mubr.f32.mxu1 %v3665_v60  ;;  %v3668_v7 = vrot.slane %v12302_v38, 2  ;;  %v3671_v0 = vsel %vm15580_vm1, %v3664_v47, %v3670_v59  ;;  %v3339_v60 = vld [vmem:[#allocation2 + $0x188] sm:$0xff]  ;;  %5318 = vmatprep.subr.mxu0 %v12304_v27  ;;  %v12328_v47 = vrot.slane %v12304_v27, 2 }
 0x297   : > { %v2859_v14 = vpop.f32.mrf.mxu0  ;;  %9159 = vmatmul.mubr.f32.gmra.mxu0 %v3727_v37  ;;  %v2042_v19 = vpop.f32.mrf.mxu1  ;;  %v3745_v2 = vsel %vm15580_vm1, %v3738_v52, %v3744_v49 }
 0x298   : > { %v12315_v55 = vadd.f32 %v2859_v14, %v12020_v48  ;;  %9161 = vmatprep.mubr.f32.mxu0 %v3733_v41  ;;  %v3739_v48 = vsel %vm15580_vm1, %v3732_v5, %v3738_v52  ;;  %5319 = vmatpush1.msra.mxu0 %v5273_v32  ;;  %v3674_v5 = vrot.slane %v3339_v60, 2  ;;  %v3343_v14 = vld [vmem:[#allocation2 + $0x320] sm:$0xff]  ;;  %v3762_v41 = vrot.slane %v3383_v34, 2 }
 0x299   : > { %v2861_v33 = vpop.f32.mrf.mxu0  ;;  %v2045_v44 = vpop.f32.mrf.mxu1  ;;  %4032 = vmatmul.mubr.f32.gmra.mxu1 %v3663_v11  ;;  %5320 = vmatprep.subr.mxu0 %v12304_v27  ;;  %v3677_v52 = vsel %vm15580_vm1, %v3670_v59, %v3676_v18  ;;  %v3342_v11 = vld [vmem:[#allocation2 + $0x148] sm:$0xff]  ;;  %v3682_v34 = vrot.slane %v3343_v14, 2  ;;  %v3345_v14 = vld [vmem:[#allocation2 + $0x280] sm:$0xff] }
 0x29a   : > { %v12324_v37 = vadd.f32 %v12193_v3, %v2045_v44  ;;  %4036 = vmatprep.mubr.f32.mxu1 %v3671_v0  ;;  %v3669_v3 = vsel %vm15580_vm1, %v3662_v4, %v3668_v7  ;;  %5321 = vmatpush1.msra.mxu0 %v5272_v35  ;;  %v3751_v33 = vsel %vm15580_vm1, %v3744_v49, %v12328_v47  ;;  %v3346_v4 = vld [vmem:[#allocation2 + $0xf8] sm:$0xff] }
 0x29b   : > { %v2864_v38 = vpop.f32.mrf.mxu0  ;;  %9162 = vmatmul.mubr.f32.gmra.mxu0 %v3739_v48  ;;  %v2047_v26 = vpop.f32.mrf.mxu1  ;;  %5322 = vmatprep.subr.mxu0 %v12304_v27  ;;  %v5271_v44 = vld [vmem:[#allocation8 + $0x648] sm:$0xff]  ;;  %v5270_v48 = vld [vmem:[#allocation8 + $0x640] sm:$0xff]  ;;  %v3675_v59 = vsel %vm15580_vm1, %v3668_v7, %v3674_v5 }
 0x29c   : > { %v12332_v51 = vadd.f32 %v2864_v38, %v12022_v9  ;;  %9164 = vmatprep.mubr.f32.mxu0 %v3745_v2  ;;  %v3680_v38 = vrot.slane %v3342_v11, 2  ;;  %5323 = vmatpush1.msra.mxu0 %v5271_v44  ;;  %v3683_v26 = vsel %vm15580_vm1, %v3676_v18, %v3682_v34  ;;  %v3686_v18 = vrot.slane %v3345_v14, 2  ;;  %v3351_v14 = vld [vmem:[#allocation2 + $0x108] sm:$0xff] }
 0x29d   : > { %v2866_v19 = vpop.f32.mrf.mxu0  ;;  %v2050_v32 = vpop.f32.mrf.mxu1  ;;  %4037 = vmatmul.mubr.f32.gmra.mxu1 %v3669_v3  ;;  %v3688_v3 = vrot.slane %v3346_v4, 2  ;;  %5324 = vmatprep.subr.mxu0 %v12304_v27  ;;  %v3348_v4 = vld [vmem:[#allocation2 + $0xe0] sm:$0xff] }
 0x29e   : > { %v12340_v9 = vadd.f32 %v12208_v25, %v2050_v32  ;;  %4041 = vmatprep.mubr.f32.mxu1 %v3677_v52  ;;  %v3763_v25 = vsel %vm15580_vm1, %v12328_v47, %v3762_v41  ;;  %5325 = vmatpush1.msra.mxu0 %v5270_v48  ;;  %v3681_v32 = vsel %vm15580_vm1, %v3674_v5, %v3680_v38  ;;  %v3349_v52 = vld [vmem:[#allocation2 + $0x328] sm:$0xff] }
 0x29f   : > { %v2869_v0 = vpop.f32.mrf.mxu0  ;;  %9165 = vmatmul.mubr.f32.gmra.mxu0 %v3751_v33  ;;  %v2052_v60 = vpop.f32.mrf.mxu1  ;;  %5326 = vmatprep.subr.mxu0 %v12304_v27  ;;  %v3687_v5 = vsel %vm15580_vm1, %v3680_v38, %v3686_v18  ;;  %v3698_v38 = vrot.slane %v3351_v14, 2  ;;  %v3357_v14 = vld [vmem:[#allocation2 + $0x3d0] sm:$0xff] }
 0x2a0   : > { %v12343_v35 = vadd.f32 %v2869_v0, %v12044_v53  ;;  %9167 = vmatprep.mubr.f32.mxu0 %v12328_v47  ;;  %v3352_v0 = vld [vmem:[#allocation2 + $0x80] sm:$0xff] }
 0x2a1   : > { %v2871_v49 = vpop.f32.mrf.mxu0  ;;  %v2055_v2 = vpop.f32.mrf.mxu1  ;;  %4042 = vmatmul.mubr.f32.gmra.mxu1 %v3675_v59  ;;  %v3694_v59 = vrot.slane %v3349_v52, 2  ;;  %v3355_v52 = vld [vmem:[#allocation2 + $0x300] sm:$0xff] }
 0x2a2   : > { %v12352_v53 = vadd.f32 %v12204_v20, %v2055_v2  ;;  %4046 = vmatprep.mubr.f32.mxu1 %v3683_v26  ;;  %v3689_v20 = vsel %vm15580_vm1, %v3682_v34, %v3688_v3  ;;  %v3700_v26 = vrot.slane %v3352_v0, 2 }
 0x2a3   : > { %v2874_v7 = vpop.f32.mrf.mxu0  ;;  %v2057_v19 = vpop.f32.mrf.mxu1  ;;  %9168 = vmatmul.mubr.f32.gmra.mxu0 %v3763_v25  ;;  %v3692_v25 = vrot.slane %v3348_v4, 2  ;;  %v3695_v34 = vsel %vm15580_vm1, %v3688_v3, %v3694_v59 }
 0x2a4   : > { %v12356_v41 = vadd.f32 %v2874_v7, %v12048_v6  ;;  %v3701_v3 = vsel %vm15580_vm1, %v3694_v59, %v3700_v26 }
 0x2a5   : > { %v2876_v11 = vpop.f32.mrf.mxu0  ;;  %v2060_v33 = vpop.f32.mrf.mxu1  ;;  %4047 = vmatmul.mubr.f32.gmra.mxu1 %v3681_v32 }
 0x2a6   : > { %v12361_v44 = vadd.f32 %v12219_v45, %v2060_v33  ;;  %4051 = vmatprep.mubr.f32.mxu1 %v3689_v20  ;;  %v3354_v20 = vld [vmem:[#allocation2 + $0x238] sm:$0xff] }
 0x2a7   : > { %v2879_v60 = vpop.f32.mrf.mxu0  ;;  %v2062_v48 = vpop.f32.mrf.mxu1 }
 0x2a8   : > { %v12364_v6 = vadd.f32 %v2879_v60, %v12113_v42  ;;  %v3693_v42 = vsel %vm15580_vm1, %v3686_v18, %v3692_v25  ;;  %v3706_v48 = vrot.slane %v3355_v52, 2  ;;  %v3699_v18 = vsel %vm15580_vm1, %v3692_v25, %v3698_v38  ;;  %v3361_v52 = vld [vmem:[#allocation2 + $0x338] sm:$0xff] }
 0x2a9   : > { %v2881_v49 = vpop.f32.mrf.mxu0  ;;  %v2065_v2 = vpop.f32.mrf.mxu1  ;;  %4052 = vmatmul.mubr.f32.gmra.mxu1 %v3687_v5  ;;  %v3704_v5 = vrot.slane %v3354_v20, 2  ;;  %v3710_v25 = vrot.slane %v3357_v14, 2  ;;  %v3363_v14 = vld [vmem:[#allocation2 + $0x200] sm:$0xff] }
 0x2aa   : > { %v12369_v45 = vadd.f32 %v12215_v23, %v2065_v2  ;;  %4056 = vmatprep.mubr.f32.mxu1 %v3695_v34  ;;  %v3358_v23 = vld [vmem:[#allocation2 + $0x3e0] sm:$0xff]  ;;  %v3707_v59 = vsel %vm15580_vm1, %v3700_v26, %v3706_v48 }
 0x2ab   : > { %v2884_v7 = vpop.f32.mrf.mxu0  ;;  %v2067_v19 = vpop.f32.mrf.mxu1  ;;  %v3712_v34 = vrot.slane %v3358_v23, 2 }
 0x2ac   : > { %v12372_v32 = vadd.f32 %v2884_v7, %v12108_v8 }
 0x2ad   : > { %v2886_v11 = vpop.f32.mrf.mxu0  ;;  %v2070_v33 = vpop.f32.mrf.mxu1  ;;  %4057 = vmatmul.mubr.f32.gmra.mxu1 %v3693_v42  ;;  %v3713_v26 = vsel %vm15580_vm1, %v3706_v48, %v3712_v34 }
 0x2ae   : > { %v12377_v4 = vadd.f32 %v12230_v12, %v2070_v33  ;;  %4061 = vmatprep.mubr.f32.mxu1 %v3701_v3  ;;  %v3360_v3 = vld [vmem:[#allocation2 + $0x1a8] sm:$0xff] }
 0x2af   : > { %v2889_v0 = vpop.f32.mrf.mxu0  ;;  %v2072_v60 = vpop.f32.mrf.mxu1 }
 0x2b0   : > { %v12380_v8 = vadd.f32 %v2889_v0, %v12124_v61  ;;  %v3705_v61 = vsel %vm15580_vm1, %v3698_v38, %v3704_v5  ;;  %v3718_v0 = vrot.slane %v3361_v52, 2  ;;  %v3716_v38 = vrot.slane %v3360_v3, 2  ;;  %v3367_v52 = vld [vmem:[#allocation2 + $0x30] sm:$0xff]  ;;  %v3366_v3 = vld [vmem:[#allocation2 + $0x58] sm:$0xff] }
 0x2b1   : > { %v2891_v49 = vpop.f32.mrf.mxu0  ;;  %v2075_v2 = vpop.f32.mrf.mxu1  ;;  %4062 = vmatmul.mubr.f32.gmra.mxu1 %v3699_v18 }
 0x2b2   : > { %v12385_v12 = vadd.f32 %v12226_v15, %v2075_v2  ;;  %4066 = vmatprep.mubr.f32.mxu1 %v3707_v59  ;;  %v3364_v15 = vld [vmem:[#allocation2 + $0xf0] sm:$0xff]  ;;  %v3719_v2 = vsel %vm15580_vm1, %v3712_v34, %v3718_v0 }
 0x2b3   : > { %v2894_v7 = vpop.f32.mrf.mxu0  ;;  %v2077_v19 = vpop.f32.mrf.mxu1  ;;  %v3724_v59 = vrot.slane %v3364_v15, 2 }
 0x2b4   : > { %v12388_v42 = vadd.f32 %v2894_v7, %v12129_v29  ;;  %v3711_v29 = vsel %vm15580_vm1, %v3704_v5, %v3710_v25  ;;  %v3722_v5 = vrot.slane %v3363_v14, 2 }
 0x2b5   : > { %v2896_v11 = vpop.f32.mrf.mxu0  ;;  %v12391_v33 = vpop.f32.mrf.mxu1  ;;  %4067 = vmatmul.mubr.f32.gmra.mxu1 %v3705_v61  ;;  %v3725_v34 = vsel %vm15580_vm1, %v3718_v0, %v3724_v59 }
 0x2b6   : > { %4071 = vmatprep.mubr.f32.mxu1 %v3713_v26 }
 0x2b7   : > { %v2899_v20 = vpop.f32.mrf.mxu0  ;;  %v2082_v23 = vpop.f32.mrf.mxu1 }
 0x2b8   : > { %v12395_v60 = vadd.f32 %v2899_v20, %v12135_v16  ;;  %v3717_v16 = vsel %vm15580_vm1, %v3710_v25, %v3716_v38  ;;  %v3730_v23 = vrot.slane %v3367_v52, 2  ;;  %v3728_v25 = vrot.slane %v3366_v3, 2 }
 0x2b9   : > { %v2901_v18 = vpop.f32.mrf.mxu0  ;;  %v2085_v49 = vpop.f32.mrf.mxu1  ;;  %4072 = vmatmul.mubr.f32.gmra.mxu1 %v3711_v29 }
 0x2ba   : > { %v12400_v48 = vadd.f32 %v12241_v39, %v2085_v49  ;;  %4076 = vmatprep.mubr.f32.mxu1 %v3719_v2  ;;  %v3370_v39 = vld [vmem:[#allocation2 + $0x110] sm:$0xff]  ;;  %v3731_v2 = vsel %vm15580_vm1, %v3724_v59, %v3730_v23 }
 0x2bb   : > { %v2904_v7 = vpop.f32.mrf.mxu0  ;;  %v2087_v19 = vpop.f32.mrf.mxu1  ;;  %v3736_v14 = vrot.slane %v3370_v39, 2  ;;  %v3372_v39 = vld [vmem:[#allocation2 + $0x130] sm:$0xff] }
 0x2bc   : > { %v12403_v61 = vadd.f32 %v2904_v7, %v12141_v43  ;;  %v3723_v43 = vsel %vm15580_vm1, %v3716_v38, %v3722_v5  ;;  %v3369_v7 = vld [vmem:[#allocation2 + $0x288] sm:$0xff] }
 0x2bd   : > { %v2906_v11 = vpop.f32.mrf.mxu0  ;;  %v12406_v26 = vpop.f32.mrf.mxu1  ;;  %4077 = vmatmul.mubr.f32.gmra.mxu1 %v3717_v16  ;;  %v3734_v38 = vrot.slane %v3369_v7, 2  ;;  %v3737_v59 = vsel %vm15580_vm1, %v3730_v23, %v3736_v14  ;;  %v5269_v7 = vld [vmem:[#allocation8 + $0x638] sm:$0xff] }
 0x2be   : > { %4081 = vmatprep.mubr.f32.mxu1 %v3725_v34  ;;  %v3373_v11 = vld [vmem:[#allocation2 + $0x210] sm:$0xff]  ;;  %5327 = vmatpush1.msra.mxu0 %v5269_v7 }
 0x2bf   : > { %v2909_v15 = vpop.f32.mrf.mxu0  ;;  %v2092_v20 = vpop.f32.mrf.mxu1  ;;  %5328 = vmatprep.subr.mxu0 %v12304_v27 }
 0x2c0   : > { %v12410_v29 = vadd.f32 %v2909_v15, %v12149_v50  ;;  %v3729_v50 = vsel %vm15580_vm1, %v3722_v5, %v3728_v25  ;;  %v3735_v5 = vsel %vm15580_vm1, %v3728_v25, %v3734_v38 }
 0x2c1   : > { %v2911_v18 = vpop.f32.mrf.mxu0  ;;  %v2095_v49 = vpop.f32.mrf.mxu1  ;;  %4082 = vmatmul.mubr.f32.gmra.mxu1 %v3723_v43  ;;  %v3742_v43 = vrot.slane %v3373_v11, 2  ;;  %v3382_v11 = vld [vmem:[#allocation2 + $0x348] sm:$0x3] }
 0x2c2   : > { %v12415_v0 = vadd.f32 %v12256_v17, %v2095_v49  ;;  %4086 = vmatprep.mubr.f32.mxu1 %v3731_v2  ;;  %v3740_v18 = vrot.slane %v3372_v39, 2  ;;  %v5268_v39 = vld [vmem:[#allocation8 + $0x630] sm:$0xff] }
 0x2c3   : > { %v2914_v19 = vpop.f32.mrf.mxu0  ;;  %v2097_v16 = vpop.f32.mrf.mxu1  ;;  %v3743_v23 = vsel %vm15580_vm1, %v3736_v14, %v3742_v43  ;;  %5329 = vmatpush1.msra.mxu0 %v5268_v39 }
 0x2c4   : > { %v12418_v52 = vadd.f32 %v2914_v19, %v12159_v54  ;;  %v3741_v25 = vsel %vm15580_vm1, %v3734_v38, %v3740_v18  ;;  %5330 = vmatprep.subr.mxu0 %v12304_v27 }
 0x2c5   : > { %v2916_v34 = vpop.f32.mrf.mxu0  ;;  %v9032_v3 = vpop.f32.mrf.mxu1  ;;  %4087 = vmatmul.mubr.f32.gmra.mxu1 %v3729_v50  ;;  %v3375_v50 = vld [vmem:[#allocation2 + $0x390] sm:$0xff] }
 0x2c6   : > { %v12423_v15 = vadd.f32 %v9032_v3, %v12297_v28  ;;  %4091 = vmatprep.mubr.f32.mxu1 %v3737_v59  ;;  %v3746_v59 = vrot.slane %v3375_v50, 2  ;;  %v5266_v50 = vld [vmem:[#allocation8 + $0x620] sm:$0xff] }
 0x2c7   : > { %v2919_v17 = vpop.f32.mrf.mxu0  ;;  %v12425_v20 = vpop.f32.mrf.mxu1 }
 0x2c8   : > { %v12428_v54 = vadd.f32 %v2919_v17, %v12169_v58  ;;  %v5267_v17 = vld [vmem:[#allocation8 + $0x628] sm:$0xff] }
 0x2c9   : > { %v2921_v49 = vpop.f32.mrf.mxu0  ;;  %v9035_v2 = vpop.f32.mrf.mxu1  ;;  %4092 = vmatmul.mubr.f32.gmra.mxu1 %v3735_v5  ;;  %5331 = vmatpush1.msra.mxu0 %v5267_v17 }
 0x2ca   : > { %v12433_v28 = vadd.f32 %v9035_v2, %v12332_v51  ;;  %4096 = vmatprep.mubr.f32.mxu1 %v3743_v23  ;;  %v3749_v51 = vsel %vm15580_vm1, %v3742_v43, %v12328_v47  ;;  %v3381_v2 = vld [vmem:[#allocation2 + $0x318] sm:$0x3]  ;;  %v3747_v23 = vsel %vm15580_vm1, %v3740_v18, %v3746_v59  ;;  %5332 = vmatprep.subr.mxu0 %v12304_v27 }
 0x2cb   : > { %v2924_v19 = vpop.f32.mrf.mxu0  ;;  %v12435_v16 = vpop.f32.mrf.mxu1  ;;  %5333 = vmatpush1.msra.mxu0 %v5266_v50  ;;  %v5308_v50 = vld [vmem:[#allocation8 + $0x770] sm:$0xff] }
 0x2cc   : > { %v12439_v58 = vadd.f32 %v2924_v19, %v12180_v63  ;;  %v3760_v63 = vrot.slane %v3382_v11, 2  ;;  %v3758_v19 = vrot.slane %v3381_v2, 2  ;;  %5334 = vmatprep.subr.mxu0 %v12304_v27 }
 0x2cd   : > { %v2926_v34 = vpop.f32.mrf.mxu0  ;;  %v9038_v14 = vpop.f32.mrf.mxu1  ;;  %4097 = vmatmul.mubr.f32.gmra.mxu1 %v3741_v25  ;;  %v5265_v25 = vld [vmem:[#allocation8 + $0x618] sm:$0xff] }
 0x2ce   : > { %v12445_v3 = vadd.f32 %v9038_v14, %v12356_v41  ;;  %4101 = vmatprep.mubr.f32.mxu1 %v3749_v51  ;;  %v3761_v18 = vsel %vm15580_vm1, %v12328_v47, %v3760_v63  ;;  %5335 = vmatpush1.msra.mxu0 %v5265_v25  ;;  %v3759_v17 = vsel %vm15580_vm1, %v12328_v47, %v3758_v19  ;;  %v5263_v63 = vld [vmem:[#allocation8 + $0x608] sm:$0xff]  ;;  %v5293_v19 = vld [vmem:[#allocation8 + $0x6f8] sm:$0xff] }
 0x2cf   : > { %v2929_v5 = vpop.f32.mrf.mxu0  ;;  %v12447_v49 = vpop.f32.mrf.mxu1  ;;  %5336 = vmatprep.subr.mxu0 %v12304_v27 }
 0x2d0   : > { %v12450_v38 = vadd.f32 %v2929_v5, %v12191_v36  ;;  %v5309_v5 = vld [vmem:[#allocation8 + $0x778] sm:$0xff] }
 0x2d1   : > { %v2931_v43 = vpop.f32.mrf.mxu0  ;;  %v9041_v41 = vpop.f32.mrf.mxu1  ;;  %4102 = vmatmul.mubr.f32.gmra.mxu1 %v3747_v23  ;;  %9170 = vmatprep.subr.mxu1 %v5309_v5 }
 0x2d2   : > { %v12455_v7 = vadd.f32 %v9041_v41, %v12372_v32  ;;  %4106 = vmatprep.mubr.f32.mxu1 %v12328_v47  ;;  %v3753_v32 = vsel %vm15580_vm1, %v3746_v59, %v12328_v47  ;;  %9171 = vmatpush3.msra.mxu1 %v5309_v5 }
 0x2d3   : > { %v2934_v36 = vpop.f32.mrf.mxu0  ;;  %v12459_v11 = vpop.f32.mrf.mxu1  ;;  %9172 = vmatprep.subr.mxu1 %v5308_v50 }
 0x2d4   : > { %v12464_v34 = vadd.f32 %v2934_v36, %v12202_v22  ;;  %v5264_v22 = vld [vmem:[#allocation8 + $0x610] sm:$0xff]  ;;  %9173 = vmatpush3.msra.mxu1 %v5308_v50 }
 0x2d5   : > { %v2936_v14 = vpop.f32.mrf.mxu0  ;;  %v9044_v51 = vpop.f32.mrf.mxu1  ;;  %4107 = vmatmul.mubr.f32.gmra.mxu1 %v3753_v32  ;;  %5337 = vmatpush1.msra.mxu0 %v5264_v22 }
 0x2d6   : > { %v12470_v39 = vadd.f32 %v9044_v51, %v12388_v42  ;;  %4111 = vmatprep.mubr.f32.mxu1 %v3761_v18  ;;  %5338 = vmatprep.subr.mxu0 %v12304_v27  ;;  %v5262_v42 = vld [vmem:[#allocation8 + $0x600] sm:$0xff]  ;;  %v5292_v18 = vld [vmem:[#allocation8 + $0x6f0] sm:$0xff]  ;;  %v5291_v51 = vld [vmem:[#allocation8 + $0x6e8] sm:$0xff] }
 0x2d7   : > { %v2939_v2 = vpop.f32.mrf.mxu0  ;;  %v12475_v59 = vpop.f32.mrf.mxu1  ;;  %5339 = vmatpush1.msra.mxu0 %v5263_v63 }
 0x2d8   : > { %v12478_v23 = vadd.f32 %v2939_v2, %v12213_v13  ;;  %5340 = vmatprep.subr.mxu0 %v12304_v27 }
 0x2d9   : > { %v2941_v43 = vpop.f32.mrf.mxu0  ;;  %v9047_v41 = vpop.f32.mrf.mxu1  ;;  %4112 = vmatmul.mubr.f32.gmra.mxu1 %v3759_v17  ;;  %5341 = vmatpush1.msra.mxu0 %v5262_v42 }
 0x2da   : > { %v12482_v47 = vadd.f32 %v9047_v41, %v12403_v61  ;;  %5342 = vmatprep.subr.mxu0 %v12304_v27  ;;  %v5307_v43 = vld [vmem:[#allocation8 + $0x768] sm:$0xff]  ;;  %v5306_v41 = vld [vmem:[#allocation8 + $0x760] sm:$0xff] }
 0x2db   : > { %v2944_v25 = vpop.f32.mrf.mxu0  ;;  %v12485_v36 = vpop.f32.mrf.mxu1  ;;  %5343 = vmatpush2.msra.mxu0 %v5293_v19  ;;  %9174 = vmatprep.subr.mxu1 %v5307_v43 }
 0x2dc   : > { %v2945_v13 = vadd.f32 %v2944_v25, %v12224_v46  ;;  %5344 = vmatprep.subr.mxu0 %v12304_v27  ;;  %v5290_v46 = vld [vmem:[#allocation8 + $0x6e0] sm:$0xff]  ;;  %v5288_v25 = vld [vmem:[#allocation8 + $0x6d0] sm:$0xff]  ;;  %9175 = vmatpush3.msra.mxu1 %v5307_v43 }
 0x2dd   : > { %v2946_v32 = vpop.f32.mrf.mxu0  ;;  %v9050_v14 = vpop.f32.mrf.mxu1  ;;  %5345 = vmatpush2.msra.mxu0 %v5292_v18  ;;  %v5305_v18 = vld [vmem:[#allocation8 + $0x758] sm:$0xff]  ;;  %9176 = vmatprep.subr.mxu1 %v5306_v41 }
 0x2de   : > { %v12490_v61 = vadd.f32 %v9050_v14, %v12418_v52  ;;  %5346 = vmatprep.subr.mxu0 %v12304_v27  ;;  %v5289_v52 = vld [vmem:[#allocation8 + $0x6d8] sm:$0xff]  ;;  %9177 = vmatpush3.msra.mxu1 %v5306_v41 }
 0x2df   : > { %v2949_v17 = vpop.f32.mrf.mxu0  ;;  %v12493_v22 = vpop.f32.mrf.mxu1  ;;  %5347 = vmatpush2.msra.mxu0 %v5291_v51  ;;  %v5287_v51 = vld [vmem:[#allocation8 + $0x6c8] sm:$0xff]  ;;  %9178 = vmatprep.subr.mxu1 %v5305_v18  ;;  %v5285_v41 = vld [vmem:[#allocation8 + $0x6b8] sm:$0xff] }
 0x2e0   : > { %v12496_v5 = vadd.f32 %v2949_v17, %v12237_v62  ;;  %5348 = vmatprep.subr.mxu0 %v12304_v27  ;;  %v5304_v17 = vld [vmem:[#allocation8 + $0x750] sm:$0xff]  ;;  %9179 = vmatpush3.msra.mxu1 %v5305_v18 }
 0x2e1   : > { %v2951_v63 = vpop.f32.mrf.mxu0  ;;  %v9053_v2 = vpop.f32.mrf.mxu1  ;;  %5349 = vmatpush2.msra.mxu0 %v5290_v46  ;;  %9180 = vmatprep.subr.mxu1 %v5304_v17  ;;  %v5284_v18 = vld [vmem:[#allocation8 + $0x6b0] sm:$0xff] }
 0x2e2   : > { %v12500_v42 = vadd.f32 %v9053_v2, %v12439_v58  ;;  %5350 = vmatprep.subr.mxu0 %v12304_v27  ;;  %v5286_v2 = vld [vmem:[#allocation8 + $0x6c0] sm:$0xff]  ;;  %9181 = vmatpush3.msra.mxu1 %v5304_v17  ;;  %v5283_v17 = vld [vmem:[#allocation8 + $0x6a8] sm:$0xff] }
 0x2e3   : > { %v2954_v19 = vpop.f32.mrf.mxu0  ;;  %v12503_v50 = vpop.f32.mrf.mxu1  ;;  %5351 = vmatpush2.msra.mxu0 %v5289_v52  ;;  %v5303_v52 = vld [vmem:[#allocation8 + $0x748] sm:$0xff] }
 0x2e4   : > { %v2955_v62 = vadd.f32 %v2954_v19, %v12254_v31  ;;  %5352 = vmatprep.subr.mxu0 %v12304_v27  ;;  %9182 = vmatprep.subr.mxu1 %v5303_v52 }
 0x2e5   : > { %v2956_v32 = vpop.f32.mrf.mxu0  ;;  %v9056_v58 = vpop.f32.mrf.mxu1  ;;  %5353 = vmatpush2.msra.mxu0 %v5288_v25  ;;  %v5302_v25 = vld [vmem:[#allocation8 + $0x740] sm:$0xff]  ;;  %9183 = vmatpush3.msra.mxu1 %v5303_v52 }
 0x2e6   : > { %v12508_v14 = vadd.f32 %v9056_v58, %v12464_v34  ;;  %5354 = vmatprep.subr.mxu0 %v12304_v27  ;;  %9184 = vmatprep.subr.mxu1 %v5302_v25  ;;  %v5282_v52 = vld [vmem:[#allocation8 + $0x6a0] sm:$0xff] }
 0x2e7   : > { %v2959_v46 = vpop.f32.mrf.mxu0  ;;  %v12511_v63 = vpop.f32.mrf.mxu1  ;;  %5355 = vmatpush2.msra.mxu0 %v5287_v51  ;;  %v5301_v51 = vld [vmem:[#allocation8 + $0x738] sm:$0xff]  ;;  %9185 = vmatpush3.msra.mxu1 %v5302_v25 }
 0x2e8   : > { %v12514_v31 = vadd.f32 %v2959_v46, %v12272_v57  ;;  %5356 = vmatprep.subr.mxu0 %v12304_v27  ;;  %9186 = vmatprep.subr.mxu1 %v5301_v51  ;;  %v5281_v25 = vld [vmem:[#allocation8 + $0x698] sm:$0xff] }
 0x2e9   : > { %v2961_v34 = vpop.f32.mrf.mxu0  ;;  %v9059_v43 = vpop.f32.mrf.mxu1  ;;  %5357 = vmatpush2.msra.mxu0 %v5286_v2  ;;  %9187 = vmatpush3.msra.mxu1 %v5301_v51  ;;  %v5280_v51 = vld [vmem:[#allocation8 + $0x690] sm:$0xff] }
 0x2ea   : > { %v12517_v19 = vadd.f32 %v9059_v43, %v2945_v13  ;;  %5358 = vmatprep.subr.mxu0 %v12304_v27  ;;  %v5300_v43 = vld [vmem:[#allocation8 + $0x730] sm:$0xff] }
 0x2eb   : > { %v2964_v32 = vpop.f32.mrf.mxu0  ;;  %v12520_v58 = vpop.f32.mrf.mxu1  ;;  %5359 = vmatpush2.msra.mxu0 %v5285_v41  ;;  %v5299_v41 = vld [vmem:[#allocation8 + $0x728] sm:$0xff]  ;;  %9188 = vmatprep.subr.mxu1 %v5300_v43 }
 0x2ec   : > { %v2965_v57 = vadd.f32 %v2964_v32, %v12291_v10  ;;  %5360 = vmatprep.subr.mxu0 %v12304_v27  ;;  %9189 = vmatpush3.msra.mxu1 %v5300_v43  ;;  %v5279_v43 = vld [vmem:[#allocation8 + $0x688] sm:$0xff] }
 0x2ed   : > { %v2966_v46 = vpop.f32.mrf.mxu0  ;;  %v9062_v13 = vpop.f32.mrf.mxu1  ;;  %5361 = vmatpush2.msra.mxu0 %v5284_v18  ;;  %v5298_v18 = vld [vmem:[#allocation8 + $0x720] sm:$0xff]  ;;  %9190 = vmatprep.subr.mxu1 %v5299_v41 }
 0x2ee   : > { %v12524_v34 = vadd.f32 %v9062_v13, %v2955_v62  ;;  %5362 = vmatprep.subr.mxu0 %v12304_v27  ;;  %9191 = vmatpush3.msra.mxu1 %v5299_v41  ;;  %v5278_v41 = vld [vmem:[#allocation8 + $0x680] sm:$0xff] }
 0x2ef   : > { %v2969_v2 = vpop.f32.mrf.mxu0  ;;  %v12527_v21 = vpop.f32.mrf.mxu1  ;;  %5363 = vmatpush2.msra.mxu0 %v5283_v17  ;;  %v5297_v17 = vld [vmem:[#allocation8 + $0x718] sm:$0xff]  ;;  %9192 = vmatprep.subr.mxu1 %v5298_v18 }
 0x2f0   : > { %v12530_v10 = vadd.f32 %v2969_v2, %v12309_v30  ;;  %5364 = vmatprep.subr.mxu0 %v12304_v27  ;;  %9193 = vmatpush3.msra.mxu1 %v5298_v18 }
 0x2f1   : > { %v2971_v62 = vpop.f32.mrf.mxu0  ;;  %v9065_v32 = vpop.f32.mrf.mxu1  ;;  %5365 = vmatpush2.msra.mxu0 %v5282_v52  ;;  %9194 = vmatprep.subr.mxu1 %v5297_v17 }
 0x2f2   : > { %15894 = vst [vmem:[#allocation87_spill] sm:$0xff] %v12530_v10  ;;  %v12533_v46 = vadd.f32 %v9065_v32, %v2965_v57  ;;  %5366 = vmatprep.subr.mxu0 %v12304_v27  ;;  %v5296_v32 = vld [vmem:[#allocation8 + $0x710] sm:$0xff]  ;;  %9195 = vmatpush3.msra.mxu1 %v5297_v17 }
 0x2f3   : > { %v2974_v13 = vpop.f32.mrf.mxu0  ;;  %v12536_v1 = vpop.f32.mrf.mxu1  ;;  %5367 = vmatpush2.msra.mxu0 %v5281_v25  ;;  %9196 = vmatprep.subr.mxu1 %v5296_v32 }
 0x2f4   : > { %15895 = vst [vmem:[#allocation99_spill] sm:$0xff] %v12533_v46  ;;  %v2975_v30 = vadd.f32 %v2974_v13, %v12324_v37  ;;  %5368 = vmatprep.subr.mxu0 %v12304_v27  ;;  %9197 = vmatpush3.msra.mxu1 %v5296_v32  ;;  %v5294_v32 = vld [vmem:[#allocation8 + $0x700] sm:$0xff] }
 0x2f5   : > { %v2976_v2 = vpop.f32.mrf.mxu0  ;;  %v9068_v57 = vpop.f32.mrf.mxu1  ;;  %5369 = vmatpush2.msra.mxu0 %v5280_v51 }
 0x2f6   : > { %v12540_v62 = vadd.f32 %v9068_v57, %v2975_v30  ;;  %5370 = vmatprep.subr.mxu0 %v12304_v27  ;;  %v12549_v30 = vld [vmem:[#allocation8 + $0x5f8] sm:$0xff] }
 0x2f7   : > { %v2979_v52 = vpop.f32.mrf.mxu0  ;;  %v12543_v10 = vpop.f32.mrf.mxu1  ;;  %5371 = vmatpush2.msra.mxu0 %v5279_v43 }
 0x2f8   : > { %15896 = vst [vmem:[#allocation100_spill] sm:$0xff] %v12540_v62  ;;  %15897 = vst [vmem:[#allocation101_spill] sm:$0xff] %v12543_v10  ;;  %v12546_v37 = vadd.f32 %v2979_v52, %v12340_v9  ;;  %5372 = vmatprep.subr.mxu0 %v12304_v27  ;;  %v5295_v62 = vld [vmem:[#allocation8 + $0x708] sm:$0xff] }
 0x2f9   : > { %v2981_v25 = vpop.f32.mrf.mxu0  ;;  %v9071_v13 = vpop.f32.mrf.mxu1  ;;  %5373 = vmatpush2.msra.mxu0 %v5278_v41  ;;  %9198 = vmatprep.subr.mxu1 %v5295_v62 }
 0x2fa   : > { %15898 = vst [vmem:[#allocation89_spill] sm:$0xff] %v12546_v37  ;;  %9256 = vmatprep.subr.mxu0 %v12549_v30  ;;  %9199 = vmatpush3.msra.mxu1 %v5295_v62 }
 0x2fb   : > { %v2984_v18 = vpop.f32.mrf.mxu0  ;;  %v12552_v2 = vpop.f32.mrf.mxu1  ;;  %9200 = vmatprep.subr.mxu1 %v5294_v32 }
 0x2fc   : > { %15899 = vst [vmem:[#allocation91_spill] sm:$0xff] %v12552_v2  ;;  %v2985_v9 = vadd.f32 %v2984_v18, %v12352_v53  ;;  %9201 = vmatpush3.msra.mxu1 %v5294_v32 }
 0x2fd   : > { %v2986_v51 = vpop.f32.mrf.mxu0  ;;  %v9074_v57 = vpop.f32.mrf.mxu1  ;;  %6238 = vmatprep.subr.mxu1 %v12304_v27  ;;  %v2326_v27 = vadd.f32 %v12246_v56, %v12391_v33 }
 0x2fe   : > { %v12556_v17 = vadd.f32 %v9071_v13, %v2985_v9 }
 0x2ff   : > { %v2989_v52 = vpop.f32.mrf.mxu0  ;;  %v12558_v43 = vpop.f32.mrf.mxu1 }
 0x300   : > { %15900 = vst [vmem:[#allocation102_spill] sm:$0xff] %v12556_v17  ;;  %15901 = vst [vmem:[#allocation92_spill] sm:$0xff] %v12558_v43  ;;  %v12561_v25 = vadd.f32 %v2989_v52, %v12361_v44 }
 0x301   : > { %v2991_v37 = vpop.f32.mrf.mxu0  ;;  %v9077_v10 = vpop.f32.mrf.mxu1 }
 0x302   : > { %15902 = vst [vmem:[#allocation93_spill] sm:$0xff] %v12561_v25 }
 0x303   : > { %v2994_v41 = vpop.f32.mrf.mxu0  ;;  %v12563_v53 = vpop.f32.mrf.mxu1 }
 0x304   : > { %15903 = vst [vmem:[#allocation103_spill] sm:$0xff] %v12563_v53  ;;  %v2995_v18 = vadd.f32 %v2994_v41, %v12369_v45 }
 0x305   : > { %v2996_v13 = vpop.f32.mrf.mxu0  ;;  %v9080_v9 = vpop.f32.mrf.mxu1 }
 0x306   : > { %v12567_v51 = vadd.f32 %v9074_v57, %v2995_v18 }
 0x307   : > { %v2999_v44 = vpop.f32.mrf.mxu0  ;;  %v12569_v52 = vpop.f32.mrf.mxu1 }
 0x308   : > { %15904 = vst [vmem:[#allocation104_spill] sm:$0xff] %v12567_v51  ;;  %15905 = vst [vmem:[#allocation105_spill] sm:$0xff] %v12569_v52  ;;  %v12572_v37 = vadd.f32 %v2999_v44, %v12377_v4 }
 0x309   : > { %v3001_v62 = vpop.f32.mrf.mxu0  ;;  %v9083_v17 = vpop.f32.mrf.mxu1 }
 0x30a   : > { %15906 = vst [vmem:[#allocation106_spill] sm:$0xff] %v12572_v37 }
 0x30b   : > { %v3004_v43 = vpop.f32.mrf.mxu0  ;;  %v12574_v53 = vpop.f32.mrf.mxu1 }
 0x30c   : > { %15907 = vst [vmem:[#allocation79_spill] sm:$0xff] %v12574_v53  ;;  %v3005_v45 = vadd.f32 %v3004_v43, %v12385_v12  ;;  %v2336_v12 = vadd.f32 %v12263_v24, %v12406_v26  ;;  %v12593_v24 = vld [vmem:[#allocation9] ss:$0 sm:$0xff] }
 0x30d   : > { %v3006_v32 = vpop.f32.mrf.mxu0  ;;  %v3938_v41 = vpop.f32.mrf.mxu1 }
 0x30e   : > { %v12579_v57 = vadd.f32 %v9077_v10, %v3005_v45 }
 0x30f   : > { %v3009_v18 = vpop.f32.mrf.mxu0  ;;  %v3940_v13 = vpop.f32.mrf.mxu1 }
 0x310   : > { %15908 = vst [vmem:[#allocation107_spill] sm:$0xff] %v12579_v57  ;;  %v12581_v51 = vadd.f32 %v3009_v18, %v2326_v27 }
 0x311   : > { %v3011_v4 = vpop.f32.mrf.mxu0  ;;  %v3943_v44 = vpop.f32.mrf.mxu1 }
 0x312   : > { %15909 = vst [vmem:[#allocation108_spill] sm:$0xff] %v12581_v51 }
 0x313   : > { %v3014_v62 = vpop.f32.mrf.mxu0  ;;  %v3945_v52 = vpop.f32.mrf.mxu1 }
 0x314   : > { %v3015_v37 = vadd.f32 %v3014_v62, %v12400_v48 }
 0x315   : > { %v3016_v53 = vpop.f32.mrf.mxu0  ;;  %v3948_v25 = vpop.f32.mrf.mxu1 }
 0x316   : > { %v12586_v43 = vadd.f32 %v9080_v9, %v3015_v37  ;;  %v3095_v37 = vadd.f32 %v12425_v20, %v12279_v40 }
 0x317   : > { %v3019_v56 = vpop.f32.mrf.mxu0  ;;  %v3950_v33 = vpop.f32.mrf.mxu1 }
 0x318   : > { %15910 = vst [vmem:[#allocation94_spill] sm:$0xff] %v12586_v43  ;;  %v12588_v10 = vadd.f32 %v3019_v56, %v2336_v12 }
 0x319   : > { %v3021_v45 = vpop.f32.mrf.mxu0  ;;  %v3953_v32 = vpop.f32.mrf.mxu1 }
 0x31a   : > { %15911 = vst [vmem:[#allocation109_spill] sm:$0xff] %v12588_v10 }
 0x31b   : > { %v3024_v27 = vpop.f32.mrf.mxu0  ;;  %v3955_v18 = vpop.f32.mrf.mxu1 }
 0x31c   : > { %v3025_v13 = vadd.f32 %v3024_v27, %v12415_v0 }
 0x31d   : > { %v3026_v52 = vpop.f32.mrf.mxu0  ;;  %v3958_v4 = vpop.f32.mrf.mxu1 }
 0x31e   : > { %v12591_v48 = vadd.f32 %v9083_v17, %v3025_v13 }
 0x31f   : > { %v9118_v53 = vpop.f32.mrf.mxu0  ;;  %v3960_v62 = vpop.f32.mrf.mxu1 }
 0x320   : > { %15912 = vst [vmem:[#allocation95_spill] sm:$0xff] %v12591_v48  ;;  %v4189_v57 = vadd.f32 %v9118_v53, %v3943_v44  ;;  %v3105_v44 = vadd.f32 %v12435_v16, %v12315_v55  ;;  %v3115_v55 = vadd.f32 %v12447_v49, %v12343_v35  ;;  %v3125_v35 = vadd.f32 %v12459_v11, %v12364_v6 }
 0x321   : > { %v4183_v26 = vpop.f32.mrf.mxu0  ;;  %v3963_v9 = vpop.f32.mrf.mxu1  ;;  %v3135_v11 = vadd.f32 %v12475_v59, %v12380_v8  ;;  %v3145_v8 = vadd.f32 %v12485_v36, %v12395_v60 }
 0x322   : > { %v4363_v12 = vadd.f32 %v4189_v57, %v12423_v15  ;;  %v4184_v56 = vadd.f32 %v4183_v26, %v3938_v41 }
 0x323   : > { %v9121_v33 = vpop.f32.mrf.mxu0  ;;  %v3965_v45 = vpop.f32.mrf.mxu1 }
 0x324   : > { %v12599_v0 = vadd.f32 %v12593_v24, %v4363_v12  ;;  %v4362_v17 = vadd.f32 %v4184_v56, %v3095_v37  ;;  %v4199_v27 = vadd.f32 %v9121_v33, %v3953_v32 }
 0x325   : > { %v4193_v18 = vpop.f32.mrf.mxu0  ;;  %v3968_v13 = vpop.f32.mrf.mxu1 }
 0x326   : > { %v8423_v52 = vmul.f32 -1.442695, %v12599_v0  ;;  %v12605_v53 = vadd.f32 %v12593_v24, %v4362_v17  ;;  %v4194_v40 = vadd.f32 %v4193_v18, %v3948_v25  ;;  %v4365_v15 = vadd.f32 %v4199_v27, %v12433_v28 }
 0x327   : > { %v9124_v20 = vpop.f32.mrf.mxu0  ;;  %v3970_v41 = vpop.f32.mrf.mxu1 }
 0x328   : > { %9705 = vpow2.f32 %v8423_v52  ;;  %v8422_v57 = vmul.f32 -1.442695, %v12605_v53  ;;  %v4364_v62 = vadd.f32 %v4194_v40, %v3105_v44  ;;  %v12610_v32 = vadd.f32 %v12593_v24, %v4365_v15 }
 0x329   : > { %v4203_v16 = vpop.f32.mrf.mxu0  ;;  %v4209_v26 = vadd.f32 %v9124_v20, %v3963_v9  ;;  %v3973_v37 = vpop.f32.mrf.mxu1 }
 0x32a   : > { %9707 = vpow2.f32 %v8422_v57  ;;  %v12615_v25 = vadd.f32 %v12593_v24, %v4364_v62  ;;  %v8425_v28 = vmul.f32 -1.442695, %v12610_v32  ;;  %v4204_v12 = vadd.f32 %v4203_v16, %v3958_v4 }
 0x32b   : > { %v9127_v56 = vpop.f32.mrf.mxu0  ;;  %v4367_v33 = vadd.f32 %v4209_v26, %v12445_v3  ;;  %v3975_v45 = vpop.f32.mrf.mxu1 }
 0x32c   : > { %v8424_v17 = vmul.f32 -1.442695, %v12615_v25  ;;  %9709 = vpow2.f32 %v8425_v28  ;;  %v4366_v27 = vadd.f32 %v4204_v12, %v3115_v55  ;;  %v4219_v44 = vadd.f32 %v9127_v56, %v3973_v37 }
 0x32d   : > { %v4213_v49 = vpop.f32.mrf.mxu0  ;;  %v12623_v9 = vadd.f32 %v12593_v24, %v4367_v33  ;;  %v3978_v18 = vpop.f32.mrf.mxu1 }
 0x32e   : > { %9711 = vpow2.f32 %v8424_v17  ;;  %v12626_v4 = vadd.f32 %v12593_v24, %v4366_v27  ;;  %v4214_v52 = vadd.f32 %v4213_v49, %v3968_v13  ;;  %v4369_v3 = vadd.f32 %v4219_v44, %v12455_v7 }
 0x32f   : > { %v8427_v40 = vmul.f32 -1.442695, %v12623_v9  ;;  %v9130_v15 = vpop.f32.mrf.mxu0  ;;  %v3980_v20 = vpop.f32.mrf.mxu1 }
 0x330   : > { %v8426_v41 = vmul.f32 -1.442695, %v12626_v4  ;;  %v4368_v57 = vadd.f32 %v4214_v52, %v3125_v35  ;;  %v12632_v6 = vadd.f32 %v12593_v24, %v4369_v3 }
 0x331   : > { %9713 = vpow2.f32 %v8427_v40  ;;  %v4223_v62 = vpop.f32.mrf.mxu0  ;;  %v3983_v55 = vpop.f32.mrf.mxu1 }
 0x332   : > { %9715 = vpow2.f32 %v8426_v41  ;;  %v12637_v13 = vadd.f32 %v12593_v24, %v4368_v57  ;;  %v8429_v7 = vmul.f32 -1.442695, %v12632_v6  ;;  %v4224_v16 = vadd.f32 %v4223_v62, %v3978_v18 }
 0x333   : > { %v9133_v26 = vpop.f32.mrf.mxu0  ;;  %v4229_v37 = vadd.f32 %v9130_v15, %v3983_v55  ;;  %v3985_v28 = vpop.f32.mrf.mxu1 }
 0x334   : > { %v8428_v12 = vmul.f32 -1.442695, %v12637_v13  ;;  %9717 = vpow2.f32 %v8429_v7  ;;  %v4370_v56 = vadd.f32 %v4224_v16, %v3135_v11 }
 0x335   : > { %v9706_v33 = vpop.eup %9705  ;;  %v4233_v59 = vpop.f32.mrf.mxu0  ;;  %v4371_v45 = vadd.f32 %v4229_v37, %v12470_v39 }
 0x336   : > { %v3988_v17 = vpop.f32.mrf.mxu1  ;;  %v4549_v27 = vadd.f32 1.0, %v9706_v33  ;;  %9719 = vpow2.f32 %v8428_v12  ;;  %v12645_v44 = vadd.f32 %v12593_v24, %v4370_v56  ;;  %v3155_v33 = vadd.f32 %v12493_v22, %v12410_v29 }
 0x337   : > { %v4234_v35 = vadd.f32 %v4233_v59, %v3988_v17  ;;  %v9708_v49 = vpop.eup %9707  ;;  %v12648_v18 = vadd.f32 %v12593_v24, %v4371_v45  ;;  %v9136_v15 = vpop.f32.mrf.mxu0 }
 0x338   : > { %v3990_v52 = vpop.f32.mrf.mxu1  ;;  %9721 = vrcp.f32 %v4549_v27  ;;  %v4548_v3 = vadd.f32 1.0, %v9708_v49  ;;  %v8430_v40 = vmul.f32 -1.442695, %v12645_v44 }
 0x339   : > { %v4372_v60 = vadd.f32 %v4234_v35, %v3145_v8  ;;  %v9710_v36 = vpop.eup %9709  ;;  %v8431_v39 = vmul.f32 -1.442695, %v12648_v18  ;;  %v4243_v28 = vpop.f32.mrf.mxu0 }
 0x33a   : > { %v3993_v20 = vpop.f32.mrf.mxu1  ;;  %9723 = vrcp.f32 %v4548_v3  ;;  %v4551_v41 = vadd.f32 1.0, %v9710_v36 }
 0x33b   : > { %v12653_v57 = vadd.f32 %v12593_v24, %v4372_v60  ;;  %v4239_v11 = vadd.f32 %v9133_v26, %v3993_v20  ;;  %v9712_v62 = vpop.eup %9711  ;;  %9725 = vpow2.f32 %v8430_v40  ;;  %v12663_v52 = vpop.f32.mrf.mxu0 }
 0x33c   : > { %v3995_v55 = vpop.f32.mrf.mxu1  ;;  %v4550_v7 = vadd.f32 1.0, %v9712_v62  ;;  %9727 = vrcp.f32 %v4551_v41  ;;  %v3165_v62 = vadd.f32 %v12503_v50, %v12428_v54 }
 0x33d   : > { %v8432_v16 = vmul.f32 -1.442695, %v12653_v57  ;;  %v4373_v37 = vadd.f32 %v4239_v11, %v12482_v47  ;;  %9729 = vpow2.f32 %v8431_v39  ;;  %v4253_v55 = vpop.f32.mrf.mxu0 }
 0x33e   : > { %v3998_v12 = vpop.f32.mrf.mxu1  ;;  %v9714_v56 = vpop.eup %9713  ;;  %9731 = vrcp.f32 %v4550_v7 }
 0x33f   : > { %v12660_v8 = vadd.f32 %v12593_v24, %v4373_v37  ;;  %v4244_v26 = vadd.f32 %v4243_v28, %v3998_v12  ;;  %v9716_v59 = vpop.eup %9715  ;;  %v4553_v45 = vadd.f32 1.0, %v9714_v56  ;;  %9733 = vpow2.f32 %v8432_v16 }
 0x340   : > { %v4000_v17 = vpop.f32.mrf.mxu1  ;;  %v4552_v27 = vadd.f32 1.0, %v9716_v59 }
 0x341   : > { %v8433_v35 = vmul.f32 -1.442695, %v12660_v8  ;;  %v4374_v47 = vadd.f32 %v4244_v26, %v3155_v33  ;;  %v9718_v49 = vpop.eup %9717  ;;  %9735 = vrcp.f32 %v4553_v45 }
 0x342   : > { %v4003_v3 = vpop.f32.mrf.mxu1  ;;  %9737 = vrcp.f32 %v4552_v27  ;;  %v4555_v29 = vadd.f32 1.0, %v9718_v49 }
 0x343   : > { %v12666_v22 = vadd.f32 %v12593_v24, %v4374_v47  ;;  %v4249_v40 = vadd.f32 %v9136_v15, %v4003_v3  ;;  %v9720_v60 = vpop.eup %9719  ;;  %9739 = vpow2.f32 %v8433_v35 }
 0x344   : > { %v4005_v36 = vpop.f32.mrf.mxu1  ;;  %v4554_v39 = vadd.f32 1.0, %v9720_v60  ;;  %9741 = vrcp.f32 %v4555_v29 }
 0x345   : > { %v8434_v20 = vmul.f32 -1.442695, %v12666_v22  ;;  %v4375_v41 = vadd.f32 %v4249_v40, %v12490_v61  ;;  %v9722_v11 = vpop.eup %9721 }
 0x346   : > { %v4008_v7 = vpop.f32.mrf.mxu1  ;;  %v12673_v16 = vmul.f32 %v9722_v11, %v12599_v0  ;;  %9743 = vrcp.f32 %v4554_v39 }
 0x347   : > { %v12676_v15 = vadd.f32 %v12593_v24, %v4375_v41  ;;  %v4254_v37 = vadd.f32 %v4253_v55, %v4008_v7  ;;  %v9724_v28 = vpop.eup %9723  ;;  %9745 = vpow2.f32 %v8434_v20 }
 0x348   : > { %v4010_v12 = vpop.f32.mrf.mxu1  ;;  %v9726_v56 = vpop.eup %9725  ;;  %v12681_v33 = vsel %vm1201_vm6, %v12673_v16, 0.0  ;;  %v4656_v54 = vmul.f32 %v9724_v28, %v12605_v53 }
 0x349   : > { %15914 = vst [vmem:[#allocation110_spill] sm:$0xff] %v12681_v33  ;;  %v8435_v50 = vmul.f32 -1.442695, %v12676_v15  ;;  %v4376_v0 = vadd.f32 %v4254_v37, %v3165_v62  ;;  %v9728_v26 = vpop.eup %9727  ;;  %v4765_v59 = vrot.slane %v12681_v33, 7  ;;  %4910 = vst [vmem:[#allocation2 + $0x378] sm:$0xff] %v12681_v33  ;;  %v4946_v45 = vrot.slane %v12681_v33, 1  ;;  %v12711_v62 = vpop.f32.mrf.mxu0 }
 0x34a   : > { %v4556_v17 = vadd.f32 1.0, %v9726_v56  ;;  %v4013_v27 = vpop.f32.mrf.mxu1  ;;  %v9730_v35 = vpop.eup %9729  ;;  %v12690_v49 = vsel %vm1200_vm0, %v4656_v54, 0.0  ;;  %v12693_v3 = vmul.f32 %v9728_v26, %v12610_v32  ;;  %10062 = vmatprep.mubr.msk.f32.mxu0 %vm1200_vm0, %v4656_v54  ;;  %v15919_v54 = vld [vmem:[#allocation17_spill] sm:$0xff] }
 0x34b   : > { %15916 = vst [vmem:[#allocation96_spill] sm:$0xff] %v12690_v49  ;;  %9747 = vpow2.f32 %v8435_v50  ;;  %v12696_v53 = vadd.f32 %v12593_v24, %v4376_v0  ;;  %v9732_v29 = vpop.eup %9731  ;;  %v4764_v40 = vrot.slane %v12690_v49, 7  ;;  %4909 = vst [vmem:[#allocation2 + $0x168] sm:$0xff] %v12690_v49  ;;  %v4945_v60 = vrot.slane %v12690_v49, 1 }
 0x34c   : > { %9749 = vrcp.f32 %v4556_v17  ;;  %v4557_v36 = vadd.f32 1.0, %v9730_v35  ;;  %v4015_v39 = vpop.f32.mrf.mxu1  ;;  %v9734_v20 = vpop.eup %9733  ;;  %v12704_v32 = vmul.f32 %v9732_v29, %v12615_v25  ;;  %v12709_v11 = vsel %vm1203_vm7, %v12693_v3, 0.0 }
 0x34d   : > { %v8436_v55 = vmul.f32 -1.442695, %v12696_v53  ;;  %v12715_v7 = vsel %vm1308_vm8, %v4764_v40, %v4765_v59  ;;  %4872 = vst [vmem:[#allocation2 + $0x150] sm:$0xfe] %v4764_v40  ;;  %v4947_v37 = vsel %vm1490_vm9, %v4945_v60, %v4946_v45  ;;  %5053 = vst [vmem:[#allocation2 + $0x250] sm:$0x80] %v4945_v60  ;;  %v4259_v26 = vadd.f32 %v12663_v52, %v4013_v27 }
 0x34e   : > { %15918 = vst [vmem:[#allocation111_spill] sm:$0xff] %v12715_v7  ;;  %v4769_v28 = vrot.slane %v12709_v11, 7  ;;  %4912 = vst [vmem:[#allocation2 + $0x1b0] sm:$0xff] %v12709_v11  ;;  %v4950_v25 = vrot.slane %v12709_v11, 1  ;;  %v12721_v12 = vpop.f32.mrf.mxu1  ;;  %v9736_v56 = vpop.eup %9735  ;;  %vm15920_vm0 = vcmp.eq.s32.totalorder %v15919_v54, 1  ;;  %9751 = vrcp.f32 %v4557_v36  ;;  %9202 = vmatprep.mubr.f32.mxu1 %v4947_v37  ;;  %v5219_v27 = vld [vmem:[#allocation8 + $0x4f8] sm:$0xff] }
 0x34f   : > { %4873 = vst [vmem:[#allocation2 + $0x388] sm:$0xff] %v12715_v7  ;;  %5054 = vst [vmem:[#allocation2 + $0x3c8] sm:$0xff] %v4947_v37  ;;  %v12727_v50 = vsel %vm15920_vm0, %v12704_v32, 0.0  ;;  %v4558_v0 = vadd.f32 1.0, %v9734_v20  ;;  %v9738_v17 = vpop.eup %9737  ;;  %v12734_v29 = vmul.f32 %v9736_v56, %v12623_v9  ;;  %9753 = vpow2.f32 %v8436_v55  ;;  %v12739_v36 = vpop.f32.mrf.mxu0 }
 0x350   : > { %15921 = vst [vmem:[#allocation97_spill] sm:$0xff] %v12727_v50  ;;  %v4767_v35 = vrot.slane %v12727_v50, 7  ;;  %4911 = vst [vmem:[#allocation2 + $0x3a8] sm:$0xff] %v12727_v50  ;;  %v4948_v47 = vrot.slane %v12727_v50, 1  ;;  %v4020_v40 = vpop.f32.mrf.mxu1  ;;  %v9740_v60 = vpop.eup %9739  ;;  %v12737_v39 = vmul.f32 %v9738_v17, %v12626_v4  ;;  %v4377_v52 = vadd.f32 %v4259_v26, %v12500_v42  ;;  %v15924_v42 = vld [vmem:[#allocation20_spill] sm:$0xff] }
 0x351   : > { %9755 = vrcp.f32 %v4558_v0  ;;  %v9742_v20 = vpop.eup %9741  ;;  %vm15925_vm0 = vcmp.eq.s32.totalorder %v15924_v42, 1  ;;  %v4559_v26 = vadd.f32 1.0, %v9740_v60 }
 0x352   : > { %v12743_v11 = vsel %vm1308_vm8, %v4765_v59, %v4767_v35  ;;  %v4949_v37 = vsel %vm1490_vm9, %v4946_v45, %v4948_v47  ;;  %v12747_v9 = vsel %vm1308_vm8, %v4767_v35, %v4769_v28  ;;  %v12750_v55 = vsel %vm1490_vm9, %v4948_v47, %v4950_v25  ;;  %v12752_v4 = vpop.f32.mrf.mxu1  ;;  %v15926_v45 = vld [vmem:[#allocation21_spill] sm:$0xff] }
 0x353   : > { %15922 = vst [vmem:[#allocation112_spill] sm:$0xff] %v12743_v11  ;;  %15923 = vst [vmem:[#allocation98_spill] sm:$0xff] %v12750_v55  ;;  %v4696_v59 = vsel %vm15925_vm0, %v12737_v39, 0.0  ;;  %vm15927_vm1 = vcmp.eq.s32.totalorder %v15926_v45, 1  ;;  %v12764_v0 = vmul.f32 %v9742_v20, %v12632_v6  ;;  %9203 = vmatmul.mubr.f32.vlgmr.msra.gmra.mxu1 %v4949_v37  ;;  %v9744_v17 = vpop.eup %9743  ;;  %v15928_v6 = vld [vmem:[#allocation23_spill] sm:$0xff]  ;;  %v12775_v20 = vpop.f32.mrf.mxu0  ;;  %9757 = vrcp.f32 %v4559_v26 }
 0x354   : > { %4874 = vst [vmem:[#allocation2 + $0xb8] sm:$0xff] %v12743_v11  ;;  %5055 = vst [vmem:[#allocation2 + $0x2b8] sm:$0xff] %v4949_v37  ;;  %v4697_v56 = vsel %vm15927_vm1, %v12734_v29, 0.0  ;;  %v4771_v35 = vrot.slane %v4696_v59, 7  ;;  %v4952_v47 = vrot.slane %v4696_v59, 1  ;;  %9205 = vmatprep.mubr.f32.mxu1 %v12750_v55  ;;  %v4025_v43 = vpop.f32.mrf.mxu1  ;;  %6239 = vmatpush1.msra.mxu1 %v5219_v27  ;;  %v9746_v50 = vpop.eup %9745  ;;  %v12768_v49 = vmul.f32 %v9744_v17, %v12637_v13  ;;  %v5101_v37 = vld [vmem:[#allocation2 + $0x150] sm:$0xff] }
 0x355   : > { %4875 = vst [vmem:[#allocation2 + $0x2a8] sm:$0xff] %v12747_v9  ;;  %5056 = vst [vmem:[#allocation2 + $0x380] sm:$0xff] %v12750_v55  ;;  %v4773_v40 = vrot.slane %v4697_v56, 7  ;;  %v4954_v48 = vrot.slane %v4697_v56, 1  ;;  %vm15929_vm1 = vcmp.eq.s32.totalorder %v15928_v6, 1  ;;  %v12780_v55 = vld [vmem:[#allocation2 + $0x308] sm:$0xff]  ;;  %5375 = vmatmul.mubr.f32.vlgmr.msra.gmra.mxu0 %v5101_v37 }
 0x356   : > { %4913 = vst [vmem:[#allocation2 + $0x2c0] sm:$0xff] %v4696_v59  ;;  %4914 = vst [vmem:[#allocation2 + $0x2b0] sm:$0xff] %v4697_v56  ;;  %v12773_v60 = vsel %vm15929_vm1, %v12764_v0, 0.0  ;;  %v12778_v59 = vadd.f32 %v12593_v24, %v4377_v52  ;;  %v5250_v56 = vld [vmem:[#allocation8 + $0x5f0] sm:$0xff]  ;;  %6240 = vmatprep.subr.mxu1 %v12780_v55  ;;  %v12784_v43 = vsel %vm1308_vm8, %v4769_v28, %v4771_v35  ;;  %v12796_v52 = vpop.f32.mrf.mxu1  ;;  %9257 = vmatpush3.msra.mxu0 %v12549_v30  ;;  %v5249_v17 = vld [vmem:[#allocation8 + $0x5e8] sm:$0xff]  ;;  %v12815_v30 = vpop.f32.mrf.mxu0 }
 0x357   : > { %15930 = vst [vmem:[#allocation84_spill] sm:$0xff] %v12784_v43  ;;  %v12787_v13 = vsel %vm1490_vm9, %v4950_v25, %v4952_v47  ;;  %v12790_v27 = vsel %vm1308_vm8, %v4771_v35, %v4773_v40  ;;  %v12793_v26 = vsel %vm1490_vm9, %v4952_v47, %v4954_v48  ;;  %4916 = vst [vmem:[#allocation2 + $0xe8] sm:$0xff] %v12773_v60  ;;  %v15933_v28 = vld [vmem:[#allocation22_spill] sm:$0xff]  ;;  %v4560_v47 = vadd.f32 1.0, %v9746_v50 }
 0x358   : > { %15931 = vst [vmem:[#allocation113_spill] sm:$0xff] %v12787_v13  ;;  %15932 = vst [vmem:[#allocation18_spill] sm:$0xff] %v12793_v26  ;;  %vm15934_vm0 = vcmp.eq.s32.totalorder %v15933_v28, 1  ;;  %10063 = vmatprep.mubr.msk.f32.mxu0 %vm1201_vm6, %v12673_v16  ;;  %v9748_v37 = vpop.eup %9747  ;;  %v8437_v51 = vmul.f32 -1.442695, %v12778_v59  ;;  %9258 = vmatprep.subr.mxu0 %v5250_v56  ;;  %v4030_v2 = vpop.f32.mrf.mxu1  ;;  %v3175_v50 = vadd.f32 %v12511_v63, %v12450_v38  ;;  %v15936_v35 = vrot.slane %v12773_v60, 7 }
 0x359   : > { %4876 = vst [vmem:[#allocation2 + $0x28] sm:$0xff] %v12784_v43  ;;  %5057 = vst [vmem:[#allocation2 + $0xb0] sm:$0xff] %v12787_v13  ;;  %v4698_v25 = vsel %vm15934_vm0, %v12768_v49, 0.0  ;;  %9206 = vmatmul.mubr.f32.gmra.mxu1 %v12787_v13  ;;  %v9750_v46 = vpop.eup %9749  ;;  %9759 = vrcp.f32 %v4560_v47  ;;  %v4561_v61 = vadd.f32 1.0, %v9748_v37  ;;  %v4264_v16 = vadd.f32 %v12739_v36, %v12721_v12  ;;  %9259 = vmatpush3.msra.mxu0 %v5250_v56  ;;  %v5248_v36 = vld [vmem:[#allocation8 + $0x5e0] sm:$0xff] }
 0x35a   : > { %4877 = vst [vmem:[#allocation2 + $0x1c8] sm:$0xff] %v12790_v27  ;;  %5058 = vst [vmem:[#allocation2 + $0x170] sm:$0xff] %v12793_v26  ;;  %v4775_v33 = vrot.slane %v4698_v25, 7  ;;  %v4956_v10 = vrot.slane %v4698_v25, 1  ;;  %9208 = vmatprep.mubr.f32.mxu1 %v12793_v26  ;;  %v15937_v63 = vrot.slane %v12773_v60, 1  ;;  %5380 = vmatmul.mubr.f32.gmra.mxu0 %v12715_v7  ;;  %v12835_v12 = vpop.f32.mrf.mxu1  ;;  %vm15938_vm6 = vcmp.eq.s32.totalorder %v15919_v54, 1 }
 0x35b   : > { %4915 = vst [vmem:[#allocation2 + $0xc8] sm:$0xff] %v4698_v25  ;;  %9761 = vrcp.f32 %v4561_v61  ;;  %10064 = vmatprep.mubr.msk.f32.mxu0 %vm15938_vm6, %v12704_v32  ;;  %9260 = vmatprep.subr.mxu0 %v5249_v17  ;;  %v4269_v56 = vadd.f32 %v12711_v62, %v12752_v4  ;;  %v12855_v32 = vpop.f32.mrf.mxu0  ;;  %v16025_v13 = vld [vmem:[#allocation47_spill] sm:$0xff] }
 0x35c   : > { %v12821_v25 = vsel %vm1308_vm8, %v4773_v40, %v4775_v33  ;;  %v12824_v2 = vsel %vm1490_vm9, %v4954_v48, %v4956_v10  ;;  %v12829_v38 = vsel %vm1308_vm8, %v4775_v33, %v15936_v35  ;;  %v4959_v47 = vsel %vm1490_vm9, %v4956_v10, %v15937_v63  ;;  %v5218_v10 = vld [vmem:[#allocation8 + $0x4f0] sm:$0xff]  ;;  %v9752_v40 = vpop.eup %9751  ;;  %9261 = vmatpush3.msra.mxu0 %v5249_v17  ;;  %v4035_v35 = vpop.f32.mrf.mxu1 }
 0x35d   : > { %15935 = vst [vmem:[#allocation16_spill] sm:$0xff] %v12824_v2  ;;  %4878 = vst [vmem:[#allocation2 + $0x60] sm:$0xff] %v12821_v25  ;;  %v12841_v48 = vmul.f32 %v9750_v46, %v12645_v44  ;;  %v4378_v33 = vadd.f32 %v4264_v16, %v3175_v50  ;;  %9763 = vpow2.f32 %v8437_v51  ;;  %9209 = vmatmul.mubr.f32.gmra.mxu1 %v12824_v2  ;;  %v9754_v37 = vpop.eup %9753  ;;  %v15939_v46 = vld [vmem:[#allocation24_spill] sm:$0xff]  ;;  %9262 = vmatprep.subr.mxu0 %v5248_v36  ;;  %v5247_v51 = vld [vmem:[#allocation8 + $0x5d8] sm:$0xff] }
 0x35e   : > { %5059 = vst [vmem:[#allocation2 + $0x3b8] sm:$0xff] %v12824_v2  ;;  %4879 = vst [vmem:[#allocation2 + $0x360] sm:$0xff] %v12829_v38  ;;  %vm15940_vm1 = vcmp.eq.s32.totalorder %v15939_v46, 1  ;;  %v12853_v50 = vmul.f32 %v9752_v40, %v12648_v18  ;;  %9211 = vmatprep.mubr.f32.mxu1 %v4959_v47  ;;  %v9756_v62 = vpop.eup %9755  ;;  %v4562_v61 = vadd.f32 1.0, %v9754_v37  ;;  %5385 = vmatmul.mubr.f32.gmra.mxu0 %v12743_v11  ;;  %v12862_v63 = vpop.f32.mrf.mxu1 }
 0x35f   : > { %5060 = vst [vmem:[#allocation2 + $0x40] sm:$0xff] %v4959_v47  ;;  %v4700_v44 = vsel %vm15940_vm1, %v12841_v48, 0.0  ;;  %v12858_v54 = vadd.f32 %v12593_v24, %v4378_v33  ;;  %v4379_v16 = vadd.f32 %v4269_v56, %v12508_v14  ;;  %6241 = vmatpush1.msra.mxu1 %v5218_v10  ;;  %v3185_v18 = vadd.f32 %v12520_v58, %v12478_v23  ;;  %v15941_v33 = vld [vmem:[#allocation25_spill] sm:$0xff] }
 0x360   : > { %v4779_v4 = vrot.slane %v4700_v44, 7  ;;  %4917 = vst [vmem:[#allocation2 + $0x128] sm:$0xff] %v4700_v44  ;;  %v4960_v17 = vrot.slane %v4700_v44, 1  ;;  %vm15942_vm0 = vcmp.eq.s32.totalorder %v15941_v33, 1  ;;  %v12870_v40 = vmul.f32 %v9756_v62, %v12653_v57  ;;  %10065 = vmatprep.mubr.msk.f32.mxu0 %vm1203_vm7, %v12693_v3  ;;  %9263 = vmatpush3.msra.mxu0 %v5248_v36  ;;  %v5246_v14 = vld [vmem:[#allocation8 + $0x5d0] sm:$0xff]  ;;  %v4040_v44 = vpop.f32.mrf.mxu1  ;;  %v4283_v36 = vpop.f32.mrf.mxu0  ;;  %v13274_v3 = vld [vmem:[#allocation2 + $0x1b0] sm:$0xff] }
 0x361   : > { %v4701_v47 = vsel %vm15942_vm0, %v12853_v50, 0.0  ;;  %v8438_v35 = vmul.f32 -1.442695, %v12858_v54  ;;  %v15943_v10 = vrot.slane %v12773_v60, 7  ;;  %v15944_v23 = vrot.slane %v12773_v60, 1  ;;  %9264 = vmatprep.subr.mxu0 %v5247_v51  ;;  %6242 = vmatprep.subr.mxu1 %v12780_v55  ;;  %16002 = vst [vmem:[#allocation31_spill] sm:$0xff] %v13274_v3 }
 0x362   : > { %v4781_v37 = vrot.slane %v4701_v47, 7  ;;  %4918 = vst [vmem:[#allocation2 + $0x8] sm:$0xff] %v4701_v47  ;;  %v4962_v57 = vrot.slane %v4701_v47, 1  ;;  %v4702_v41 = vsel %vm1210_vm12, %v12870_v40, 0.0  ;;  %9765 = vrcp.f32 %v4562_v61  ;;  %9265 = vmatpush3.msra.mxu0 %v5247_v51  ;;  %v5217_v47 = vld [vmem:[#allocation8 + $0x4e8] sm:$0xff]  ;;  %v12899_v61 = vpop.f32.mrf.mxu1 }
 0x363   : > { %v12879_v56 = vsel %vm1308_vm8, %v15943_v10, %v4779_v4  ;;  %v4961_v58 = vsel %vm1490_vm9, %v15944_v23, %v4960_v17  ;;  %v12890_v60 = vadd.f32 %v12593_v24, %v4379_v16  ;;  %v4274_v62 = vadd.f32 %v12815_v30, %v12796_v52  ;;  %v9758_v10 = vpop.eup %9757  ;;  %4919 = vst [vmem:[#allocation2 + $0xa0] sm:$0xff] %v4702_v41  ;;  %v5245_v16 = vld [vmem:[#allocation8 + $0x5c8] sm:$0xff] }
 0x364   : > { %4880 = vst [vmem:[#allocation2 + $0x278] sm:$0xff] %v12879_v56  ;;  %5061 = vst [vmem:[#allocation2 + $0x2d0] sm:$0xff] %v4961_v58  ;;  %9212 = vmatmul.mubr.f32.gmra.mxu1 %v4961_v58  ;;  %v12895_v23 = vsel %vm1308_vm8, %v4779_v4, %v4781_v37  ;;  %v4963_v44 = vsel %vm1490_vm9, %v4960_v17, %v4962_v57  ;;  %v4783_v2 = vrot.slane %v4702_v41, 7  ;;  %v4964_v26 = vrot.slane %v4702_v41, 1  ;;  %v4045_v17 = vpop.f32.mrf.mxu1 }
 0x365   : > { %5390 = vmatmul.mubr.f32.gmra.mxu0 %v12747_v9  ;;  %9266 = vmatprep.subr.mxu0 %v5246_v14  ;;  %4881 = vst [vmem:[#allocation2 + $0x120] sm:$0xff] %v12895_v23  ;;  %5062 = vst [vmem:[#allocation2 + $0x2e8] sm:$0xff] %v4963_v44  ;;  %v12903_v52 = vmul.f32 %v9758_v10, %v12660_v8  ;;  %9767 = vpow2.f32 %v8438_v35  ;;  %v8439_v30 = vmul.f32 -1.442695, %v12890_v60  ;;  %vm15946_vm7 = vcmp.eq.s32.totalorder %v15924_v42, 1  ;;  %v15947_v8 = vld [vmem:[#allocation27_spill] sm:$0xff]  ;;  %v12917_v35 = vpop.f32.mrf.mxu0 }
 0x366   : > { %v4380_v51 = vadd.f32 %v4274_v62, %v3185_v18  ;;  %10066 = vmatprep.mubr.msk.f32.mxu0 %vm15946_vm7, %v12737_v39  ;;  %9214 = vmatprep.mubr.f32.mxu1 %v4963_v44  ;;  %v12910_v9 = vsel %vm1308_vm8, %v4781_v37, %v4783_v2  ;;  %v4965_v4 = vsel %vm1490_vm9, %v4962_v57, %v4964_v26  ;;  %vm15948_vm6 = vcmp.eq.s32.totalorder %v15947_v8, 1  ;;  %v5244_v42 = vld [vmem:[#allocation8 + $0x5c0] sm:$0xff]  ;;  %v9760_v58 = vpop.eup %9759  ;;  %v12925_v41 = vpop.f32.mrf.mxu1  ;;  %v5243_v10 = vld [vmem:[#allocation8 + $0x5b8] sm:$0xff] }
 0x367   : > { %9267 = vmatpush3.msra.mxu0 %v5246_v14  ;;  %6243 = vmatpush1.msra.mxu1 %v5217_v47  ;;  %4882 = vst [vmem:[#allocation2 + $0x310] sm:$0xff] %v12910_v9  ;;  %5063 = vst [vmem:[#allocation2 + $0x1d0] sm:$0xff] %v4965_v4  ;;  %v4703_v18 = vsel %vm15948_vm6, %v12903_v52, 0.0  ;;  %9769 = vpow2.f32 %v8439_v30  ;;  %v4279_v57 = vadd.f32 %v12775_v20, %v12835_v12  ;;  %vm15949_vm1 = vcmp.eq.s32.totalorder %v15926_v45, 1 }
 0x368   : > { %v12920_v39 = vadd.f32 %v12593_v24, %v4380_v51  ;;  %9215 = vmatmul.mubr.f32.gmra.mxu1 %v4965_v4  ;;  %9268 = vmatprep.subr.mxu0 %v5245_v16  ;;  %v4785_v37 = vrot.slane %v4703_v18, 7  ;;  %4920 = vst [vmem:[#allocation2 + $0xd8] sm:$0xff] %v4703_v18  ;;  %v4966_v14 = vrot.slane %v4703_v18, 1  ;;  %v12929_v62 = vmul.f32 %v9760_v58, %v12666_v22  ;;  %v9762_v44 = vpop.eup %9761  ;;  %v4050_v22 = vpop.f32.mrf.mxu1 }
 0x369   : > { %5395 = vmatmul.mubr.f32.gmra.mxu0 %v12784_v43  ;;  %6244 = vmatprep.subr.mxu1 %v12780_v55  ;;  %v4381_v12 = vadd.f32 %v4279_v57, %v12517_v19  ;;  %v4284_v51 = vadd.f32 %v4283_v36, %v12862_v63  ;;  %v3195_v17 = vadd.f32 %v12527_v21, %v12496_v5  ;;  %v5242_v19 = vld [vmem:[#allocation8 + $0x5b0] sm:$0xff]  ;;  %v5216_v63 = vld [vmem:[#allocation8 + $0x4e0] sm:$0xff]  ;;  %vm15952_vm0 = vcmp.eq.s32.totalorder %v15933_v28, 1 }
 0x36a   : > { %v8440_v47 = vmul.f32 -1.442695, %v12920_v39  ;;  %10067 = vmatprep.mubr.msk.f32.mxu0 %vm15949_vm1, %v12734_v29  ;;  %9269 = vmatpush3.msra.mxu0 %v5245_v16  ;;  %v12936_v30 = vsel %vm1308_vm8, %v4783_v2, %v4785_v37  ;;  %v4967_v20 = vsel %vm1490_vm9, %v4964_v26, %v4966_v14  ;;  %v9764_v4 = vpop.eup %9763  ;;  %v4704_v45 = vsel %vm1212_vm14, %v12929_v62, 0.0  ;;  %v4293_v2 = vpop.f32.mrf.mxu0  ;;  %v15981_v29 = vld [vmem:[#allocation32_spill] sm:$0xff] }
 0x36b   : > { %9270 = vmatprep.subr.mxu0 %v5244_v42  ;;  %4883 = vst [vmem:[#allocation2 + $0x228] sm:$0xff] %v12936_v30  ;;  %5064 = vst [vmem:[#allocation2 + $0x350] sm:$0xff] %v4967_v20  ;;  %v12948_v26 = vmul.f32 %v9762_v44, %v12676_v15  ;;  %9217 = vmatprep.mubr.f32.mxu1 %v4967_v20  ;;  %v4787_v36 = vrot.slane %v4704_v45, 7  ;;  %v4968_v16 = vrot.slane %v4704_v45, 1  ;;  %v4563_v21 = vadd.f32 1.0, %v9764_v4  ;;  %v12954_v18 = vpop.f32.mrf.mxu1  ;;  %v15989_v15 = vld [vmem:[#allocation35_spill] sm:$0xff] }
 0x36c   : > { %9771 = vpow2.f32 %v8440_v47  ;;  %9271 = vmatpush3.msra.mxu0 %v5244_v42  ;;  %4921 = vst [vmem:[#allocation2 + $0x3e8] sm:$0xff] %v4704_v45  ;;  %v12951_v5 = vadd.f32 %v12593_v24, %v4381_v12  ;;  %v4382_v42 = vadd.f32 %v4284_v51, %v3195_v17  ;;  %6245 = vmatpush1.msra.mxu1 %v5216_v63  ;;  %v5241_v12 = vld [vmem:[#allocation8 + $0x5a8] sm:$0xff]  ;;  %vm15953_vm7 = vcmp.eq.s32.totalorder %v15928_v6, 1 }
 0x36d   : > { %5400 = vmatmul.mubr.f32.gmra.mxu0 %v12790_v27  ;;  %9272 = vmatprep.subr.mxu0 %v5243_v10  ;;  %v12959_v58 = vsel %vm1213_vm11, %v12948_v26, 0.0  ;;  %v12965_v57 = vsel %vm1308_vm8, %v4785_v37, %v4787_v36  ;;  %v12968_v47 = vsel %vm1490_vm9, %v4966_v14, %v4968_v16  ;;  %v4055_v20 = vpop.f32.mrf.mxu1  ;;  %9773 = vrcp.f32 %v4563_v21 }
 0x36e   : > { %10068 = vmatprep.mubr.msk.f32.mxu0 %vm15952_vm0, %v12768_v49  ;;  %9273 = vmatpush3.msra.mxu0 %v5243_v10  ;;  %v4789_v27 = vrot.slane %v12959_v58, 7  ;;  %4922 = vst [vmem:[#allocation2 + $0x118] sm:$0xff] %v12959_v58  ;;  %v4970_v44 = vrot.slane %v12959_v58, 1  ;;  %4884 = vst [vmem:[#allocation2 + $0x370] sm:$0xff] %v12965_v57  ;;  %v12975_v49 = vpop.f32.mrf.mxu0  ;;  %v8441_v28 = vmul.f32 -1.442695, %v12951_v5  ;;  %v12979_v37 = vadd.f32 %v12593_v24, %v4382_v42 }
 0x36f   : > { %9274 = vmatprep.subr.mxu0 %v5242_v19  ;;  %5065 = vst [vmem:[#allocation2 + $0x330] sm:$0xff] %v12968_v47  ;;  %v4289_v14 = vadd.f32 %v12855_v32, %v12899_v61  ;;  %9218 = vmatmul.mubr.f32.gmra.mxu1 %v12968_v47  ;;  %v5215_v10 = vld [vmem:[#allocation8 + $0x4d8] sm:$0xff]  ;;  %v9766_v51 = vpop.eup %9765  ;;  %v4058_v17 = vpop.f32.mrf.mxu1  ;;  %v3205_v63 = vadd.f32 %v12536_v1, %v12514_v31  ;;  %v5213_v42 = vld [vmem:[#allocation8 + $0x4c8] sm:$0xff]  ;;  %v5240_v1 = vld [vmem:[#allocation8 + $0x5a0] sm:$0xff]  ;;  %vm15956_vm6 = vcmp.eq.s32.totalorder %v15939_v46, 1  ;;  %vm15961_vm1 = vcmp.eq.s32.totalorder %v15941_v33, 1 }
 0x370   : > { %9275 = vmatpush3.msra.mxu0 %v5242_v19  ;;  %v12987_v22 = vsel %vm1308_vm8, %v4787_v36, %v4789_v27  ;;  %v12990_v4 = vsel %vm1490_vm9, %v4968_v16, %v4970_v44  ;;  %6246 = vmatprep.subr.mxu1 %v12780_v55  ;;  %v12997_v32 = vmul.f32 %v9766_v51, %v12696_v53  ;;  %9775 = vpow2.f32 %v8441_v28  ;;  %v4303_v16 = vpop.f32.mrf.mxu0  ;;  %v5212_v51 = vld [vmem:[#allocation8 + $0x4c0] sm:$0xff] }
 0x371   : > { %5405 = vmatmul.mubr.f32.gmra.mxu0 %v12821_v25  ;;  %4885 = vst [vmem:[#allocation2 + $0x140] sm:$0xff] %v12987_v22  ;;  %5066 = vst [vmem:[#allocation2 + $0x270] sm:$0xff] %v12990_v4  ;;  %v8442_v61 = vmul.f32 -1.442695, %v12979_v37  ;;  %v4383_v45 = vadd.f32 %v4289_v14, %v12524_v34  ;;  %9220 = vmatprep.mubr.f32.mxu1 %v12990_v4  ;;  %v5214_v25 = vld [vmem:[#allocation8 + $0x4d0] sm:$0xff]  ;;  %v4294_v36 = vadd.f32 %v4293_v2, %v12925_v41  ;;  %v4060_v53 = vpop.f32.mrf.mxu1 }
 0x372   : > { %10069 = vmatprep.mubr.msk.f32.mxu0 %vm15953_vm7, %v12764_v0  ;;  %v9768_v19 = vpop.eup %9767  ;;  %6247 = vmatpush1.msra.mxu1 %v5215_v10  ;;  %v13011_v34 = vsel %vm1214_vm15, %v12997_v32, 0.0 }
 0x373   : > { %9276 = vmatprep.subr.mxu0 %v5241_v12  ;;  %15955 = vst [vmem:[#allocation19_spill] sm:$0xff] %v13011_v34  ;;  %v4564_v6 = vadd.f32 1.0, %v9768_v19  ;;  %9777 = vpow2.f32 %v8442_v61  ;;  %v13014_v0 = vadd.f32 %v12593_v24, %v4383_v45  ;;  %6248 = vmatprep.subr.mxu1 %v12780_v55  ;;  %v4791_v41 = vrot.slane %v13011_v34, 7  ;;  %4923 = vst [vmem:[#allocation2 + $0x1e8] sm:$0xff] %v13011_v34  ;;  %v4063_v28 = vpop.f32.mrf.mxu1  ;;  %v15959_v45 = vld [vmem:[#allocation87_spill] sm:$0xff] }
 0x374   : > { %9277 = vmatpush3.msra.mxu0 %v5241_v12  ;;  %v9770_v31 = vpop.eup %9769  ;;  %v4972_v2 = vrot.slane %v13011_v34, 1  ;;  %v4384_v20 = vadd.f32 %v4294_v36, %v3205_v63  ;;  %6249 = vmatpush1.msra.mxu1 %v5214_v25  ;;  %v4299_v12 = vadd.f32 %v12917_v35, %v12954_v18  ;;  %v9157_v35 = vpop.f32.mrf.mxu0  ;;  %v15958_v18 = vld [vmem:[#allocation99_spill] sm:$0xff]  ;;  %v15960_v25 = vld [vmem:[#allocation101_spill] sm:$0xff]  ;;  %v4304_v36 = vadd.f32 %v4303_v16, %v4058_v17 }
 0x375   : > { %5410 = vmatmul.mubr.f32.gmra.mxu0 %v12829_v38  ;;  %9779 = vrcp.f32 %v4564_v6  ;;  %v4565_v14 = vadd.f32 1.0, %v9770_v31  ;;  %v8443_v10 = vmul.f32 -1.442695, %v13014_v0  ;;  %6250 = vmatprep.subr.mxu1 %v12780_v55  ;;  %v13033_v38 = vsel %vm1308_vm8, %v4789_v27, %v4791_v41  ;;  %v4065_v46 = vpop.f32.mrf.mxu1  ;;  %v5211_v27 = vld [vmem:[#allocation8 + $0x4b8] sm:$0xff]  ;;  %v15962_v17 = vld [vmem:[#allocation89_spill] sm:$0xff] }
 0x376   : > { %10070 = vmatprep.mubr.msk.f32.mxu0 %vm15956_vm6, %v12841_v48  ;;  %15957 = vst [vmem:[#allocation17_spill] sm:$0xff] %v13033_v38  ;;  %v13038_v61 = vsel %vm1490_vm9, %v4970_v44, %v4972_v2  ;;  %v13041_v48 = vadd.f32 %v12593_v24, %v4384_v20  ;;  %6251 = vmatpush1.msra.mxu1 %v5213_v42  ;;  %4886 = vst [vmem:[#allocation2 + $0x2c8] sm:$0xff] %v13033_v38  ;;  %v5239_v6 = vld [vmem:[#allocation8 + $0x598] sm:$0xff]  ;;  %v5210_v20 = vld [vmem:[#allocation8 + $0x4b0] sm:$0xff] }
 0x377   : > { %9278 = vmatprep.subr.mxu0 %v5240_v1  ;;  %5067 = vst [vmem:[#allocation2 + $0x240] sm:$0xff] %v13038_v61  ;;  %9781 = vrcp.f32 %v4565_v14  ;;  %v4385_v58 = vadd.f32 %v4299_v12, %v15958_v18  ;;  %9221 = vmatmul.mubr.f32.gmra.mxu1 %v13038_v61  ;;  %v3215_v19 = vadd.f32 %v15960_v25, %v15959_v45  ;;  %v4068_v53 = vpop.f32.mrf.mxu1  ;;  %v15963_v16 = vld [vmem:[#allocation91_spill] sm:$0xff] }
 0x378   : > { %6252 = vmatprep.subr.mxu1 %v12780_v55  ;;  %9783 = vpow2.f32 %v8443_v10  ;;  %v8444_v63 = vmul.f32 -1.442695, %v13041_v48  ;;  %v4309_v10 = vadd.f32 %v12975_v49, %v4063_v28  ;;  %9279 = vmatpush3.msra.mxu0 %v5240_v1  ;;  %v3225_v12 = vadd.f32 %v15963_v16, %v15962_v17  ;;  %v13065_v46 = vld [vmem:[#allocation9] ss:$0 sm:$0xff]  ;;  %v15964_v1 = vld [vmem:[#allocation100_spill] sm:$0xff] }
 0x379   : > { %v9772_v44 = vpop.eup %9771  ;;  %5415 = vmatmul.mubr.f32.gmra.mxu0 %v12879_v56  ;;  %6253 = vmatpush1.msra.mxu1 %v5212_v51  ;;  %v13053_v31 = vadd.f32 %v12593_v24, %v4385_v58  ;;  %v4386_v14 = vadd.f32 %v4304_v36, %v3215_v19  ;;  %v4070_v56 = vpop.f32.mrf.mxu1 }
 0x37a   : > { %v4566_v42 = vadd.f32 1.0, %v9772_v44  ;;  %10071 = vmatprep.mubr.msk.f32.mxu0 %vm15961_vm1, %v12853_v50  ;;  %6254 = vmatprep.subr.mxu1 %v12780_v55  ;;  %9785 = vpow2.f32 %v8444_v63  ;;  %v4313_v51 = vpop.f32.mrf.mxu0  ;;  %v5209_v50 = vld [vmem:[#allocation8 + $0x4a8] sm:$0xff]  ;;  %v9774_v33 = vpop.eup %9773  ;;  %v4387_v28 = vadd.f32 %v4309_v10, %v15964_v1  ;;  %v5207_v56 = vld [vmem:[#allocation8 + $0x498] sm:$0xff]  ;;  %v5206_v1 = vld [vmem:[#allocation8 + $0x490] sm:$0xff] }
 0x37b   : > { %6255 = vmatpush1.msra.mxu1 %v5211_v27  ;;  %v8445_v24 = vmul.f32 -1.442695, %v13053_v31  ;;  %9280 = vmatprep.subr.mxu0 %v5239_v6  ;;  %v13068_v49 = vadd.f32 %v13065_v46, %v4386_v14  ;;  %v4314_v18 = vadd.f32 %v4313_v51, %v4068_v53  ;;  %v4073_v58 = vpop.f32.mrf.mxu1  ;;  %v5238_v27 = vld [vmem:[#allocation8 + $0x590] sm:$0xff]  ;;  %v13072_v44 = vmul.f32 %v9774_v33, %v12778_v59 }
 0x37c   : > { %9787 = vrcp.f32 %v4566_v42  ;;  %6256 = vmatprep.subr.mxu1 %v12780_v55  ;;  %v13080_v19 = vadd.f32 %v13065_v46, %v4387_v28  ;;  %v4319_v36 = vadd.f32 %v9157_v35, %v4073_v58  ;;  %9281 = vmatpush3.msra.mxu0 %v5239_v6  ;;  %v15965_v59 = vld [vmem:[#allocation93_spill] sm:$0xff]  ;;  %v15966_v42 = vld [vmem:[#allocation92_spill] sm:$0xff]  ;;  %v13089_v14 = vpop.f32.mrf.mxu0 }
 0x37d   : > { %5420 = vmatmul.mubr.f32.gmra.mxu0 %v12895_v23  ;;  %6257 = vmatpush1.msra.mxu1 %v5210_v20  ;;  %9789 = vpow2.f32 %v8445_v24  ;;  %v5208_v23 = vld [vmem:[#allocation8 + $0x4a0] sm:$0xff]  ;;  %v9776_v45 = vpop.eup %9775  ;;  %v8446_v25 = vmul.f32 -1.442695, %v13068_v49  ;;  %v4388_v63 = vadd.f32 %v4314_v18, %v3225_v12  ;;  %v4075_v53 = vpop.f32.mrf.mxu1  ;;  %v3235_v20 = vadd.f32 %v15966_v42, %v15965_v59  ;;  %v15975_v59 = vld [vmem:[#allocation105_spill] sm:$0xff] }
 0x37e   : > { %10072 = vmatprep.mubr.msk.f32.mxu0 %vm1210_vm12, %v12870_v40  ;;  %6258 = vmatprep.subr.mxu1 %v12780_v55  ;;  %v13087_v40 = vsel %vm1215_vm4, %v13072_v44, 0.0  ;;  %v4567_v10 = vadd.f32 1.0, %v9776_v45  ;;  %v8447_v16 = vmul.f32 -1.442695, %v13080_v19  ;;  %vm15969_vm12 = vcmp.eq.s32.totalorder %v15947_v8, 1  ;;  %v15972_v18 = vld [vmem:[#allocation103_spill] sm:$0xff]  ;;  %v4323_v45 = vpop.f32.mrf.mxu0 }
 0x37f   : > { %6259 = vmatpush1.msra.mxu1 %v5209_v50  ;;  %15968 = vst [vmem:[#allocation20_spill] sm:$0xff] %v13087_v40  ;;  %9282 = vmatprep.subr.mxu0 %v5238_v27  ;;  %v4793_v35 = vrot.slane %v13087_v40, 7  ;;  %4924 = vst [vmem:[#allocation2 + $0x198] sm:$0xff] %v13087_v40  ;;  %v4974_v6 = vrot.slane %v13087_v40, 1  ;;  %9791 = vpow2.f32 %v8446_v25  ;;  %v4078_v12 = vpop.f32.mrf.mxu1  ;;  %v13101_v24 = vadd.f32 %v13065_v46, %v4388_v63  ;;  %v15970_v50 = vld [vmem:[#allocation102_spill] sm:$0xff]  ;;  %v15974_v53 = vld [vmem:[#allocation108_spill] sm:$0xff] }
 0x380   : > { %6260 = vmatprep.subr.mxu1 %v12780_v55  ;;  %v9778_v17 = vpop.eup %9777  ;;  %9793 = vrcp.f32 %v4567_v10  ;;  %v4389_v33 = vadd.f32 %v4319_v36, %v15970_v50  ;;  %9283 = vmatpush3.msra.mxu0 %v5238_v27  ;;  %v5237_v27 = vld [vmem:[#allocation8 + $0x588] sm:$0xff]  ;;  %v13136_v42 = vadd.f32 %v15975_v59, %v15974_v53  ;;  %v13167_v53 = vrot.slane %v12780_v55, 6 }
 0x381   : > { %5425 = vmatmul.mubr.f32.gmra.mxu0 %v12910_v9  ;;  %6261 = vmatpush1.msra.mxu1 %v5208_v23  ;;  %v4568_v51 = vadd.f32 1.0, %v9778_v17  ;;  %v15971_v9 = vld [vmem:[#allocation106_spill] sm:$0xff]  ;;  %v13114_v8 = vsel %vm1308_vm8, %v4791_v41, %v4793_v35  ;;  %9795 = vpow2.f32 %v8447_v16  ;;  %v4080_v23 = vpop.f32.mrf.mxu1  ;;  %v8448_v41 = vmul.f32 -1.442695, %v13101_v24  ;;  %v15976_v10 = vld [vmem:[#allocation109_spill] sm:$0xff] }
 0x382   : > { %10073 = vmatprep.mubr.msk.f32.mxu0 %vm15969_vm12, %v12903_v52  ;;  %6262 = vmatprep.subr.mxu1 %v12780_v55  ;;  %v9780_v28 = vpop.eup %9779  ;;  %v13107_v58 = vadd.f32 %v15972_v18, %v15971_v9  ;;  %15973 = vst [vmem:[#allocation21_spill] sm:$0xff] %v13114_v8  ;;  %v13121_v52 = vsel %vm1490_vm9, %v4972_v2, %v4974_v6  ;;  %4887 = vst [vmem:[#allocation2 + $0x90] sm:$0xff] %v13114_v8  ;;  %v5205_v2 = vld [vmem:[#allocation8 + $0x488] sm:$0xff]  ;;  %vm16026_vm12 = vcmp.eq.s32.totalorder %v16025_v13, 1 }
 0x383   : > { %6263 = vmatpush1.msra.mxu1 %v5207_v56  ;;  %5068 = vst [vmem:[#allocation2 + $0x3a0] sm:$0xff] %v13121_v52  ;;  %v13126_v25 = vmul.f32 %v9780_v28, %v12858_v54  ;;  %9797 = vrcp.f32 %v4568_v51  ;;  %v13130_v63 = vadd.f32 %v13065_v46, %v4389_v33  ;;  %9223 = vmatprep.mubr.f32.mxu1 %v13121_v52  ;;  %v15977_v54 = vld [vmem:[#allocation79_spill] sm:$0xff]  ;;  %v4083_v16 = vpop.f32.mrf.mxu1  ;;  %v15978_v50 = vld [vmem:[#allocation33_spill] sm:$0xff]  ;;  %15984 = vst [vmem:[#allocation24_spill] sm:$0xff] %v13167_v53 }
 0x384   : > { %6264 = vmatprep.subr.mxu1 %v12780_v55  ;;  %v9782_v36 = vpop.eup %9781  ;;  %v13140_v56 = vadd.f32 %v15977_v54, %v15976_v10  ;;  %v4324_v17 = vadd.f32 %v4323_v45, %v4078_v12  ;;  %vm15979_vm0 = vcmp.eq.s32.totalorder %v15978_v50, 1  ;;  %9799 = vpow2.f32 %v8448_v41  ;;  %9284 = vmatprep.subr.mxu0 %v5237_v27  ;;  %v13179_v10 = vpop.f32.mrf.mxu0 }
 0x385   : > { %5430 = vmatmul.mubr.f32.gmra.mxu0 %v12936_v30  ;;  %6265 = vmatpush1.msra.mxu1 %v5206_v1  ;;  %v9784_v51 = vpop.eup %9783  ;;  %v13146_v33 = vsel %vm15979_vm0, %v13126_v25, 0.0  ;;  %v13149_v28 = vmul.f32 %v9782_v36, %v12890_v60  ;;  %v8449_v9 = vmul.f32 -1.442695, %v13130_v63  ;;  %v5204_v30 = vld [vmem:[#allocation8 + $0x480] sm:$0xff]  ;;  %v4085_v60 = vpop.f32.mrf.mxu1  ;;  %v4329_v41 = vadd.f32 %v13089_v14, %v4083_v16  ;;  %vm16009_vm7 = vmmov %vm15979_vm0 }
 0x386   : > { %15980 = vst [vmem:[#allocation23_spill] sm:$0xff] %v13146_v33  ;;  %10074 = vmatprep.mubr.msk.f32.mxu0 %vm1212_vm14, %v12929_v62  ;;  %6266 = vmatprep.subr.mxu1 %v12780_v55  ;;  %v4795_v12 = vrot.slane %v13146_v33, 7  ;;  %4925 = vst [vmem:[#allocation2 + $0x2f0] sm:$0xff] %v13146_v33  ;;  %v4976_v1 = vrot.slane %v13146_v33, 1  ;;  %v4569_v18 = vadd.f32 1.0, %v9784_v51  ;;  %v4390_v23 = vadd.f32 %v4324_v17, %v3235_v20  ;;  %v5236_v36 = vld [vmem:[#allocation8 + $0x580] sm:$0xff] }
 0x387   : > { %6267 = vmatpush1.msra.mxu1 %v5205_v2  ;;  %v9786_v45 = vpop.eup %9785  ;;  %vm15982_vm14 = vcmp.eq.s32.totalorder %v15981_v29, 1  ;;  %9801 = vpow2.f32 %v8449_v9  ;;  %9285 = vmatpush3.msra.mxu0 %v5237_v27  ;;  %v4088_v54 = vpop.f32.mrf.mxu1  ;;  %v5235_v17 = vld [vmem:[#allocation8 + $0x578] sm:$0xff]  ;;  %v5233_v9 = vld [vmem:[#allocation8 + $0x568] sm:$0xff] }
 0x388   : > { %v13162_v62 = vsel %vm15982_vm14, %v13149_v28, 0.0  ;;  %6268 = vmatprep.subr.mxu1 %v12780_v55  ;;  %v13172_v2 = vsel %vm1308_vm8, %v4793_v35, %v4795_v12  ;;  %v13177_v59 = vsel %vm1490_vm9, %v4974_v6, %v4976_v1  ;;  %9803 = vrcp.f32 %v4569_v18  ;;  %v15988_v18 = vld [vmem:[#allocation104_spill] sm:$0xff]  ;;  %9286 = vmatprep.subr.mxu0 %v5236_v36  ;;  %vm16019_vm1 = vmmov %vm15982_vm14 }
 0x389   : > { %15983 = vst [vmem:[#allocation22_spill] sm:$0xff] %v13162_v62  ;;  %v9788_v20 = vpop.eup %9787  ;;  %15985 = vst [vmem:[#allocation25_spill] sm:$0xff] %v13172_v2  ;;  %v4797_v14 = vrot.slane %v13162_v62, 7  ;;  %v4978_v27 = vrot.slane %v13162_v62, 1  ;;  %5435 = vmatmul.mubr.f32.gmra.mxu0 %v12965_v57  ;;  %6269 = vmatpush1.msra.mxu1 %v5204_v30  ;;  %v4570_v6 = vadd.f32 1.0, %v9786_v45  ;;  %v13194_v16 = vadd.f32 %v13065_v46, %v4390_v23  ;;  %v4090_v45 = vpop.f32.mrf.mxu1 }
 0x38a   : > { %4926 = vst [vmem:[#allocation2 + $0x1a0] sm:$0xff] %v13162_v62  ;;  %4888 = vst [vmem:[#allocation2 + $0x20] sm:$0xff] %v13172_v2  ;;  %v13188_v35 = vmul.f32 %v9788_v20, %v12920_v39  ;;  %10075 = vmatprep.mubr.msk.f32.mxu0 %vm1213_vm11, %v12948_v26  ;;  %9224 = vmatmul.mubr.f32.gmra.mxu1 %v13177_v59  ;;  %v9790_v57 = vpop.eup %9789  ;;  %v4391_v60 = vadd.f32 %v4329_v41, %v15988_v18  ;;  %v5234_v26 = vld [vmem:[#allocation8 + $0x570] sm:$0xff]  ;;  %vm15990_vm11 = vcmp.eq.s32.totalorder %v15989_v15, 1  ;;  %v4333_v18 = vpop.f32.mrf.mxu0 }
 0x38b   : > { %5069 = vst [vmem:[#allocation2 + $0x1b8] sm:$0xff] %v13177_v59  ;;  %v13199_v30 = vsel %vm1308_vm8, %v4795_v12, %v4797_v14  ;;  %v13202_v39 = vsel %vm1490_vm9, %v4976_v1, %v4978_v27  ;;  %6270 = vmatprep.subr.mxu1 %v12780_v55  ;;  %9805 = vrcp.f32 %v4570_v6  ;;  %v4571_v12 = vadd.f32 1.0, %v9790_v57  ;;  %v4093_v6 = vpop.f32.mrf.mxu1  ;;  %9287 = vmatpush3.msra.mxu0 %v5236_v36  ;;  %vm16035_vm14 = vmmov %vm15990_vm11 }
 0x38c   : > { %15987 = vst [vmem:[#allocation26_spill] sm:$0xff] %v13199_v30  ;;  %4889 = vst [vmem:[#allocation2 + $0x368] sm:$0xff] %v13199_v30  ;;  %v13211_v23 = vsel %vm15990_vm11, %v13188_v35, 0.0  ;;  %v8450_v1 = vmul.f32 -1.442695, %v13194_v16  ;;  %9226 = vmatprep.mubr.f32.mxu1 %v13202_v39  ;;  %6271 = vmatpush2.msra.mxu1 %v5235_v17  ;;  %v13221_v53 = vadd.f32 %v13065_v46, %v4391_v60  ;;  %v9792_v57 = vpop.eup %9791 }
 0x38d   : > { %5070 = vst [vmem:[#allocation2 + $0x10] sm:$0xff] %v13202_v39  ;;  %15991 = vst [vmem:[#allocation27_spill] sm:$0xff] %v13211_v23  ;;  %5440 = vmatmul.mubr.f32.gmra.mxu0 %v12987_v22  ;;  %6272 = vmatprep.subr.mxu1 %v12780_v55  ;;  %9807 = vrcp.f32 %v4571_v12  ;;  %v4334_v45 = vadd.f32 %v4333_v18, %v4088_v54  ;;  %v9794_v22 = vpop.eup %9793  ;;  %v15994_v60 = vrot.slane %v13211_v23, 7  ;;  %v15996_v62 = vrot.slane %v13211_v23, 1  ;;  %v4095_v12 = vpop.f32.mrf.mxu1 }
 0x38e   : > { %4927 = vst [vmem:[#allocation2 + $0x220] sm:$0xff] %v13211_v23  ;;  %10076 = vmatprep.mubr.msk.f32.mxu0 %vm1214_vm15, %v12997_v32  ;;  %6273 = vmatpush2.msra.mxu1 %v5234_v26  ;;  %v4572_v20 = vadd.f32 1.0, %v9792_v57  ;;  %9809 = vpow2.f32 %v8450_v1  ;;  %v9796_v32 = vpop.eup %9795  ;;  %v8451_v26 = vmul.f32 -1.442695, %v13221_v53  ;;  %v4339_v57 = vadd.f32 %v13179_v10, %v4093_v6  ;;  %v5231_v10 = vld [vmem:[#allocation8 + $0x558] sm:$0xff] }
 0x38f   : > { %v13232_v41 = vsel %vm1308_vm8, %v4797_v14, %v15994_v60  ;;  %v13237_v17 = vsel %vm1490_vm9, %v4978_v27, %v15996_v62  ;;  %6274 = vmatprep.subr.mxu1 %v12780_v55  ;;  %v13244_v14 = vmul.f32 %v9794_v22, %v12951_v5  ;;  %v4392_v62 = vadd.f32 %v4334_v45, %v13107_v58  ;;  %v5232_v27 = vld [vmem:[#allocation8 + $0x560] sm:$0xff]  ;;  %v4098_v5 = vpop.f32.mrf.mxu1  ;;  %v13253_v22 = vpop.f32.mrf.mxu0  ;;  %v15998_v58 = vld [vmem:[#allocation34_spill] sm:$0xff] }
 0x390   : > { %15995 = vst [vmem:[#allocation29_spill] sm:$0xff] %v13232_v41  ;;  %4890 = vst [vmem:[#allocation2] sm:$0xff] %v13232_v41  ;;  %9227 = vmatmul.mubr.f32.gmra.mxu1 %v13237_v17  ;;  %7326 = vmatprep.subr.mxu0 %v12780_v55  ;;  %v9798_v36 = vpop.eup %9797  ;;  %9811 = vrcp.f32 %v4572_v20  ;;  %v4573_v18 = vadd.f32 1.0, %v9796_v32  ;;  %vm15999_vm15 = vcmp.eq.s32.totalorder %v15998_v58, 1 }
 0x391   : > { %5071 = vst [vmem:[#allocation2 + $0x38] sm:$0xff] %v13237_v17  ;;  %5445 = vmatmul.mubr.f32.gmra.mxu0 %v13033_v38  ;;  %6275 = vmatpush2.msra.mxu1 %v5233_v9  ;;  %v13258_v45 = vsel %vm15999_vm15, %v13244_v14, 0.0  ;;  %v13261_v60 = vmul.f32 %v9798_v36, %v12979_v37  ;;  %9813 = vpow2.f32 %v8451_v26  ;;  %v13267_v20 = vadd.f32 %v13065_v46, %v4392_v62  ;;  %v9800_v9 = vpop.eup %9799  ;;  %v16001_v37 = vld [vmem:[#allocation107_spill] sm:$0xff]  ;;  %v4100_v26 = vpop.f32.mrf.mxu1  ;;  %v16003_v62 = vld [vmem:[#allocation41_spill] sm:$0xff]  ;;  %v16096_v38 = vld [vmem:[#allocation96_spill] sm:$0xff] }
 0x392   : > { %16000 = vst [vmem:[#allocation28_spill] sm:$0xff] %v13258_v45  ;;  %10077 = vmatprep.mubr.msk.f32.mxu0 %vm1215_vm4, %v13072_v44  ;;  %6276 = vmatprep.subr.mxu1 %v12780_v55  ;;  %v4801_v6 = vrot.slane %v13258_v45, 7  ;;  %4928 = vst [vmem:[#allocation2 + $0x340] sm:$0xff] %v13258_v45  ;;  %v4982_v12 = vrot.slane %v13258_v45, 1  ;;  %9815 = vrcp.f32 %v4573_v18  ;;  %v4393_v32 = vadd.f32 %v4339_v57, %v16001_v37  ;;  %v4343_v11 = vpop.f32.mrf.mxu0 }
 0x393   : > { %6277 = vmatpush2.msra.mxu1 %v5232_v27  ;;  %vm16004_vm4 = vcmp.eq.s32.totalorder %v16003_v62, 1  ;;  %v4574_v1 = vadd.f32 1.0, %v9800_v9  ;;  %v8452_v54 = vmul.f32 -1.442695, %v13267_v20  ;;  %v16006_v18 = vrot.slane %v13211_v23, 7  ;;  %v4103_v44 = vpop.f32.mrf.mxu1  ;;  %v5230_v9 = vld [vmem:[#allocation8 + $0x550] sm:$0xff] }
 0x394   : > { %v13280_v36 = vsel %vm16004_vm4, %v13261_v60, 0.0  ;;  %6278 = vmatprep.subr.mxu1 %v12780_v55  ;;  %v9802_v7 = vpop.eup %9801  ;;  %v16008_v27 = vrot.slane %v13211_v23, 1  ;;  %v4344_v50 = vadd.f32 %v4343_v11, %v4098_v5  ;;  %v5229_v11 = vld [vmem:[#allocation8 + $0x548] sm:$0xff]  ;;  %v16097_v40 = vrot.slane %v16096_v38, 6 }
 0x395   : > { %16005 = vst [vmem:[#allocation99_spill] sm:$0xff] %v13280_v36  ;;  %v13287_v57 = vsel %vm1308_vm8, %v16006_v18, %v4801_v6  ;;  %v15602_v26 = vrot.slane %v13280_v36, 7  ;;  %4929 = vst [vmem:[#allocation2 + $0x358] sm:$0xff] %v13280_v36  ;;  %5450 = vmatmul.mubr.f32.gmra.mxu0 %v13114_v8  ;;  %6279 = vmatpush2.msra.mxu1 %v5231_v10  ;;  %9817 = vrcp.f32 %v4574_v1  ;;  %v4575_v18 = vadd.f32 1.0, %v9802_v7  ;;  %v9804_v10 = vpop.eup %9803  ;;  %v13319_v1 = vld [vmem:[#allocation2 + $0x2a8] sm:$0xff]  ;;  %v13329_v5 = vld [vmem:[#allocation2 + $0x2c0] sm:$0xff] }
 0x396   : > { %16007 = vst [vmem:[#allocation87_spill] sm:$0xff] %v13287_v57  ;;  %v13292_v37 = vsel %vm1490_vm9, %v16008_v27, %v4982_v12  ;;  %4891 = vst [vmem:[#allocation2 + $0x3d8] sm:$0xff] %v13287_v57  ;;  %10078 = vmatprep.mubr.msk.f32.mxu0 %vm16009_vm7, %v13126_v25  ;;  %v13305_v27 = vadd.f32 %v13065_v46, %v4393_v32  ;;  %v16011_v21 = vrot.slane %v13280_v36, 1  ;;  %9819 = vpow2.f32 %v8452_v54  ;;  %v4105_v25 = vpop.f32.mrf.mxu1  ;;  %v16094_v8 = vld [vmem:[#allocation110_spill] sm:$0xff] }
 0x397   : > { %5072 = vst [vmem:[#allocation2 + $0x1f8] sm:$0xff] %v13292_v37  ;;  %9229 = vmatprep.mubr.f32.mxu1 %v13292_v37  ;;  %v13311_v3 = vsel %vm1308_vm8, %v4801_v6, %v15602_v26  ;;  %6280 = vmatprep.subr.mxu1 %v12780_v55  ;;  %16013 = vst [vmem:[#allocation91_spill] sm:$0xff] %v13319_v1  ;;  %v13325_v6 = vmul.f32 %v9804_v10, %v13014_v0  ;;  %9821 = vrcp.f32 %v4575_v18  ;;  %v16016_v26 = vld [vmem:[#allocation39_spill] sm:$0xff]  ;;  %v13360_v18 = vpop.f32.mrf.mxu0 }
 0x398   : > { %16010 = vst [vmem:[#allocation101_spill] sm:$0xff] %v13311_v3  ;;  %v13316_v7 = vsel %vm1490_vm9, %v4982_v12, %v16011_v21  ;;  %4892 = vst [vmem:[#allocation2 + $0x68] sm:$0xff] %v13311_v3  ;;  %v8453_v21 = vmul.f32 -1.442695, %v13305_v27  ;;  %v9806_v54 = vpop.eup %9805  ;;  %v4394_v32 = vadd.f32 %v4344_v50, %v13136_v42  ;;  %v4349_v0 = vadd.f32 %v13253_v22, %v4103_v44  ;;  %v13336_v10 = vpop.f32.mrf.mxu1  ;;  %v13350_v42 = vld [vmem:[#allocation2 + $0x308] sm:$0xff]  ;;  %v5228_v22 = vld [vmem:[#allocation8 + $0x540] sm:$0xff] }
 0x399   : > { %16012 = vst [vmem:[#allocation89_spill] sm:$0xff] %v13316_v7  ;;  %5073 = vst [vmem:[#allocation2 + $0x100] sm:$0xff] %v13316_v7  ;;  %9230 = vmatmul.mubr.f32.gmra.mxu1 %v13316_v7  ;;  %5455 = vmatmul.mubr.f32.gmra.mxu0 %v13172_v2  ;;  %vm16017_vm6 = vcmp.eq.s32.totalorder %v16016_v26, 1  ;;  %v13345_v55 = vmul.f32 %v9806_v54, %v13041_v48  ;;  %v13362_v25 = vld [vmem:[#allocation2 + $0x2b0] sm:$0xff]  ;;  %v16095_v23 = vrot.slane %v16094_v8, 6 }
 0x39a   : > { %16014 = vst [vmem:[#allocation100_spill] sm:$0xff] %v13329_v5  ;;  %6281 = vmatpush2.msra.mxu1 %v5230_v9  ;;  %v13342_v1 = vsel %vm16017_vm6, %v13325_v6, 0.0  ;;  %9823 = vpow2.f32 %v8453_v21  ;;  %10079 = vmatprep.mubr.msk.f32.mxu0 %vm16019_vm1, %v13149_v28  ;;  %16020 = vst [vmem:[#allocation92_spill] sm:$0xff] %v13350_v42  ;;  %v9808_v44 = vpop.eup %9807  ;;  %v13357_v48 = vadd.f32 %v13065_v46, %v4394_v32  ;;  %v16022_v21 = vld [vmem:[#allocation94_spill] sm:$0xff]  ;;  %v4110_v28 = vpop.f32.mrf.mxu1  ;;  %vm16053_vm6 = vcmp.eq.s32.totalorder %v16003_v62, 1  ;;  %v13568_v62 = vld [vmem:[#allocation2 + $0x278] sm:$0xff] }
 0x39b   : > { %16018 = vst [vmem:[#allocation93_spill] sm:$0xff] %v13342_v1  ;;  %6282 = vmatprep.subr.mxu1 %v13350_v42  ;;  %v4805_v9 = vrot.slane %v13342_v1, 7  ;;  %4930 = vst [vmem:[#allocation2 + $0x260] sm:$0xff] %v13342_v1  ;;  %v4986_v50 = vrot.slane %v13342_v1, 1  ;;  %v4395_v54 = vadd.f32 %v4349_v0, %v16022_v21  ;;  %v9810_v29 = vpop.eup %9809  ;;  %v13369_v1 = vsel %vm16026_vm12, %v13345_v55, 0.0 }
 0x39c   : > { %16021 = vst [vmem:[#allocation30_spill] sm:$0xff] %v13357_v48  ;;  %6283 = vmatpush2.msra.mxu1 %v5229_v11  ;;  %16023 = vst [vmem:[#allocation102_spill] sm:$0xff] %v13362_v25  ;;  %v13372_v32 = vmul.f32 %v9808_v44, %v13053_v31  ;;  %v16028_v0 = vrot.slane %v13280_v36, 7  ;;  %v16030_v21 = vrot.slane %v13280_v36, 1  ;;  %v4807_v43 = vrot.slane %v13369_v1, 7  ;;  %v13389_v31 = vpop.f32.mrf.mxu1 }
 0x39d   : > { %16027 = vst [vmem:[#allocation106_spill] sm:$0xff] %v13369_v1  ;;  %6284 = vmatprep.subr.mxu1 %v13350_v42  ;;  %4931 = vst [vmem:[#allocation2 + $0x298] sm:$0xff] %v13369_v1  ;;  %v4988_v12 = vrot.slane %v13369_v1, 1  ;;  %5460 = vmatmul.mubr.f32.gmra.mxu0 %v13199_v30  ;;  %v9812_v44 = vpop.eup %9811  ;;  %v4576_v36 = vadd.f32 1.0, %v9810_v29  ;;  %v8454_v25 = vmul.f32 -1.442695, %v13357_v48  ;;  %v13403_v1 = vadd.f32 %v13065_v46, %v4395_v54 }
 0x39e   : > { %v13378_v11 = vsel %vm1308_vm8, %v16028_v0, %v4805_v9  ;;  %v13383_v28 = vsel %vm1490_vm9, %v16030_v21, %v4986_v50  ;;  %6285 = vmatpush2.msra.mxu1 %v5228_v22  ;;  %v16032_v0 = vld [vmem:[#allocation46_spill] sm:$0xff]  ;;  %10080 = vmatprep.mubr.msk.f32.mxu0 %vm16035_vm14, %v13188_v35  ;;  %v9814_v5 = vpop.eup %9813  ;;  %v13407_v51 = vsel %vm1308_vm8, %v4805_v9, %v4807_v43  ;;  %v4353_v35 = vpop.f32.mrf.mxu0  ;;  %vm16060_vm12 = vcmp.eq.s32.totalorder %v16016_v26, 1 }
 0x39f   : > { %16029 = vst [vmem:[#allocation103_spill] sm:$0xff] %v13378_v11  ;;  %16031 = vst [vmem:[#allocation108_spill] sm:$0xff] %v13383_v28  ;;  %vm16033_vm0 = vcmp.eq.s32.totalorder %v16032_v0, 1  ;;  %9232 = vmatprep.mubr.f32.mxu1 %v13383_v28  ;;  %v5227_v22 = vld [vmem:[#allocation8 + $0x538] sm:$0xff]  ;;  %v13410_v7 = vsel %vm1490_vm9, %v4986_v50, %v4988_v12  ;;  %v4115_v48 = vpop.f32.mrf.mxu1  ;;  %6286 = vmatprep.subr.mxu1 %v13350_v42  ;;  %v9816_v54 = vpop.eup %9815  ;;  %v13419_v9 = vmul.f32 %v9812_v44, %v13068_v49  ;;  %v5226_v49 = vld [vmem:[#allocation8 + $0x530] sm:$0xff] }
 0x3a0   : > { %4893 = vst [vmem:[#allocation2 + $0x98] sm:$0xff] %v13378_v11  ;;  %5074 = vst [vmem:[#allocation2 + $0x78] sm:$0xff] %v13383_v28  ;;  %v13396_v21 = vsel %vm16033_vm0, %v13372_v32, 0.0  ;;  %9825 = vrcp.f32 %v4576_v36  ;;  %v4577_v50 = vadd.f32 1.0, %v9814_v5  ;;  %v8455_v28 = vmul.f32 -1.442695, %v13403_v1  ;;  %9233 = vmatmul.mubr.f32.gmra.mxu1 %v13410_v7 }
 0x3a1   : > { %16034 = vst [vmem:[#allocation105_spill] sm:$0xff] %v13396_v21  ;;  %16036 = vst [vmem:[#allocation109_spill] sm:$0xff] %v13403_v1  ;;  %v4809_v29 = vrot.slane %v13396_v21, 7  ;;  %v4990_v15 = vrot.slane %v13396_v21, 1  ;;  %v13430_v45 = vmul.f32 %v9816_v54, %v13080_v19  ;;  %9827 = vpow2.f32 %v8454_v25  ;;  %5465 = vmatmul.mubr.f32.gmra.mxu0 %v13232_v41  ;;  %6287 = vmatpush2.msra.mxu1 %v5227_v22  ;;  %v13433_v36 = vld [vmem:[#allocation2 + $0x1c8] sm:$0xff]  ;;  %v16045_v54 = vld [vmem:[#allocation57_spill] sm:$0xff] }
 0x3a2   : > { %16037 = vst [vmem:[#allocation79_spill] sm:$0xff] %v13407_v51  ;;  %16038 = vst [vmem:[#allocation33_spill] sm:$0xff] %v13410_v7  ;;  %9829 = vrcp.f32 %v4577_v50  ;;  %10081 = vmatprep.mubr.msk.f32.mxu0 %vm15999_vm15, %v13244_v14  ;;  %v4354_v19 = vadd.f32 %v4353_v35, %v13336_v10  ;;  %v9818_v25 = vpop.eup %9817  ;;  %vm16046_vm4 = vcmp.eq.s32.totalorder %v16045_v54, 1  ;;  %6288 = vmatprep.subr.mxu1 %v13350_v42  ;;  %v13464_v1 = vld [vmem:[#allocation2 + $0xc8] sm:$0xff]  ;;  %vm16071_vm0 = vcmp.eq.s32.totalorder %v16025_v13, 1 }
 0x3a3   : > { %4932 = vst [vmem:[#allocation2 + $0x2f8] sm:$0xff] %v13396_v21  ;;  %4894 = vst [vmem:[#allocation2 + $0x1d8] sm:$0xff] %v13407_v51  ;;  %v13424_v21 = vsel %vm1308_vm8, %v4807_v43, %v4809_v29  ;;  %v13427_v48 = vsel %vm1490_vm9, %v4988_v12, %v4990_v15  ;;  %v16042_v43 = vld [vmem:[#allocation59_spill] sm:$0xff]  ;;  %v13454_v5 = vsel %vm16046_vm4, %v13430_v45, 0.0  ;;  %9831 = vpow2.f32 %v8455_v28  ;;  %v9820_v14 = vpop.eup %9819  ;;  %6289 = vmatpush2.msra.mxu1 %v5226_v49 }
 0x3a4   : > { %5075 = vst [vmem:[#allocation2 + $0x1f0] sm:$0xff] %v13410_v7  ;;  %16039 = vst [vmem:[#allocation32_spill] sm:$0xff] %v13424_v21  ;;  %vm16043_vm11 = vcmp.eq.s32.totalorder %v16042_v43, 1  ;;  %9235 = vmatprep.mubr.f32.mxu1 %v13427_v48  ;;  %v4813_v58 = vrot.slane %v13454_v5, 7  ;;  %v4994_v10 = vrot.slane %v13454_v5, 1  ;;  %v13461_v35 = vmul.f32 %v9818_v25, %v13101_v24  ;;  %6290 = vmatprep.subr.mxu1 %v13350_v42  ;;  %v16091_v43 = vld [vmem:[#allocation89_spill] sm:$0xff] }
 0x3a5   : > { %16040 = vst [vmem:[#allocation104_spill] sm:$0xff] %v13427_v48  ;;  %16041 = vst [vmem:[#allocation35_spill] sm:$0xff] %v13433_v36  ;;  %v13441_v12 = vsel %vm16043_vm11, %v13419_v9, 0.0  ;;  %v4396_v50 = vadd.f32 %v4354_v19, %v13140_v56  ;;  %v9822_v36 = vpop.eup %9821  ;;  %v4578_v41 = vadd.f32 1.0, %v9820_v14  ;;  %5470 = vmatmul.mubr.f32.gmra.mxu0 %v13287_v57  ;;  %v5224_v19 = vld [vmem:[#allocation8 + $0x520] sm:$0xff]  ;;  %v13556_v57 = vld [vmem:[#allocation2 + $0x128] sm:$0xff] }
 0x3a6   : > { %4895 = vst [vmem:[#allocation2 + $0x158] sm:$0xff] %v13424_v21  ;;  %5076 = vst [vmem:[#allocation2 + $0x88] sm:$0xff] %v13427_v48  ;;  %v4811_v44 = vrot.slane %v13441_v12, 7  ;;  %v4992_v22 = vrot.slane %v13441_v12, 1  ;;  %v13489_v49 = vmul.f32 %v9822_v36, %v13130_v63  ;;  %10082 = vmatprep.mubr.msk.f32.mxu0 %vm16053_vm6, %v13261_v60  ;;  %v13504_v60 = vld [vmem:[#allocation2 + $0x40] sm:$0xff]  ;;  %vm16079_vm14 = vcmp.eq.s32.totalorder %v16032_v0, 1 }
 0x3a7   : > { %16044 = vst [vmem:[#allocation34_spill] sm:$0xff] %v13441_v12  ;;  %4933 = vst [vmem:[#allocation2 + $0x398] sm:$0xff] %v13441_v12  ;;  %v5225_v12 = vld [vmem:[#allocation8 + $0x528] sm:$0xff]  ;;  %v9824_v25 = vpop.eup %9823  ;;  %9833 = vrcp.f32 %v4578_v41  ;;  %v13501_v63 = vadd.f32 %v13065_v46, %v4396_v50  ;;  %v13647_v0 = vld [vmem:[#allocation2 + $0x370] sm:$0xff] }
 0x3a8   : > { %16047 = vst [vmem:[#allocation107_spill] sm:$0xff] %v13454_v5  ;;  %4934 = vst [vmem:[#allocation2 + $0x320] sm:$0xff] %v13454_v5  ;;  %v13468_v48 = vsel %vm1308_vm8, %v4809_v29, %v4811_v44  ;;  %v13471_v7 = vsel %vm1490_vm9, %v4990_v15, %v4992_v22  ;;  %v13478_v24 = vsel %vm1308_vm8, %v4811_v44, %v4813_v58  ;;  %v16050_v29 = vld [vmem:[#allocation60_spill] sm:$0xff]  ;;  %6291 = vmatpush2.msra.mxu1 %v5225_v12  ;;  %v16055_v36 = vld [vmem:[#allocation61_spill] sm:$0xff] }
 0x3a9   : > { %16048 = vst [vmem:[#allocation41_spill] sm:$0xff] %v13468_v48  ;;  %4896 = vst [vmem:[#allocation2 + $0x188] sm:$0xff] %v13468_v48  ;;  %v13481_v56 = vsel %vm1490_vm9, %v4992_v22, %v4994_v10  ;;  %vm16051_vm7 = vcmp.eq.s32.totalorder %v16050_v29, 1  ;;  %9236 = vmatmul.mubr.f32.gmra.mxu1 %v13471_v7  ;;  %vm16056_vm1 = vcmp.eq.s32.totalorder %v16055_v36, 1  ;;  %v4579_v28 = vadd.f32 1.0, %v9824_v25  ;;  %6292 = vmatprep.subr.mxu1 %v13350_v42  ;;  %v5223_v25 = vld [vmem:[#allocation8 + $0x518] sm:$0xff] }
 0x3aa   : > { %5077 = vst [vmem:[#allocation2 + $0x230] sm:$0xff] %v13471_v7  ;;  %16049 = vst [vmem:[#allocation39_spill] sm:$0xff] %v13478_v24  ;;  %v13486_v15 = vsel %vm16051_vm7, %v13461_v35, 0.0  ;;  %9238 = vmatprep.mubr.f32.mxu1 %v13481_v56  ;;  %v13510_v14 = vsel %vm16056_vm1, %v13489_v49, 0.0  ;;  %5475 = vmatmul.mubr.f32.gmra.mxu0 %v13311_v3  ;;  %v13525_v5 = vld [vmem:[#allocation2 + $0x60] sm:$0xff]  ;;  %v13598_v50 = vld [vmem:[#allocation2 + $0xd8] sm:$0xff] }
 0x3ab   : > { %16052 = vst [vmem:[#allocation94_spill] sm:$0xff] %v13486_v15  ;;  %4897 = vst [vmem:[#allocation2 + $0x148] sm:$0xff] %v13478_v24  ;;  %v4815_v44 = vrot.slane %v13486_v15, 7  ;;  %v4996_v22 = vrot.slane %v13486_v15, 1  ;;  %6293 = vmatpush2.msra.mxu1 %v5224_v19  ;;  %9835 = vrcp.f32 %v4579_v28  ;;  %10083 = vmatprep.mubr.msk.f32.mxu0 %vm16060_vm12, %v13325_v6  ;;  %v13536_v19 = vld [vmem:[#allocation2 + $0xe8] sm:$0xff]  ;;  %v16062_v28 = vrot.slane %v13510_v14, 7 }
 0x3ac   : > { %5078 = vst [vmem:[#allocation2 + $0x1c0] sm:$0xff] %v13481_v56  ;;  %4935 = vst [vmem:[#allocation2 + $0xf8] sm:$0xff] %v13486_v15  ;;  %v4359_v15 = vadd.f32 %v13360_v18, %v13389_v31  ;;  %v8456_v31 = vmul.f32 -1.442695, %v13501_v63  ;;  %v13539_v18 = vld [vmem:[#allocation2 + $0x2d0] sm:$0xff]  ;;  %6294 = vmatprep.subr.mxu1 %v13350_v42  ;;  %v5222_v6 = vld [vmem:[#allocation8 + $0x510] sm:$0xff] }
 0x3ad   : > { %16054 = vst [vmem:[#allocation47_spill] sm:$0xff] %v13501_v63  ;;  %16057 = vst [vmem:[#allocation46_spill] sm:$0xff] %v13510_v14  ;;  %v13516_v41 = vsel %vm1308_vm8, %v4813_v58, %v4815_v44  ;;  %v13519_v12 = vsel %vm1490_vm9, %v4994_v10, %v4996_v22  ;;  %v16059_v58 = vld [vmem:[#allocation95_spill] sm:$0xff]  ;;  %v13545_v3 = vsel %vm1308_vm8, %v4815_v44, %v16062_v28  ;;  %6295 = vmatpush2.msra.mxu1 %v5223_v25  ;;  %v5221_v25 = vld [vmem:[#allocation8 + $0x508] sm:$0xff]  ;;  %vm16414_vm12 = vcmask 1045504  }
 0x3ae   : > { %16058 = vst [vmem:[#allocation59_spill] sm:$0xff] %v13516_v41  ;;  %4936 = vst [vmem:[#allocation2 + $0x328] sm:$0xff] %v13510_v14  ;;  %v4397_v10 = vadd.f32 %v4359_v15, %v16059_v58  ;;  %9239 = vmatmul.mubr.f32.gmra.mxu1 %v13519_v12  ;;  %v16063_v15 = vrot.slane %v13510_v14, 1  ;;  %v13553_v58 = vld [vmem:[#allocation2 + $0x360] sm:$0xff]  ;;  %9837 = vpow2.f32 %v8456_v31  ;;  %v13565_v28 = vld [vmem:[#allocation2 + $0x2e8] sm:$0xff]  ;;  %5480 = vmatmul.mubr.f32.gmra.mxu0 %v13378_v11 }
 0x3af   : > { %4898 = vst [vmem:[#allocation2 + $0x280] sm:$0xff] %v13516_v41  ;;  %5079 = vst [vmem:[#allocation2 + $0x180] sm:$0xff] %v13519_v12  ;;  %v13574_v31 = vld [vmem:[#allocation2 + $0x1d0] sm:$0xff]  ;;  %6296 = vmatprep.subr.mxu1 %v13350_v42  ;;  %v13579_v63 = vld [vmem:[#allocation2 + $0x120] sm:$0xff]  ;;  %10084 = vmatprep.mubr.msk.f32.mxu0 %vm16071_vm0, %v13345_v55 }
 0x3b0   : > { %16061 = vst [vmem:[#allocation57_spill] sm:$0xff] %v13536_v19  ;;  %v13550_v26 = vsel %vm1490_vm9, %v4996_v22, %v16063_v15  ;;  %16064 = vst [vmem:[#allocation60_spill] sm:$0xff] %v13553_v58  ;;  %v13562_v44 = vadd.f32 %v13065_v46, %v4397_v10  ;;  %v9826_v22 = vpop.eup %9825  ;;  %v13582_v19 = vld [vmem:[#allocation2 + $0xa0] sm:$0xff]  ;;  %6297 = vmatpush2.msra.mxu1 %v5222_v6  ;;  %v13592_v11 = vld [vmem:[#allocation2 + $0x350] sm:$0xff] }
 0x3b1   : > { %16065 = vst [vmem:[#allocation61_spill] sm:$0xff] %v13556_v57  ;;  %4899 = vst [vmem:[#allocation2 + $0xe0] sm:$0xff] %v13545_v3  ;;  %9241 = vmatprep.mubr.f32.mxu1 %v13550_v26  ;;  %v13571_v57 = vld [vmem:[#allocation2 + $0x8] sm:$0xff]  ;;  %v9828_v10 = vpop.eup %9827  ;;  %v13586_v58 = vmul.f32 %v9826_v22, %v13194_v16  ;;  %v13595_v15 = vld [vmem:[#allocation2 + $0x310] sm:$0xff]  ;;  %6298 = vmatprep.subr.mxu1 %v13350_v42 }
 0x3b2   : > { %5080 = vst [vmem:[#allocation2 + $0x3c0] sm:$0xff] %v13550_v26  ;;  %16066 = vst [vmem:[#allocation95_spill] sm:$0xff] %v13562_v44  ;;  %v9830_v46 = vpop.eup %9829  ;;  %v4580_v22 = vadd.f32 1.0, %v9828_v10  ;;  %6299 = vmatpush2.msra.mxu1 %v5221_v25  ;;  %5485 = vmatmul.mubr.f32.gmra.mxu0 %v13407_v51  ;;  %v16100_v54 = vld [vmem:[#allocation104_spill] sm:$0xff] }
 0x3b3   : > { %16067 = vst [vmem:[#allocation115_spill] sm:$0xff] %v13568_v62  ;;  %16068 = vst [vmem:[#allocation116_spill] sm:$0xff] %v13571_v57  ;;  %v8457_v57 = vmul.f32 -1.442695, %v13562_v44  ;;  %v5220_v44 = vld [vmem:[#allocation8 + $0x500] sm:$0xff]  ;;  %v9832_v13 = vpop.eup %9831  ;;  %v13609_v62 = vmul.f32 %v9830_v46, %v13221_v53  ;;  %6300 = vmatprep.subr.mxu1 %v13350_v42  ;;  %10085 = vmatprep.mubr.msk.f32.mxu0 %vm16079_vm14, %v13372_v32  ;;  %v16081_v53 = vrot.slane %v13510_v14, 1 }
 0x3b4   : > { %16069 = vst [vmem:[#allocation117_spill] sm:$0xff] %v13579_v63  ;;  %16070 = vst [vmem:[#allocation118_spill] sm:$0xff] %v13582_v19  ;;  %v13606_v19 = vsel %vm1228_vm2, %v13586_v58, 0.0  ;;  %v13611_v63 = vld [vmem:[#allocation8 + $0x8f8] sm:$0xff]  ;;  %v4581_v55 = vadd.f32 1.0, %v9832_v13  ;;  %6301 = vmatpush2.msra.mxu1 %v5220_v44  ;;  %v9834_v32 = vpop.eup %9833  ;;  %v16152_v6 = vld [vmem:[#allocation84_spill] sm:$0xff] }
 0x3b5   : > { %16072 = vst [vmem:[#allocation119_spill] sm:$0xff] %v13595_v15  ;;  %16073 = vst [vmem:[#allocation120_spill] sm:$0xff] %v13598_v50  ;;  %9839 = vpow2.f32 %v8457_v57  ;;  %v4819_v10 = vrot.slane %v13606_v19, 7  ;;  %v5000_v16 = vrot.slane %v13606_v19, 1  ;;  %v13618_v50 = vld [vmem:[#allocation2 + $0x228] sm:$0xff]  ;;  %9436 = vmatprep.subr.mxu1 %v13611_v63 }
 0x3b6   : > { %16075 = vst [vmem:[#allocation63_spill] sm:$0xff] %v13606_v19  ;;  %16076 = vst [vmem:[#allocation121_spill] sm:$0xff] %v13611_v63  ;;  %9841 = vrcp.f32 %v4580_v22  ;;  %v13621_v57 = vld [vmem:[#allocation2 + $0x3e8] sm:$0xff]  ;;  %v16080_v22 = vrot.slane %v13510_v14, 7  ;;  %v13667_v14 = vmul.f32 %v9834_v32, %v13267_v20  ;;  %5490 = vmatmul.mubr.f32.gmra.mxu0 %v13424_v21 }
 0x3b7   : > { %4937 = vst [vmem:[#allocation2 + $0x80] sm:$0xff] %v13606_v19  ;;  %v13628_v19 = vsel %vm1229_vm3, %v13609_v62, 0.0  ;;  %v13641_v46 = vsel %vm1490_vm9, %v16081_v53, %v5000_v16  ;;  %9843 = vrcp.f32 %v4581_v55  ;;  %10086 = vmatprep.mubr.msk.f32.mxu0 %vm16043_vm11, %v13419_v9  ;;  %vm16088_vm15 = vmmov %vm16046_vm4 }
 0x3b8   : > { %16078 = vst [vmem:[#allocation64_spill] sm:$0xff] %v13628_v19  ;;  %v13636_v13 = vsel %vm1308_vm8, %v16080_v22, %v4819_v10  ;;  %v4821_v25 = vrot.slane %v13628_v19, 7  ;;  %4938 = vst [vmem:[#allocation2 + $0x300] sm:$0xff] %v13628_v19  ;;  %v5002_v42 = vrot.slane %v13628_v19, 1  ;;  %v13650_v22 = vld [vmem:[#allocation2 + $0x118] sm:$0xff]  ;;  %9242 = vmatmul.mubr.f32.gmra.mxu1 %v13641_v46  ;;  %v13657_v19 = vld [vmem:[#allocation2 + $0x140] sm:$0xff]  ;;  %v9836_v20 = vpop.eup %9835 }
 0x3b9   : > { %16082 = vst [vmem:[#allocation122_spill] sm:$0xff] %v13650_v22  ;;  %4900 = vst [vmem:[#allocation2 + $0x108] sm:$0xff] %v13636_v13  ;;  %v13685_v22 = vsel %vm1230_vm13, %v13667_v14, 0.0  ;;  %v13693_v55 = vmul.f32 %v9836_v20, %v13305_v27  ;;  %v16189_v15 = vld [vmem:[#allocation61_spill] sm:$0xff]  ;;  %v16254_v27 = vrot.slane %v13550_v26, 6 }
 0x3ba   : > { %5081 = vst [vmem:[#allocation2 + $0xc0] sm:$0xff] %v13641_v46  ;;  %v13661_v51 = vsel %vm1308_vm8, %v4819_v10, %v4821_v25  ;;  %v13664_v44 = vsel %vm1490_vm9, %v5000_v16, %v5002_v42  ;;  %16084 = vst [vmem:[#allocation69_spill] sm:$0xff] %v13685_v22  ;;  %v4823_v10 = vrot.slane %v13685_v22, 7  ;;  %v5004_v9 = vrot.slane %v13685_v22, 1  ;;  %5495 = vmatmul.mubr.f32.gmra.mxu0 %v13468_v48 }
 0x3bb   : > { %4901 = vst [vmem:[#allocation2 + $0x238] sm:$0xff] %v13661_v51  ;;  %5082 = vst [vmem:[#allocation2 + $0x248] sm:$0xff] %v13664_v44  ;;  %9244 = vmatprep.mubr.f32.mxu1 %v13664_v44  ;;  %v9838_v16 = vpop.eup %9837  ;;  %v13709_v20 = vsel %vm1231_vm5, %v13693_v55, 0.0  ;;  %10087 = vmatprep.mubr.msk.f32.mxu0 %vm16088_vm15, %v13430_v45  ;;  %v13738_v45 = vsel %vm2455_vm10, %v16097_v40, %v16095_v23  ;;  %v13749_v40 = vld [vmem:[#allocation2 + $0x2e0] sm:$0xc0] }
 0x3bc   : > { %4939 = vst [vmem:[#allocation2 + $0x3e0] sm:$0xff] %v13685_v22  ;;  %v13701_v33 = vsel %vm1308_vm8, %v4821_v25, %v4823_v10  ;;  %v13704_v22 = vsel %vm1490_vm9, %v5002_v42, %v5004_v9  ;;  %16087 = vst [vmem:[#allocation70_spill] sm:$0xff] %v13709_v20  ;;  %v4582_v32 = vadd.f32 1.0, %v9838_v16  ;;  %v4825_v25 = vrot.slane %v13709_v20, 7  ;;  %v16103_v23 = vld [vmem:[#allocation30_spill] sm:$0xff]  ;;  %v16105_v16 = vld [vmem:[#allocation97_spill] sm:$0xff] }
 0x3bd   : > { %4902 = vst [vmem:[#allocation2 + $0x3d0] sm:$0xff] %v13701_v33  ;;  %5083 = vst [vmem:[#allocation2 + $0x1e0] sm:$0xff] %v13704_v22  ;;  %v5006_v42 = vrot.slane %v13709_v20, 1  ;;  %9245 = vmatmul.mubr.f32.gmra.mxu1 %v13704_v22 }
 0x3be   : > { %4940 = vst [vmem:[#allocation2 + $0x338] sm:$0xff] %v13709_v20  ;;  %9845 = vrcp.f32 %v4582_v32  ;;  %v13726_v21 = vsel %vm1308_vm8, %v4823_v10, %v4825_v25  ;;  %v16093_v20 = vld [vmem:[#allocation108_spill] sm:$0xff]  ;;  %5500 = vmatmul.mubr.f32.gmra.mxu0 %v13478_v24  ;;  %v16099_v32 = vld [vmem:[#allocation33_spill] sm:$0xff]  ;;  %vm16101_vm4 = vmmov %vm16051_vm7  ;;  %v16106_v24 = vrot.slane %v16105_v16, 6 }
 0x3bf   : > { %16092 = vst [vmem:[#allocation89_spill] sm:$0xff] %v13726_v21  ;;  %v13729_v2 = vsel %vm1490_vm9, %v5004_v9, %v5006_v42  ;;  %16098 = vst [vmem:[#allocation108_spill] sm:$0xff] %v13738_v45  ;;  %10088 = vmatprep.mubr.msk.f32.mxu0 %vm16101_vm4, %v13461_v35  ;;  %v16107_v35 = vrot.slane %v16094_v8, 6  ;;  %v16114_v9 = vld [vmem:[#allocation73_spill] sm:$0xff]  ;;  %v16123_v8 = vld [vmem:[#allocation112_spill] sm:$0xff] }
 0x3c0   : > { %4903 = vst [vmem:[#allocation2 + $0x1a8] sm:$0xff] %v13726_v21  ;;  %5084 = vst [vmem:[#allocation2 + $0x2d8] sm:$0xff] %v13729_v2  ;;  %9247 = vmatprep.mubr.f32.mxu1 %v13729_v2  ;;  %v16109_v21 = vld [vmem:[#allocation113_spill] sm:$0xff]  ;;  %vm16115_vm7 = vcmp.eq.s32.totalorder %v16114_v9, 1 }
 0x3c1   : > { %16102 = vst [vmem:[#allocation110_spill] sm:$0xff] %v13749_v40  ;;  %v13763_v29 = vsel %vm2455_vm10, %v16107_v35, %v16106_v24  ;;  %v16110_v34 = vrot.slane %v16109_v21, 6  ;;  %v16117_v35 = vld [vmem:[#allocation18_spill] sm:$0xff]  ;;  %vm16122_vm6 = vmmov %vm16056_vm1  ;;  %v16124_v21 = vrot.slane %v16123_v8, 6 }
 0x3c2   : > { %v9840_v30 = vpop.eup %9839  ;;  %16108 = vst [vmem:[#allocation104_spill] sm:$0xff] %v13763_v29  ;;  %5505 = vmatmul.mubr.f32.gmra.mxu0 %v13516_v41  ;;  %v16118_v63 = vrot.slane %v16117_v35, 6  ;;  %v16125_v41 = vld [vmem:[#allocation111_spill] sm:$0xff]  ;;  %vm16415_vm0 = vmmov %vm16414_vm12 }
 0x3c3   : > { %v9842_v48 = vpop.eup %9841  ;;  %v4583_v10 = vadd.f32 1.0, %v9840_v30  ;;  %v16119_v29 = vmov %v16110_v34  ;;  %10089 = vmatprep.mubr.msk.f32.mxu0 %vm16122_vm6, %v13489_v49  ;;  %v16133_v49 = vrot.slane %v16117_v35, 6  ;;  %v16140_v35 = vld [vmem:[#allocation91_spill] sm:$0xff]  ;;  %vm16416_vm14 = vmmov %vm16415_vm0 }
 0x3c4   : > { %v13752_v45 = vmul.f32 %v9842_v48, %v16103_v23  ;;  %v16111_v48 = vld [vmem:[#allocation98_spill] sm:$0xff]  ;;  %v9844_v30 = vpop.eup %9843  ;;  %vm16417_vm11 = vmmov %vm16415_vm0 }
 0x3c5   : > { %9847 = vrcp.f32 %v4583_v10  ;;  %v16112_v23 = vrot.slane %v16111_v48, 6  ;;  %v13785_v48 = vsel %vm2455_vm10, %v16119_v29, %v16118_v63  ;;  %v16126_v63 = vrot.slane %v16125_v41, 6  ;;  %vm16418_vm15 = vmmov %vm16415_vm0 }
 0x3c6   : > { %16104 = vst [vmem:[#allocation33_spill] sm:$0xff] %v13752_v45  ;;  %v13775_v10 = vsel %vm16115_vm7, %v13752_v45, 0.0  ;;  %16120 = vst [vmem:[#allocation113_spill] sm:$0xff] %v13785_v48  ;;  %v16127_v48 = vld [vmem:[#allocation31_spill] sm:$0xff]  ;;  %5510 = vmatmul.mubr.f32.gmra.mxu0 %v13545_v3 }
 0x3c7   : > { %v13770_v38 = vsel %vm2455_vm10, %v16112_v23, %v16110_v34  ;;  %16116 = vst [vmem:[#allocation97_spill] sm:$0xff] %v13775_v10  ;;  %v4827_v34 = vrot.slane %v13775_v10, 7  ;;  %4941 = vst [vmem:[#allocation2 + $0xf0] sm:$0xff] %v13775_v10  ;;  %v5008_v23 = vrot.slane %v13775_v10, 1  ;;  %v13802_v29 = vsel %vm2455_vm10, %v16126_v63, %v16124_v21  ;;  %10090 = vmatprep.mubr.msk.f32.mxu0 %vm1228_vm2, %v13586_v58 }
 0x3c8   : > { %16113 = vst [vmem:[#allocation30_spill] sm:$0xff] %v13770_v38  ;;  %v16121_v38 = vld [vmem:[#allocation109_spill] sm:$0xff]  ;;  %v16128_v40 = vrot.slane %v16127_v48, 6  ;;  %v16129_v10 = vmov %v16106_v24  ;;  %v16135_v24 = vrot.slane %v13504_v60, 6  ;;  %vm16419_vm4 = vmmov %vm16415_vm0 }
 0x3c9   : > { %v13791_v9 = vmul.f32 %v9844_v30, %v16121_v38  ;;  %v16131_v30 = vld [vmem:[#allocation16_spill] sm:$0xff]  ;;  %v13826_v63 = vsel %vm1308_vm8, %v4825_v25, %v4827_v34  ;;  %v13829_v16 = vsel %vm1490_vm9, %v5006_v42, %v5008_v23  ;;  %vm16422_vm6 = vmmov %vm16415_vm0 }
 0x3ca   : > { %v13809_v38 = vsel %vm2455_vm10, %v16129_v10, %v16128_v40  ;;  %v16132_v45 = vrot.slane %v16131_v30, 6  ;;  %v16138_v40 = vld [vmem:[#allocation74_spill] sm:$0xff]  ;;  %4904 = vst [vmem:[#allocation2 + $0x200] sm:$0xff] %v13826_v63  ;;  %5085 = vst [vmem:[#allocation2 + $0x290] sm:$0xff] %v13829_v16  ;;  %9248 = vmatmul.mubr.f32.gmra.mxu1 %v13829_v16  ;;  %5515 = vmatmul.mubr.f32.gmra.mxu0 %v13636_v13 }
 0x3cb   : > { %16130 = vst [vmem:[#allocation18_spill] sm:$0xff] %v13809_v38  ;;  %vm16139_vm1 = vcmp.eq.s32.totalorder %v16138_v40, 1  ;;  %v16153_v38 = vrot.slane %v16152_v6, 6  ;;  %10091 = vmatprep.mubr.msk.f32.mxu0 %vm1229_vm3, %v13609_v62  ;;  %v5094_v40 = vld [vmem:[#allocation2 + $0xa8] sm:$0xc0] }
 0x3cc   : > { %v13816_v36 = vsel %vm2455_vm10, %v16133_v49, %v16132_v45  ;;  %v16136_v41 = vmov %v16132_v45  ;;  %v4725_v10 = vsel %vm16139_vm1, %v13791_v9, 0.0  ;;  %v16141_v45 = vrot.slane %v16140_v35, 6 }
 0x3cd   : > { %16134 = vst [vmem:[#allocation109_spill] sm:$0xff] %v13816_v36  ;;  %v13823_v21 = vsel %vm2455_vm10, %v16136_v41, %v16135_v24  ;;  %v16142_v49 = vrot.slane %v16123_v8, 6  ;;  %v4829_v41 = vrot.slane %v4725_v10, 7  ;;  %4942 = vst [vmem:[#allocation2 + $0x30] sm:$0xff] %v4725_v10  ;;  %v5010_v25 = vrot.slane %v4725_v10, 1  ;;  %v16144_v8 = vld [vmem:[#allocation100_spill] sm:$0xff] }
 0x3ce   : > { %16137 = vst [vmem:[#allocation112_spill] sm:$0xff] %v13823_v21  ;;  %v16145_v30 = vrot.slane %v16144_v8, 6  ;;  %v16147_v10 = vrot.slane %v13539_v18, 6  ;;  %v16148_v21 = vmov %v16135_v24  ;;  %v16149_v24 = vrot.slane %v13565_v28, 6  ;;  %5520 = vmatmul.mubr.f32.gmra.mxu0 %v13661_v51 }
 0x3cf   : > { %v13839_v36 = vsel %vm2455_vm10, %v16142_v49, %v16141_v45  ;;  %v16146_v45 = vrot.slane %v16127_v48, 6  ;;  %v16154_v48 = vrot.slane %v16140_v35, 6  ;;  %v13882_v60 = vsel %vm1490_vm9, %v5008_v23, %v5010_v25  ;;  %10092 = vmatprep.mubr.msk.f32.mxu0 %vm1230_vm13, %v13667_v14 }
 0x3d0   : > { %16143 = vst [vmem:[#allocation31_spill] sm:$0xff] %v13839_v36  ;;  %v13862_v42 = vsel %vm2455_vm10, %v16148_v21, %v16147_v10  ;;  %v16150_v36 = vmov %v16147_v10  ;;  %16155 = vst [vmem:[#allocation74_spill] sm:$0xff] %v13882_v60  ;;  %v16156_v21 = vld [vmem:[#allocation102_spill] sm:$0xff]  ;;  %v16158_v18 = vrot.slane %v16144_v8, 6  ;;  %v16160_v35 = vrot.slane %v13565_v28, 6  ;;  %9250 = vmatprep.mubr.f32.mxu1 %v13882_v60 }
 0x3d1   : > { %v13855_v49 = vsel %vm2455_vm10, %v16146_v45, %v16145_v30  ;;  %v13869_v58 = vsel %vm2455_vm10, %v16150_v36, %v16149_v24  ;;  %v13876_v30 = vsel %vm2455_vm10, %v16154_v48, %v16153_v38  ;;  %v13879_v45 = vsel %vm1308_vm8, %v4827_v34, %v4829_v41  ;;  %5086 = vst [vmem:[#allocation2 + $0x218] sm:$0xff] %v13882_v60 }
 0x3d2   : > { %16151 = vst [vmem:[#allocation16_spill] sm:$0xff] %v13869_v58  ;;  %v16157_v10 = vrot.slane %v16156_v21, 6  ;;  %v16159_v24 = vrot.slane %v13574_v31, 6  ;;  %4905 = vst [vmem:[#allocation2 + $0x58] sm:$0xff] %v13879_v45  ;;  %v16162_v23 = vrot.slane %v13592_v11, 6  ;;  %v9846_v58 = vpop.eup %9845  ;;  %v16171_v31 = vrot.slane %v12968_v47, 6  ;;  %5525 = vmatmul.mubr.f32.gmra.mxu0 %v13701_v33 }
 0x3d3   : > { %v16179_v11 = vrot.slane %v13464_v1, 6  ;;  %v16181_v47 = vrot.slane %v13038_v61, 6  ;;  %10093 = vmatprep.mubr.msk.f32.mxu0 %vm1231_vm5, %v13693_v55 }
 0x3d4   : > { %v13889_v36 = vsel %vm2455_vm10, %v16158_v18, %v16157_v10  ;;  %v13896_v38 = vsel %vm2455_vm10, %v16160_v35, %v16159_v24  ;;  %v16163_v8 = vmov %v16159_v24  ;;  %v16165_v10 = vld [vmem:[#allocation35_spill] sm:$0xff]  ;;  %v16167_v18 = vrot.slane %v16152_v6, 6 }
 0x3d5   : > { %16161 = vst [vmem:[#allocation91_spill] sm:$0xff] %v13896_v38  ;;  %v13907_v48 = vsel %vm2455_vm10, %v16163_v8, %v16162_v23  ;;  %v16166_v28 = vrot.slane %v16165_v10, 6  ;;  %v16168_v35 = vrot.slane %v13464_v1, 6  ;;  %v16169_v38 = vrot.slane %v16156_v21, 6 }
 0x3d6   : > { %16164 = vst [vmem:[#allocation100_spill] sm:$0xff] %v13907_v48  ;;  %v13929_v8 = vsel %vm2455_vm10, %v16162_v23, %v16171_v31  ;;  %v16173_v6 = vrot.slane %v12990_v4, 6  ;;  %v16175_v21 = vrot.slane %v13525_v5, 6  ;;  %v16177_v48 = vld [vmem:[#allocation57_spill] sm:$0xff]  ;;  %v16180_v23 = vld [vmem:[#allocation47_spill] sm:$0xff]  ;;  %v16184_v1 = vmov %v16181_v47 }
 0x3d7   : > { %v13914_v24 = vsel %vm2455_vm10, %v16167_v18, %v16166_v28  ;;  %v13921_v34 = vsel %vm2455_vm10, %v16169_v38, %v16168_v35  ;;  %16172 = vst [vmem:[#allocation102_spill] sm:$0xff] %v13929_v8  ;;  %v16174_v28 = vmov %v16171_v31  ;;  %v16176_v38 = vrot.slane %v16165_v10, 6 }
 0x3d8   : > { %16170 = vst [vmem:[#allocation84_spill] sm:$0xff] %v13921_v34  ;;  %v13936_v18 = vsel %vm2455_vm10, %v16174_v28, %v16173_v6  ;;  %v16178_v34 = vrot.slane %v16177_v48, 6  ;;  %v13953_v8 = vmul.f32 %v9846_v58, %v16180_v23  ;;  %v16182_v10 = vmov %v16173_v6  ;;  %v16186_v58 = vld [vmem:[#allocation60_spill] sm:$0xff] }
 0x3d9   : > { %v13943_v35 = vsel %vm2455_vm10, %v16176_v38, %v16175_v21  ;;  %v13963_v6 = vsel %vm2455_vm10, %v16182_v10, %v16181_v47  ;;  %v16183_v28 = vrot.slane %v13121_v52, 6  ;;  %v16187_v21 = vrot.slane %v16186_v58, 6 }
 0x3da   : > { %v13950_v31 = vsel %vm2455_vm10, %v16179_v11, %v16178_v34  ;;  %v16188_v38 = vrot.slane %v13525_v5, 6  ;;  %v16190_v11 = vrot.slane %v16189_v15, 6  ;;  %v16191_v4 = vrot.slane %v16177_v48, 6 }
 0x3db   : > { %v13970_v34 = vsel %vm2455_vm10, %v16184_v1, %v16183_v28  ;;  %v16192_v47 = vrot.slane %v13177_v59, 6  ;;  %v16193_v61 = vmov %v16183_v28  ;;  %v16195_v28 = vrot.slane %v13202_v39, 6 }
 0x3dc   : > { %16185 = vst [vmem:[#allocation35_spill] sm:$0xff] %v13970_v34  ;;  %v13977_v62 = vsel %vm2455_vm10, %v16188_v38, %v16187_v21  ;;  %v13984_v23 = vsel %vm2455_vm10, %v16191_v4, %v16190_v11  ;;  %v16198_v21 = vld [vmem:[#allocation115_spill] sm:$0xff]  ;;  %v16200_v48 = vrot.slane %v16186_v58, 6  ;;  %v16202_v4 = vld [vmem:[#allocation86_spill] sm:$0xff] }
 0x3dd   : > { %v13991_v10 = vsel %vm2455_vm10, %v16193_v61, %v16192_v47  ;;  %v16196_v5 = vmov %v16192_v47  ;;  %v16199_v38 = vrot.slane %v16198_v21, 6  ;;  %vm16203_vm2 = vcmp.eq.s32.totalorder %v16202_v4, 1  ;;  %v16204_v47 = vld [vmem:[#allocation116_spill] sm:$0xff] }
 0x3de   : > { %16194 = vst [vmem:[#allocation57_spill] sm:$0xff] %v13991_v10  ;;  %v13998_v1 = vsel %vm2455_vm10, %v16196_v5, %v16195_v28  ;;  %v4726_v52 = vsel %vm16203_vm2, %v13953_v8, 0.0  ;;  %v16205_v61 = vrot.slane %v16204_v47, 6  ;;  %v16206_v10 = vrot.slane %v16189_v15, 6  ;;  %vm16340_vm3 = vmmov %vm16203_vm2 }
 0x3df   : > { %16197 = vst [vmem:[#allocation47_spill] sm:$0xff] %v13998_v1  ;;  %v14005_v11 = vsel %vm2455_vm10, %v16200_v48, %v16199_v38  ;;  %v16207_v28 = vrot.slane %v13237_v17, 6  ;;  %v16208_v5 = vrot.slane %v13202_v39, 6  ;;  %v16210_v38 = vrot.slane %v13292_v37, 6  ;;  %4943 = vst [vmem:[#allocation2 + $0x110] sm:$0xff] %v4726_v52 }
 0x3e0   : > { %16201 = vst [vmem:[#allocation60_spill] sm:$0xff] %v14005_v11  ;;  %v14015_v59 = vsel %vm2455_vm10, %v16206_v10, %v16205_v61  ;;  %v9848_v11 = vpop.eup %9847  ;;  %v4831_v34 = vrot.slane %v4726_v52, 7  ;;  %v5012_v15 = vrot.slane %v4726_v52, 1  ;;  %v16213_v10 = vld [vmem:[#allocation117_spill] sm:$0xff]  ;;  %v16215_v39 = vrot.slane %v16198_v21, 6  ;;  %vm16425_vm2 = vmmov %vm16415_vm0 }
 0x3e1   : > { %v14022_v58 = vsel %vm2455_vm10, %v16208_v5, %v16207_v28  ;;  %v16211_v48 = vmov %v16207_v28  ;;  %v16214_v61 = vrot.slane %v16213_v10, 6  ;;  %v16216_v5 = vld [vmem:[#allocation118_spill] sm:$0xff]  ;;  %v16218_v17 = vrot.slane %v16204_v47, 6 }
 0x3e2   : > { %16209 = vst [vmem:[#allocation61_spill] sm:$0xff] %v14022_v58  ;;  %v14029_v1 = vsel %vm2455_vm10, %v16211_v48, %v16210_v38  ;;  %v16217_v58 = vrot.slane %v16216_v5, 6  ;;  %v16219_v48 = vld [vmem:[#allocation95_spill] sm:$0xff]  ;;  %v16220_v52 = vrot.slane %v16091_v43, 6  ;;  %v16221_v21 = vrot.slane %v13292_v37, 6 }
 0x3e3   : > { %16212 = vst [vmem:[#allocation115_spill] sm:$0xff] %v14029_v1  ;;  %v14037_v28 = vsel %vm2455_vm10, %v16215_v39, %v16214_v61  ;;  %v14047_v1 = vmul.f32 %v9848_v11, %v16219_v48  ;;  %v16223_v39 = vrot.slane %v16093_v20, 6  ;;  %v16225_v11 = vld [vmem:[#allocation119_spill] sm:$0xff]  ;;  %v16227_v48 = vrot.slane %v16213_v10, 6 }
 0x3e4   : > { %v14044_v38 = vsel %vm2455_vm10, %v16218_v17, %v16217_v58  ;;  %v14057_v61 = vsel %vm2455_vm10, %v16221_v21, %v16220_v52  ;;  %v16224_v47 = vmov %v16220_v52  ;;  %v16226_v17 = vrot.slane %v16225_v11, 6  ;;  %v16228_v52 = vld [vmem:[#allocation120_spill] sm:$0xff] }
 0x3e5   : > { %16222 = vst [vmem:[#allocation86_spill] sm:$0xff] %v14057_v61  ;;  %v14064_v58 = vsel %vm2455_vm10, %v16224_v47, %v16223_v39  ;;  %v14074_v53 = vsel %vm1308_vm8, %v4829_v41, %v4831_v34  ;;  %v5013_v37 = vsel %vm1490_vm9, %v5010_v25, %v5012_v15  ;;  %v16229_v21 = vrot.slane %v16228_v52, 6  ;;  %v16234_v41 = vld [vmem:[#allocation85_spill] sm:$0xff] }
 0x3e6   : > { %v14071_v14 = vsel %vm2455_vm10, %v16227_v48, %v16226_v17  ;;  %v16230_v61 = vrot.slane %v16216_v5, 6  ;;  %v16231_v39 = vrot.slane %v16099_v32, 6  ;;  %v16232_v47 = vrot.slane %v16093_v20, 6  ;;  %4906 = vst [vmem:[#allocation2 + $0x288] sm:$0xff] %v14074_v53  ;;  %5087 = vst [vmem:[#allocation2 + $0xd0] sm:$0xff] %v5013_v37  ;;  %9251 = vmatmul.mubr.f32.gmra.mxu1 %v5013_v37 }
 0x3e7   : > { %vm16235_vm13 = vcmp.eq.s32.totalorder %v16234_v41, 1  ;;  %v16236_v5 = vrot.slane %v16100_v54, 6  ;;  %v16238_v20 = vrot.slane %v13618_v50, 6  ;;  %v16239_v48 = vrot.slane %v16225_v11, 6 }
 0x3e8   : > { %v14082_v43 = vsel %vm2455_vm10, %v16230_v61, %v16229_v21  ;;  %v14089_v10 = vsel %vm2455_vm10, %v16232_v47, %v16231_v39  ;;  %v4727_v25 = vsel %vm16235_vm13, %v14047_v1, 0.0  ;;  %v16237_v61 = vmov %v16231_v39  ;;  %vm16351_vm5 = vmmov %vm16235_vm13 }
 0x3e9   : > { %16233 = vst [vmem:[#allocation116_spill] sm:$0xff] %v14089_v10  ;;  %v14100_v17 = vsel %vm2455_vm10, %v16237_v61, %v16236_v5  ;;  %v14107_v21 = vsel %vm2455_vm10, %v16239_v48, %v16238_v20  ;;  %v16240_v39 = vrot.slane %v13621_v57, 6  ;;  %v16241_v47 = vrot.slane %v16228_v52, 6  ;;  %4944 = vst [vmem:[#allocation2 + $0x210] sm:$0xff] %v4727_v25 }
 0x3ea   : > { %v4833_v10 = vrot.slane %v4727_v25, 7  ;;  %v5014_v32 = vrot.slane %v4727_v25, 1  ;;  %v16242_v5 = vrot.slane %v13471_v7, 6  ;;  %v16243_v61 = vrot.slane %v16100_v54, 6  ;;  %vm16427_vm13 = vmmov %vm16415_vm0 }
 0x3eb   : > { %v14114_v37 = vsel %vm2455_vm10, %v16241_v47, %v16240_v39  ;;  %v16244_v20 = vrot.slane %v13481_v56, 6  ;;  %v16246_v25 = vrot.slane %v13647_v0, 6  ;;  %v16247_v39 = vrot.slane %v13618_v50, 6  ;;  %v16248_v47 = vld [vmem:[#allocation122_spill] sm:$0xff] }
 0x3ec   : > { %v14122_v11 = vsel %vm2455_vm10, %v16243_v61, %v16242_v5  ;;  %v16245_v48 = vmov %v16242_v5  ;;  %v16249_v5 = vrot.slane %v16248_v47, 6  ;;  %v16250_v61 = vrot.slane %v13621_v57, 6  ;;  %4908 = vst [vmem:[#allocation2 + $0x390] sm:$0x1] %v4833_v10  ;;  %5089 = vst [vmem:[#allocation2 + $0x138] sm:$0x7f] %v5014_v32 }
 0x3ed   : > { %v14129_v52 = vsel %vm2455_vm10, %v16245_v48, %v16244_v20  ;;  %v14139_v54 = vsel %vm2455_vm10, %v16247_v39, %v16246_v25  ;;  %v16251_v20 = vrot.slane %v13519_v12, 6  ;;  %v16252_v48 = vrot.slane %v13481_v56, 6 }
 0x3ee   : > { %v14146_v7 = vsel %vm2455_vm10, %v16250_v61, %v16249_v5  ;;  %v14163_v39 = vsel %vm1308_vm8, %v4831_v34, %v4833_v10  ;;  %v5015_v57 = vsel %vm1490_vm9, %v5012_v15, %v5014_v32  ;;  %v16257_v5 = vrot.slane %v13657_v19, 6  ;;  %vm16295_vm8 = vmmov %vm16115_vm7 }
 0x3ef   : > { %v14153_v55 = vsel %vm2455_vm10, %v16252_v48, %v16251_v20  ;;  %v16255_v50 = vmov %v16251_v20  ;;  %v16258_v56 = vrot.slane %v13647_v0, 6  ;;  %v16260_v20 = vld [vmem:[#allocation19_spill] sm:$0xff]  ;;  %v16262_v12 = vrot.slane %v16248_v47, 6  ;;  %4907 = vst [vmem:[#allocation2 + $0x130] sm:$0xff] %v14163_v39  ;;  %5088 = vst [vmem:[#allocation2 + $0x2a0] sm:$0xff] %v5015_v57  ;;  %9253 = vmatprep.mubr.f32.mxu1 %v5015_v57 }
 0x3f0   : > { %16253 = vst [vmem:[#allocation117_spill] sm:$0xff] %v14153_v55  ;;  %v14160_v25 = vsel %vm2455_vm10, %v16255_v50, %v16254_v27  ;;  %v16261_v48 = vrot.slane %v16260_v20, 6  ;;  %v16264_v34 = vrot.slane %v13641_v46, 6  ;;  %v16265_v15 = vrot.slane %v13550_v26, 6  ;;  %v16270_v50 = vld [vmem:[#allocation17_spill] sm:$0xff]  ;;  %vm16332_vm9 = vmmov %vm16139_vm1 }
 0x3f1   : > { %16256 = vst [vmem:[#allocation118_spill] sm:$0xff] %v14160_v25  ;;  %v14171_v61 = vsel %vm2455_vm10, %v16258_v56, %v16257_v5  ;;  %v16267_v10 = vrot.slane %v13664_v44, 6  ;;  %v16271_v5 = vrot.slane %v16270_v50, 6  ;;  %v16272_v56 = vrot.slane %v13657_v19, 6  ;;  %v5092_v46 = vld [vmem:[#allocation2 + $0x308] sm:$0xc0]  ;;  %vm16420_vm7 = vmmov %vm16415_vm0 }
 0x3f2   : > { %16259 = vst [vmem:[#allocation95_spill] sm:$0xff] %v14171_v61  ;;  %v14178_v27 = vsel %vm2455_vm10, %v16262_v12, %v16261_v48  ;;  %v14186_v0 = vsel %vm2455_vm10, %v16265_v15, %v16264_v34  ;;  %v16268_v32 = vmov %v16264_v34  ;;  %v16274_v48 = vld [vmem:[#allocation20_spill] sm:$0xff]  ;;  %v16276_v26 = vrot.slane %v16260_v20, 6  ;;  %v16278_v15 = vld [vmem:[#allocation89_spill] sm:$0xff]  ;;  %v16323_v25 = vld [vmem:[#allocation110_spill] sm:$0xff] }
 0x3f3   : > { %16263 = vst [vmem:[#allocation119_spill] sm:$0xff] %v14178_v27  ;;  %16266 = vst [vmem:[#allocation120_spill] sm:$0xff] %v14186_v0  ;;  %v14193_v47 = vsel %vm2455_vm10, %v16268_v32, %v16267_v10  ;;  %v14200_v57 = vsel %vm2455_vm10, %v16272_v56, %v16271_v5  ;;  %v16275_v12 = vrot.slane %v16274_v48, 6  ;;  %5530 = vmatmul.mubr.f32.gmra.mxu0 %v16278_v15  ;;  %v16279_v10 = vrot.slane %v13704_v22, 6  ;;  %v16285_v20 = vld [vmem:[#allocation21_spill] sm:$0xff] }
 0x3f4   : > { %16269 = vst [vmem:[#allocation85_spill] sm:$0xff] %v14193_v47  ;;  %16273 = vst [vmem:[#allocation122_spill] sm:$0xff] %v14200_v57  ;;  %v16280_v32 = vrot.slane %v13664_v44, 6  ;;  %v16282_v19 = vrot.slane %v13729_v2, 6  ;;  %v16291_v44 = vrot.slane %v16274_v48, 6  ;;  %v16296_v22 = vrot.slane %v13829_v16, 6 }
 0x3f5   : > { %v14207_v34 = vsel %vm2455_vm10, %v16276_v26, %v16275_v12  ;;  %v16283_v5 = vmov %v16279_v10  ;;  %v16286_v12 = vrot.slane %v16285_v20, 6  ;;  %v16287_v26 = vrot.slane %v16270_v50, 6  ;;  %v16310_v16 = vld [vmem:[#allocation99_spill] sm:$0xff]  ;;  %vm16424_vm1 = vmmov %vm16415_vm0 }
 0x3f6   : > { %16277 = vst [vmem:[#allocation19_spill] sm:$0xff] %v14207_v34  ;;  %v14215_v47 = vsel %vm2455_vm10, %v16280_v32, %v16279_v10  ;;  %v14222_v56 = vsel %vm2455_vm10, %v16283_v5, %v16282_v19  ;;  %v16289_v34 = vld [vmem:[#allocation23_spill] sm:$0xff]  ;;  %v16293_v32 = vld [vmem:[#allocation33_spill] sm:$0xff]  ;;  %v14246_v50 = vsel %vm2455_vm10, %v16282_v19, %v16296_v22  ;;  %v16298_v5 = vrot.slane %v13882_v60, 6 }
 0x3f7   : > { %16281 = vst [vmem:[#allocation17_spill] sm:$0xff] %v14215_v47  ;;  %16284 = vst [vmem:[#allocation20_spill] sm:$0xff] %v14222_v56  ;;  %v14229_v0 = vsel %vm2455_vm10, %v16287_v26, %v16286_v12  ;;  %v16290_v57 = vrot.slane %v16289_v34, 6  ;;  %10094 = vmatprep.mubr.msk.f32.mxu0 %vm16295_vm8, %v16293_v32  ;;  %v16299_v12 = vmov %v16296_v22  ;;  %v16305_v32 = vld [vmem:[#allocation22_spill] sm:$0xff]  ;;  %v16307_v2 = vrot.slane %v16289_v34, 6  ;;  %v16309_v19 = vld [vmem:[#allocation87_spill] sm:$0xff] }
 0x3f8   : > { %16288 = vst [vmem:[#allocation89_spill] sm:$0xff] %v14229_v0  ;;  %16297 = vst [vmem:[#allocation23_spill] sm:$0xff] %v14246_v50  ;;  %v14253_v48 = vsel %vm2455_vm10, %v16299_v12, %v16298_v5  ;;  %v16306_v56 = vrot.slane %v16305_v32, 6  ;;  %v6040_v60 = vrot.slane %v16309_v19, 6  ;;  %v6048_v50 = vrot.slane %v16310_v16, 6  ;;  %v16311_v5 = vld [vmem:[#allocation26_spill] sm:$0xff]  ;;  %5535 = vmatmul.mubr.f32.gmra.mxu0 %v13826_v63 }
 0x3f9   : > { %v14236_v10 = vsel %vm2455_vm10, %v16291_v44, %v16290_v57  ;;  %16300 = vst [vmem:[#allocation33_spill] sm:$0xff] %v14253_v48  ;;  %v16301_v57 = vld [vmem:[#allocation25_spill] sm:$0xff]  ;;  %v16303_v44 = vrot.slane %v16285_v20, 6  ;;  %v16312_v12 = vrot.slane %v16311_v5, 6  ;;  %v16321_v16 = vld [vmem:[#allocation103_spill] sm:$0xff]  ;;  %v16327_v32 = vrot.slane %v16311_v5, 6  ;;  %10095 = vmatprep.mubr.msk.f32.mxu0 %vm16332_vm9, %v13791_v9  ;;  %vm16429_vm8 = vmmov %vm16415_vm0 }
 0x3fa   : > { %16292 = vst [vmem:[#allocation21_spill] sm:$0xff] %v14236_v10  ;;  %v16302_v26 = vrot.slane %v16301_v57, 6  ;;  %v14267_v22 = vsel %vm2455_vm10, %v16307_v2, %v16306_v56  ;;  %v5911_v10 = vrot.slane %v5092_v46, 6  ;;  %v6052_v0 = vrot.slane %v16321_v16, 6  ;;  %v16322_v57 = vld [vmem:[#allocation24_spill] sm:$0xff]  ;;  %v16331_v16 = vld [vmem:[#allocation106_spill] sm:$0xff]  ;;  %vm16431_vm9 = vmmov %vm16415_vm0 }
 0x3fb   : > { %16308 = vst [vmem:[#allocation25_spill] sm:$0xff] %v14267_v22  ;;  %v16320_v22 = vld [vmem:[#allocation93_spill] sm:$0xff] }
 0x3fc   : > { %v14260_v47 = vsel %vm2455_vm10, %v16303_v44, %v16302_v26  ;;  %v16313_v48 = vmov %v16302_v26  ;;  %v16315_v26 = vld [vmem:[#allocation27_spill] sm:$0xff]  ;;  %v6054_v19 = vrot.slane %v16320_v22, 6  ;;  %v16334_v5 = vld [vmem:[#allocation105_spill] sm:$0xff]  ;;  %v5913_v9 = vsel %vm2455_vm10, %v5911_v10, %v16322_v57  ;;  %5540 = vmatmul.mubr.f32.gmra.mxu0 %v13879_v45 }
 0x3fd   : > { %16304 = vst [vmem:[#allocation73_spill] sm:$0xff] %v14260_v47  ;;  %v14276_v20 = vsel %vm2455_vm10, %v16313_v48, %v16312_v12  ;;  %v16316_v44 = vrot.slane %v16315_v26, 6  ;;  %v16317_v47 = vmov %v16306_v56  ;;  %v16319_v56 = vld [vmem:[#allocation101_spill] sm:$0xff]  ;;  %v16324_v48 = vrot.slane %v16323_v25, 6  ;;  %10096 = vmatprep.mubr.msk.f32.mxu0 %vm16340_vm3, %v13953_v8  ;;  %vm16433_vm3 = vmmov %vm16415_vm0 }
 0x3fe   : > { %16314 = vst [vmem:[#allocation22_spill] sm:$0xff] %v14276_v20  ;;  %v6046_v2 = vrot.slane %v16319_v56, 6  ;;  %v16325_v20 = vld [vmem:[#allocation29_spill] sm:$0xff]  ;;  %v16330_v46 = vrot.slane %v16315_v26, 6  ;;  %v6066_v61 = vrot.slane %v16334_v5, 6 }
 0x3ff   : > { %v14283_v34 = vsel %vm2455_vm10, %v16317_v47, %v16316_v44  ;;  %v5916_v12 = vsel %vm2455_vm10, %v16324_v48, %v16322_v57  ;;  %v16326_v55 = vrot.slane %v16325_v20, 6  ;;  %v16328_v44 = vld [vmem:[#allocation28_spill] sm:$0xff]  ;;  %v16333_v48 = vld [vmem:[#allocation79_spill] sm:$0xff]  ;;  %v16346_v8 = vld [vmem:[#allocation121_spill] sm:$0xff] }
 0x400   : > { %16318 = vst [vmem:[#allocation87_spill] sm:$0xff] %v14283_v34  ;;  %v16329_v56 = vrot.slane %v16328_v44, 6  ;;  %v6060_v34 = vrot.slane %v16331_v16, 6  ;;  %v5260_v25 = vld [vmem:[#allocation2 + $0x138] sm:$0xff]  ;;  %v6058_v27 = vrot.slane %v16333_v48, 6  ;;  %v14329_v16 = vsel %vm2455_vm10, %v6048_v50, %v6054_v19  ;;  %v16337_v48 = vld [vmem:[#allocation34_spill] sm:$0xff]  ;;  %5545 = vmatmul.mubr.f32.gmra.mxu0 %v14074_v53 }
 0x401   : > { %v14298_v47 = vsel %vm2455_vm10, %v16327_v32, %v16326_v55  ;;  %9254 = vmatmul.mubr.f32.gmra.mxu1 %v5260_v25  ;;  %v14316_v32 = vsel %vm2455_vm10, %v16326_v55, %v6040_v60  ;;  %v16336_v20 = vld [vmem:[#allocation32_spill] sm:$0xff]  ;;  %v6072_v5 = vrot.slane %v16337_v48, 6  ;;  %v14335_v44 = vsel %vm2455_vm10, %v6046_v2, %v6052_v0  ;;  %v16344_v48 = vld [vmem:[#allocation39_spill] sm:$0xff]  ;;  %10097 = vmatprep.mubr.msk.f32.mxu0 %vm16351_vm5, %v14047_v1  ;;  %vm16434_vm5 = vmmov %vm16415_vm0 }
 0x402   : > { %v14305_v22 = vsel %vm2455_vm10, %v16330_v46, %v16329_v56  ;;  %v16335_v26 = vmov %v16329_v56  ;;  %6302 = vmatprep.mubr.f32.mxu1 %v5916_v12  ;;  %v14326_v46 = vsel %vm2455_vm10, %v6040_v60, %v6046_v2  ;;  %v6064_v25 = vrot.slane %v16336_v20, 6  ;;  %16338 = vst [vmem:[#allocation99_spill] sm:$0xff] %v14335_v44  ;;  %v16339_v12 = vld [vmem:[#allocation41_spill] sm:$0xff]  ;;  %v16345_v44 = vld [vmem:[#allocation94_spill] sm:$0xff]  ;;  %v14374_v53 = vld [vmem:[#allocation8 + $0x8e0] sm:$0xff] }
 0x403   : > { %v14321_v56 = vsel %vm2455_vm10, %v16335_v26, %v6048_v50  ;;  %v6070_v55 = vrot.slane %v16339_v12, 6  ;;  %v14341_v60 = vld [vmem:[#allocation8 + $0x8f0] sm:$0xff]  ;;  %v14344_v10 = vsel %vm2455_vm10, %v6054_v19, %v6060_v34  ;;  %v16342_v50 = vld [vmem:[#allocation107_spill] sm:$0xff]  ;;  %v5917_v20 = vrot.slane %v5094_v40, 6  ;;  %v14357_v19 = vld [vmem:[#allocation8 + $0x8e8] sm:$0xff] }
 0x404   : > { %16341 = vst [vmem:[#allocation26_spill] sm:$0xff] %v14344_v10  ;;  %v6078_v26 = vrot.slane %v16342_v50, 6  ;;  %v14348_v45 = vsel %vm2455_vm10, %v6052_v0, %v6058_v27  ;;  %v14351_v2 = vsel %vm2455_vm10, %v6060_v34, %v6066_v61  ;;  %v6076_v12 = vrot.slane %v16344_v48, 6  ;;  %v16347_v10 = vld [vmem:[#allocation59_spill] sm:$0xff]  ;;  %5550 = vmatmul.mubr.f32.gmra.mxu0 %v14163_v39 }
 0x405   : > { %6303 = vmatmul.mubr.f32.vlgmr.msra.gmra.mxu1 %v5913_v9  ;;  %16343 = vst [vmem:[#allocation27_spill] sm:$0xff] %v14351_v2  ;;  %v6084_v4 = vrot.slane %v16345_v44, 6  ;;  %v6082_v50 = vrot.slane %v16347_v10, 6  ;;  %v16348_v9 = vld [vmem:[#allocation46_spill] sm:$0xff]  ;;  %v5100_v0 = vld [vmem:[#allocation2 + $0x250] sm:$0xff]  ;;  %v14364_v34 = vsel %vm2455_vm10, %v6058_v27, %v6064_v25  ;;  %v14367_v44 = vsel %vm2455_vm10, %v6066_v61, %v6072_v5 }
 0x406   : > { %6307 = vmatprep.mubr.f32.mxu1 %v16322_v57  ;;  %9452 = vmatpush3.msra.mxu1 %v16346_v8  ;;  %v6090_v40 = vrot.slane %v16348_v9, 6  ;;  %16349 = vst [vmem:[#allocation101_spill] sm:$0xff] %v14364_v34  ;;  %16350 = vst [vmem:[#allocation93_spill] sm:$0xff] %v14367_v44  ;;  %v6088_v48 = vrot.slane %v13545_v3, 6  ;;  %v10051_v10 = vld [vmem:[#allocation2 + $0x150] sm:$0xff]  ;;  %v14377_v9 = vsel %vm2455_vm10, %v6064_v25, %v6070_v55  ;;  %v6094_v25 = vrot.slane %v13636_v13, 6 }
 0x407   : > { %9437 = vmatprep.subr.mxu1 %v14341_v60  ;;  %v5926_v2 = vrot.slane %v10051_v10, 6  ;;  %16352 = vst [vmem:[#allocation103_spill] sm:$0xff] %v14377_v9  ;;  %v16353_v27 = vld [vmem:[#allocation63_spill] sm:$0xff]  ;;  %v5919_v3 = vsel %vm2455_vm10, %v5917_v20, %v16322_v57  ;;  %v16354_v61 = vld [vmem:[#allocation96_spill] sm:$0xff]  ;;  %v14389_v41 = vsel %vm2455_vm10, %v6072_v5, %v6078_v26  ;;  %v5924_v10 = vrot.slane %v5100_v0, 6 }
 0x408   : > { %9453 = vmatpush3.msra.mxu1 %v14341_v60  ;;  %v6096_v34 = vrot.slane %v16353_v27, 6  ;;  %v16355_v44 = vrot.slane %v16354_v61, 6  ;;  %v14393_v27 = vld [vmem:[#allocation8 + $0x8d8] sm:$0xff]  ;;  %v14396_v20 = vsel %vm2455_vm10, %v6070_v55, %v6076_v12  ;;  %v14399_v61 = vsel %vm2455_vm10, %v6078_v26, %v6084_v4  ;;  %9288 = vmatprep.mubr.f32.mxu0 %v5919_v3 }
 0x409   : > { %6308 = vmatmul.mubr.f32.gmra.mxu1 %v16322_v57  ;;  %9438 = vmatprep.subr.mxu1 %v14357_v19  ;;  %16356 = vst [vmem:[#allocation24_spill] sm:$0xff] %v14396_v20  ;;  %16357 = vst [vmem:[#allocation110_spill] sm:$0xff] %v14399_v61  ;;  %v14405_v13 = vsel %vm2455_vm10, %v6076_v12, %v6082_v50  ;;  %v14408_v5 = vsel %vm2455_vm10, %v6084_v4, %v6090_v40  ;;  %v6100_v0 = vrot.slane %v13661_v51, 6  ;;  %v10052_v12 = vld [vmem:[#allocation2 + $0x3c8] sm:$0xff] }
 0x40a   : > { %v5929_v1 = vsel %vm2455_vm10, %v16322_v57, %v16355_v44  ;;  %9454 = vmatpush3.msra.mxu1 %v14357_v19  ;;  %v16358_v44 = vld [vmem:[#allocation64_spill] sm:$0xff]  ;;  %16359 = vst [vmem:[#allocation29_spill] sm:$0xff] %v14405_v13  ;;  %16360 = vst [vmem:[#allocation28_spill] sm:$0xff] %v14408_v5  ;;  %v5927_v26 = vsel %vm2455_vm10, %v16322_v57, %v5926_v2  ;;  %v14418_v39 = vsel %vm2455_vm10, %v6082_v50, %v6088_v48  ;;  %v16363_v5 = vld [vmem:[#allocation70_spill] sm:$0xff] }
 0x40b   : > { %6312 = vmatprep.mubr.f32.mxu1 %v5929_v1  ;;  %v6102_v9 = vrot.slane %v16358_v44, 6  ;;  %9439 = vmatprep.subr.mxu1 %v14374_v53  ;;  %v16361_v1 = vld [vmem:[#allocation69_spill] sm:$0xff]  ;;  %16362 = vst [vmem:[#allocation106_spill] sm:$0xff] %v14418_v39  ;;  %v5930_v13 = vrot.slane %v10052_v12, 6  ;;  %v6106_v4 = vrot.slane %v13701_v33, 6  ;;  %v6114_v61 = vrot.slane %v16363_v5, 6 }
 0x40c   : > { %v6108_v55 = vrot.slane %v16361_v1, 6  ;;  %9455 = vmatpush3.msra.mxu1 %v14374_v53  ;;  %v14415_v44 = vld [vmem:[#allocation8 + $0x8d0] sm:$0xff]  ;;  %v6855_v51 = vld [vmem:[#allocation8 + $0x7f8] sm:$0xff]  ;;  %v14424_v3 = vsel %vm2455_vm10, %v6090_v40, %v6096_v34  ;;  %v6112_v1 = vrot.slane %v16278_v15, 6  ;;  %v5925_v20 = vsel %vm2455_vm10, %v16322_v57, %v5924_v10  ;;  %v16365_v50 = vld [vmem:[#allocation108_spill] sm:$0xff] }
 0x40d   : > { %6313 = vmatmul.mubr.f32.gmra.mxu1 %v5927_v26  ;;  %9440 = vmatprep.subr.mxu1 %v14393_v27  ;;  %16364 = vst [vmem:[#allocation79_spill] sm:$0xff] %v14424_v3  ;;  %v10053_v39 = vld [vmem:[#allocation2 + $0x2b8] sm:$0xff]  ;;  %v14432_v33 = vsel %vm2455_vm10, %v6088_v48, %v6094_v25  ;;  %v5931_v40 = vsel %vm2455_vm10, %v5924_v10, %v5930_v13  ;;  %v6854_v3 = vld [vmem:[#allocation8 + $0x7f0] sm:$0xff]  ;;  %v6118_v57 = vrot.slane %v13826_v63, 6 }
 0x40e   : > { %6317 = vmatprep.mubr.f32.mxu1 %v16365_v50  ;;  %v5936_v12 = vrot.slane %v10053_v39, 6  ;;  %9456 = vmatpush3.msra.mxu1 %v14393_v27  ;;  %16366 = vst [vmem:[#allocation105_spill] sm:$0xff] %v14432_v33  ;;  %v16367_v5 = vld [vmem:[#allocation97_spill] sm:$0xff]  ;;  %v14438_v15 = vsel %vm2455_vm10, %v6096_v34, %v6102_v9  ;;  %v16368_v39 = vld [vmem:[#allocation111_spill] sm:$0xff]  ;;  %v14445_v33 = vsel %vm2455_vm10, %v6094_v25, %v6100_v0  ;;  %v16370_v10 = vld [vmem:[#allocation92_spill] sm:$0xff] }
 0x40f   : > { %9289 = vmatmul.mubr.f32.vlgmr.msra.gmra.mxu0 %v5925_v20  ;;  %9441 = vmatprep.subr.mxu1 %v14415_v44  ;;  %v16369_v50 = vrot.slane %v16368_v39, 6  ;;  %v14448_v20 = vsel %vm2455_vm10, %v6102_v9, %v6108_v55  ;;  %v6853_v26 = vld [vmem:[#allocation8 + $0x7e8] sm:$0xff]  ;;  %v14452_v34 = vsel %vm2455_vm10, %v6100_v0, %v6106_v4  ;;  %v14460_v25 = vsel %vm2455_vm10, %v6106_v4, %v6112_v1  ;;  %v16372_v9 = vld [vmem:[#allocation98_spill] sm:$0xff]  ;;  %v6852_v0 = vld [vmem:[#allocation8 + $0x7e0] sm:$0xff] }
 0x410   : > { %7327 = vmatpush1.msra.mxu0 %v6855_v51  ;;  %9291 = vmatprep.mubr.f32.mxu0 %v5931_v40  ;;  %v14455_v51 = vsel %vm2455_vm10, %v6108_v55, %v6114_v61  ;;  %v5937_v40 = vsel %vm2455_vm10, %v5930_v13, %v5936_v12  ;;  %v16373_v39 = vrot.slane %v16372_v9, 6  ;;  %v14474_v13 = vsel %vm2455_vm10, %v6112_v1, %v6118_v57  ;;  %v14476_v4 = vld [vmem:[#allocation2 + $0x308] sm:$0xff]  ;;  %v6849_v1 = vld [vmem:[#allocation8 + $0x7c8] sm:$0xff] }
 0x411   : > { %v5933_v48 = vsel %vm2455_vm10, %v5926_v2, %v16369_v50  ;;  %7328 = vmatprep.subr.mxu0 %v16370_v10  ;;  %v16371_v2 = vld [vmem:[#allocation104_spill] sm:$0xff]  ;;  %9457 = vmatpush3.msra.mxu1 %v14415_v44 }
 0x412   : > { %6318 = vmatmul.mubr.f32.gmra.mxu1 %v5933_v48  ;;  %7329 = vmatpush1.msra.mxu0 %v6854_v3  ;;  %v5943_v50 = vsel %vm2455_vm10, %v5936_v12, %v16373_v39  ;;  %v16374_v48 = vrot.slane %v16367_v5, 6  ;;  %v6851_v3 = vld [vmem:[#allocation8 + $0x7d8] sm:$0xff]  ;;  %v16380_v9 = vld [vmem:[#allocation112_spill] sm:$0xff] }
 0x413   : > { %6322 = vmatprep.mubr.f32.mxu1 %v16371_v2  ;;  %9292 = vmatmul.mubr.f32.gmra.mxu0 %v5937_v40  ;;  %v16375_v12 = vld [vmem:[#allocation18_spill] sm:$0xff]  ;;  %v16378_v40 = vld [vmem:[#allocation31_spill] sm:$0xff] }
 0x414   : > { %7330 = vmatprep.subr.mxu0 %v16370_v10  ;;  %v14469_v55 = vsel %vm2455_vm10, %v6114_v61, %v16374_v48  ;;  %9294 = vmatprep.mubr.f32.mxu0 %v5943_v50  ;;  %v16376_v10 = vld [vmem:[#allocation30_spill] sm:$0xff]  ;;  %v6848_v2 = vld [vmem:[#allocation8 + $0x7c0] sm:$0xff] }
 0x415   : > { %7331 = vmatpush1.msra.mxu0 %v6853_v26  ;;  %v6850_v61 = vld [vmem:[#allocation8 + $0x7d0] sm:$0xff]  ;;  %v6847_v39 = vld [vmem:[#allocation8 + $0x7b8] sm:$0xff]  ;;  %v16381_v50 = vld [vmem:[#allocation16_spill] sm:$0xff] }
 0x416   : > { %7332 = vmatprep.subr.mxu0 %v14476_v4  ;;  %6323 = vmatmul.mubr.f32.gmra.mxu1 %v13802_v29  ;;  %v16377_v26 = vld [vmem:[#allocation113_spill] sm:$0xff]  ;;  %v16382_v48 = vld [vmem:[#allocation84_spill] sm:$0xff] }
 0x417   : > { %7333 = vmatpush1.msra.mxu0 %v6852_v0  ;;  %6327 = vmatprep.mubr.f32.mxu1 %v16375_v12  ;;  %v16379_v29 = vld [vmem:[#allocation109_spill] sm:$0xff] }
 0x418   : > { %9295 = vmatmul.mubr.f32.gmra.mxu0 %v16376_v10  ;;  %7334 = vmatprep.subr.mxu0 %v14476_v4  ;;  %v6845_v0 = vld [vmem:[#allocation8 + $0x7a8] sm:$0xff]  ;;  %v6842_v12 = vld [vmem:[#allocation8 + $0x790] sm:$0xff] }
 0x419   : > { %9297 = vmatprep.mubr.f32.mxu0 %v16377_v26  ;;  %7335 = vmatpush1.msra.mxu0 %v6851_v3  ;;  %v6843_v3 = vld [vmem:[#allocation8 + $0x798] sm:$0xff]  ;;  %v6841_v10 = vld [vmem:[#allocation8 + $0x788] sm:$0xff] }
 0x41a   : > { %7336 = vmatprep.subr.mxu0 %v14476_v4  ;;  %6328 = vmatmul.mubr.f32.gmra.mxu1 %v16378_v40  ;;  %v6869_v26 = vld [vmem:[#allocation8 + $0x868] sm:$0xff]  ;;  %v16391_v40 = vld [vmem:[#allocation115_spill] sm:$0xff] }
 0x41b   : > { %7337 = vmatpush1.msra.mxu0 %v6850_v61  ;;  %6332 = vmatprep.mubr.f32.mxu1 %v13855_v49  ;;  %v6846_v49 = vld [vmem:[#allocation8 + $0x7b0] sm:$0xff]  ;;  %v6871_v61 = vld [vmem:[#allocation8 + $0x878] sm:$0xff] }
 0x41c   : > { %9298 = vmatmul.mubr.f32.gmra.mxu0 %v16379_v29  ;;  %7338 = vmatprep.subr.mxu0 %v14476_v4  ;;  %v6867_v29 = vld [vmem:[#allocation8 + $0x858] sm:$0xff] }
 0x41d   : > { %9300 = vmatprep.mubr.f32.mxu0 %v16380_v9  ;;  %7339 = vmatpush1.msra.mxu0 %v6849_v1  ;;  %v16390_v1 = vld [vmem:[#allocation61_spill] sm:$0xff]  ;;  %v16394_v9 = vld [vmem:[#allocation95_spill] sm:$0xff] }
 0x41e   : > { %7340 = vmatprep.subr.mxu0 %v14476_v4  ;;  %6333 = vmatmul.mubr.f32.gmra.mxu1 %v13876_v30  ;;  %v16383_v30 = vld [vmem:[#allocation91_spill] sm:$0xff] }
 0x41f   : > { %7341 = vmatpush1.msra.mxu0 %v6848_v2  ;;  %6337 = vmatprep.mubr.f32.mxu1 %v13889_v36  ;;  %v6844_v36 = vld [vmem:[#allocation8 + $0x7a0] sm:$0xff]  ;;  %v6865_v2 = vld [vmem:[#allocation8 + $0x848] sm:$0xff] }
 0x420   : > { %9301 = vmatmul.mubr.f32.gmra.mxu0 %v13862_v42  ;;  %7342 = vmatprep.subr.mxu0 %v14476_v4  ;;  %v16384_v42 = vld [vmem:[#allocation100_spill] sm:$0xff] }
 0x421   : > { %9303 = vmatprep.mubr.f32.mxu0 %v16381_v50  ;;  %7343 = vmatpush1.msra.mxu0 %v6847_v39  ;;  %v16395_v39 = vld [vmem:[#allocation119_spill] sm:$0xff]  ;;  %v9204_v50 = vpop.f32.mrf.mxu1 }
 0x422   : > { %7344 = vmatprep.subr.mxu0 %v14476_v4  ;;  %6338 = vmatmul.mubr.f32.gmra.mxu1 %v13914_v24  ;;  %v16385_v24 = vld [vmem:[#allocation102_spill] sm:$0xff] }
 0x423   : > { %7345 = vmatpush1.msra.mxu0 %v6846_v49  ;;  %6342 = vmatprep.mubr.f32.mxu1 %v16382_v48  ;;  %v16396_v49 = vld [vmem:[#allocation117_spill] sm:$0xff] }
 0x424   : > { %9304 = vmatmul.mubr.f32.gmra.mxu0 %v16383_v30  ;;  %7346 = vmatprep.subr.mxu0 %v14476_v4  ;;  %v16398_v30 = vld [vmem:[#allocation122_spill] sm:$0xff] }
 0x425   : > { %9306 = vmatprep.mubr.f32.mxu0 %v16384_v42  ;;  %7347 = vmatpush1.msra.mxu0 %v6845_v0  ;;  %v16399_v42 = vld [vmem:[#allocation19_spill] sm:$0xff] }
 0x426   : > { %7348 = vmatprep.subr.mxu0 %v14476_v4  ;;  %6343 = vmatmul.mubr.f32.gmra.mxu1 %v13943_v35  ;;  %v6840_v35 = vld [vmem:[#allocation8 + $0x780] sm:$0xff] }
 0x427   : > { %7349 = vmatpush1.msra.mxu0 %v6844_v36  ;;  %6347 = vmatprep.mubr.f32.mxu1 %v13950_v31  ;;  %v16386_v31 = vld [vmem:[#allocation35_spill] sm:$0xff] }
 0x428   : > { %9307 = vmatmul.mubr.f32.gmra.mxu0 %v16385_v24  ;;  %7350 = vmatprep.subr.mxu0 %v14476_v4  ;;  %v6859_v36 = vld [vmem:[#allocation8 + $0x818] sm:$0xff] }
 0x429   : > { %9309 = vmatprep.mubr.f32.mxu0 %v13936_v18  ;;  %7351 = vmatpush1.msra.mxu0 %v6843_v3  ;;  %v16387_v18 = vld [vmem:[#allocation60_spill] sm:$0xff]  ;;  %v14557_v3 = vpop.f32.mrf.mxu1 }
 0x42a   : > { %7352 = vmatprep.subr.mxu0 %v14476_v4  ;;  %6348 = vmatmul.mubr.f32.gmra.mxu1 %v13977_v62  ;;  %v16388_v62 = vld [vmem:[#allocation57_spill] sm:$0xff] }
 0x42b   : > { %7353 = vmatpush1.msra.mxu0 %v6842_v12  ;;  %6352 = vmatprep.mubr.f32.mxu1 %v13984_v23  ;;  %v6870_v23 = vld [vmem:[#allocation8 + $0x870] sm:$0xff]  ;;  %v16400_v12 = vld [vmem:[#allocation120_spill] sm:$0xff] }
 0x42c   : > { %9310 = vmatmul.mubr.f32.gmra.mxu0 %v13963_v6  ;;  %7354 = vmatprep.subr.mxu0 %v14476_v4  ;;  %v16389_v6 = vld [vmem:[#allocation47_spill] sm:$0xff] }
 0x42d   : > { %9312 = vmatprep.mubr.f32.mxu0 %v16386_v31  ;;  %7355 = vmatpush1.msra.mxu0 %v6841_v10  ;;  %v6858_v10 = vld [vmem:[#allocation8 + $0x810] sm:$0xff] }
 0x42e   : > { %7356 = vmatprep.subr.mxu0 %v14476_v4  ;;  %6353 = vmatmul.mubr.f32.gmra.mxu1 %v16387_v18  ;;  %v16402_v18 = vld [vmem:[#allocation89_spill] sm:$0xff] }
 0x42f   : > { %7357 = vmatpush1.msra.mxu0 %v6840_v35  ;;  %6357 = vmatprep.mubr.f32.mxu1 %v14015_v59  ;;  %v6868_v59 = vld [vmem:[#allocation8 + $0x860] sm:$0xff]  ;;  %v16401_v35 = vld [vmem:[#allocation85_spill] sm:$0xff] }
 0x430   : > { %9313 = vmatmul.mubr.f32.gmra.mxu0 %v16388_v62  ;;  %7358 = vmatprep.subr.mxu0 %v14476_v4  ;;  %v16403_v62 = vld [vmem:[#allocation21_spill] sm:$0xff] }
 0x431   : > { %9315 = vmatprep.mubr.f32.mxu0 %v16389_v6  ;;  %7359 = vmatpush2.msra.mxu0 %v6871_v61  ;;  %v6857_v61 = vld [vmem:[#allocation8 + $0x808] sm:$0xff] }
 0x432   : > { %7360 = vmatprep.subr.mxu0 %v14476_v4  ;;  %6358 = vmatmul.mubr.f32.gmra.mxu1 %v14037_v28  ;;  %v16392_v28 = vld [vmem:[#allocation86_spill] sm:$0xff] }
 0x433   : > { %7361 = vmatpush2.msra.mxu0 %v6870_v23  ;;  %6362 = vmatprep.mubr.f32.mxu1 %v14044_v38  ;;  %v6866_v38 = vld [vmem:[#allocation8 + $0x850] sm:$0xff]  ;;  %v9207_v23 = vpop.f32.mrf.mxu1 }
 0x434   : > { %9316 = vmatmul.mubr.f32.gmra.mxu0 %v16390_v1  ;;  %7362 = vmatprep.subr.mxu0 %v14476_v4  ;;  %v5202_v1 = vld [vmem:[#allocation2 + $0xd0] sm:$0x3f] }
 0x435   : > { %9318 = vmatprep.mubr.f32.mxu0 %v16391_v40  ;;  %7363 = vmatpush2.msra.mxu0 %v6869_v26  ;;  %v16404_v26 = vld [vmem:[#allocation17_spill] sm:$0xff] }
 0x436   : > { %7364 = vmatprep.subr.mxu0 %v14476_v4  ;;  %6363 = vmatmul.mubr.f32.gmra.mxu1 %v14071_v14  ;;  %v16393_v14 = vld [vmem:[#allocation116_spill] sm:$0xff] }
 0x437   : > { %7365 = vmatpush2.msra.mxu0 %v6868_v59  ;;  %6367 = vmatprep.mubr.f32.mxu1 %v14082_v43  ;;  %v6864_v43 = vld [vmem:[#allocation8 + $0x840] sm:$0xff] }
 0x438   : > { %9319 = vmatmul.mubr.f32.gmra.mxu0 %v16392_v28  ;;  %7366 = vmatprep.subr.mxu0 %v14476_v4  ;;  %v6856_v59 = vld [vmem:[#allocation8 + $0x800] sm:$0xff]  ;;  %v6729_v28 = vld [vmem:[#allocation2 + $0x3a8] sm:$0xfc] }
 0x439   : > { %9321 = vmatprep.mubr.f32.mxu0 %v14064_v58  ;;  %7367 = vmatpush2.msra.mxu0 %v6867_v29  ;;  %v6863_v58 = vld [vmem:[#allocation8 + $0x838] sm:$0xff]  ;;  %v16405_v29 = vld [vmem:[#allocation20_spill] sm:$0xff] }
 0x43a   : > { %6368 = vmatmul.mubr.f32.gmra.mxu1 %v14107_v21  ;;  %7368 = vmatprep.subr.mxu0 %v14476_v4  ;;  %v14541_v21 = vpop.f32.mrf.mxu0 }
 0x43b   : > { %6372 = vmatprep.mubr.f32.mxu1 %v14114_v37  ;;  %7369 = vmatpush2.msra.mxu0 %v6866_v38  ;;  %v6862_v37 = vld [vmem:[#allocation8 + $0x830] sm:$0xff]  ;;  %v6732_v38 = vld [vmem:[#allocation2 + $0x1b0] sm:$0xff] }
 0x43c   : > { %9322 = vmatmul.mubr.f32.gmra.mxu0 %v16393_v14  ;;  %7370 = vmatprep.subr.mxu0 %v14476_v4  ;;  %v16406_v14 = vld [vmem:[#allocation73_spill] sm:$0xff] }
 0x43d   : > { %9324 = vmatprep.mubr.f32.mxu0 %v14100_v17  ;;  %7371 = vmatpush2.msra.mxu0 %v6865_v2  ;;  %v5378_v17 = vpop.f32.mrf.mxu0 }
 0x43e   : > { %6373 = vmatmul.mubr.f32.gmra.mxu1 %v14139_v54  ;;  %7372 = vmatprep.subr.mxu0 %v14476_v4  ;;  %v6861_v54 = vld [vmem:[#allocation8 + $0x828] sm:$0xff] }
 0x43f   : > { %6377 = vmatprep.mubr.f32.mxu1 %v14146_v7  ;;  %7373 = vmatpush2.msra.mxu0 %v6864_v43  ;;  %v5381_v7 = vpop.f32.mrf.mxu0  ;;  %v16407_v43 = vld [vmem:[#allocation25_spill] sm:$0xff] }
 0x440   : > { %9325 = vmatmul.mubr.f32.gmra.mxu0 %v14122_v11  ;;  %7374 = vmatprep.subr.mxu0 %v14476_v4  ;;  %v6860_v11 = vld [vmem:[#allocation8 + $0x820] sm:$0xff]  ;;  %v14551_v0 = vadd.f32 %v9204_v50, %v5381_v7  ;;  %v6728_v7 = vld [vmem:[#allocation2 + $0xb8] sm:$0xfc] }
 0x441   : > { %9327 = vmatprep.mubr.f32.mxu0 %v14129_v52  ;;  %7375 = vmatpush2.msra.mxu0 %v6863_v58  ;;  %v16397_v52 = vld [vmem:[#allocation118_spill] sm:$0xff]  ;;  %v5383_v48 = vpop.f32.mrf.mxu0  ;;  %v6128_v58 = vrot.slane %v5202_v1, 6  ;;  %v16409_v50 = vld [vmem:[#allocation33_spill] sm:$0xff]  ;;  %v6738_v1 = vld [vmem:[#allocation2 + $0x2b0] sm:$0xff] }
 0x442   : > { %6378 = vmatmul.mubr.f32.gmra.mxu1 %v16394_v9  ;;  %7376 = vmatprep.subr.mxu0 %v14476_v4  ;;  %v16408_v9 = vld [vmem:[#allocation23_spill] sm:$0xff] }
 0x443   : > { %6382 = vmatprep.mubr.f32.mxu1 %v16395_v39  ;;  %7377 = vmatpush2.msra.mxu0 %v6862_v37  ;;  %v14559_v24 = vpop.f32.mrf.mxu0  ;;  %v14575_v37 = vld [vmem:[#allocation8 + $0x8c8] sm:$0xff]  ;;  %v7003_v39 = vrot.slane %v6732_v38, 2 }
 0x444   : > { %9328 = vmatmul.mubr.f32.gmra.mxu0 %v16396_v49  ;;  %7378 = vmatprep.subr.mxu0 %v14476_v4  ;;  %v6731_v49 = vld [vmem:[#allocation2 + $0x2a8] sm:$0xff] }
 0x445   : > { %9330 = vmatprep.mubr.f32.mxu0 %v16397_v52  ;;  %7379 = vmatpush2.msra.mxu0 %v6861_v54  ;;  %v5388_v31 = vpop.f32.mrf.mxu0  ;;  %v7002_v54 = vrot.slane %v6729_v28, 2  ;;  %v14585_v52 = vpop.f32.mrf.mxu1 }
 0x446   : > { %6383 = vmatmul.mubr.f32.gmra.mxu1 %v16398_v30  ;;  %7380 = vmatprep.subr.mxu0 %v14476_v4  ;;  %v16410_v30 = vld [vmem:[#allocation22_spill] sm:$0xff] }
 0x447   : > { %6387 = vmatprep.mubr.f32.mxu1 %v16399_v42  ;;  %7381 = vmatpush2.msra.mxu0 %v6860_v11  ;;  %v5391_v6 = vpop.f32.mrf.mxu0  ;;  %v6735_v11 = vld [vmem:[#allocation2 + $0x2c0] sm:$0xff]  ;;  %v14594_v31 = vld [vmem:[#allocation8 + $0x8b8] sm:$0xff] }
 0x448   : > { %9331 = vmatmul.mubr.f32.gmra.mxu0 %v16400_v12  ;;  %7382 = vmatprep.subr.mxu0 %v14476_v4  ;;  %v14569_v40 = vadd.f32 %v9207_v23, %v5391_v6  ;;  %v16413_v12 = vld [vmem:[#allocation87_spill] sm:$0xff]  ;;  %v7010_v23 = vrot.slane %v6735_v11, 2 }
 0x449   : > { %9333 = vmatprep.mubr.f32.mxu0 %v16401_v35  ;;  %7383 = vmatpush2.msra.mxu0 %v6859_v36  ;;  %v5393_v2 = vpop.f32.mrf.mxu0  ;;  %v16411_v36 = vld [vmem:[#allocation74_spill] sm:$0xff]  ;;  %v7000_v35 = vrot.slane %v6731_v49, 2 }
 0x44a   : > { %6388 = vmatmul.mubr.f32.gmra.mxu1 %v16402_v18  ;;  %7384 = vmatprep.subr.mxu0 %v14476_v4  ;;  %v16412_v42 = vrot.slane %v16411_v36, 6  ;;  %v9210_v18 = vpop.f32.mrf.mxu1  ;;  %v6734_v6 = vld [vmem:[#allocation2 + $0x28] sm:$0xff] }
 0x44b   : > { %6392 = vmatprep.mubr.f32.mxu1 %v16403_v62  ;;  %7385 = vmatpush2.msra.mxu0 %v6858_v10  ;;  %v14577_v17 = vpop.f32.mrf.mxu0  ;;  %v6999_v10 = vrot.slane %v6728_v7, 2  ;;  %v7004_v62 = vsel %vm16414_vm12, %v7002_v54, %v7003_v39  ;;  %v7008_v38 = vrot.slane %v6734_v6, 2  ;;  %vm16436_vm12 = vmmov %vm16415_vm0 }
 0x44c   : > { %9334 = vmatmul.mubr.f32.gmra.mxu0 %v16404_v26  ;;  %7386 = vmatprep.subr.mxu0 %v14476_v4  ;;  %v14612_v54 = vpop.f32.mrf.mxu1 }
 0x44d   : > { %9336 = vmatprep.mubr.f32.mxu0 %v16405_v29  ;;  %7387 = vmatpush2.msra.mxu0 %v6857_v61  ;;  %v5398_v48 = vpop.f32.mrf.mxu0  ;;  %v7001_v28 = vsel %vm16415_vm0, %v6999_v10, %v7000_v35 }
 0x44e   : > { %6393 = vmatmul.mubr.f32.gmra.mxu1 %v16406_v14  ;;  %7388 = vmatprep.subr.mxu0 %v14476_v4  ;;  %v14583_v4 = vld [vmem:[#allocation8 + $0x8c0] sm:$0xff]  ;;  %v7011_v14 = vsel %vm16416_vm14, %v7003_v39, %v7010_v23  ;;  %v9213_v49 = vpop.f32.mrf.mxu1  ;;  %vm16439_vm14 = vmmov %vm16415_vm0 }
 0x44f   : > { %6397 = vmatprep.mubr.f32.mxu1 %v16407_v43  ;;  %7389 = vmatpush2.msra.mxu0 %v6856_v59  ;;  %v5401_v61 = vpop.f32.mrf.mxu0  ;;  %v14601_v59 = vld [vmem:[#allocation8 + $0x8b0] sm:$0xff]  ;;  %v7016_v43 = vrot.slane %v6738_v1, 2 }
 0x450   : > { %9337 = vmatmul.mubr.f32.gmra.mxu0 %v16408_v9  ;;  %9342 = vmatprep.subr.mxu0 %v16346_v8  ;;  %v6129_v8 = vsel %vm2455_vm10, %v16412_v42, %v6128_v58  ;;  %v14598_v26 = vadd.f32 %v9210_v18, %v5401_v61  ;;  %v6737_v58 = vld [vmem:[#allocation2 + $0x1c8] sm:$0xff]  ;;  %v14636_v18 = vpop.f32.mrf.mxu1 }
 0x451   : > { %9339 = vmatprep.mubr.f32.mxu0 %v16409_v50  ;;  %9442 = vmatprep.subr.mxu1 %v14575_v37  ;;  %v5403_v29 = vpop.f32.mrf.mxu0  ;;  %v10055_v9 = vld [vmem:[#allocation8 + $0x8f8] sm:$0xff]  ;;  %v7014_v39 = vrot.slane %v6737_v58, 2  ;;  %v7017_v11 = vsel %vm16418_vm15, %v7010_v23, %v7016_v43  ;;  %vm16443_vm15 = vmmov %vm16415_vm0 }
 0x452   : > { %6398 = vmatmul.mubr.f32.gmra.mxu1 %v16410_v30  ;;  %v6740_v30 = vld [vmem:[#allocation2 + $0x60] sm:$0xff]  ;;  %v16421_v61 = vld [vmem:[#allocation99_spill] sm:$0xff]  ;;  %v9216_v6 = vpop.f32.mrf.mxu1 }
 0x453   : > { %6402 = vmatprep.mubr.f32.mxu1 %v16413_v12  ;;  %9458 = vmatpush3.msra.mxu1 %v14575_v37  ;;  %v14608_v2 = vpop.f32.mrf.mxu0 }
 0x454   : > { %9340 = vmatmul.mubr.f32.gmra.mxu0 %v6129_v8  ;;  %9443 = vmatprep.subr.mxu1 %v14583_v4 }
 0x455   : > { %7390 = vmatprep.mubr.f32.mxu0 %v7004_v62  ;;  %9459 = vmatpush3.msra.mxu1 %v14583_v4  ;;  %v5408_v7 = vpop.f32.mrf.mxu0  ;;  %v16423_v62 = vld [vmem:[#allocation26_spill] sm:$0xff] }
 0x456   : > { %6403 = vmatmul.mubr.f32.gmra.mxu1 %v14298_v47  ;;  %9444 = vmatprep.subr.mxu1 %v14594_v31  ;;  %v6741_v47 = vld [vmem:[#allocation2 + $0xc8] sm:$0xff] }
 0x457   : > { %6407 = vmatprep.mubr.f32.mxu1 %v14305_v22  ;;  %9460 = vmatpush3.msra.mxu1 %v14594_v31  ;;  %v7009_v22 = vsel %vm16417_vm11, %v7000_v35, %v7008_v38  ;;  %v5411_v50 = vpop.f32.mrf.mxu0  ;;  %v7022_v48 = vrot.slane %v6741_v47, 2  ;;  %v6743_v35 = vld [vmem:[#allocation2 + $0x360] sm:$0xff]  ;;  %v16426_v47 = vld [vmem:[#allocation27_spill] sm:$0xff]  ;;  %vm16441_vm11 = vmmov %vm16415_vm0 }
 0x458   : > { %7391 = vmatmul.mubr.f32.vlgmr.msra.gmra.mxu0 %v7001_v28  ;;  %9445 = vmatprep.subr.mxu1 %v14601_v59  ;;  %v14621_v36 = vadd.f32 %v9213_v49, %v5411_v50  ;;  %v7026_v23 = vrot.slane %v6743_v35, 2  ;;  %v6746_v28 = vld [vmem:[#allocation2 + $0x278] sm:$0xff]  ;;  %v6749_v50 = vld [vmem:[#allocation2 + $0x120] sm:$0xff] }
 0x459   : > { %9343 = vmatpush3.msra.mxu0 %v10055_v9  ;;  %7395 = vmatprep.mubr.f32.mxu0 %v7011_v14  ;;  %v5413_v42 = vpop.f32.mrf.mxu0  ;;  %v7023_v12 = vsel %vm16420_vm7, %v7016_v43, %v7022_v48  ;;  %v6750_v14 = vld [vmem:[#allocation2 + $0x8] sm:$0xff]  ;;  %v14648_v43 = vld [vmem:[#allocation8 + $0x8a0] sm:$0xff]  ;;  %v7032_v7 = vrot.slane %v6746_v28, 2  ;;  %vm16447_vm7 = vmmov %vm16415_vm0 }
 0x45a   : > { %6408 = vmatmul.mubr.f32.gmra.mxu1 %v14316_v32  ;;  %9344 = vmatprep.subr.mxu0 %v14341_v60  ;;  %v6744_v32 = vld [vmem:[#allocation2 + $0xe8] sm:$0xff]  ;;  %v7040_v49 = vrot.slane %v6750_v14, 2 }
 0x45b   : > { %6412 = vmatprep.mubr.f32.mxu1 %v14321_v56  ;;  %9345 = vmatpush3.msra.mxu0 %v14341_v60  ;;  %v7015_v56 = vsel %vm16419_vm4, %v7008_v38, %v7014_v39  ;;  %v7020_v60 = vrot.slane %v6740_v30, 2  ;;  %v14629_v8 = vpop.f32.mrf.mxu0  ;;  %v7028_v10 = vrot.slane %v6744_v32, 2  ;;  %v16428_v32 = vld [vmem:[#allocation101_spill] sm:$0xff]  ;;  %v7033_v42 = vsel %vm16429_vm8, %v7026_v23, %v7032_v7  ;;  %vm16445_vm4 = vmmov %vm16415_vm0 }
 0x45c   : > { %7396 = vmatmul.mubr.f32.gmra.mxu0 %v7009_v22  ;;  %9346 = vmatprep.subr.mxu0 %v14357_v19  ;;  %v14655_v22 = vpop.f32.mrf.mxu1  ;;  %vm16452_vm8 = vmmov %vm16415_vm0 }
 0x45d   : > { %7400 = vmatprep.mubr.f32.mxu0 %v7017_v11  ;;  %9347 = vmatpush3.msra.mxu0 %v14357_v19  ;;  %v14634_v19 = vld [vmem:[#allocation8 + $0x8a8] sm:$0xff]  ;;  %v7027_v9 = vsel %vm16425_vm2, %v7020_v60, %v7026_v23  ;;  %v14662_v11 = vld [vmem:[#allocation8 + $0x898] sm:$0xff]  ;;  %vm16450_vm2 = vmmov %vm16415_vm0 }
 0x45e   : > { %6413 = vmatmul.mubr.f32.gmra.mxu1 %v14326_v46  ;;  %9348 = vmatprep.subr.mxu0 %v14374_v53  ;;  %v6747_v46 = vld [vmem:[#allocation2 + $0x128] sm:$0xff]  ;;  %v9219_v30 = vpop.f32.mrf.mxu1 }
 0x45f   : > { %6417 = vmatprep.mubr.f32.mxu1 %v14329_v16  ;;  %9349 = vmatpush3.msra.mxu0 %v14374_v53  ;;  %v5418_v16 = vpop.f32.mrf.mxu0  ;;  %v7021_v53 = vsel %vm16422_vm6, %v7014_v39, %v7020_v60  ;;  %v7034_v29 = vrot.slane %v6747_v46, 2  ;;  %v7038_v60 = vrot.slane %v6749_v50, 2  ;;  %v6752_v46 = vld [vmem:[#allocation2 + $0x310] sm:$0xff]  ;;  %vm16448_vm6 = vmmov %vm16415_vm0 }
 0x460   : > { %7401 = vmatmul.mubr.f32.gmra.mxu0 %v7015_v56  ;;  %9350 = vmatprep.subr.mxu0 %v14393_v27  ;;  %v16430_v56 = vld [vmem:[#allocation93_spill] sm:$0xff] }
 0x461   : > { %7405 = vmatprep.mubr.f32.mxu0 %v7023_v12  ;;  %9351 = vmatpush3.msra.mxu0 %v14393_v27  ;;  %v5421_v1 = vpop.f32.mrf.mxu0  ;;  %v7029_v27 = vsel %vm16424_vm1, %v7022_v48, %v7028_v10  ;;  %v14669_v12 = vld [vmem:[#allocation8 + $0x890] sm:$0xff]  ;;  %vm16449_vm1 = vmmov %vm16415_vm0 }
 0x462   : > { %6418 = vmatmul.mubr.f32.gmra.mxu1 %v16421_v61  ;;  %9352 = vmatprep.subr.mxu0 %v14415_v44  ;;  %v14645_v38 = vadd.f32 %v9216_v6, %v5421_v1  ;;  %v6756_v61 = vld [vmem:[#allocation2 + $0xd8] sm:$0xff]  ;;  %v16432_v6 = vld [vmem:[#allocation103_spill] sm:$0xff]  ;;  %v7039_v1 = vsel %vm16433_vm3, %v7032_v7, %v7038_v60  ;;  %vm16454_vm3 = vmmov %vm16415_vm0 }
 0x463   : > { %6422 = vmatprep.mubr.f32.mxu1 %v16423_v62  ;;  %9461 = vmatpush3.msra.mxu1 %v14601_v59  ;;  %v5423_v58 = vpop.f32.mrf.mxu0  ;;  %v14678_v62 = vpop.f32.mrf.mxu1  ;;  %v14690_v7 = vld [vmem:[#allocation8 + $0x880] sm:$0xff] }
 0x464   : > { %7406 = vmatmul.mubr.f32.gmra.mxu0 %v7021_v53  ;;  %9446 = vmatprep.subr.mxu1 %v14634_v19  ;;  %v14676_v53 = vld [vmem:[#allocation8 + $0x888] sm:$0xff]  ;;  %v7052_v58 = vrot.slane %v6756_v61, 2 }
 0x465   : > { %7410 = vmatprep.mubr.f32.mxu0 %v7029_v27  ;;  %9353 = vmatpush3.msra.mxu0 %v14415_v44  ;;  %v14657_v39 = vpop.f32.mrf.mxu0  ;;  %v7035_v44 = vsel %vm16427_vm13, %v7028_v10, %v7034_v29  ;;  %v7044_v27 = vrot.slane %v6752_v46, 2  ;;  %v9222_v14 = vpop.f32.mrf.mxu1  ;;  %v16438_v46 = vld [vmem:[#allocation29_spill] sm:$0xff]  ;;  %vm16451_vm13 = vmmov %vm16415_vm0 }
 0x466   : > { %6423 = vmatmul.mubr.f32.gmra.mxu1 %v14348_v45  ;;  %9354 = vmatprep.subr.mxu0 %v14575_v37  ;;  %v6753_v45 = vld [vmem:[#allocation2 + $0xa0] sm:$0xff] }
 0x467   : > { %6427 = vmatprep.mubr.f32.mxu1 %v16426_v47  ;;  %9462 = vmatpush3.msra.mxu1 %v14634_v19  ;;  %v5428_v48 = vpop.f32.mrf.mxu0  ;;  %v7046_v35 = vrot.slane %v6753_v45, 2  ;;  %v6759_v47 = vld [vmem:[#allocation2 + $0x3e8] sm:$0xff]  ;;  %v7045_v50 = vsel %vm16436_vm12, %v7038_v60, %v7044_v27  ;;  %vm16457_vm12 = vmmov %vm16415_vm0 }
 0x468   : > { %7411 = vmatmul.mubr.f32.gmra.mxu0 %v7027_v9  ;;  %9447 = vmatprep.subr.mxu1 %v14648_v43  ;;  %v6755_v9 = vld [vmem:[#allocation2 + $0x228] sm:$0xff] }
 0x469   : > { %7415 = vmatprep.mubr.f32.mxu0 %v7035_v44  ;;  %9355 = vmatpush3.msra.mxu0 %v14575_v37  ;;  %v5431_v10 = vpop.f32.mrf.mxu0  ;;  %v7041_v37 = vsel %vm16431_vm9, %v7034_v29, %v7040_v49  ;;  %v7047_v28 = vsel %vm16434_vm5, %v7040_v49, %v7046_v35  ;;  %v16435_v44 = vld [vmem:[#allocation24_spill] sm:$0xff]  ;;  %v16437_v45 = vld [vmem:[#allocation110_spill] sm:$0xff]  ;;  %v7050_v49 = vrot.slane %v6755_v9, 2  ;;  %vm16453_vm9 = vmmov %vm16415_vm0 }
 0x46a   : > { %6428 = vmatmul.mubr.f32.gmra.mxu1 %v16428_v32  ;;  %9356 = vmatprep.subr.mxu0 %v14583_v4  ;;  %v14673_v16 = vadd.f32 %v9219_v30, %v5431_v10  ;;  %v14697_v30 = vpop.f32.mrf.mxu1  ;;  %v7058_v32 = vrot.slane %v6759_v47, 2  ;;  %v6762_v10 = vld [vmem:[#allocation2 + $0x118] sm:$0xff]  ;;  %v6765_v9 = vld [vmem:[#allocation2 + $0x1e8] sm:$0xff]  ;;  %vm16456_vm5 = vmmov %vm16415_vm0 }
 0x46b   : > { %6432 = vmatprep.mubr.f32.mxu1 %v16430_v56  ;;  %9463 = vmatpush3.msra.mxu1 %v14648_v43  ;;  %v5433_v23 = vpop.f32.mrf.mxu0  ;;  %v7051_v61 = vsel %vm16439_vm14, %v7044_v27, %v7050_v49  ;;  %v16442_v27 = vld [vmem:[#allocation106_spill] sm:$0xff]  ;;  %vm16458_vm14 = vmmov %vm16415_vm0 }
 0x46c   : > { %7416 = vmatmul.mubr.f32.gmra.mxu0 %v7033_v42  ;;  %9448 = vmatprep.subr.mxu1 %v14662_v11  ;;  %v6758_v42 = vld [vmem:[#allocation2 + $0x370] sm:$0xff] }
 0x46d   : > { %7420 = vmatprep.mubr.f32.mxu0 %v7041_v37  ;;  %9464 = vmatpush3.msra.mxu1 %v14662_v11  ;;  %v14685_v29 = vpop.f32.mrf.mxu0  ;;  %v9225_v37 = vpop.f32.mrf.mxu1  ;;  %v16440_v23 = vld [vmem:[#allocation28_spill] sm:$0xff] }
 0x46e   : > { %6433 = vmatmul.mubr.f32.gmra.mxu1 %v16432_v6  ;;  %9449 = vmatprep.subr.mxu1 %v14669_v12 }
 0x46f   : > { %6437 = vmatprep.mubr.f32.mxu1 %v14389_v41  ;;  %9465 = vmatpush3.msra.mxu1 %v14669_v12  ;;  %v5438_v41 = vpop.f32.mrf.mxu0 }
 0x470   : > { %7421 = vmatmul.mubr.f32.gmra.mxu0 %v7039_v1  ;;  %9450 = vmatprep.subr.mxu1 %v14676_v53  ;;  %v7059_v1 = vsel %vm16441_vm11, %v7052_v58, %v7058_v32  ;;  %vm16459_vm11 = vmmov %vm16415_vm0 }
 0x471   : > { %7425 = vmatprep.mubr.f32.mxu0 %v7047_v28  ;;  %9357 = vmatpush3.msra.mxu0 %v14583_v4  ;;  %v5441_v48 = vpop.f32.mrf.mxu0  ;;  %v7053_v4 = vsel %vm16415_vm0, %v7046_v35, %v7052_v58  ;;  %v7056_v35 = vrot.slane %v6758_v42, 2  ;;  %v7064_v28 = vrot.slane %v6762_v10, 2  ;;  %v6768_v10 = vld [vmem:[#allocation2 + $0x198] sm:$0xff] }
 0x472   : > { %6438 = vmatmul.mubr.f32.gmra.mxu1 %v16435_v44  ;;  %9358 = vmatprep.subr.mxu0 %v14594_v31  ;;  %v14701_v56 = vadd.f32 %v9222_v14, %v5441_v48  ;;  %v6761_v14 = vld [vmem:[#allocation2 + $0x140] sm:$0xff]  ;;  %v16444_v44 = vld [vmem:[#allocation79_spill] sm:$0xff]  ;;  %v7070_v48 = vrot.slane %v6765_v9, 2 }
 0x473   : > { %6442 = vmatprep.mubr.f32.mxu1 %v16437_v45  ;;  %9466 = vmatpush3.msra.mxu1 %v14676_v53  ;;  %v5443_v60 = vpop.f32.mrf.mxu0  ;;  %v7057_v41 = vsel %vm16443_vm15, %v7050_v49, %v7056_v35  ;;  %v7065_v45 = vsel %vm16445_vm4, %v7058_v32, %v7064_v28  ;;  %vm16461_vm15 = vmmov %vm16415_vm0 }
 0x474   : > { %7426 = vmatmul.mubr.f32.gmra.mxu0 %v7045_v50  ;;  %9451 = vmatprep.subr.mxu1 %v14690_v7  ;;  %v7062_v50 = vrot.slane %v6761_v14, 2  ;;  %v16446_v60 = vld [vmem:[#allocation105_spill] sm:$0xff]  ;;  %v6771_v14 = vld [vmem:[#allocation2 + $0x2f0] sm:$0xff]  ;;  %vm16462_vm4 = vmmov %vm16415_vm0 }
 0x475   : > { %7430 = vmatprep.mubr.f32.mxu0 %v7053_v4  ;;  %9467 = vmatpush3.msra.mxu1 %v14690_v7  ;;  %v14709_v6 = vpop.f32.mrf.mxu0  ;;  %v6764_v4 = vld [vmem:[#allocation2 + $0x2c8] sm:$0xff] }
 0x476   : > { %6443 = vmatmul.mubr.f32.gmra.mxu1 %v16438_v46  ;;  %9359 = vmatpush3.msra.mxu0 %v14594_v31  ;;  %v14713_v31 = vpop.f32.mrf.mxu1  ;;  %v7068_v32 = vrot.slane %v6764_v4, 2  ;;  %v6773_v4 = vld [vmem:[#allocation2 + $0x368] sm:$0xff] }
 0x477   : > { %6447 = vmatprep.mubr.f32.mxu1 %v16440_v23  ;;  %9360 = vmatprep.subr.mxu0 %v14601_v59  ;;  %v5448_v47 = vpop.f32.mrf.mxu0  ;;  %v7076_v23 = vrot.slane %v6768_v10, 2 }
 0x478   : > { %7431 = vmatmul.mubr.f32.gmra.mxu0 %v7051_v61  ;;  %v7082_v47 = vrot.slane %v6771_v14, 2 }
 0x479   : > { %7435 = vmatprep.mubr.f32.mxu0 %v7059_v1  ;;  %9361 = vmatpush3.msra.mxu0 %v14601_v59  ;;  %v5451_v58 = vpop.f32.mrf.mxu0  ;;  %v9228_v59 = vpop.f32.mrf.mxu1  ;;  %v6767_v1 = vld [vmem:[#allocation2 + $0x90] sm:$0xff]  ;;  %v7077_v9 = vsel %vm16450_vm2, %v7070_v48, %v7076_v23  ;;  %vm16466_vm2 = vmmov %vm16415_vm0 }
 0x47a   : > { %6448 = vmatmul.mubr.f32.gmra.mxu1 %v16442_v27  ;;  %9362 = vmatprep.subr.mxu0 %v14634_v19  ;;  %v14722_v42 = vadd.f32 %v9225_v37, %v5451_v58  ;;  %v7071_v37 = vsel %vm16448_vm6, %v7064_v28, %v7070_v48  ;;  %vm16464_vm6 = vmmov %vm16415_vm0 }
 0x47b   : > { %6452 = vmatprep.mubr.f32.mxu1 %v16444_v44  ;;  %9363 = vmatpush3.msra.mxu0 %v14634_v19  ;;  %v5453_v49 = vpop.f32.mrf.mxu0  ;;  %v7063_v19 = vsel %vm16447_vm7, %v7056_v35, %v7062_v50  ;;  %v5701_v61 = vpop.f32.mrf.mxu1  ;;  %vm16463_vm7 = vmmov %vm16415_vm0 }
 0x47c   : > { %7436 = vmatmul.mubr.f32.gmra.mxu0 %v7057_v41  ;;  %9364 = vmatprep.subr.mxu0 %v14648_v43  ;;  %v6770_v41 = vld [vmem:[#allocation2 + $0x20] sm:$0xff] }
 0x47d   : > { %7440 = vmatprep.mubr.f32.mxu0 %v7065_v45  ;;  %9365 = vmatpush3.msra.mxu0 %v14648_v43  ;;  %v5456_v46 = vpop.f32.mrf.mxu0  ;;  %v9231_v27 = vpop.f32.mrf.mxu1  ;;  %v7083_v45 = vsel %vm16452_vm8, %v7076_v23, %v7082_v47  ;;  %vm16468_vm8 = vmmov %vm16415_vm0 }
 0x47e   : > { %6453 = vmatmul.mubr.f32.gmra.mxu1 %v16446_v60  ;;  %9366 = vmatprep.subr.mxu0 %v14662_v11  ;;  %v14732_v43 = vadd.f32 %v5701_v61, %v5456_v46  ;;  %v5200_v60 = vld [vmem:[#allocation2 + $0x58] sm:$0x3f] }
 0x47f   : > { %6457 = vmatprep.mubr.f32.mxu1 %v14438_v15  ;;  %9367 = vmatpush3.msra.mxu0 %v14662_v11  ;;  %v5458_v35 = vpop.f32.mrf.mxu0  ;;  %v7069_v15 = vsel %vm16449_vm1, %v7062_v50, %v7068_v32  ;;  %v7074_v11 = vrot.slane %v6767_v1, 2  ;;  %v5201_v50 = vld [vmem:[#allocation2 + $0x30] sm:$0x3f]  ;;  %v5711_v48 = vpop.f32.mrf.mxu1  ;;  %v6776_v1 = vld [vmem:[#allocation2] sm:$0xff]  ;;  %vm16465_vm1 = vmmov %vm16415_vm0 }
 0x480   : > { %7441 = vmatmul.mubr.f32.gmra.mxu0 %v7063_v19  ;;  %9368 = vmatprep.subr.mxu0 %v14669_v12  ;;  %v7086_v19 = vrot.slane %v6773_v4, 2  ;;  %v6780_v35 = vld [vmem:[#allocation2 + $0x340] sm:$0xff] }
 0x481   : > { %7445 = vmatprep.mubr.f32.mxu0 %v7071_v37  ;;  %9369 = vmatpush3.msra.mxu0 %v14669_v12  ;;  %v5461_v28 = vpop.f32.mrf.mxu0  ;;  %v9234_v23 = vpop.f32.mrf.mxu1 }
 0x482   : > { %6458 = vmatmul.mubr.f32.gmra.mxu1 %v14445_v33  ;;  %9370 = vmatprep.subr.mxu0 %v14676_v53  ;;  %v14742_v12 = vadd.f32 %v9228_v59, %v5461_v28  ;;  %v6774_v33 = vld [vmem:[#allocation2 + $0x1a0] sm:$0xff] }
 0x483   : > { %6462 = vmatprep.mubr.f32.mxu1 %v14448_v20  ;;  %9371 = vmatpush3.msra.mxu0 %v14676_v53  ;;  %v5463_v44 = vpop.f32.mrf.mxu0  ;;  %v7075_v20 = vsel %vm16451_vm13, %v7068_v32, %v7074_v11  ;;  %v7080_v53 = vrot.slane %v6770_v41, 2  ;;  %v7088_v59 = vrot.slane %v6774_v33, 2  ;;  %v6757_v32 = vld [vmem:[#allocation2 + $0x330] sm:$0xff]  ;;  %v7092_v33 = vrot.slane %v6776_v1, 2  ;;  %v6782_v1 = vld [vmem:[#allocation2 + $0x68] sm:$0xff]  ;;  %vm16467_vm13 = vmmov %vm16415_vm0 }
 0x484   : > { %7446 = vmatmul.mubr.f32.gmra.mxu0 %v7069_v15  ;;  %9372 = vmatprep.subr.mxu0 %v14690_v7  ;;  %v14757_v15 = vld [vmem:[#allocation2 + $0x350] sm:$0xff] }
 0x485   : > { %7450 = vmatprep.mubr.f32.mxu0 %v7077_v9  ;;  %9373 = vmatpush3.msra.mxu0 %v14690_v7  ;;  %v5466_v58 = vpop.f32.mrf.mxu0  ;;  %v6777_v7 = vld [vmem:[#allocation2 + $0x220] sm:$0xff]  ;;  %v7089_v37 = vsel %vm16454_vm3, %v7082_v47, %v7088_v59  ;;  %v7054_v9 = vrot.slane %v6757_v32, 2  ;;  %v6760_v41 = vld [vmem:[#allocation2 + $0x270] sm:$0xff]  ;;  %v7087_v47 = vsel %vm16456_vm5, %v7080_v53, %v7086_v19  ;;  %v6769_v32 = vld [vmem:[#allocation2 + $0x1b8] sm:$0xff] }
 0x486   : > { %6463 = vmatmul.mubr.f32.gmra.mxu1 %v14452_v34  ;;  %v14749_v10 = vadd.f32 %v5711_v48, %v5466_v58  ;;  %v6126_v34 = vrot.slane %v5201_v50, 6  ;;  %v7094_v61 = vrot.slane %v6777_v7, 2  ;;  %v5721_v50 = vpop.f32.mrf.mxu1  ;;  %v7100_v58 = vrot.slane %v6780_v35, 2  ;;  %vm16470_vm3 = vmmov %vm16415_vm0 }
 0x487   : > { %6467 = vmatprep.mubr.f32.mxu1 %v14455_v51  ;;  %v5468_v49 = vpop.f32.mrf.mxu0  ;;  %v7081_v51 = vsel %vm16453_vm9, %v7074_v11, %v7080_v53  ;;  %v6783_v53 = vld [vmem:[#allocation2 + $0x358] sm:$0xff]  ;;  %v7060_v4 = vrot.slane %v6760_v41, 2  ;;  %v7078_v41 = vrot.slane %v6769_v32, 2  ;;  %vm16469_vm9 = vmmov %vm16415_vm0 }
 0x488   : > { %7451 = vmatmul.mubr.f32.gmra.mxu0 %v7075_v20  ;;  %v7095_v20 = vsel %vm16457_vm12, %v7088_v59, %v7094_v61  ;;  %v7101_v63 = vsel %vm16459_vm11, %v7094_v61, %v7100_v58  ;;  %v6775_v61 = vld [vmem:[#allocation2 + $0x38] sm:$0xff]  ;;  %vm16471_vm5 = vmmov %vm16415_vm0 }
 0x489   : > { %7455 = vmatprep.mubr.f32.mxu0 %v7083_v45  ;;  %v5471_v46 = vpop.f32.mrf.mxu0  ;;  %v6779_v45 = vld [vmem:[#allocation2 + $0x3d8] sm:$0xff]  ;;  %vm16472_vm12 = vmmov %vm16415_vm0 }
 0x48a   : > { %6468 = vmatmul.mubr.f32.gmra.mxu1 %v14460_v25  ;;  %v14755_v14 = vadd.f32 %v9231_v27, %v5471_v46  ;;  %v6124_v25 = vrot.slane %v5200_v60, 6  ;;  %v6763_v27 = vld [vmem:[#allocation2 + $0x240] sm:$0xff]  ;;  %v7093_v60 = vsel %vm16458_vm14, %v7086_v19, %v7092_v33  ;;  %vm16473_vm14 = vmmov %vm16415_vm0 }
 0x48b   : > { %6472 = vmatprep.mubr.f32.mxu1 %v14469_v55  ;;  %v5473_v28 = vpop.f32.mrf.mxu0  ;;  %v16455_v55 = vrot.slane %v16367_v5, 6  ;;  %v7066_v49 = vrot.slane %v6763_v27, 2  ;;  %vm16474_vm11 = vmmov %vm16415_vm0 }
 0x48c   : > { %7456 = vmatmul.mubr.f32.gmra.mxu0 %v7081_v51  ;;  %v6125_v48 = vsel %vm2455_vm10, %v6118_v57, %v6124_v25  ;;  %v7098_v51 = vrot.slane %v6779_v45, 2  ;;  %v7106_v57 = vrot.slane %v6783_v53, 2  ;;  %v6786_v28 = vld [vmem:[#allocation2 + $0x260] sm:$0xff] }
 0x48d   : > { %7460 = vmatprep.mubr.f32.mxu0 %v7089_v37  ;;  %v6127_v11 = vsel %vm2455_vm10, %v16455_v55, %v6126_v34  ;;  %v5476_v44 = vpop.f32.mrf.mxu0  ;;  %v6766_v34 = vld [vmem:[#allocation2 + $0x3a0] sm:$0xff]  ;;  %v9237_v37 = vpop.f32.mrf.mxu1  ;;  %vm16460_vm10 = vmmov %vm16415_vm0  ;;  %v7067_v19 = vsel %vm16461_vm15, %v7060_v4, %v7066_v49  ;;  %v7112_v45 = vrot.slane %v6786_v28, 2 }
 0x48e   : > { %6473 = vmatmul.mubr.f32.gmra.mxu1 %v14474_v13  ;;  %v15698_v13 = vrot.slane %v14757_v15, 2  ;;  %v14766_v5 = vadd.f32 %v5721_v50, %v5476_v44  ;;  %v7061_v25 = vsel %vm16460_vm10, %v7054_v9, %v7060_v4  ;;  %v7072_v55 = vrot.slane %v6766_v34, 2  ;;  %v6789_v4 = vld [vmem:[#allocation2 + $0x298] sm:$0xff]  ;;  %vm16475_vm10 = vmmov %vm16415_vm0 }
 0x48f   : > { %6477 = vmatprep.mubr.f32.mxu1 %v6127_v11  ;;  %v5478_v7 = vpop.f32.mrf.mxu0  ;;  %v7099_v27 = vsel %vm16462_vm4, %v7092_v33, %v7098_v51  ;;  %v7104_v44 = vrot.slane %v6782_v1, 2  ;;  %v5731_v50 = vpop.f32.mrf.mxu1  ;;  %v7090_v34 = vrot.slane %v6775_v61, 2  ;;  %v7113_v1 = vsel %vm16467_vm13, %v7106_v57, %v7112_v45  ;;  %vm16476_vm15 = vmmov %vm16415_vm0 }
 0x490   : > { %7461 = vmatmul.mubr.f32.gmra.mxu0 %v7087_v47  ;;  %v7055_v59 = vsel %vm16415_vm0, %v15698_v13, %v7054_v9  ;;  %v6772_v47 = vld [vmem:[#allocation2 + $0x10] sm:$0xff]  ;;  %v6785_v9 = vld [vmem:[#allocation2 + $0x98] sm:$0xff]  ;;  %v7073_v53 = vsel %vm16464_vm6, %v7066_v49, %v7072_v55  ;;  %v7079_v33 = vsel %vm16465_vm1, %v7072_v55, %v7078_v41  ;;  %vm16477_vm4 = vmmov %vm16415_vm0 }
 0x491   : > { %7465 = vmatprep.mubr.f32.mxu0 %v7095_v20  ;;  %v5481_v46 = vpop.f32.mrf.mxu0  ;;  %v7084_v7 = vrot.slane %v6772_v47, 2  ;;  %v7105_v32 = vsel %vm16466_vm2, %v7098_v51, %v7104_v44  ;;  %v9240_v28 = vpop.f32.mrf.mxu1  ;;  %v6788_v49 = vld [vmem:[#allocation2 + $0x1d8] sm:$0xff]  ;;  %vm16479_vm6 = vmmov %vm16415_vm0 }
 0x492   : > { %6478 = vmatmul.mubr.f32.gmra.mxu1 %v6125_v48  ;;  %v14776_v35 = vadd.f32 %v9234_v23, %v5481_v46  ;;  %v7107_v23 = vsel %vm16463_vm7, %v7100_v58, %v7106_v57  ;;  %v7110_v46 = vrot.slane %v6785_v9, 2  ;;  %v6781_v58 = vld [vmem:[#allocation2 + $0x100] sm:$0xff]  ;;  %v6792_v55 = vld [vmem:[#allocation2 + $0x2f8] sm:$0xff]  ;;  %v6787_v57 = vld [vmem:[#allocation2 + $0x1f0] sm:$0xff] }
 0x493   : > { %9386 = vmatprep.mubr.f32.mxu1 %v7055_v59  ;;  %v5483_v11 = vpop.f32.mrf.mxu0  ;;  %v7091_v51 = vsel %vm16469_vm9, %v7084_v7, %v7090_v34  ;;  %v7102_v61 = vrot.slane %v6781_v58, 2  ;;  %v7114_v58 = vrot.slane %v6787_v57, 2  ;;  %vm16478_vm7 = vmmov %vm16415_vm0 }
 0x494   : > { %7466 = vmatmul.mubr.f32.gmra.mxu0 %v7093_v60  ;;  %v6778_v60 = vld [vmem:[#allocation2 + $0x1f8] sm:$0xff]  ;;  %vm16480_vm1 = vmmov %vm16415_vm0 }
 0x495   : > { %7470 = vmatprep.mubr.f32.mxu0 %v7101_v63  ;;  %v5486_v20 = vpop.f32.mrf.mxu0  ;;  %v7096_v47 = vrot.slane %v6778_v60, 2  ;;  %vm16481_vm2 = vmmov %vm16415_vm0 }
 0x496   : > { %9387 = vmatmul.mubr.f32.vlgmr.msra.gmra.mxu1 %v7061_v25  ;;  %v14782_v48 = vadd.f32 %v5731_v50, %v5486_v20  ;;  %v7118_v25 = vrot.slane %v6789_v4, 2  ;;  %v6784_v20 = vld [vmem:[#allocation2 + $0x78] sm:$0xff]  ;;  %v7116_v50 = vrot.slane %v6788_v49, 2  ;;  %v7124_v4 = vrot.slane %v6792_v55, 2  ;;  %vm16482_vm13 = vmmov %vm16415_vm0 }
 0x497   : > { %9389 = vmatprep.mubr.f32.mxu1 %v7067_v19  ;;  %v5488_v59 = vpop.f32.mrf.mxu0  ;;  %v7085_v19 = vsel %vm16468_vm8, %v7078_v41, %v7084_v7  ;;  %v6791_v41 = vld [vmem:[#allocation2 + $0x158] sm:$0xff]  ;;  %v7108_v60 = vrot.slane %v6784_v20, 2  ;;  %vm16483_vm8 = vmmov %vm16415_vm0 }
 0x498   : > { %7471 = vmatmul.mubr.f32.gmra.mxu0 %v7099_v27  ;;  %v6795_v7 = vld [vmem:[#allocation2 + $0x398] sm:$0xff]  ;;  %v7122_v49 = vrot.slane %v6791_v41, 2  ;;  %v7125_v55 = vsel %vm16474_vm11, %v7118_v25, %v7124_v4  ;;  %vm16484_vm9 = vmmov %vm16415_vm0 }
 0x499   : > { %7475 = vmatprep.mubr.f32.mxu0 %v7107_v23  ;;  %v5491_v63 = vpop.f32.mrf.mxu0  ;;  %v7111_v23 = vsel %vm16470_vm3, %v7104_v44, %v7110_v46  ;;  %v7103_v44 = vsel %vm16415_vm0, %v7096_v47, %v7102_v61  ;;  %v7109_v20 = vsel %vm16475_vm10, %v7102_v61, %v7108_v60  ;;  %v6797_v61 = vld [vmem:[#allocation2 + $0x148] sm:$0xff]  ;;  %vm16485_vm3 = vmmov %vm16415_vm0 }
 0x49a   : > { %9390 = vmatmul.mubr.f32.gmra.mxu1 %v7073_v53  ;;  %v14788_v11 = vadd.f32 %v9237_v37, %v5491_v63  ;;  %v7119_v37 = vsel %vm16471_vm5, %v7112_v45, %v7118_v25  ;;  %v5741_v53 = vpop.f32.mrf.mxu1  ;;  %v6790_v63 = vld [vmem:[#allocation2 + $0x88] sm:$0xff]  ;;  %v6793_v45 = vld [vmem:[#allocation2 + $0x230] sm:$0xff]  ;;  %v7123_v41 = vsel %vm16477_vm4, %v7116_v50, %v7122_v49  ;;  %v6799_v25 = vld [vmem:[#allocation2 + $0x180] sm:$0xff] }
 0x49b   : > { %9392 = vmatprep.mubr.f32.mxu1 %v7079_v33  ;;  %v5493_v27 = vpop.f32.mrf.mxu0  ;;  %v7097_v33 = vsel %vm16472_vm12, %v7090_v34, %v7096_v47  ;;  %v6794_v34 = vld [vmem:[#allocation2 + $0x188] sm:$0xff]  ;;  %v6798_v47 = vld [vmem:[#allocation2 + $0x320] sm:$0xff]  ;;  %v7120_v57 = vrot.slane %v6790_v63, 2  ;;  %vm16486_vm5 = vmmov %vm16415_vm0 }
 0x49c   : > { %7476 = vmatmul.mubr.f32.gmra.mxu0 %v7105_v32  ;;  %v7130_v27 = vrot.slane %v6795_v7, 2  ;;  %vm16487_vm12 = vmmov %vm16415_vm0 }
 0x49d   : > { %7480 = vmatprep.mubr.f32.mxu0 %v7113_v1  ;;  %v5496_v9 = vpop.f32.mrf.mxu0  ;;  %v7117_v1 = vsel %vm16473_vm14, %v7110_v46, %v7116_v50  ;;  %v7115_v46 = vsel %vm16476_vm15, %v7108_v60, %v7114_v58  ;;  %v6801_v60 = vld [vmem:[#allocation2 + $0xf8] sm:$0xff]  ;;  %vm16488_vm14 = vmmov %vm16415_vm0 }
 0x49e   : > { %9393 = vmatmul.mubr.f32.gmra.mxu1 %v7085_v19  ;;  %v14794_v59 = vadd.f32 %v5741_v53, %v5496_v9  ;;  %v6796_v53 = vld [vmem:[#allocation2 + $0x1c0] sm:$0xff]  ;;  %vm16489_vm11 = vmmov %vm16415_vm0 }
 0x49f   : > { %9395 = vmatprep.mubr.f32.mxu1 %v7091_v51  ;;  %v5498_v32 = vpop.f32.mrf.mxu0  ;;  %v9243_v51 = vpop.f32.mrf.mxu1  ;;  %vm16491_vm10 = vmmov %vm16415_vm0 }
 0x4a0   : > { %7481 = vmatmul.mubr.f32.gmra.mxu0 %v7111_v23  ;;  %vm16492_vm15 = vmmov %vm16415_vm0 }
 0x4a1   : > { %7485 = vmatprep.mubr.f32.mxu0 %v7119_v37  ;;  %v5501_v19 = vpop.f32.mrf.mxu0  ;;  %v7126_v37 = vrot.slane %v6793_v45, 2  ;;  %v5751_v32 = vpop.f32.mrf.mxu1  ;;  %v7132_v45 = vrot.slane %v6796_v53, 2  ;;  %vm16493_vm4 = vmmov %vm16415_vm0 }
 0x4a2   : > { %9396 = vmatmul.mubr.f32.gmra.mxu1 %v7097_v33  ;;  %v14800_v23 = vadd.f32 %v9240_v28, %v5501_v19  ;;  %v7128_v33 = vrot.slane %v6794_v34, 2  ;;  %v7131_v28 = vsel %vm16478_vm7, %v7124_v4, %v7130_v27  ;;  %v6802_v34 = vld [vmem:[#allocation2 + $0x3c0] sm:$0xff]  ;;  %vm16494_vm7 = vmmov %vm16415_vm0 }
 0x4a3   : > { %9398 = vmatprep.mubr.f32.mxu1 %v7103_v44  ;;  %v5503_v9 = vpop.f32.mrf.mxu0  ;;  %v7136_v44 = vrot.slane %v6798_v47, 2  ;;  %v7127_v50 = vsel %vm16480_vm1, %v7120_v57, %v7126_v37  ;;  %v6805_v4 = vld [vmem:[#allocation2 + $0xc0] sm:$0xff]  ;;  %v7133_v53 = vsel %vm16483_vm8, %v7126_v37, %v7132_v45  ;;  %vm16497_vm1 = vmmov %vm16415_vm0 }
 0x4a4   : > { %7486 = vmatmul.mubr.f32.gmra.mxu0 %v7117_v1  ;;  %v7121_v1 = vsel %vm16479_vm6, %v7114_v58, %v7120_v57  ;;  %v7134_v9 = vrot.slane %v6797_v61, 2  ;;  %v6800_v58 = vld [vmem:[#allocation2 + $0x280] sm:$0xff]  ;;  %v6804_v57 = vld [vmem:[#allocation2 + $0x328] sm:$0xff]  ;;  %v7150_v61 = vrot.slane %v6805_v4, 2  ;;  %vm16496_vm6 = vmmov %vm16415_vm0 }
 0x4a5   : > { %7490 = vmatprep.mubr.f32.mxu0 %v7125_v55  ;;  %v5506_v7 = vpop.f32.mrf.mxu0  ;;  %v7138_v55 = vrot.slane %v6799_v25, 2  ;;  %v7144_v25 = vrot.slane %v6802_v34, 2  ;;  %v6803_v37 = vld [vmem:[#allocation2 + $0xe0] sm:$0xff]  ;;  %vm16500_vm8 = vmmov %vm16415_vm0 }
 0x4a6   : > { %9399 = vmatmul.mubr.f32.gmra.mxu1 %v7109_v20  ;;  %v14806_v63 = vadd.f32 %v5751_v32, %v5506_v7  ;;  %v7129_v20 = vsel %vm16481_vm2, %v7122_v49, %v7128_v33  ;;  %v9246_v7 = vpop.f32.mrf.mxu1  ;;  %vm16498_vm2 = vmmov %vm16415_vm0 }
 0x4a7   : > { %9401 = vmatprep.mubr.f32.mxu1 %v7115_v46  ;;  %v5508_v19 = vpop.f32.mrf.mxu0  ;;  %v7137_v46 = vsel %vm16482_vm13, %v7130_v27, %v7136_v44  ;;  %v7139_v49 = vsel %vm16484_vm9, %v7132_v45, %v7138_v55  ;;  %v6811_v27 = vld [vmem:[#allocation2 + $0x1e0] sm:$0xff]  ;;  %vm16499_vm13 = vmmov %vm16415_vm0 }
 0x4a8   : > { %7491 = vmatmul.mubr.f32.gmra.mxu0 %v7123_v41  ;;  %v7142_v41 = vrot.slane %v6801_v60, 2  ;;  %v7135_v19 = vsel %vm16485_vm3, %v7128_v33, %v7134_v9  ;;  %v6807_v45 = vld [vmem:[#allocation2 + $0x80] sm:$0xff]  ;;  %v7151_v33 = vsel %vm16415_vm0, %v7144_v25, %v7150_v61  ;;  %vm16501_vm9 = vmmov %vm16415_vm0 }
 0x4a9   : > { %7495 = vmatprep.mubr.f32.mxu0 %v7131_v28  ;;  %v5511_v47 = vpop.f32.mrf.mxu0  ;;  %vm16502_vm3 = vmmov %vm16415_vm0 }
 0x4aa   : > { %9402 = vmatmul.mubr.f32.gmra.mxu1 %v7121_v1  ;;  %v14812_v28 = vadd.f32 %v9243_v51, %v5511_v47  ;;  %v6808_v1 = vld [vmem:[#allocation2 + $0x248] sm:$0xff]  ;;  %v7143_v51 = vsel %vm16486_vm5, %v7136_v44, %v7142_v41  ;;  %v7148_v47 = vrot.slane %v6804_v57, 2  ;;  %v6817_v44 = vld [vmem:[#allocation2 + $0x290] sm:$0xff]  ;;  %vm16503_vm5 = vmmov %vm16415_vm0 }
 0x4ab   : > { %9404 = vmatprep.mubr.f32.mxu1 %v7127_v50  ;;  %v5513_v32 = vpop.f32.mrf.mxu0  ;;  %v7140_v50 = vrot.slane %v6800_v58, 2  ;;  %v7156_v4 = vrot.slane %v6808_v1, 2  ;;  %v7162_v58 = vrot.slane %v6811_v27, 2 }
 0x4ac   : > { %7496 = vmatmul.mubr.f32.gmra.mxu0 %v7129_v20  ;;  %v5761_v20 = vpop.f32.mrf.mxu1  ;;  %v6814_v32 = vld [vmem:[#allocation2 + $0x2d8] sm:$0xff] }
 0x4ad   : > { %7500 = vmatprep.mubr.f32.mxu0 %v7137_v46  ;;  %v5516_v60 = vpop.f32.mrf.mxu0  ;;  %v7145_v46 = vsel %vm16487_vm12, %v7138_v55, %v7144_v25  ;;  %v6806_v55 = vld [vmem:[#allocation2 + $0x108] sm:$0xff]  ;;  %v7157_v1 = vsel %vm16491_vm10, %v7150_v61, %v7156_v4  ;;  %v6810_v25 = vld [vmem:[#allocation2 + $0x300] sm:$0xff]  ;;  %v7168_v27 = vrot.slane %v6814_v32, 2  ;;  %v6809_v61 = vld [vmem:[#allocation2 + $0x238] sm:$0xff] }
 0x4ae   : > { %9405 = vmatmul.mubr.f32.gmra.mxu1 %v7133_v53  ;;  %v14818_v34 = vadd.f32 %v5761_v20, %v5516_v60  ;;  %v7149_v60 = vsel %vm16489_vm11, %v7142_v41, %v7148_v47  ;;  %v9249_v20 = vpop.f32.mrf.mxu1  ;;  %v6823_v41 = vld [vmem:[#allocation2 + $0xd0] sm:$0xff]  ;;  %vm16504_vm12 = vmmov %vm16415_vm0 }
 0x4af   : > { %9407 = vmatprep.mubr.f32.mxu1 %v7139_v49  ;;  %v5518_v53 = vpop.f32.mrf.mxu0  ;;  %v7141_v49 = vsel %vm16488_vm14, %v7134_v9, %v7140_v50  ;;  %v7163_v9 = vsel %vm16492_vm15, %v7156_v4, %v7162_v58  ;;  %v6813_v4 = vld [vmem:[#allocation2 + $0x3e0] sm:$0xff]  ;;  %vm16505_vm14 = vmmov %vm16415_vm0 }
 0x4b0   : > { %7501 = vmatmul.mubr.f32.gmra.mxu0 %v7135_v19  ;;  %v7146_v19 = vrot.slane %v6803_v37, 2  ;;  %v7174_v37 = vrot.slane %v6817_v44, 2  ;;  %v6820_v53 = vld [vmem:[#allocation2 + $0x218] sm:$0xff]  ;;  %vm16506_vm11 = vmmov %vm16415_vm0 }
 0x4b1   : > { %7505 = vmatprep.mubr.f32.mxu0 %v7143_v51  ;;  %v5521_v57 = vpop.f32.mrf.mxu0  ;;  %v7154_v51 = vrot.slane %v6807_v45, 2  ;;  %v7180_v44 = vrot.slane %v6820_v53, 2  ;;  %vm16507_vm10 = vmmov %vm16415_vm0 }
 0x4b2   : > { %9408 = vmatmul.mubr.f32.gmra.mxu1 %v7145_v46  ;;  %v14824_v13 = vadd.f32 %v9246_v7, %v5521_v57  ;;  %v5771_v57 = vpop.f32.mrf.mxu1  ;;  %vm16508_vm15 = vmmov %vm16415_vm0 }
 0x4b3   : > { %9410 = vmatprep.mubr.f32.mxu1 %v7151_v33  ;;  %v5523_v46 = vpop.f32.mrf.mxu0  ;;  %v7147_v33 = vsel %vm16493_vm4, %v7140_v50, %v7146_v19  ;;  %v7155_v7 = vsel %vm16494_vm7, %v7148_v47, %v7154_v51  ;;  %v7175_v50 = vsel %vm16497_vm1, %v7168_v27, %v7174_v37  ;;  %v6829_v47 = vld [vmem:[#allocation2 + $0x138] sm:$0xff]  ;;  %v7181_v53 = vsel %vm16500_vm8, %v7174_v37, %v7180_v44  ;;  %vm16509_vm4 = vmmov %vm16415_vm0 }
 0x4b4   : > { %7506 = vmatmul.mubr.f32.gmra.mxu0 %v7141_v49  ;;  %16490 = vst [vmem:[#allocation32_spill] sm:$0xff] %v14824_v13  ;;  %v7152_v49 = vrot.slane %v6806_v55, 2  ;;  %v7186_v55 = vrot.slane %v6823_v41, 2  ;;  %v7158_v13 = vrot.slane %v6809_v61, 2  ;;  %v7198_v61 = vrot.slane %v6829_v47, 2  ;;  %vm16510_vm7 = vmmov %vm16415_vm0 }
 0x4b5   : > { %7510 = vmatprep.mubr.f32.mxu0 %v7149_v60  ;;  %v5526_v45 = vpop.f32.mrf.mxu0  ;;  %v7160_v60 = vrot.slane %v6810_v25, 2  ;;  %vm16512_vm1 = vmmov %vm16415_vm0 }
 0x4b6   : > { %9411 = vmatmul.mubr.f32.gmra.mxu1 %v7157_v1  ;;  %v14830_v32 = vadd.f32 %v5771_v57, %v5526_v45  ;;  %v7169_v1 = vsel %vm16496_vm6, %v7162_v58, %v7168_v27  ;;  %v9252_v57 = vpop.f32.mrf.mxu1  ;;  %v6812_v58 = vld [vmem:[#allocation2 + $0x3d0] sm:$0xff]  ;;  %v6816_v27 = vld [vmem:[#allocation2 + $0x338] sm:$0xff]  ;;  %vm16511_vm6 = vmmov %vm16415_vm0 }
 0x4b7   : > { %9413 = vmatprep.mubr.f32.mxu1 %v7163_v9  ;;  %v5528_v46 = vpop.f32.mrf.mxu0  ;;  %v6826_v9 = vld [vmem:[#allocation2 + $0x2a0] sm:$0xff]  ;;  %v7161_v45 = vsel %vm16499_vm13, %v7154_v51, %v7160_v60  ;;  %vm16514_vm13 = vmmov %vm16415_vm0 }
 0x4b8   : > { %7511 = vmatmul.mubr.f32.gmra.mxu0 %v7147_v33  ;;  %16495 = vst [vmem:[#allocation34_spill] sm:$0xff] %v14830_v32  ;;  %v7153_v33 = vsel %vm16498_vm2, %v7146_v19, %v7152_v49  ;;  %v7192_v41 = vrot.slane %v6826_v9, 2  ;;  %v7187_v19 = vsel %vm16501_vm9, %v7180_v44, %v7186_v55  ;;  %v7159_v46 = vsel %vm16502_vm3, %v7152_v49, %v7158_v13  ;;  %vm16513_vm2 = vmmov %vm16415_vm0 }
 0x4b9   : > { %7515 = vmatprep.mubr.f32.mxu0 %v7155_v7  ;;  %v5531_v25 = vpop.f32.mrf.mxu0  ;;  %v7166_v7 = vrot.slane %v6813_v4, 2  ;;  %vm16515_vm8 = vmmov %vm16415_vm0 }
 0x4ba   : > { %9414 = vmatmul.mubr.f32.gmra.mxu1 %v7169_v1  ;;  %v14836_v32 = vadd.f32 %v9249_v20, %v5531_v25  ;;  %v5781_v20 = vpop.f32.mrf.mxu1  ;;  %v6815_v25 = vld [vmem:[#allocation2 + $0x1a8] sm:$0xff]  ;;  %v7193_v9 = vsel %vm16504_vm12, %v7186_v55, %v7192_v41  ;;  %v7199_v49 = vsel %vm16415_vm0, %v7192_v41, %v7198_v61  ;;  %vm16516_vm9 = vmmov %vm16415_vm0 }
 0x4bb   : > { %9416 = vmatprep.mubr.f32.mxu1 %v7175_v50  ;;  %v5533_v1 = vpop.f32.mrf.mxu0  ;;  %v7164_v50 = vrot.slane %v6812_v58, 2  ;;  %v7167_v4 = vsel %vm16503_vm5, %v7160_v60, %v7166_v7  ;;  %v10056_v58 = vld [vmem:[#allocation2 + $0x308] sm:$0xff]  ;;  %vm16517_vm3 = vmmov %vm16415_vm0 }
 0x4bc   : > { %7516 = vmatmul.mubr.f32.gmra.mxu0 %v7153_v33  ;;  %v7172_v33 = vrot.slane %v6816_v27, 2  ;;  %v14846_v1 = vrot.slane %v10056_v58, 2  ;;  %vm16518_vm5 = vmmov %vm16415_vm0 }
 0x4bd   : > { %7520 = vmatprep.mubr.f32.mxu0 %v7161_v45  ;;  %v5536_v51 = vpop.f32.mrf.mxu0  ;;  %v6838_v45 = vld [vmem:[#allocation2 + $0x258] sm:$0x3]  ;;  %v7165_v60 = vsel %vm16505_vm14, %v7158_v13, %v7164_v50  ;;  %v6822_v13 = vld [vmem:[#allocation2 + $0x30] sm:$0xff]  ;;  %vm16520_vm12 = vmmov %vm16415_vm0 }
 0x4be   : > { %9417 = vmatmul.mubr.f32.gmra.mxu1 %v7181_v53  ;;  %v14842_v37 = vadd.f32 %v5781_v20, %v5536_v51  ;;  %v6819_v53 = vld [vmem:[#allocation2 + $0xf0] sm:$0xff]  ;;  %v7216_v27 = vrot.slane %v6838_v45, 2  ;;  %v7173_v51 = vsel %vm16506_vm11, %v7166_v7, %v7172_v33  ;;  %v6818_v20 = vld [vmem:[#allocation2 + $0x200] sm:$0xff]  ;;  %v7205_v41 = vsel %vm16507_vm10, %v7198_v61, %v14846_v1  ;;  %v6821_v61 = vld [vmem:[#allocation2 + $0x58] sm:$0xff] }
 0x4bf   : > { %9419 = vmatprep.mubr.f32.mxu1 %v7187_v19  ;;  %v5538_v44 = vpop.f32.mrf.mxu0  ;;  %v7170_v19 = vrot.slane %v6815_v25, 2  ;;  %v7178_v55 = vrot.slane %v6819_v53, 2  ;;  %v7176_v7 = vrot.slane %v6818_v20, 2  ;;  %vm16521_vm14 = vmmov %vm16415_vm0 }
 0x4c0   : > { %7521 = vmatmul.mubr.f32.gmra.mxu0 %v7159_v46  ;;  %v7217_v53 = vsel %vm16509_vm4, %v14846_v1, %v7216_v27  ;;  %vm16523_vm11 = vmmov %vm16415_vm0 }
 0x4c1   : > { %7525 = vmatprep.mubr.f32.mxu0 %v7167_v4  ;;  %v9255_v47 = vpop.f32.mrf.mxu1  ;;  %v5541_v46 = vpop.f32.mrf.mxu0  ;;  %v7171_v45 = vsel %vm16508_vm15, %v7164_v50, %v7170_v19  ;;  %v7177_v20 = vsel %vm16511_vm6, %v7170_v19, %v7176_v7  ;;  %vm16524_vm10 = vmmov %vm16415_vm0 }
 0x4c2   : > { %9420 = vmatmul.mubr.f32.gmra.mxu1 %v7193_v9  ;;  %v5622_v9 = vadd.f32 %v14557_v3, %v14541_v21  ;;  %v14852_v44 = vadd.f32 %v9252_v57, %v5541_v46  ;;  %v7179_v3 = vsel %vm16510_vm7, %v7172_v33, %v7178_v55  ;;  %vm16526_vm15 = vmmov %vm16415_vm0 }
 0x4c3   : > { %9422 = vmatprep.mubr.f32.mxu1 %v7199_v49  ;;  %v5791_v4 = vpop.f32.mrf.mxu1  ;;  %v5543_v25 = vpop.f32.mrf.mxu0  ;;  %vm16527_vm4 = vmmov %vm16415_vm0 }
 0x4c4   : > { %7526 = vmatmul.mubr.f32.gmra.mxu0 %v7165_v60  ;;  %v7184_v60 = vrot.slane %v6822_v13, 2  ;;  %v7182_v25 = vrot.slane %v6821_v61, 2  ;;  %v6824_v13 = vld [vmem:[#allocation2 + $0x288] sm:$0xff]  ;;  %vm16528_vm7 = vmmov %vm16415_vm0 }
 0x4c5   : > { %7530 = vmatprep.mubr.f32.mxu0 %v7173_v51  ;;  %v6304_v49 = vpop.f32.mrf.mxu1  ;;  %v5546_v21 = vpop.f32.mrf.mxu0  ;;  %v6825_v51 = vld [vmem:[#allocation2 + $0x110] sm:$0xff]  ;;  %v7188_v61 = vrot.slane %v6824_v13, 2  ;;  %vm16529_vm6 = vmmov %vm16415_vm0 }
 0x4c6   : > { %9423 = vmatmul.mubr.f32.gmra.mxu1 %v7205_v41  ;;  %v6305_v58 = vadd.f32 %v6304_v49, %v5622_v9  ;;  %v14861_v46 = vadd.f32 %v5791_v4, %v5546_v21  ;;  %v7185_v49 = vsel %vm16512_vm1, %v7178_v55, %v7184_v60  ;;  %v5632_v4 = vadd.f32 %v14585_v52, %v14559_v24  ;;  %vm16530_vm1 = vmmov %vm16415_vm0 }
 0x4c7   : > { %9425 = vmatprep.mubr.f32.mxu1 %v14846_v1  ;;  %v6306_v57 = vpop.f32.mrf.mxu1  ;;  %v5548_v41 = vpop.f32.mrf.mxu0  ;;  %v7183_v19 = vsel %vm16513_vm2, %v7176_v7, %v7182_v25  ;;  %vm16531_vm2 = vmmov %vm16415_vm0 }
 0x4c8   : > { %7531 = vmatmul.mubr.f32.gmra.mxu0 %v7171_v45  ;;  %v7190_v45 = vrot.slane %v6825_v51, 2 }
 0x4c9   : > { %7535 = vmatprep.mubr.f32.mxu0 %v7179_v3  ;;  %v6309_v50 = vpop.f32.mrf.mxu1  ;;  %v5551_v27 = vpop.f32.mrf.mxu0  ;;  %v6828_v3 = vld [vmem:[#allocation2 + $0x210] sm:$0xff] }
 0x4ca   : > { %9426 = vmatmul.mubr.f32.gmra.mxu1 %v7217_v53  ;;  %v6310_v9 = vadd.f32 %v6309_v50, %v14551_v0  ;;  %v14868_v21 = vadd.f32 %v9255_v47, %v5551_v27  ;;  %v7191_v55 = vsel %vm16514_vm13, %v7184_v60, %v7190_v45  ;;  %v7196_v51 = vrot.slane %v6828_v3, 2  ;;  %vm16533_vm13 = vmmov %vm16415_vm0 }
 0x4cb   : > { %v6311_v33 = vpop.f32.mrf.mxu1  ;;  %v5553_v53 = vpop.f32.mrf.mxu0  ;;  %v7189_v27 = vsel %vm16515_vm8, %v7182_v25, %v7188_v61 }
 0x4cc   : > { %7536 = vmatmul.mubr.f32.gmra.mxu0 %v7177_v20  ;;  %v6827_v20 = vld [vmem:[#allocation2 + $0x130] sm:$0xff] }
 0x4cd   : > { %7540 = vmatprep.mubr.f32.mxu0 %v7185_v49  ;;  %v6314_v57 = vpop.f32.mrf.mxu1  ;;  %v7194_v49 = vrot.slane %v6827_v20, 2  ;;  %v6830_v53 = vld [vmem:[#allocation2 + $0x390] sm:$0xff] }
 0x4ce   : > { %v6315_v0 = vadd.f32 %v6314_v57, %v5632_v4  ;;  %v7197_v4 = vsel %vm16516_vm9, %v7190_v45, %v7196_v51  ;;  %v7203_v45 = vsel %vm16518_vm5, %v7196_v51, %v14846_v1 }
 0x4cf   : > { %v9290_v41 = vpop.f32.mrf.mxu0  ;;  %v6316_v50 = vpop.f32.mrf.mxu1  ;;  %v7195_v25 = vsel %vm16517_vm3, %v7188_v61, %v7194_v49 }
 0x4d0   : > { %7541 = vmatmul.mubr.f32.gmra.mxu0 %v7183_v19  ;;  %v14872_v33 = vadd.f32 %v9290_v41, %v6310_v9  ;;  %v5642_v9 = vadd.f32 %v14612_v54, %v14577_v17  ;;  %v7200_v41 = vrot.slane %v6830_v53, 2  ;;  %v6733_v53 = vld [vmem:[#allocation2 + $0xb0] sm:$0xff] }
 0x4d1   : > { %7545 = vmatprep.mubr.f32.mxu0 %v7191_v55  ;;  %v6549_v24 = vpop.f32.mrf.mxu0  ;;  %v6837_v55 = vld [vmem:[#allocation2 + $0x348] sm:$0x3] }
 0x4d2   : > { %v6319_v52 = vpop.f32.mrf.mxu1  ;;  %v14874_v47 = vadd.f32 %v6549_v24, %v6305_v58  ;;  %v7214_v24 = vrot.slane %v6837_v55, 2 }
 0x4d3   : > { %v6320_v7 = vadd.f32 %v6319_v52, %v14569_v40  ;;  %v9293_v13 = vpop.f32.mrf.mxu0  ;;  %v6836_v52 = vld [vmem:[#allocation2 + $0x318] sm:$0x3] }
 0x4d4   : > { %7546 = vmatmul.mubr.f32.gmra.mxu0 %v7189_v27  ;;  %v6321_v60 = vpop.f32.mrf.mxu1  ;;  %v7212_v51 = vrot.slane %v6836_v52, 2 }
 0x4d5   : > { %7550 = vmatprep.mubr.f32.mxu0 %v7197_v4  ;;  %v14881_v3 = vadd.f32 %v9293_v13, %v6320_v7  ;;  %v6559_v57 = vpop.f32.mrf.mxu0  ;;  %v5652_v4 = vadd.f32 %v14636_v18, %v14608_v2  ;;  %v7006_v2 = vrot.slane %v6733_v53, 2  ;;  %v6736_v18 = vld [vmem:[#allocation2 + $0x170] sm:$0xff]  ;;  %v6742_v53 = vld [vmem:[#allocation2 + $0x40] sm:$0xff] }
 0x4d6   : > { %v6324_v58 = vpop.f32.mrf.mxu1  ;;  %v14883_v19 = vadd.f32 %v6559_v57, %v6315_v0  ;;  %v7201_v0 = vsel %vm16520_vm12, %v7194_v49, %v7200_v41 }
 0x4d7   : > { %v6325_v40 = vadd.f32 %v6324_v58, %v5642_v9  ;;  %v7215_v58 = vsel %vm16415_vm0, %v14846_v1, %v7214_v24 }
 0x4d8   : > { %v9296_v50 = vpop.f32.mrf.mxu0  ;;  %7551 = vmatmul.mubr.f32.gmra.mxu0 %v7195_v25  ;;  %v6326_v20 = vpop.f32.mrf.mxu1  ;;  %v6730_v25 = vld [vmem:[#allocation2 + $0x380] sm:$0xfc] }
 0x4d9   : > { %7555 = vmatprep.mubr.f32.mxu0 %v7203_v45  ;;  %v7213_v45 = vsel %vm16523_vm11, %v14846_v1, %v7212_v51  ;;  %v6739_v20 = vld [vmem:[#allocation2 + $0x3b8] sm:$0xff] }
 0x4da   : > { %v6569_v17 = vpop.f32.mrf.mxu0  ;;  %v6329_v54 = vpop.f32.mrf.mxu1 }
 0x4db   : > { %v14888_v27 = vadd.f32 %v6569_v17, %v6325_v40  ;;  %v6330_v61 = vadd.f32 %v6329_v54, %v14598_v26  ;;  %v7207_v26 = vsel %vm16521_vm14, %v7200_v41, %v14846_v1  ;;  %v7005_v54 = vrot.slane %v6730_v25, 2 }
 0x4dc   : > { %v9299_v7 = vpop.f32.mrf.mxu0  ;;  %7556 = vmatmul.mubr.f32.gmra.mxu0 %v7201_v0  ;;  %v6331_v13 = vpop.f32.mrf.mxu1  ;;  %v7012_v41 = vrot.slane %v6736_v18, 2 }
 0x4dd   : > { %16519 = vst [vmem:[#allocation41_spill] sm:$0xff] %v14888_v27  ;;  %v14894_v60 = vadd.f32 %v9296_v50, %v6330_v61  ;;  %7560 = vmatprep.mubr.f32.mxu0 %v14846_v1  ;;  %v7007_v61 = vsel %vm16524_vm10, %v7005_v54, %v7006_v2  ;;  %v6745_v1 = vld [vmem:[#allocation2 + $0x2d0] sm:$0xff] }
 0x4de   : > { %v6579_v9 = vpop.f32.mrf.mxu0  ;;  %v6334_v57 = vpop.f32.mrf.mxu1  ;;  %v15058_v27 = vld [vmem:[#allocation9 + $0x1] ss:$0 sm:$0xff] }
 0x4df   : > { %v6335_v49 = vadd.f32 %v6334_v57, %v5652_v4  ;;  %v7018_v4 = vrot.slane %v6739_v20, 2  ;;  %v6748_v20 = vld [vmem:[#allocation2 + $0x2e8] sm:$0xff] }
 0x4e0   : > { %v9302_v40 = vpop.f32.mrf.mxu0  ;;  %7561 = vmatmul.mubr.f32.gmra.mxu0 %v7207_v26  ;;  %v6336_v55 = vpop.f32.mrf.mxu1  ;;  %v7013_v26 = vsel %vm16526_vm15, %v7006_v2, %v7012_v41  ;;  %v7036_v2 = vrot.slane %v6748_v20, 2 }
 0x4e1   : > { %v14901_v50 = vadd.f32 %v6579_v9, %v6335_v49  ;;  %7565 = vmatprep.mubr.f32.mxu0 %v7215_v58  ;;  %v5662_v9 = vadd.f32 %v14655_v22, %v14629_v8  ;;  %v7024_v49 = vrot.slane %v6742_v53, 2  ;;  %v7019_v55 = vsel %vm16527_vm4, %v7012_v41, %v7018_v4  ;;  %v6751_v8 = vld [vmem:[#allocation2 + $0x1d0] sm:$0xff] }
 0x4e2   : > { %v6589_v17 = vpop.f32.mrf.mxu0  ;;  %v6339_v24 = vpop.f32.mrf.mxu1  ;;  %v7042_v41 = vrot.slane %v6751_v8, 2 }
 0x4e3   : > { %16522 = vst [vmem:[#allocation107_spill] sm:$0xff] %v14901_v50  ;;  %v6340_v52 = vadd.f32 %v6339_v24, %v14621_v36  ;;  %v7025_v24 = vsel %vm16528_vm7, %v7018_v4, %v7024_v49 }
 0x4e4   : > { %v9305_v0 = vpop.f32.mrf.mxu0  ;;  %7566 = vmatmul.mubr.f32.gmra.mxu0 %v7213_v45  ;;  %v6341_v13 = vpop.f32.mrf.mxu1  ;;  %v7030_v45 = vrot.slane %v6745_v1, 2 }
 0x4e5   : > { %9374 = vmatprep.mubr.f32.mxu0 %v7007_v61  ;;  %v14909_v57 = vadd.f32 %v9299_v7, %v6340_v52 }
 0x4e6   : > { %v6599_v51 = vpop.f32.mrf.mxu0  ;;  %v6344_v58 = vpop.f32.mrf.mxu1  ;;  %v7031_v13 = vsel %vm16529_vm6, %v7024_v49, %v7030_v45 }
 0x4e7   : > { %16525 = vst [vmem:[#allocation39_spill] sm:$0xff] %v14909_v57  ;;  %v6345_v36 = vadd.f32 %v6344_v58, %v5662_v9  ;;  %v5672_v9 = vadd.f32 %v14678_v62, %v14657_v39  ;;  %v16532_v39 = vrot.slane %v14757_v15, 2 }
 0x4e8   : > { %v9308_v25 = vpop.f32.mrf.mxu0  ;;  %9375 = vmatmul.mubr.f32.vlgmr.msra.gmra.mxu0 %v7013_v26  ;;  %v6346_v18 = vpop.f32.mrf.mxu1  ;;  %v7037_v26 = vsel %vm16530_vm1, %v7030_v45, %v7036_v2 }
 0x4e9   : > { %9377 = vmatprep.mubr.f32.mxu0 %v7019_v55  ;;  %v14913_v54 = vadd.f32 %v6589_v17, %v6345_v36  ;;  %v7049_v62 = vsel %vm16533_vm13, %v7042_v41, %v16532_v39 }
 0x4ea   : > { %v6609_v22 = vpop.f32.mrf.mxu0  ;;  %v6349_v7 = vpop.f32.mrf.mxu1 }
 0x4eb   : > { %v6350_v52 = vadd.f32 %v6349_v7, %v14645_v38  ;;  %v7043_v38 = vsel %vm16531_vm2, %v7036_v2, %v7042_v41  ;;  %v5682_v7 = vadd.f32 %v14697_v30, %v14685_v29 }
 0x4ec   : > { %v9311_v61 = vpop.f32.mrf.mxu0  ;;  %9378 = vmatmul.mubr.f32.gmra.mxu0 %v7025_v24  ;;  %v6351_v53 = vpop.f32.mrf.mxu1 }
 0x4ed   : > { %9380 = vmatprep.mubr.f32.mxu0 %v7031_v13  ;;  %v14920_v17 = vadd.f32 %v9302_v40, %v6350_v52 }
 0x4ee   : > { %v6619_v1 = vpop.f32.mrf.mxu0  ;;  %v6354_v58 = vpop.f32.mrf.mxu1 }
 0x4ef   : > { %v6355_v4 = vadd.f32 %v6354_v58, %v5672_v9 }
 0x4f0   : > { %v9314_v36 = vpop.f32.mrf.mxu0  ;;  %9381 = vmatmul.mubr.f32.gmra.mxu0 %v7037_v26  ;;  %v6356_v55 = vpop.f32.mrf.mxu1 }
 0x4f1   : > { %9383 = vmatprep.mubr.f32.mxu0 %v7043_v38  ;;  %v14924_v49 = vadd.f32 %v6599_v51, %v6355_v4  ;;  %v5692_v4 = vadd.f32 %v14713_v31, %v14709_v6 }
 0x4f2   : > { %v6629_v18 = vpop.f32.mrf.mxu0  ;;  %v6359_v20 = vpop.f32.mrf.mxu1 }
 0x4f3   : > { %v6360_v40 = vadd.f32 %v6359_v20, %v14673_v16 }
 0x4f4   : > { %v9317_v8 = vpop.f32.mrf.mxu0  ;;  %9384 = vmatmul.mubr.f32.gmra.mxu0 %v7049_v62  ;;  %v6361_v45 = vpop.f32.mrf.mxu1 }
 0x4f5   : > { %v14932_v24 = vadd.f32 %v9305_v0, %v6360_v40 }
 0x4f6   : > { %v6639_v52 = vpop.f32.mrf.mxu0  ;;  %v6364_v2 = vpop.f32.mrf.mxu1 }
 0x4f7   : > { %v6365_v51 = vadd.f32 %v6364_v2, %v5682_v7 }
 0x4f8   : > { %v9320_v13 = vpop.f32.mrf.mxu0  ;;  %v6366_v53 = vpop.f32.mrf.mxu1 }
 0x4f9   : > { %v14934_v9 = vadd.f32 %v6609_v22, %v6365_v51 }
 0x4fa   : > { %v6649_v15 = vpop.f32.mrf.mxu0  ;;  %v6369_v58 = vpop.f32.mrf.mxu1 }
 0x4fb   : > { %v6370_v41 = vadd.f32 %v6369_v58, %v14701_v56 }
 0x4fc   : > { %v14937_v16 = vpop.f32.mrf.mxu0  ;;  %v6371_v26 = vpop.f32.mrf.mxu1 }
 0x4fd   : > { %v14941_v29 = vadd.f32 %v9308_v25, %v6370_v41 }
 0x4fe   : > { %v6659_v30 = vpop.f32.mrf.mxu0  ;;  %v6374_v0 = vpop.f32.mrf.mxu1 }
 0x4ff   : > { %v6375_v38 = vadd.f32 %v6374_v0, %v5692_v4 }
 0x500   : > { %v14943_v55 = vpop.f32.mrf.mxu0  ;;  %v6376_v20 = vpop.f32.mrf.mxu1 }
 0x501   : > { %v14945_v22 = vadd.f32 %v6619_v1, %v6375_v38 }
 0x502   : > { %v6669_v39 = vpop.f32.mrf.mxu0  ;;  %v6379_v62 = vpop.f32.mrf.mxu1 }
 0x503   : > { %v6380_v56 = vadd.f32 %v6379_v62, %v14722_v42 }
 0x504   : > { %v14948_v40 = vpop.f32.mrf.mxu0  ;;  %v6381_v45 = vpop.f32.mrf.mxu1 }
 0x505   : > { %v14950_v7 = vadd.f32 %v9311_v61, %v6380_v56 }
 0x506   : > { %v14952_v6 = vpop.f32.mrf.mxu0  ;;  %v6384_v31 = vpop.f32.mrf.mxu1 }
 0x507   : > { %v6385_v25 = vadd.f32 %v6384_v31, %v14732_v43 }
 0x508   : > { %v14955_v2 = vpop.f32.mrf.mxu0  ;;  %v6386_v51 = vpop.f32.mrf.mxu1 }
 0x509   : > { %v14957_v53 = vadd.f32 %v6629_v18, %v6385_v25 }
 0x50a   : > { %v14959_v1 = vpop.f32.mrf.mxu0  ;;  %v6389_v58 = vpop.f32.mrf.mxu1 }
 0x50b   : > { %v6390_v42 = vadd.f32 %v6389_v58, %v14742_v12 }
 0x50c   : > { %v14962_v41 = vpop.f32.mrf.mxu0  ;;  %v6391_v26 = vpop.f32.mrf.mxu1 }
 0x50d   : > { %v14964_v61 = vadd.f32 %v9314_v36, %v6390_v42 }
 0x50e   : > { %v14966_v4 = vpop.f32.mrf.mxu0  ;;  %v6394_v0 = vpop.f32.mrf.mxu1 }
 0x50f   : > { %v6395_v43 = vadd.f32 %v6394_v0, %v14749_v10 }
 0x510   : > { %v14969_v38 = vpop.f32.mrf.mxu0  ;;  %v6396_v20 = vpop.f32.mrf.mxu1 }
 0x511   : > { %v14971_v18 = vadd.f32 %v6639_v52, %v6395_v43 }
 0x512   : > { %v14973_v62 = vpop.f32.mrf.mxu0  ;;  %v6399_v56 = vpop.f32.mrf.mxu1 }
 0x513   : > { %v6400_v12 = vadd.f32 %v6399_v56, %v14755_v14 }
 0x514   : > { %v14976_v45 = vpop.f32.mrf.mxu0  ;;  %v6401_v31 = vpop.f32.mrf.mxu1 }
 0x515   : > { %v14978_v36 = vadd.f32 %v9317_v8, %v6400_v12 }
 0x516   : > { %v14980_v25 = vpop.f32.mrf.mxu0  ;;  %v6404_v51 = vpop.f32.mrf.mxu1 }
 0x517   : > { %v6405_v10 = vadd.f32 %v6404_v51, %v14766_v5 }
 0x518   : > { %v14983_v58 = vpop.f32.mrf.mxu0  ;;  %v6406_v42 = vpop.f32.mrf.mxu1 }
 0x519   : > { %v14985_v52 = vadd.f32 %v6649_v15, %v6405_v10 }
 0x51a   : > { %v7394_v26 = vpop.f32.mrf.mxu0  ;;  %v6409_v0 = vpop.f32.mrf.mxu1 }
 0x51b   : > { %v6410_v43 = vadd.f32 %v6409_v0, %v14776_v35 }
 0x51c   : > { %v14988_v14 = vpop.f32.mrf.mxu0  ;;  %v6411_v20 = vpop.f32.mrf.mxu1 }
 0x51d   : > { %v14990_v56 = vadd.f32 %v9320_v13, %v6410_v43 }
 0x51e   : > { %v7399_v8 = vpop.f32.mrf.mxu0  ;;  %v6414_v12 = vpop.f32.mrf.mxu1 }
 0x51f   : > { %v6415_v31 = vadd.f32 %v6414_v12, %v14782_v48 }
 0x520   : > { %v14993_v50 = vpop.f32.mrf.mxu0  ;;  %v6416_v5 = vpop.f32.mrf.mxu1 }
 0x521   : > { %v14995_v51 = vadd.f32 %v6659_v30, %v6415_v31 }
 0x522   : > { %v7404_v15 = vpop.f32.mrf.mxu0  ;;  %v6419_v10 = vpop.f32.mrf.mxu1 }
 0x523   : > { %v6420_v42 = vadd.f32 %v6419_v10, %v14788_v11 }
 0x524   : > { %v14998_v26 = vpop.f32.mrf.mxu0  ;;  %v6421_v35 = vpop.f32.mrf.mxu1 }
 0x525   : > { %v15001_v0 = vadd.f32 %v14937_v16, %v6420_v42 }
 0x526   : > { %v7409_v13 = vpop.f32.mrf.mxu0  ;;  %v6424_v43 = vpop.f32.mrf.mxu1 }
 0x527   : > { %v6425_v20 = vadd.f32 %v6424_v43, %v14794_v59 }
 0x528   : > { %v15004_v48 = vpop.f32.mrf.mxu0  ;;  %v6426_v8 = vpop.f32.mrf.mxu1 }
 0x529   : > { %v15006_v12 = vadd.f32 %v6669_v39, %v6425_v20 }
 0x52a   : > { %v7414_v30 = vpop.f32.mrf.mxu0  ;;  %v6429_v31 = vpop.f32.mrf.mxu1 }
 0x52b   : > { %v6430_v5 = vadd.f32 %v6429_v31, %v14800_v23 }
 0x52c   : > { %v15009_v11 = vpop.f32.mrf.mxu0  ;;  %v6431_v15 = vpop.f32.mrf.mxu1 }
 0x52d   : > { %v15012_v10 = vadd.f32 %v14943_v55, %v6430_v5 }
 0x52e   : > { %v7419_v16 = vpop.f32.mrf.mxu0  ;;  %v6434_v42 = vpop.f32.mrf.mxu1 }
 0x52f   : > { %v6435_v35 = vadd.f32 %v6434_v42, %v14806_v63 }
 0x530   : > { %v15015_v59 = vpop.f32.mrf.mxu0  ;;  %v6436_v13 = vpop.f32.mrf.mxu1 }
 0x531   : > { %16534 = vst [vmem:[#allocation94_spill] sm:$0xff] %v15015_v59  ;;  %v15018_v39 = vadd.f32 %v14952_v6, %v6435_v35  ;;  %v16535_v13 = vld [vmem:[#allocation32_spill] sm:$0xff] }
 0x532   : > { %v7424_v43 = vpop.f32.mrf.mxu0  ;;  %v6439_v20 = vpop.f32.mrf.mxu1 }
 0x533   : > { %v6440_v23 = vadd.f32 %v6439_v20, %v14812_v28 }
 0x534   : > { %v15021_v8 = vpop.f32.mrf.mxu0  ;;  %v6441_v30 = vpop.f32.mrf.mxu1 }
 0x535   : > { %v15024_v55 = vadd.f32 %v14948_v40, %v6440_v23 }
 0x536   : > { %v7429_v31 = vpop.f32.mrf.mxu0  ;;  %v6444_v5 = vpop.f32.mrf.mxu1 }
 0x537   : > { %v6445_v63 = vadd.f32 %v6444_v5, %v14818_v34  ;;  %v16536_v31 = vld [vmem:[#allocation34_spill] sm:$0xff] }
 0x538   : > { %v7432_v15 = vpop.f32.mrf.mxu0  ;;  %v6446_v16 = vpop.f32.mrf.mxu1 }
 0x539   : > { %v15028_v42 = vadd.f32 %v14959_v1, %v6445_v63 }
 0x53a   : > { %v7434_v6 = vpop.f32.mrf.mxu0  ;;  %v6449_v35 = vpop.f32.mrf.mxu1 }
 0x53b   : > { %v6450_v43 = vadd.f32 %v6449_v35, %v16535_v13 }
 0x53c   : > { %v7437_v28 = vpop.f32.mrf.mxu0  ;;  %v6451_v20 = vpop.f32.mrf.mxu1 }
 0x53d   : > { %v15032_v30 = vadd.f32 %v14955_v2, %v6450_v43 }
 0x53e   : > { %v7439_v40 = vpop.f32.mrf.mxu0  ;;  %v6454_v23 = vpop.f32.mrf.mxu1 }
 0x53f   : > { %v6455_v59 = vadd.f32 %v6454_v23, %v16536_v31 }
 0x540   : > { %v7442_v57 = vpop.f32.mrf.mxu0  ;;  %v6456_v34 = vpop.f32.mrf.mxu1 }
 0x541   : > { %v15036_v5 = vadd.f32 %v14966_v4, %v6455_v59 }
 0x542   : > { %v7444_v1 = vpop.f32.mrf.mxu0  ;;  %v6459_v63 = vpop.f32.mrf.mxu1 }
 0x543   : > { %v6460_v16 = vadd.f32 %v6459_v63, %v14836_v32 }
 0x544   : > { %v7447_v6 = vpop.f32.mrf.mxu0  ;;  %v6461_v35 = vpop.f32.mrf.mxu1 }
 0x545   : > { %v15040_v13 = vadd.f32 %v14962_v41, %v6460_v16 }
 0x546   : > { %v7449_v2 = vpop.f32.mrf.mxu0  ;;  %v6464_v43 = vpop.f32.mrf.mxu1 }
 0x547   : > { %v6465_v20 = vadd.f32 %v6464_v43, %v14842_v37 }
 0x548   : > { %v7452_v40 = vpop.f32.mrf.mxu0  ;;  %v6466_v23 = vpop.f32.mrf.mxu1 }
 0x549   : > { %v15044_v31 = vadd.f32 %v14973_v62, %v6465_v20 }
 0x54a   : > { %v7454_v4 = vpop.f32.mrf.mxu0  ;;  %v6469_v59 = vpop.f32.mrf.mxu1 }
 0x54b   : > { %v6470_v34 = vadd.f32 %v6469_v59, %v14852_v44 }
 0x54c   : > { %v7457_v1 = vpop.f32.mrf.mxu0  ;;  %v6471_v32 = vpop.f32.mrf.mxu1 }
 0x54d   : > { %v15048_v63 = vadd.f32 %v14969_v38, %v6470_v34 }
 0x54e   : > { %v7459_v41 = vpop.f32.mrf.mxu0  ;;  %v6474_v16 = vpop.f32.mrf.mxu1 }
 0x54f   : > { %v6475_v35 = vadd.f32 %v6474_v16, %v14861_v46 }
 0x550   : > { %v7462_v2 = vpop.f32.mrf.mxu0  ;;  %v6476_v37 = vpop.f32.mrf.mxu1 }
 0x551   : > { %v15052_v43 = vadd.f32 %v14980_v25, %v6475_v35 }
 0x552   : > { %v7464_v62 = vpop.f32.mrf.mxu0  ;;  %v6479_v20 = vpop.f32.mrf.mxu1 }
 0x553   : > { %v6480_v23 = vadd.f32 %v6479_v20, %v14868_v21 }
 0x554   : > { %v7467_v4 = vpop.f32.mrf.mxu0  ;;  %v6481_v44 = vpop.f32.mrf.mxu1 }
 0x555   : > { %v15056_v59 = vadd.f32 %v14976_v45, %v6480_v23 }
 0x556   : > { %v7469_v38 = vpop.f32.mrf.mxu0  ;;  %v9388_v34 = vpop.f32.mrf.mxu1 }
 0x557   : > { %v7683_v32 = vadd.f32 %v9388_v34, %v7437_v28 }
 0x558   : > { %v7472_v41 = vpop.f32.mrf.mxu0  ;;  %v7677_v46 = vpop.f32.mrf.mxu1 }
 0x559   : > { %v7825_v16 = vadd.f32 %v7683_v32, %v14920_v17  ;;  %v7678_v25 = vadd.f32 %v7677_v46, %v7432_v15 }
 0x55a   : > { %v7474_v35 = vpop.f32.mrf.mxu0  ;;  %v9391_v37 = vpop.f32.mrf.mxu1 }
 0x55b   : > { %v15062_v62 = vadd.f32 %v15058_v27, %v7825_v16  ;;  %v7824_v21 = vadd.f32 %v7678_v25, %v14913_v54  ;;  %v7693_v20 = vadd.f32 %v9391_v37, %v7447_v6 }
 0x55c   : > { %v7477_v45 = vpop.f32.mrf.mxu0  ;;  %v7687_v23 = vpop.f32.mrf.mxu1 }
 0x55d   : > { %v8468_v44 = vmul.f32 -1.442695, %v15062_v62  ;;  %v15067_v28 = vadd.f32 %v15058_v27, %v7824_v21  ;;  %v7827_v38 = vadd.f32 %v7693_v20, %v14932_v24  ;;  %v7688_v34 = vadd.f32 %v7687_v23, %v7442_v57 }
 0x55e   : > { %v7479_v17 = vpop.f32.mrf.mxu0  ;;  %v9394_v15 = vpop.f32.mrf.mxu1 }
 0x55f   : > { %9849 = vpow2.f32 %v8468_v44  ;;  %v8467_v32 = vmul.f32 -1.442695, %v15067_v28  ;;  %v15072_v46 = vadd.f32 %v15058_v27, %v7827_v38  ;;  %v7826_v54 = vadd.f32 %v7688_v34, %v14924_v49 }
 0x560   : > { %v7482_v6 = vpop.f32.mrf.mxu0  ;;  %v7703_v16 = vadd.f32 %v9394_v15, %v7457_v1  ;;  %v7697_v25 = vpop.f32.mrf.mxu1 }
 0x561   : > { %9851 = vpow2.f32 %v8467_v32  ;;  %v8470_v35 = vmul.f32 -1.442695, %v15072_v46  ;;  %v15077_v37 = vadd.f32 %v15058_v27, %v7826_v54  ;;  %v7698_v57 = vadd.f32 %v7697_v25, %v7452_v40 }
 0x562   : > { %v7484_v24 = vpop.f32.mrf.mxu0  ;;  %v7829_v21 = vadd.f32 %v7703_v16, %v14941_v29  ;;  %v9397_v20 = vpop.f32.mrf.mxu1 }
 0x563   : > { %9853 = vpow2.f32 %v8470_v35  ;;  %v8469_v23 = vmul.f32 -1.442695, %v15077_v37  ;;  %v7828_v44 = vadd.f32 %v7698_v57, %v14934_v9  ;;  %v7713_v49 = vadd.f32 %v9397_v20, %v7467_v4 }
 0x564   : > { %v15083_v1 = vadd.f32 %v15058_v27, %v7829_v21  ;;  %v7487_v38 = vpop.f32.mrf.mxu0  ;;  %v7707_v34 = vpop.f32.mrf.mxu1 }
 0x565   : > { %9855 = vpow2.f32 %v8469_v23  ;;  %v15086_v17 = vadd.f32 %v15058_v27, %v7828_v44  ;;  %v7831_v40 = vadd.f32 %v7713_v49, %v14950_v7  ;;  %v7708_v15 = vadd.f32 %v7707_v34, %v7462_v2 }
 0x566   : > { %v8472_v29 = vmul.f32 -1.442695, %v15083_v1  ;;  %v7489_v32 = vpop.f32.mrf.mxu0  ;;  %v9400_v54 = vpop.f32.mrf.mxu1 }
 0x567   : > { %v8471_v16 = vmul.f32 -1.442695, %v15086_v17  ;;  %v15092_v9 = vadd.f32 %v15058_v27, %v7831_v40  ;;  %v7830_v4 = vadd.f32 %v7708_v15, %v14945_v22  ;;  %v7723_v25 = vadd.f32 %v9400_v54, %v7477_v45 }
 0x568   : > { %9857 = vpow2.f32 %v8472_v29  ;;  %v7492_v35 = vpop.f32.mrf.mxu0  ;;  %v7717_v57 = vpop.f32.mrf.mxu1 }
 0x569   : > { %9859 = vpow2.f32 %v8471_v16  ;;  %v8474_v24 = vmul.f32 -1.442695, %v15092_v9  ;;  %v15097_v7 = vadd.f32 %v15058_v27, %v7830_v4  ;;  %v7833_v2 = vadd.f32 %v7723_v25, %v14964_v61 }
 0x56a   : > { %v7494_v21 = vpop.f32.mrf.mxu0  ;;  %v7718_v20 = vadd.f32 %v7717_v57, %v7472_v41  ;;  %v9403_v23 = vpop.f32.mrf.mxu1 }
 0x56b   : > { %9861 = vpow2.f32 %v8474_v24  ;;  %v8473_v44 = vmul.f32 -1.442695, %v15097_v7  ;;  %v15102_v22 = vadd.f32 %v15058_v27, %v7833_v2  ;;  %v7733_v45 = vadd.f32 %v9403_v23, %v7487_v38 }
 0x56c   : > { %v9850_v49 = vpop.eup %9849  ;;  %v7497_v34 = vpop.f32.mrf.mxu0  ;;  %v7832_v40 = vadd.f32 %v7718_v20, %v14957_v53 }
 0x56d   : > { %v7727_v15 = vpop.f32.mrf.mxu1  ;;  %v8011_v29 = vadd.f32 1.0, %v9850_v49  ;;  %9863 = vpow2.f32 %v8473_v44  ;;  %v8476_v32 = vmul.f32 -1.442695, %v15102_v22  ;;  %v7835_v61 = vadd.f32 %v7733_v45, %v14978_v36 }
 0x56e   : > { %v9852_v41 = vpop.eup %9851  ;;  %v15108_v54 = vadd.f32 %v15058_v27, %v7832_v40  ;;  %v7499_v16 = vpop.f32.mrf.mxu0  ;;  %v7728_v4 = vadd.f32 %v7727_v15, %v7482_v6 }
 0x56f   : > { %v9406_v25 = vpop.f32.mrf.mxu1  ;;  %9865 = vrcp.f32 %v8011_v29  ;;  %v8010_v38 = vadd.f32 1.0, %v9852_v41  ;;  %v15111_v57 = vadd.f32 %v15058_v27, %v7835_v61 }
 0x570   : > { %v7743_v53 = vadd.f32 %v9406_v25, %v7497_v34  ;;  %v9854_v24 = vpop.eup %9853  ;;  %9867 = vpow2.f32 %v8476_v32  ;;  %v8475_v2 = vmul.f32 -1.442695, %v15108_v54  ;;  %v7502_v21 = vpop.f32.mrf.mxu0  ;;  %v7834_v36 = vadd.f32 %v7728_v4, %v14971_v18 }
 0x571   : > { %v7737_v20 = vpop.f32.mrf.mxu1  ;;  %9869 = vrcp.f32 %v8010_v38  ;;  %v8013_v23 = vadd.f32 1.0, %v9854_v24  ;;  %v8478_v44 = vmul.f32 -1.442695, %v15111_v57 }
 0x572   : > { %v7837_v6 = vadd.f32 %v7743_v53, %v14990_v56  ;;  %v9856_v45 = vpop.eup %9855  ;;  %9871 = vpow2.f32 %v8475_v2  ;;  %v15118_v49 = vadd.f32 %v15058_v27, %v7834_v36  ;;  %v7504_v34 = vpop.f32.mrf.mxu0  ;;  %v7738_v40 = vadd.f32 %v7737_v20, %v7492_v35 }
 0x573   : > { %v9409_v15 = vpop.f32.mrf.mxu1  ;;  %9873 = vrcp.f32 %v8013_v23  ;;  %v8012_v29 = vadd.f32 1.0, %v9856_v45 }
 0x574   : > { %v15121_v32 = vadd.f32 %v15058_v27, %v7837_v6  ;;  %9875 = vpow2.f32 %v8478_v44  ;;  %v8477_v18 = vmul.f32 -1.442695, %v15118_v49  ;;  %v7507_v61 = vpop.f32.mrf.mxu0  ;;  %v7836_v56 = vadd.f32 %v7738_v40, %v14985_v52 }
 0x575   : > { %v7747_v41 = vpop.f32.mrf.mxu1  ;;  %v9858_v16 = vpop.eup %9857  ;;  %9877 = vrcp.f32 %v8012_v29  ;;  %v7753_v25 = vadd.f32 %v9409_v15, %v7507_v61 }
 0x576   : > { %v8480_v4 = vmul.f32 -1.442695, %v15121_v32  ;;  %v7748_v35 = vadd.f32 %v7747_v41, %v7502_v21  ;;  %v9860_v38 = vpop.eup %9859  ;;  %v8015_v53 = vadd.f32 1.0, %v9858_v16  ;;  %9879 = vpow2.f32 %v8477_v18  ;;  %v7509_v2 = vpop.f32.mrf.mxu0 }
 0x577   : > { %v15127_v24 = vadd.f32 %v15058_v27, %v7836_v56  ;;  %v9412_v36 = vpop.f32.mrf.mxu1  ;;  %v8014_v20 = vadd.f32 1.0, %v9860_v38  ;;  %v7839_v52 = vadd.f32 %v7753_v25, %v15001_v0 }
 0x578   : > { %9881 = vpow2.f32 %v8480_v4  ;;  %v7838_v23 = vadd.f32 %v7748_v35, %v14995_v51  ;;  %v9862_v44 = vpop.eup %9861  ;;  %v7512_v6 = vpop.f32.mrf.mxu0 }
 0x579   : > { %9883 = vrcp.f32 %v8015_v53  ;;  %v8479_v21 = vmul.f32 -1.442695, %v15127_v24  ;;  %v7757_v45 = vpop.f32.mrf.mxu1  ;;  %v8017_v34 = vadd.f32 1.0, %v9862_v44  ;;  %v15134_v40 = vadd.f32 %v15058_v27, %v7839_v52 }
 0x57a   : > { %9885 = vrcp.f32 %v8014_v20  ;;  %v15137_v15 = vadd.f32 %v15058_v27, %v7838_v23  ;;  %v9864_v29 = vpop.eup %9863  ;;  %v7514_v51 = vpop.f32.mrf.mxu0  ;;  %v7758_v0 = vadd.f32 %v7757_v45, %v7512_v6  ;;  %v16537_v6 = vld [vmem:[#allocation56_spill] sm:$0xff] }
 0x57b   : > { %9887 = vpow2.f32 %v8479_v21  ;;  %v9415_v18 = vpop.f32.mrf.mxu1  ;;  %v8016_v61 = vadd.f32 1.0, %v9864_v29  ;;  %v8482_v56 = vmul.f32 -1.442695, %v15134_v40 }
 0x57c   : > { %9889 = vrcp.f32 %v8017_v34  ;;  %v8481_v41 = vmul.f32 -1.442695, %v15137_v15  ;;  %v9866_v16 = vpop.eup %9865  ;;  %v7517_v4 = vpop.f32.mrf.mxu0  ;;  %v7840_v25 = vadd.f32 %v7758_v0, %v15006_v12 }
 0x57d   : > { %v9868_v35 = vpop.eup %9867  ;;  %v8119_v38 = vmul.f32 %v9866_v16, %v15062_v62  ;;  %9891 = vrcp.f32 %v8016_v61  ;;  %v7763_v53 = vadd.f32 %v9412_v36, %v7517_v4  ;;  %v7767_v44 = vpop.f32.mrf.mxu1  ;;  %v16538_v61 = vld [vmem:[#allocation62_spill] sm:$0xff] }
 0x57e   : > { %v9870_v2 = vpop.eup %9869  ;;  %v8019_v20 = vadd.f32 1.0, %v9868_v35  ;;  %9893 = vpow2.f32 %v8482_v56  ;;  %v15148_v52 = vadd.f32 %v15058_v27, %v7840_v25  ;;  %v7519_v23 = vpop.f32.mrf.mxu0 }
 0x57f   : > { %v9872_v21 = vpop.eup %9871  ;;  %v8155_v45 = vadd.f32 %v8119_v38, %v16537_v6  ;;  %v8118_v34 = vmul.f32 %v9870_v2, %v15067_v28  ;;  %9895 = vpow2.f32 %v8481_v41  ;;  %v7841_v12 = vadd.f32 %v7763_v53, %v15012_v10  ;;  %v16539_v38 = vld [vmem:[#allocation66_spill] sm:$0xff] }
 0x580   : > { %v9874_v62 = vpop.eup %9873  ;;  %9897 = vrcp.f32 %v8019_v20  ;;  %v8018_v36 = vadd.f32 1.0, %v9872_v21  ;;  %v8483_v29 = vmul.f32 -1.442695, %v15148_v52  ;;  %v7522_v51 = vpop.f32.mrf.mxu0 }
 0x581   : > { %v9876_v0 = vpop.eup %9875  ;;  %8191 = vst [vmem:[%s15155_s15 + $0x48] sm:$0xff] %v8155_v45  ;;  %v8154_v56 = vadd.f32 %v8118_v34, %v16538_v61  ;;  %v8121_v16 = vmul.f32 %v9874_v62, %v15072_v46  ;;  %v15161_v28 = vadd.f32 %v15058_v27, %v7841_v12  ;;  %v7768_v10 = vadd.f32 %v7767_v44, %v7522_v51  ;;  %v9418_v21 = vpop.f32.mrf.mxu1  ;;  %v16540_v34 = vld [vmem:[#allocation67_spill] sm:$0xff] }
 0x582   : > { %v9878_v41 = vpop.eup %9877  ;;  %9899 = vrcp.f32 %v8018_v36  ;;  %v8021_v4 = vadd.f32 1.0, %v9876_v0  ;;  %v7524_v25 = vpop.f32.mrf.mxu0 }
 0x583   : > { %v9880_v35 = vpop.eup %9879  ;;  %8190 = vst [vmem:[%s15155_s15 + $0x40] sm:$0xff] %v8154_v56  ;;  %v8157_v53 = vadd.f32 %v8121_v16, %v16539_v38  ;;  %v8120_v2 = vmul.f32 %v9878_v41, %v15077_v37  ;;  %v8484_v20 = vmul.f32 -1.442695, %v15161_v28  ;;  %9901 = vpow2.f32 %v8483_v29 }
 0x584   : > { %9903 = vrcp.f32 %v8021_v4  ;;  %v8020_v46 = vadd.f32 1.0, %v9880_v35  ;;  %v7842_v44 = vadd.f32 %v7768_v10, %v15018_v39  ;;  %v7527_v6 = vpop.f32.mrf.mxu0  ;;  %v16541_v10 = vld [vmem:[#allocation114_spill] sm:$0xff]  ;;  %v7777_v4 = vpop.f32.mrf.mxu1  ;;  %v16542_v35 = vld [vmem:[#allocation72_spill] sm:$0xff] }
 0x585   : > { %v9882_v23 = vpop.eup %9881  ;;  %8193 = vst [vmem:[%s15155_s15 + $0x58] sm:$0xff] %v8157_v53  ;;  %v8156_v12 = vadd.f32 %v8120_v2, %v16540_v34  ;;  %9905 = vpow2.f32 %v8484_v20  ;;  %v7773_v36 = vadd.f32 %v9415_v18, %v7527_v6 }
 0x586   : > { %v9884_v45 = vpop.eup %9883  ;;  %v8023_v62 = vadd.f32 1.0, %v9882_v23  ;;  %9907 = vrcp.f32 %v8020_v46  ;;  %v15172_v29 = vadd.f32 %v15058_v27, %v7842_v44  ;;  %v7529_v0 = vpop.f32.mrf.mxu0  ;;  %v16543_v46 = vld [vmem:[#allocation76_spill] sm:$0xff] }
 0x587   : > { %v9886_v51 = vpop.eup %9885  ;;  %v8123_v37 = vmul.f32 %v9884_v45, %v15083_v1  ;;  %8192 = vst [vmem:[%s15155_s15 + $0x50] sm:$0xff] %v8156_v12  ;;  %v7843_v56 = vadd.f32 %v7773_v36, %v15024_v55  ;;  %v9421_v12 = vpop.f32.mrf.mxu1 }
 0x588   : > { %v9888_v61 = vpop.eup %9887  ;;  %v8122_v39 = vmul.f32 %v9886_v51, %v15086_v17  ;;  %9909 = vrcp.f32 %v8023_v62  ;;  %v8485_v1 = vmul.f32 -1.442695, %v15172_v29  ;;  %v7532_v25 = vpop.f32.mrf.mxu0 }
 0x589   : > { %v9890_v16 = vpop.eup %9889  ;;  %v8159_v18 = vadd.f32 %v16541_v10, %v8123_v37  ;;  %v8022_v41 = vadd.f32 1.0, %v9888_v61  ;;  %v15182_v2 = vadd.f32 %v15058_v27, %v7843_v56  ;;  %v7778_v17 = vadd.f32 %v7777_v4, %v7532_v25  ;;  %v16544_v37 = vld [vmem:[#allocation78_spill] sm:$0xff]  ;;  %v7787_v25 = vpop.f32.mrf.mxu1 }
 0x58a   : > { %v8158_v38 = vadd.f32 %v8122_v39, %v16542_v35  ;;  %v8125_v53 = vmul.f32 %v9890_v16, %v15092_v9  ;;  %v9892_v20 = vpop.eup %9891  ;;  %v7534_v55 = vpop.f32.mrf.mxu0 }
 0x58b   : > { %8195 = vst [vmem:[%s15155_s15 + $0x68] sm:$0xff] %v8159_v18  ;;  %9911 = vrcp.f32 %v8022_v41  ;;  %v9894_v23 = vpop.eup %9893  ;;  %v8124_v6 = vmul.f32 %v9892_v20, %v15097_v7  ;;  %v8486_v45 = vmul.f32 -1.442695, %v15182_v2  ;;  %v7844_v62 = vadd.f32 %v7778_v17, %v15028_v42  ;;  %v16545_v41 = vld [vmem:[#allocation37_spill] sm:$0xff]  ;;  %v16546_v55 = vld [vmem:[#allocation40_spill] sm:$0xff] }
 0x58c   : > { %8194 = vst [vmem:[%s15155_s15 + $0x60] sm:$0xff] %v8158_v38  ;;  %v8161_v44 = vadd.f32 %v8125_v53, %v16543_v46  ;;  %9913 = vpow2.f32 %v8485_v1  ;;  %v9896_v34 = vpop.eup %9895  ;;  %v8025_v9 = vadd.f32 1.0, %v9894_v23  ;;  %v7537_v36 = vpop.f32.mrf.mxu0 }
 0x58d   : > { %v9898_v51 = vpop.eup %9897  ;;  %v8160_v0 = vadd.f32 %v8124_v6, %v16544_v37  ;;  %v8024_v61 = vadd.f32 1.0, %v9896_v34  ;;  %9915 = vpow2.f32 %v8486_v45  ;;  %v7783_v39 = vadd.f32 %v9418_v21, %v7537_v36 }
 0x58e   : > { %8197 = vst [vmem:[%s15155_s15 + $0x78] sm:$0xff] %v8161_v44  ;;  %v8127_v56 = vmul.f32 %v9898_v51, %v15102_v22  ;;  %9917 = vrcp.f32 %v8025_v9  ;;  %v15194_v7 = vadd.f32 %v15058_v27, %v7844_v62  ;;  %v7539_v16 = vpop.f32.mrf.mxu0  ;;  %v16547_v9 = vld [vmem:[#allocation45_spill] sm:$0xff]  ;;  %v9424_v51 = vpop.f32.mrf.mxu1 }
 0x58f   : > { %v9900_v10 = vpop.eup %9899  ;;  %8196 = vst [vmem:[%s15155_s15 + $0x70] sm:$0xff] %v8160_v0  ;;  %9919 = vrcp.f32 %v8024_v61  ;;  %v7845_v42 = vadd.f32 %v7783_v39, %v15032_v30  ;;  %v16548_v39 = vld [vmem:[#allocation44_spill] sm:$0xff] }
 0x590   : > { %v9902_v18 = vpop.eup %9901  ;;  %v8163_v1 = vadd.f32 %v8127_v56, %v16545_v41  ;;  %v8126_v4 = vmul.f32 %v9900_v10, %v15108_v54  ;;  %v8487_v21 = vmul.f32 -1.442695, %v15194_v7  ;;  %v7542_v22 = vpop.f32.mrf.mxu0  ;;  %v16549_v10 = vld [vmem:[#allocation50_spill] sm:$0xff] }
 0x591   : > { %v9904_v35 = vpop.eup %9903  ;;  %v8026_v38 = vadd.f32 1.0, %v9902_v18  ;;  %v15202_v53 = vadd.f32 %v15058_v27, %v7845_v42  ;;  %v7788_v17 = vadd.f32 %v7787_v25, %v7542_v22 }
 0x592   : > { %v9906_v20 = vpop.eup %9905  ;;  %8199 = vst [vmem:[%s15155_s15 + $0x88] sm:$0xff] %v8163_v1  ;;  %v8162_v30 = vadd.f32 %v8126_v4, %v16546_v55  ;;  %v8129_v23 = vmul.f32 %v9904_v35, %v15111_v57  ;;  %9921 = vpow2.f32 %v8487_v21  ;;  %v7544_v46 = vpop.f32.mrf.mxu0  ;;  %v16550_v35 = vld [vmem:[#allocation51_spill] sm:$0xff] }
 0x593   : > { %v9908_v54 = vpop.eup %9907  ;;  %v8027_v44 = vadd.f32 1.0, %v9906_v20  ;;  %9923 = vrcp.f32 %v8026_v38  ;;  %v8488_v6 = vmul.f32 -1.442695, %v15202_v53  ;;  %v7846_v45 = vadd.f32 %v7788_v17, %v15036_v5  ;;  %v7797_v1 = vpop.f32.mrf.mxu1 }
 0x594   : > { %8198 = vst [vmem:[%s15155_s15 + $0x80] sm:$0xff] %v8162_v30  ;;  %v8165_v62 = vadd.f32 %v8129_v23, %v16547_v9  ;;  %v8128_v36 = vmul.f32 %v9908_v54, %v15118_v49  ;;  %v7547_v37 = vpop.f32.mrf.mxu0 }
 0x595   : > { %v9910_v34 = vpop.eup %9909  ;;  %9925 = vrcp.f32 %v8027_v44  ;;  %v15214_v0 = vadd.f32 %v15058_v27, %v7846_v45  ;;  %v7793_v61 = vadd.f32 %v9421_v12, %v7547_v37  ;;  %v9427_v20 = vpop.f32.mrf.mxu1  ;;  %v16552_v37 = vld [vmem:[#allocation55_spill] sm:$0xff] }
 0x596   : > { %v8131_v57 = vmul.f32 %v9910_v34, %v15121_v32  ;;  %8201 = vst [vmem:[%s15155_s15 + $0x98] sm:$0xff] %v8165_v62  ;;  %v8164_v5 = vadd.f32 %v8128_v36, %v16548_v39  ;;  %9927 = vpow2.f32 %v8488_v6  ;;  %v7549_v56 = vpop.f32.mrf.mxu0  ;;  %v16551_v34 = vld [vmem:[#allocation53_spill] sm:$0xff] }
 0x597   : > { %v8489_v49 = vmul.f32 -1.442695, %v15214_v0  ;;  %v7847_v18 = vadd.f32 %v7793_v61, %v15040_v13  ;;  %v7807_v36 = vpop.f32.mrf.mxu1 }
 0x598   : > { %v9912_v16 = vpop.eup %9911  ;;  %v8167_v42 = vadd.f32 %v8131_v57, %v16549_v10  ;;  %8200 = vst [vmem:[%s15155_s15 + $0x90] sm:$0xff] %v8164_v5  ;;  %v7552_v4 = vpop.f32.mrf.mxu0 }
 0x599   : > { %v9914_v41 = vpop.eup %9913  ;;  %v8130_v32 = vmul.f32 %v9912_v16, %v15127_v24  ;;  %9929 = vpow2.f32 %v8489_v49  ;;  %v15225_v21 = vadd.f32 %v15058_v27, %v7847_v18  ;;  %v7798_v25 = vadd.f32 %v7797_v1, %v7552_v4  ;;  %v16553_v18 = vld [vmem:[#allocation65_spill] sm:$0xff] }
 0x59a   : > { %8203 = vst [vmem:[%s15155_s15 + $0xa8] sm:$0xff] %v8167_v42  ;;  %v8028_v12 = vadd.f32 1.0, %v9914_v41  ;;  %v9916_v22 = vpop.eup %9915  ;;  %v7554_v17 = vpop.f32.mrf.mxu0 }
 0x59b   : > { %v8166_v38 = vadd.f32 %v8130_v32, %v16550_v35  ;;  %v9918_v13 = vpop.eup %9917  ;;  %v8029_v55 = vadd.f32 1.0, %v9916_v22  ;;  %v8490_v24 = vmul.f32 -1.442695, %v15225_v21  ;;  %v7848_v30 = vadd.f32 %v7798_v25, %v15044_v31 }
 0x59c   : > { %9931 = vrcp.f32 %v8028_v12  ;;  %v9920_v23 = vpop.eup %9919  ;;  %v8133_v46 = vmul.f32 %v9918_v13, %v15134_v40  ;;  %v7557_v54 = vpop.f32.mrf.mxu0  ;;  %v16554_v12 = vld [vmem:[#allocation58_spill] sm:$0xff] }
 0x59d   : > { %8202 = vst [vmem:[%s15155_s15 + $0xa0] sm:$0xff] %v8166_v38  ;;  %v8132_v44 = vmul.f32 %v9920_v23, %v15137_v15  ;;  %9933 = vrcp.f32 %v8029_v55  ;;  %v15234_v6 = vadd.f32 %v15058_v27, %v7848_v30  ;;  %v7803_v45 = vadd.f32 %v9424_v51, %v7557_v54 }
 0x59e   : > { %v8169_v9 = vadd.f32 %v8133_v46, %v16551_v34  ;;  %9935 = vpow2.f32 %v8490_v24  ;;  %v7559_v62 = vpop.f32.mrf.mxu0 }
 0x59f   : > { %v9922_v31 = vpop.eup %9921  ;;  %v8168_v57 = vadd.f32 %v8132_v44, %v16552_v37  ;;  %v8491_v61 = vmul.f32 -1.442695, %v15234_v6  ;;  %v7849_v40 = vadd.f32 %v7803_v45, %v15048_v63  ;;  %v16555_v45 = vld [vmem:[#allocation68_spill] sm:$0xff]  ;;  %v16556_v37 = vld [vmem:[#allocation71_spill] sm:$0xff] }
 0x5a0   : > { %v9924_v39 = vpop.eup %9923  ;;  %8205 = vst [vmem:[%s15155_s15 + $0xb8] sm:$0xff] %v8169_v9  ;;  %v8030_v15 = vadd.f32 1.0, %v9922_v31  ;;  %v7562_v5 = vpop.f32.mrf.mxu0 }
 0x5a1   : > { %8204 = vst [vmem:[%s15155_s15 + $0xb0] sm:$0xff] %v8168_v57  ;;  %v8134_v51 = vmul.f32 %v9924_v39, %v15148_v52  ;;  %9937 = vpow2.f32 %v8491_v61  ;;  %v15244_v56 = vadd.f32 %v15058_v27, %v7849_v40  ;;  %v7808_v16 = vadd.f32 %v7807_v36, %v7562_v5 }
 0x5a2   : > { %v9926_v10 = vpop.eup %9925  ;;  %9939 = vrcp.f32 %v8030_v15  ;;  %v7564_v42 = vpop.f32.mrf.mxu0 }
 0x5a3   : > { %v9928_v49 = vpop.eup %9927  ;;  %v8135_v63 = vmul.f32 %v9926_v10, %v15161_v28  ;;  %v8170_v41 = vadd.f32 %v8134_v51, %v16553_v18  ;;  %v8492_v32 = vmul.f32 -1.442695, %v15244_v56  ;;  %v7850_v1 = vadd.f32 %v7808_v16, %v15052_v43  ;;  %v16557_v18 = vld [vmem:[#allocation75_spill] sm:$0xff] }
 0x5a4   : > { %v8031_v4 = vadd.f32 1.0, %v9928_v49  ;;  %v7567_v52 = vpop.f32.mrf.mxu0 }
 0x5a5   : > { %v8171_v25 = vadd.f32 %v8135_v63, %v16554_v12  ;;  %8206 = vst [vmem:[%s15155_s15 + $0xc0] sm:$0xff] %v8170_v41  ;;  %9941 = vpow2.f32 %v8492_v32  ;;  %v15253_v22 = vadd.f32 %v15058_v27, %v7850_v1  ;;  %v7813_v35 = vadd.f32 %v9427_v20, %v7567_v52 }
 0x5a6   : > { %v9930_v38 = vpop.eup %9929  ;;  %9943 = vrcp.f32 %v8031_v4  ;;  %v7569_v17 = vpop.f32.mrf.mxu0 }
 0x5a7   : > { %8207 = vst [vmem:[%s15155_s15 + $0xc8] sm:$0xff] %v8171_v25  ;;  %v8032_v28 = vadd.f32 1.0, %v9930_v38  ;;  %v8493_v13 = vmul.f32 -1.442695, %v15253_v22  ;;  %v7851_v55 = vadd.f32 %v7813_v35, %v15056_v59 }
 0x5a8   : > { %v9376_v24 = vpop.f32.mrf.mxu0 }
 0x5a9   : > { %v9932_v43 = vpop.eup %9931  ;;  %9945 = vrcp.f32 %v8032_v28  ;;  %v15260_v23 = vadd.f32 %v15058_v27, %v7851_v55  ;;  %v7643_v20 = vadd.f32 %v9376_v24, %v14988_v14  ;;  %v16558_v28 = vld [vmem:[#allocation77_spill] sm:$0xff] }
 0x5aa   : > { %v8136_v30 = vmul.f32 %v9932_v43, %v15172_v29  ;;  %v9934_v46 = vpop.eup %9933  ;;  %9947 = vpow2.f32 %v8493_v13  ;;  %v7637_v54 = vpop.f32.mrf.mxu0 }
 0x5ab   : > { %v9936_v44 = vpop.eup %9935  ;;  %v8137_v9 = vmul.f32 %v9934_v46, %v15182_v2  ;;  %v8494_v59 = vmul.f32 -1.442695, %v15260_v23  ;;  %v7817_v62 = vadd.f32 %v7643_v20, %v14872_v33  ;;  %v7638_v36 = vadd.f32 %v7637_v54, %v14983_v58  ;;  %v16561_v54 = vld [vmem:[#allocation94_spill] sm:$0xff] }
 0x5ac   : > { %v8172_v34 = vadd.f32 %v8136_v30, %v16555_v45  ;;  %v8033_v29 = vadd.f32 1.0, %v9936_v44  ;;  %v9379_v31 = vpop.f32.mrf.mxu0  ;;  %v16560_v30 = vld [vmem:[#allocation39_spill] sm:$0xff]  ;;  %v16562_v45 = vld [vmem:[#allocation80_spill] sm:$0xff] }
 0x5ad   : > { %v8173_v14 = vadd.f32 %v8137_v9, %v16556_v37  ;;  %9949 = vpow2.f32 %v8494_v59  ;;  %v15271_v57 = vadd.f32 %v15058_v27, %v7817_v62  ;;  %v7653_v61 = vadd.f32 %v9379_v31, %v14998_v26  ;;  %v16563_v62 = vld [vmem:[#allocation107_spill] sm:$0xff] }
 0x5ae   : > { %8208 = vst [vmem:[%s15155_s15 + $0xd0] sm:$0xff] %v8172_v34  ;;  %v9938_v40 = vpop.eup %9937  ;;  %9951 = vrcp.f32 %v8033_v29  ;;  %v7816_v2 = vadd.f32 %v7638_v36, %v14874_v47  ;;  %v7647_v39 = vpop.f32.mrf.mxu0 }
 0x5af   : > { %v9940_v15 = vpop.eup %9939  ;;  %8209 = vst [vmem:[%s15155_s15 + $0xd8] sm:$0xff] %v8173_v14  ;;  %v8034_v33 = vadd.f32 1.0, %v9938_v40  ;;  %v8460_v58 = vmul.f32 -1.442695, %v15271_v57  ;;  %v7819_v5 = vadd.f32 %v7653_v61, %v14881_v3  ;;  %v7648_v51 = vadd.f32 %v7647_v39, %v14993_v50 }
 0x5b0   : > { %v8138_v16 = vmul.f32 %v9940_v15, %v15194_v7  ;;  %v15281_v10 = vadd.f32 %v15058_v27, %v7816_v2  ;;  %v9382_v26 = vpop.f32.mrf.mxu0  ;;  %v16564_v2 = vld [vmem:[#allocation81_spill] sm:$0xff] }
 0x5b1   : > { %9953 = vrcp.f32 %v8034_v33  ;;  %v15284_v47 = vadd.f32 %v15058_v27, %v7819_v5  ;;  %v7818_v42 = vadd.f32 %v7648_v51, %v14883_v19  ;;  %v7663_v49 = vadd.f32 %v9382_v26, %v15009_v11 }
 0x5b2   : > { %v9942_v63 = vpop.eup %9941  ;;  %v8174_v3 = vadd.f32 %v8138_v16, %v16557_v18  ;;  %9955 = vpow2.f32 %v8460_v58  ;;  %v8459_v50 = vmul.f32 -1.442695, %v15281_v10  ;;  %v7657_v7 = vpop.f32.mrf.mxu0 }
 0x5b3   : > { %v9944_v41 = vpop.eup %9943  ;;  %v8035_v32 = vadd.f32 1.0, %v9942_v63  ;;  %v8462_v1 = vmul.f32 -1.442695, %v15284_v47  ;;  %v15292_v4 = vadd.f32 %v15058_v27, %v7818_v42  ;;  %v7821_v52 = vadd.f32 %v7663_v49, %v14894_v60  ;;  %v16559_v60 = vld [vmem:[#allocation41_spill] sm:$0xff] }
 0x5b4   : > { %8210 = vst [vmem:[%s15155_s15 + $0xe0] sm:$0xff] %v8174_v3  ;;  %v8139_v19 = vmul.f32 %v9944_v41, %v15202_v53  ;;  %9957 = vpow2.f32 %v8459_v50  ;;  %v7658_v11 = vadd.f32 %v7657_v7, %v15004_v48  ;;  %v9385_v12 = vpop.f32.mrf.mxu0  ;;  %v16566_v3 = vld [vmem:[#allocation83_spill] sm:$0xff] }
 0x5b5   : > { %9959 = vrcp.f32 %v8035_v32  ;;  %v8461_v25 = vmul.f32 -1.442695, %v15292_v4  ;;  %v15300_v35 = vadd.f32 %v15058_v27, %v7821_v52  ;;  %v7673_v38 = vadd.f32 %v9385_v12, %v15021_v8 }
 0x5b6   : > { %v9946_v17 = vpop.eup %9945  ;;  %v8175_v13 = vadd.f32 %v8139_v19, %v16558_v28  ;;  %9961 = vpow2.f32 %v8462_v1  ;;  %v7820_v55 = vadd.f32 %v7658_v11, %v16559_v60  ;;  %v7667_v53 = vpop.f32.mrf.mxu0 }
 0x5b7   : > { %v9948_v43 = vpop.eup %9947  ;;  %v8140_v48 = vmul.f32 %v9946_v17, %v15214_v0  ;;  %9963 = vpow2.f32 %v8461_v25  ;;  %v8464_v24 = vmul.f32 -1.442695, %v15300_v35  ;;  %v7823_v20 = vadd.f32 %v7673_v38, %v16560_v30 }
 0x5b8   : > { %8211 = vst [vmem:[%s15155_s15 + $0xe8] sm:$0xff] %v8175_v13  ;;  %v8036_v46 = vadd.f32 1.0, %v9948_v43  ;;  %v15310_v8 = vadd.f32 %v15058_v27, %v7820_v55  ;;  %v7668_v44 = vadd.f32 %v7667_v53, %v16561_v54  ;;  %v16568_v13 = vld [vmem:[#allocation88_spill] sm:$0xff] }
 0x5b9   : > { %v8176_v34 = vadd.f32 %v8140_v48, %v16562_v45  ;;  %9965 = vpow2.f32 %v8464_v24  ;;  %v15315_v9 = vadd.f32 %v15058_v27, %v7823_v20  ;;  %v16569_v48 = vld [vmem:[#allocation36_spill] sm:$0xff] }
 0x5ba   : > { %v9950_v0 = vpop.eup %9949  ;;  %9967 = vrcp.f32 %v8036_v46  ;;  %v8463_v59 = vmul.f32 -1.442695, %v15310_v8  ;;  %v7822_v29 = vadd.f32 %v7668_v44, %v16563_v62  ;;  %v16570_v46 = vld [vmem:[#allocation38_spill] sm:$0xff] }
 0x5bb   : > { %v9952_v36 = vpop.eup %9951  ;;  %8212 = vst [vmem:[%s15155_s15 + $0xf0] sm:$0xff] %v8176_v34  ;;  %v8037_v31 = vadd.f32 1.0, %v9950_v0  ;;  %v8466_v37 = vmul.f32 -1.442695, %v15315_v9  ;;  %v16571_v34 = vld [vmem:[#allocation42_spill] sm:$0xff] }
 0x5bc   : > { %v8141_v14 = vmul.f32 %v9952_v36, %v15225_v21  ;;  %9969 = vpow2.f32 %v8463_v59  ;;  %v15323_v61 = vadd.f32 %v15058_v27, %v7822_v29  ;;  %v16565_v21 = vld [vmem:[#allocation82_spill] sm:$0xff]  ;;  %v16572_v59 = vld [vmem:[#allocation43_spill] sm:$0xff]  ;;  %v16573_v36 = vld [vmem:[#allocation48_spill] sm:$0xff] }
 0x5bd   : > { %9971 = vrcp.f32 %v8037_v31 }
 0x5be   : > { %v9954_v40 = vpop.eup %9953  ;;  %v8177_v39 = vadd.f32 %v8141_v14, %v16564_v2  ;;  %9973 = vpow2.f32 %v8466_v37  ;;  %v8465_v15 = vmul.f32 -1.442695, %v15323_v61  ;;  %v16574_v37 = vld [vmem:[#allocation49_spill] sm:$0xff] }
 0x5bf   : > { %v9956_v33 = vpop.eup %9955  ;;  %v8142_v58 = vmul.f32 %v9954_v40, %v15234_v6 }
 0x5c0   : > { %8213 = vst [vmem:[%s15155_s15 + $0xf8] sm:$0xff] %v8177_v39  ;;  %v8003_v5 = vadd.f32 1.0, %v9956_v33  ;;  %9975 = vpow2.f32 %v8465_v15 }
 0x5c1   : > { %v9958_v51 = vpop.eup %9957  ;;  %v8178_v16 = vadd.f32 %v8142_v58, %v16565_v21 }
 0x5c2   : > { %v9960_v27 = vpop.eup %9959  ;;  %9977 = vrcp.f32 %v8003_v5  ;;  %v8002_v26 = vadd.f32 1.0, %v9958_v51 }
 0x5c3   : > { %v9962_v42 = vpop.eup %9961  ;;  %8214 = vst [vmem:[%s15155_s15 + $0x100] sm:$0xff] %v8178_v16  ;;  %v8143_v49 = vmul.f32 %v9960_v27, %v15244_v56  ;;  %v16567_v56 = vld [vmem:[#allocation90_spill] sm:$0xff] }
 0x5c4   : > { %v9964_v63 = vpop.eup %9963  ;;  %9979 = vrcp.f32 %v8002_v26  ;;  %v8005_v18 = vadd.f32 1.0, %v9962_v42 }
 0x5c5   : > { %v8179_v50 = vadd.f32 %v8143_v49, %v16566_v3  ;;  %v8004_v6 = vadd.f32 1.0, %v9964_v63 }
 0x5c6   : > { %v9966_v7 = vpop.eup %9965  ;;  %9981 = vrcp.f32 %v8005_v18 }
 0x5c7   : > { %v9968_v41 = vpop.eup %9967  ;;  %8215 = vst [vmem:[%s15155_s15 + $0x108] sm:$0xff] %v8179_v50  ;;  %9983 = vrcp.f32 %v8004_v6  ;;  %v8007_v32 = vadd.f32 1.0, %v9966_v7 }
 0x5c8   : > { %v8144_v1 = vmul.f32 %v9968_v41, %v15253_v22 }
 0x5c9   : > { %v9970_v52 = vpop.eup %9969  ;;  %9985 = vrcp.f32 %v8007_v32 }
 0x5ca   : > { %v9972_v19 = vpop.eup %9971  ;;  %v8180_v11 = vadd.f32 %v8144_v1, %v16567_v56  ;;  %v8006_v12 = vadd.f32 1.0, %v9970_v52 }
 0x5cb   : > { %v9974_v25 = vpop.eup %9973  ;;  %v8145_v38 = vmul.f32 %v9972_v19, %v15260_v23 }
 0x5cc   : > { %8216 = vst [vmem:[%s15155_s15 + $0x110] sm:$0xff] %v8180_v11  ;;  %9987 = vrcp.f32 %v8006_v12  ;;  %v8009_v17 = vadd.f32 1.0, %v9974_v25 }
 0x5cd   : > { %v9976_v28 = vpop.eup %9975  ;;  %v8181_v60 = vadd.f32 %v8145_v38, %v16568_v13 }
 0x5ce   : > { %9989 = vrcp.f32 %v8009_v17  ;;  %v8008_v22 = vadd.f32 1.0, %v9976_v28 }
 0x5cf   : > { %v9978_v55 = vpop.eup %9977  ;;  %8217 = vst [vmem:[%s15155_s15 + $0x118] sm:$0xff] %v8181_v60 }
 0x5d0   : > { %v8111_v53 = vmul.f32 %v9978_v55, %v15271_v57  ;;  %9991 = vrcp.f32 %v8008_v22 }
 0x5d1   : > { %v9980_v43 = vpop.eup %9979 }
 0x5d2   : > { %v8147_v23 = vadd.f32 %v8111_v53, %v16569_v48  ;;  %v8110_v24 = vmul.f32 %v9980_v43, %v15281_v10 }
 0x5d3   : > { %v9982_v30 = vpop.eup %9981 }
 0x5d4   : > { %v9984_v20 = vpop.eup %9983  ;;  %8183 = vst [vmem:[%s15155_s15 + $0x8] sm:$0xff] %v8147_v23  ;;  %v8146_v54 = vadd.f32 %v8110_v24, %v16570_v46  ;;  %v8113_v44 = vmul.f32 %v9982_v30, %v15284_v47 }
 0x5d5   : > { %v8112_v45 = vmul.f32 %v9984_v20, %v15292_v4 }
 0x5d6   : > { %v9986_v57 = vpop.eup %9985  ;;  %8182 = vst [vmem:[%s15155_s15] sm:$0xff] %v8146_v54  ;;  %v8149_v0 = vadd.f32 %v8113_v44, %v16571_v34 }
 0x5d7   : > { %v8148_v62 = vadd.f32 %v8112_v45, %v16572_v59  ;;  %v8115_v10 = vmul.f32 %v9986_v57, %v15300_v35  ;;  %v16575_v35 = vld [vmem:[#allocation52_spill] sm:$0xff] }
 0x5d8   : > { %8185 = vst [vmem:[%s15155_s15 + $0x18] sm:$0xff] %v8149_v0 }
 0x5d9   : > { %v9988_v29 = vpop.eup %9987  ;;  %8184 = vst [vmem:[%s15155_s15 + $0x10] sm:$0xff] %v8148_v62  ;;  %v8151_v31 = vadd.f32 %v8115_v10, %v16573_v36 }
 0x5da   : > { %v8114_v47 = vmul.f32 %v9988_v29, %v15310_v8  ;;  %v16576_v8 = vld [vmem:[#allocation54_spill] sm:$0xff] }
 0x5db   : > { %v9990_v4 = vpop.eup %9989  ;;  %8187 = vst [vmem:[%s15155_s15 + $0x28] sm:$0xff] %v8151_v31 }
 0x5dc   : > { %v8150_v14 = vadd.f32 %v8114_v47, %v16574_v37  ;;  %v8117_v40 = vmul.f32 %v9990_v4, %v15315_v9 }
 0x5dd   : > { %v9992_v2 = vpop.eup %9991 }
 0x5de   : > { %8186 = vst [vmem:[%s15155_s15 + $0x20] sm:$0xff] %v8150_v14  ;;  %v8153_v39 = vadd.f32 %v8117_v40, %v16575_v35  ;;  %v8116_v15 = vmul.f32 %v9992_v2, %v15323_v61 }
 0x5e0   : > { %8189 = vst [vmem:[%s15155_s15 + $0x38] sm:$0xff] %v8153_v39  ;;  %v8152_v33 = vadd.f32 %v8116_v15, %v16576_v8 }
 0x5e2   : > { %8188 = vst [vmem:[%s15155_s15 + $0x30] sm:$0xff] %v8152_v33 }
 0x5e3   : > { %10215 = shalt.err (!%p10212_p13)
}
 0x5e4   : > { %s10216_s14 = scalar_lea.hbm %s15366_s20, 4608  ;;  %s10220_s29 = scalar_lea.hbm %s15421_s6, 9216 }
 0x5e5   : > { %p10217_p9 = scmp.ne.s32.totalorder %s15366_s20, %s10216_s14  ;;  %p10221_p12 = scmp.lt.s32.totalorder %s15366_s20, %s15421_s6 }
 0x5e6   : > { %p10222_p10 = scmp.lt.s32.totalorder %s10220_s29, %s10216_s14 }
 0x5e7   : > { %p10218_p4 = pnand %p10217_p9, %p10362_p5 }
 0x5e8   : > { %p10223_p8 = por %p10222_p10, %p10221_p12 }
 0x5e9   : > { %p10219_p7 = pneg %p10218_p4 }
 0x5eb   : > { %p10224_p11 = pnand %p10223_p8, %p10219_p7 }
 0x5ed   : > { %10227 = shalt.err (!%p10224_p11)
}
 0x5ee   : > { %s10287_s17 = smov 128   ;;  %s10288_s18 = smov 8  }
 0x5ef   : > { %9487 = dma.vmem_to_hbm [thread:$0]  (%p10362_p5), %s15370_s13, 4608, %s15366_s20, %s15375_s25, %s10287_s17, %s10287_s17, %s10288_s18  }
 0x5f0 PF: > { %p9514_p3 = scmp.ge.s32.totalorder %s10274_s24, 2  ;;  %s8247_s19 = sand.u32 1, %s10262_s21  }
 0x5f1   : > { %s8248_s26 = scalar_lea.sflag [#allocation5], %s8247_s19 }
 0x5f2   : > { %p9503_p0 = pnand %p9514_p3, %p10366_p6 }
 0x5f4   : > { %p9504_p1 = pneg %p9503_p0 }
 0x5f6   : > { %10257 = dma.done.wait (%p9504_p1), %s8248_s26, 4608  }
 0x5f7   : > { %10259 = vsyncadd (%p9504_p1), %s8248_s26, 4294962688  ;;  %p19_p2 = scmp.ge.s32.totalorder %s10349_s27, 4   ;;  %s16577_s21 = smov %s10266_s22 }
 0x5f8   : > { %s16578_s22 = smov %s10270_s23  ;;  %s16579_s23 = smov %s10360_s30 }
 0x5f9   : > { %s16580_s24 = smov %s10349_s27  ;;  %21 = sbr.rel (!%p19_p2) target bundleno = 6 (0x6), region = 102 }
 0x5fe   :  { %8253 = vsyncpa [#allocation4], 1 }
 0x5ff   :  { %8255 = vsyncpa [#allocation4 + $0x1], 1 }
 0x600   :  { %8256 = vsyncpa [#allocation7], 1 }
 0x601   :  { %8257 = vsyncpa [#allocation10], 1 }
 0x602   :  { %8258 = vsyncpa [#allocation5], 1 }
 0x603   :  { %8260 = vsyncpa [#allocation5 + $0x1], 1 }

</bundles_post_ra>
